<compile_context>
chip_gen: v5e
topology: v5e:2x2
jax: 0.10.0
libtpu: 0.0.40
codegen_flags: <defaults>
</compile_context>

<pallas_src>
import numpy as np
import jax
import jax.numpy as jnp
from jax import lax
from jax.experimental import pallas as pl
from jax.experimental.pallas import tpu as pltpu


# ----------------------------------------------------------------------------
# Pallas kernel
# ----------------------------------------------------------------------------
def _encoder_kernel(x_ref, xr_ref, mask_ref,
                    wihf_ref, wihb_ref, bihf_ref, bihb_ref,
                    whh_ref, bhh_ref, wfc_ref, bfc_ref,
                    outf_ref, outb_ref, hid_ref,
                    h_scr, gi_scr):
    T, B, H = outf_ref.shape
    H2, H4, H6 = 2 * H, 4 * H, 6 * H

    # ---- Phase 1: hoisted input projection (bulk MXU work, off the serial path)
    # bf16 operands feed the MXU at full rate; accumulation stays f32.
    gf = (jnp.dot(x_ref[...], wihf_ref[...], preferred_element_type=jnp.float32)
          + bihf_ref[...])                                # (T*B, 3H)  [r_f|z_f|n_f]
    gb = (jnp.dot(xr_ref[...], wihb_ref[...], preferred_element_type=jnp.float32)
          + bihb_ref[...])                                # (T*B, 3H)  time-reversed bwd
    # Interleave the two directions so the per-step gate math is fully fused:
    # gi columns = [r_f | r_b | z_f | z_b | n_f | n_b]; row block i holds forward
    # time i and backward time T-1-i.  Slices are lane-dense when H % 128 == 0,
    # and this copy runs once (bulk), not per timestep.
    gi_scr[:, 0 * H:1 * H] = gf[:, 0 * H:1 * H]
    gi_scr[:, 1 * H:2 * H] = gb[:, 0 * H:1 * H]
    gi_scr[:, 2 * H:3 * H] = gf[:, 1 * H:2 * H]
    gi_scr[:, 3 * H:4 * H] = gb[:, 1 * H:2 * H]
    gi_scr[:, 4 * H:5 * H] = gf[:, 2 * H:3 * H]
    gi_scr[:, 5 * H:6 * H] = gb[:, 2 * H:3 * H]

    # ---- hoisted loop invariants (JAX does not CSE broadcast_in_dim in loops)
    whh = whh_ref[...]                                    # (2H, 6H) block-structured
    bhh_b = jnp.broadcast_to(bhh_ref[...], (B, H6))       # (B, 6H)
    h_scr[...] = jnp.zeros_like(h_scr)                    # fused state [hf | hb]

    # ---- Phase 2: fused fwd/bwd recurrence (iteration i does t=i and t=T-1-i)
    def step(i, carry):
        tf = i
        tb = T - 1 - i
        h_cat = h_scr[...]                                               # (B, 2H)
        gh = jnp.dot(h_cat, whh, preferred_element_type=jnp.float32) + bhh_b
        base = pl.multiple_of(i * B, 8)                  # 8-aligned sublane start
        gi = gi_scr[pl.ds(base, B), :]                                   # (B, 6H)

        s = jax.nn.sigmoid(gi[:, 0:H4] + gh[:, 0:H4])    # ONE sigmoid: [r_f r_b z_f z_b]
        r = s[:, 0:H2]
        z = s[:, H2:H4]
        n = jnp.tanh(gi[:, H4:H6] + r * gh[:, H4:H6])    # ONE tanh:    [n_f n_b]
        h_new = n + z * (h_cat - n)                      # == (1-z)*n + z*h

        m_f = mask_ref[tf] != 0.0                                        # (B, 1)
        m_b = mask_ref[tb] != 0.0
        hf_new = h_new[:, 0:H]
        hb_new = h_new[:, H:H2]
        # pack_padded_sequence semantics: padded steps -> output 0, state frozen
        outf_ref[tf] = jnp.where(m_f, hf_new, 0.0).astype(outf_ref.dtype)
        outb_ref[tb] = jnp.where(m_b, hb_new, 0.0).astype(outb_ref.dtype)
        h_scr[:, 0:H] = jnp.where(m_f, hf_new, h_cat[:, 0:H])
        h_scr[:, H:H2] = jnp.where(m_b, hb_new, h_cat[:, H:H2])
        return carry

    lax.fori_loop(0, T, step, 0, unroll=(True if T <= 16 else 8))

    # ---- Phase 3: hidden = tanh([hf | hb] @ W_fc + b_fc)
    hid = jnp.tanh(jnp.dot(h_scr[...], wfc_ref[...],
                           preferred_element_type=jnp.float32) + bfc_ref[...])
    hid_ref[...] = hid.astype(hid_ref.dtype)


# ----------------------------------------------------------------------------
# Wrapper
# ----------------------------------------------------------------------------
@jax.jit
def encoder_forward(src, src_len, params):
    """src: (T, B, E) float32; src_len: (B,) int32 (sorted descending)."""
    T, B, E = src.shape
    H = params["whh_f"].shape[0]
    D = params["wfc"].shape[1]
    f32 = jnp.float32

    # ---- pad batch to a sublane multiple (>= 8); padded rows get length 0.
    B_pad = max(8, ((B + 7) // 8) * 8)
    pad_b = B_pad - B
    src_p = jnp.pad(src, ((0, 0), (0, pad_b), (0, 0)))
    len_p = jnp.pad(src_len.astype(jnp.int32), (0, pad_b))

    # validity mask, (T, B_pad, 1): 1.0 where t < len
    mask = (jnp.arange(T, dtype=jnp.int32)[:, None]
            < len_p[None, :]).astype(f32)[:, :, None]

    # forward input and time-reversed input (backward dir), bf16 for the MXU
    x2d = src_p.reshape(T * B_pad, E).astype(jnp.bfloat16)
    xr2d = src_p[::-1].reshape(T * B_pad, E).astype(jnp.bfloat16)

    # ---- weight prep (tiny one-time ops fused under jit)
    wihf = params["wih_f"].astype(jnp.bfloat16)           # (E, 3H) cols [r|z|n]
    wihb = params["wih_b"].astype(jnp.bfloat16)
    bihf = params["bih_f"].astype(f32)                    # (1, 3H)
    bihb = params["bih_b"].astype(f32)
    # W_hh block layout, interleaved gate columns [r_f r_b z_f z_b n_f n_b]
    whf, whb = params["whh_f"], params["whh_b"]           # (H, 3H)
    zH = jnp.zeros((H, H), f32)
    row_f = jnp.concatenate([whf[:, 0:H], zH, whf[:, H:2 * H], zH,
                             whf[:, 2 * H:3 * H], zH], axis=1)
    row_b = jnp.concatenate([zH, whb[:, 0:H], zH, whb[:, H:2 * H],
                             zH, whb[:, 2 * H:3 * H]], axis=1)
    whh_blk = jnp.concatenate([row_f, row_b], axis=0)     # (2H, 6H)
    bhf, bhb = params["bhh_f"], params["bhh_b"]           # (1, 3H)
    bhh_cat = jnp.concatenate([bhf[:, 0:H], bhb[:, 0:H],
                               bhf[:, H:2 * H], bhb[:, H:2 * H],
                               bhf[:, 2 * H:3 * H], bhb[:, 2 * H:3 * H]],
                              axis=1)                     # (1, 6H)
    wfc = params["wfc"].astype(f32)                       # (2H, D)
    bfc = params["bfc"].astype(f32)                       # (1, D)

    # ---- explicit VMEM budget (grid-less kernel: everything resident)
    def _nb(shape, itemsize):
        n = 1
        for s in shape:
            n *= int(s)
        return n * itemsize
    resident = (
        2 * _nb((T * B_pad, E), 2)                                   # x, x_rev (bf16)
        + _nb((T, B_pad, 128), 4)                                    # mask (lane-padded)
        + 2 * _nb((E, 3 * H), 2) + 2 * _nb((8, 3 * H), 4)            # W_ih, b_ih
        + _nb((2 * H, 6 * H), 4) + _nb((8, 6 * H), 4)                # W_hh, b_hh
        + _nb((2 * H, D), 4) + _nb((8, D), 4)                        # W_fc, b_fc
        + 2 * _nb((T, B_pad, H), 4) + _nb((B_pad, D), 4)             # outputs
        + _nb((B_pad, 2 * H), 4) + _nb((T * B_pad, 6 * H), 4))       # scratch
    vmem_limit = int(min(max(2 * resident + (8 << 20), 32 << 20), 100 << 20))

    vmem = pl.BlockSpec(memory_space=pltpu.MemorySpace.VMEM)

    out_f, out_b, hidden_p = pl.pallas_call(
        _encoder_kernel,
        out_shape=(
            jax.ShapeDtypeStruct((T, B_pad, H), f32),     # forward-direction outputs
            jax.ShapeDtypeStruct((T, B_pad, H), f32),     # backward-direction outputs
            jax.ShapeDtypeStruct((B_pad, D), f32),        # decoder init hidden
        ),
        in_specs=[vmem] * 11,
        out_specs=(vmem, vmem, vmem),
        scratch_shapes=[
            pltpu.VMEM((B_pad, 2 * H), jnp.float32),          # recurrent state [hf|hb]
            pltpu.VMEM((T * B_pad, 6 * H), jnp.float32),      # precomputed input proj
        ],
        compiler_params=pltpu.CompilerParams(vmem_limit_bytes=vmem_limit),
    )(x2d, xr2d, mask, wihf, wihb, bihf, bihb, whh_blk, bhh_cat, wfc, bfc)

    # lazy concat of the two direction buffers -> (T, B, 2H); strip batch padding
    outputs = jnp.concatenate([out_f, out_b], axis=-1)[:, :B, :]
    hidden = hidden_p[:B, :]
    return outputs, hidden


# ----------------------------------------------------------------------------
# Pure-JAX reference (mirrors PyTorch GRU math, full f32) used for validation
# ----------------------------------------------------------------------------
def encoder_reference(src, src_len, params):
    T, B, E = src.shape
    H = params["whh_f"].shape[0]
    mask = (jnp.arange(T)[:, None] < src_len[None, :]).astype(jnp.float32)[:, :, None]

    def gru_dir(wih, whh, bih, bhh, reverse):
        def step(h, xs):
            x_t, m = xs
            gi = x_t @ wih + bih
            gh = h @ whh + bhh
            r = jax.nn.sigmoid(gi[:, :H] + gh[:, :H])
            z = jax.nn.sigmoid(gi[:, H:2 * H] + gh[:, H:2 * H])
            n = jnp.tanh(gi[:, 2 * H:] + r * gh[:, 2 * H:])
            h_new = (1.0 - z) * n + z * h
            h_upd = m * h_new + (1.0 - m) * h
            return h_upd, m * h_upd
        h0 = jnp.zeros((B, H), jnp.float32)
        h_last, outs = lax.scan(step, h0, (src, mask), reverse=reverse)
        return outs, h_last

    out_f, hf = gru_dir(params["wih_f"], params["whh_f"],
                        params["bih_f"], params["bhh_f"], reverse=False)
    out_b, hb = gru_dir(params["wih_b"], params["whh_b"],
                        params["bih_b"], params["bhh_b"], reverse=True)
    outputs = jnp.concatenate([out_f, out_b], axis=-1)
    hidden = jnp.tanh(jnp.concatenate([hf, hb], axis=-1) @ params["wfc"]
                      + params["bfc"])
    return outputs, hidden


# ----------------------------------------------------------------------------
# Deterministic parameter init (shapes from nn.GRU / nn.Linear in __init__)
# ----------------------------------------------------------------------------
def init_params(key, E, H, D):
    ks = jax.random.split(key, 10)
    s_gru = 1.0 / np.sqrt(H)
    s_fc = 1.0 / np.sqrt(2 * H)
    u = lambda k, shape, s: jax.random.uniform(k, shape, jnp.float32, -s, s)
    return {
        # forward direction (stored transposed: (in, 3H)), gate order (r, z, n)
        "wih_f": u(ks[0], (E, 3 * H), s_gru),
        "whh_f": u(ks[1], (H, 3 * H), s_gru),
        "bih_f": u(ks[2], (1, 3 * H), s_gru),
        "bhh_f": u(ks[3], (1, 3 * H), s_gru),
        # backward direction
        "wih_b": u(ks[4], (E, 3 * H), s_gru),
        "whh_b": u(ks[5], (H, 3 * H), s_gru),
        "bih_b": u(ks[6], (1, 3 * H), s_gru),
        "bhh_b": u(ks[7], (1, 3 * H), s_gru),
        # fc: Linear(2H -> D), stored transposed (2H, D)
        "wfc": u(ks[8], (2 * H, D), s_fc),
        "bfc": u(ks[9], (1, D), s_fc),
    }


if __name__ == "__main__":
    T, B, E = 8, 2, 32           # seq_len, batch, embedding_dim
    H, D = 128, 128              # encoder/decoder hidden dims (H % 128 == 0)

    key = jax.random.PRNGKey(0)
    k_x, k_p = jax.random.split(key)
    src = jax.random.normal(k_x, (T, B, E), jnp.float32)
    src_len = jnp.array([8, 5], dtype=jnp.int32)   # sorted descending (enforce_sorted)
    params = init_params(k_p, E, H, D)

    outputs, hidden = jax.block_until_ready(encoder_forward(src, src_len, params))

    ref_outputs, ref_hidden = encoder_reference(src, src_len, params)
    # tolerance reflects bf16 MXU operands for the input projection (reference is f32)
    np.testing.assert_allclose(np.asarray(outputs), np.asarray(ref_outputs),
                               rtol=1e-2, atol=1e-2)
    np.testing.assert_allclose(np.asarray(hidden), np.asarray(ref_hidden),
                               rtol=1e-2, atol=1e-2)

    assert outputs.shape == (T, B, 2 * H) and hidden.shape == (B, D)
    print("KERNEL_OK")
</pallas_src>

<mosaic_0001>
module attributes {stable_mosaic.version = 11 : i64} {
  func.func @_encoder_kernel(%arg0: memref<64x32xbf16, #tpu.memory_space<vmem>>, %arg1: memref<64x32xbf16, #tpu.memory_space<vmem>>, %arg2: memref<8x8x1xf32, #tpu.memory_space<vmem>>, %arg3: memref<32x384xbf16, #tpu.memory_space<vmem>>, %arg4: memref<32x384xbf16, #tpu.memory_space<vmem>>, %arg5: memref<1x384xf32, #tpu.memory_space<vmem>>, %arg6: memref<1x384xf32, #tpu.memory_space<vmem>>, %arg7: memref<256x768xf32, #tpu.memory_space<vmem>>, %arg8: memref<1x768xf32, #tpu.memory_space<vmem>>, %arg9: memref<256x128xf32, #tpu.memory_space<vmem>>, %arg10: memref<1x128xf32, #tpu.memory_space<vmem>>, %arg11: memref<8x8x128xf32, #tpu.memory_space<vmem>>, %arg12: memref<8x8x128xf32, #tpu.memory_space<vmem>>, %arg13: memref<8x128xf32, #tpu.memory_space<vmem>>, %arg14: memref<8x256xf32, #tpu.memory_space<vmem>>, %arg15: memref<64x768xf32, #tpu.memory_space<vmem>>) attributes {dimension_semantics = [], scalar_prefetch = 0 : i64, scratch_operands = 2 : i64, tpu.core_type = #tpu.core_type<tc>} {
    %c0 = arith.constant 0 : index
    %c0_0 = arith.constant 0 : index
    %0 = vector.load %arg0[%c0, %c0_0] : memref<64x32xbf16, #tpu.memory_space<vmem>>, vector<64x32xbf16>
    %c0_1 = arith.constant 0 : index
    %c0_2 = arith.constant 0 : index
    %1 = vector.load %arg3[%c0_1, %c0_2] : memref<32x384xbf16, #tpu.memory_space<vmem>>, vector<32x384xbf16>
    %cst = arith.constant dense<0.000000e+00> : vector<64x384xf32>
    %2 = tpu.matmul %0, %1, %cst {dimension_numbers = #tpu.dot_dimension_numbers<[1], [0], [0], [1], [0, 0, 1, 1], [], []>} : vector<64x32xbf16>, vector<32x384xbf16>, vector<64x384xf32> -> vector<64x384xf32>
    %c0_3 = arith.constant 0 : index
    %c0_4 = arith.constant 0 : index
    %3 = vector.load %arg5[%c0_3, %c0_4] : memref<1x384xf32, #tpu.memory_space<vmem>>, vector<1x384xf32>
    %4 = vector.broadcast %3 : vector<1x384xf32> to vector<64x384xf32>
    %5 = arith.addf %2, %4 : vector<64x384xf32>
    %c0_5 = arith.constant 0 : index
    %c0_6 = arith.constant 0 : index
    %6 = vector.load %arg1[%c0_5, %c0_6] : memref<64x32xbf16, #tpu.memory_space<vmem>>, vector<64x32xbf16>
    %c0_7 = arith.constant 0 : index
    %c0_8 = arith.constant 0 : index
    %7 = vector.load %arg4[%c0_7, %c0_8] : memref<32x384xbf16, #tpu.memory_space<vmem>>, vector<32x384xbf16>
    %cst_9 = arith.constant dense<0.000000e+00> : vector<64x384xf32>
    %8 = tpu.matmul %6, %7, %cst_9 {dimension_numbers = #tpu.dot_dimension_numbers<[1], [0], [0], [1], [0, 0, 1, 1], [], []>} : vector<64x32xbf16>, vector<32x384xbf16>, vector<64x384xf32> -> vector<64x384xf32>
    %c0_10 = arith.constant 0 : index
    %c0_11 = arith.constant 0 : index
    %9 = vector.load %arg6[%c0_10, %c0_11] : memref<1x384xf32, #tpu.memory_space<vmem>>, vector<1x384xf32>
    %10 = vector.broadcast %9 : vector<1x384xf32> to vector<64x384xf32>
    %11 = arith.addf %8, %10 : vector<64x384xf32>
    %12 = vector.extract_strided_slice %5 {offsets = [0, 0], sizes = [64, 128], strides = [1, 1]} : vector<64x384xf32> to vector<64x128xf32>
    %c0_12 = arith.constant 0 : index
    %c0_13 = arith.constant 0 : index
    %13 = vector.load %arg15[%c0_12, %c0_13] : memref<64x768xf32, #tpu.memory_space<vmem>>, vector<64x128xf32>
    tpu.vector_store %arg15[%c0_12, %c0_13], %12 {strides = array<i32>} : memref<64x768xf32, #tpu.memory_space<vmem>>, vector<64x128xf32>,
    %14 = vector.extract_strided_slice %11 {offsets = [0, 0], sizes = [64, 128], strides = [1, 1]} : vector<64x384xf32> to vector<64x128xf32>
    %c0_14 = arith.constant 0 : index
    %c128 = arith.constant 128 : index
    %15 = vector.load %arg15[%c0_14, %c128] : memref<64x768xf32, #tpu.memory_space<vmem>>, vector<64x128xf32>
    tpu.vector_store %arg15[%c0_14, %c128], %14 {strides = array<i32>} : memref<64x768xf32, #tpu.memory_space<vmem>>, vector<64x128xf32>,
    %16 = vector.extract_strided_slice %5 {offsets = [0, 128], sizes = [64, 128], strides = [1, 1]} : vector<64x384xf32> to vector<64x128xf32>
    %c0_15 = arith.constant 0 : index
    %c256 = arith.constant 256 : index
    %17 = vector.load %arg15[%c0_15, %c256] : memref<64x768xf32, #tpu.memory_space<vmem>>, vector<64x128xf32>
    tpu.vector_store %arg15[%c0_15, %c256], %16 {strides = array<i32>} : memref<64x768xf32, #tpu.memory_space<vmem>>, vector<64x128xf32>,
    %18 = vector.extract_strided_slice %11 {offsets = [0, 128], sizes = [64, 128], strides = [1, 1]} : vector<64x384xf32> to vector<64x128xf32>
    %c0_16 = arith.constant 0 : index
    %c384 = arith.constant 384 : index
    %19 = vector.load %arg15[%c0_16, %c384] : memref<64x768xf32, #tpu.memory_space<vmem>>, vector<64x128xf32>
    tpu.vector_store %arg15[%c0_16, %c384], %18 {strides = array<i32>} : memref<64x768xf32, #tpu.memory_space<vmem>>, vector<64x128xf32>,
    %20 = vector.extract_strided_slice %5 {offsets = [0, 256], sizes = [64, 128], strides = [1, 1]} : vector<64x384xf32> to vector<64x128xf32>
    %c0_17 = arith.constant 0 : index
    %c512 = arith.constant 512 : index
    %21 = vector.load %arg15[%c0_17, %c512] : memref<64x768xf32, #tpu.memory_space<vmem>>, vector<64x128xf32>
    tpu.vector_store %arg15[%c0_17, %c512], %20 {strides = array<i32>} : memref<64x768xf32, #tpu.memory_space<vmem>>, vector<64x128xf32>,
    %22 = vector.extract_strided_slice %11 {offsets = [0, 256], sizes = [64, 128], strides = [1, 1]} : vector<64x384xf32> to vector<64x128xf32>
    %c0_18 = arith.constant 0 : index
    %c640 = arith.constant 640 : index
    %23 = vector.load %arg15[%c0_18, %c640] : memref<64x768xf32, #tpu.memory_space<vmem>>, vector<64x128xf32>
    tpu.vector_store %arg15[%c0_18, %c640], %22 {strides = array<i32>} : memref<64x768xf32, #tpu.memory_space<vmem>>, vector<64x128xf32>,
    %c0_19 = arith.constant 0 : index
    %c0_20 = arith.constant 0 : index
    %24 = vector.load %arg7[%c0_19, %c0_20] : memref<256x768xf32, #tpu.memory_space<vmem>>, vector<256x768xf32>
    %c0_21 = arith.constant 0 : index
    %c0_22 = arith.constant 0 : index
    %25 = vector.load %arg8[%c0_21, %c0_22] : memref<1x768xf32, #tpu.memory_space<vmem>>, vector<1x768xf32>
    %26 = vector.shape_cast %25 : vector<1x768xf32> to vector<1x768xf32>
    %27 = vector.broadcast %26 : vector<1x768xf32> to vector<8x768xf32>
    %cst_23 = arith.constant 0.000000e+00 : f32
    %28 = vector.broadcast %cst_23 : f32 to vector<8x256xf32>
    %c0_24 = arith.constant 0 : index
    %c0_25 = arith.constant 0 : index
    %29 = vector.load %arg14[%c0_24, %c0_25] : memref<8x256xf32, #tpu.memory_space<vmem>>, vector<8x256xf32>
    tpu.vector_store %arg14[%c0_24, %c0_25], %28 {strides = array<i32>} : memref<8x256xf32, #tpu.memory_space<vmem>>, vector<8x256xf32>,
    %c0_i32 = arith.constant 0 : i32
    %c7_i32 = arith.constant 7 : i32
    %30 = arith.subi %c7_i32, %c0_i32 : i32
    %c0_26 = arith.constant 0 : index
    %c0_27 = arith.constant 0 : index
    %31 = vector.load %arg14[%c0_26, %c0_27] : memref<8x256xf32, #tpu.memory_space<vmem>>, vector<8x256xf32>
    %cst_28 = arith.constant dense<0.000000e+00> : vector<8x768xf32>
    %32 = tpu.matmul %31, %24, %cst_28 {dimension_numbers = #tpu.dot_dimension_numbers<[1], [0], [0], [1], [0, 0, 1, 1], [], []>} : vector<8x256xf32>, vector<256x768xf32>, vector<8x768xf32> -> vector<8x768xf32>
    %33 = arith.addf %32, %27 : vector<8x768xf32>
    %c8_i32 = arith.constant 8 : i32
    %34 = arith.muli %c0_i32, %c8_i32 : i32
    %35 = tpu.assume_multiple %34, 8 : i32
    %36 = arith.index_cast %35 : i32 to index
    %c0_29 = arith.constant 0 : index
    %37 = vector.load %arg15[%36, %c0_29] : memref<64x768xf32, #tpu.memory_space<vmem>>, vector<8x768xf32>
    %38 = vector.extract_strided_slice %37 {offsets = [0, 0], sizes = [8, 512], strides = [1, 1]} : vector<8x768xf32> to vector<8x512xf32>
    %39 = vector.extract_strided_slice %33 {offsets = [0, 0], sizes = [8, 512], strides = [1, 1]} : vector<8x768xf32> to vector<8x512xf32>
    %40 = arith.addf %38, %39 : vector<8x512xf32>
    %41 = arith.negf %40 : vector<8x512xf32>
    %42 = math.exp %41 : vector<8x512xf32>
    %cst_30 = arith.constant 1.000000e+00 : f32
    %43 = vector.broadcast %cst_30 : f32 to vector<8x512xf32>
    %44 = arith.addf %43, %42 : vector<8x512xf32>
    %45 = arith.divf %43, %44 : vector<8x512xf32>
    %46 = vector.extract_strided_slice %45 {offsets = [0, 0], sizes = [8, 256], strides = [1, 1]} : vector<8x512xf32> to vector<8x256xf32>
    %47 = vector.extract_strided_slice %45 {offsets = [0, 256], sizes = [8, 256], strides = [1, 1]} : vector<8x512xf32> to vector<8x256xf32>
    %48 = vector.extract_strided_slice %37 {offsets = [0, 512], sizes = [8, 256], strides = [1, 1]} : vector<8x768xf32> to vector<8x256xf32>
    %49 = vector.extract_strided_slice %33 {offsets = [0, 512], sizes = [8, 256], strides = [1, 1]} : vector<8x768xf32> to vector<8x256xf32>
    %50 = arith.mulf %46, %49 : vector<8x256xf32>
    %51 = arith.addf %48, %50 : vector<8x256xf32>
    %52 = math.tanh %51 : vector<8x256xf32>
    %53 = arith.subf %31, %52 : vector<8x256xf32>
    %54 = arith.mulf %47, %53 : vector<8x256xf32>
    %55 = arith.addf %52, %54 : vector<8x256xf32>
    %56 = arith.index_cast %c0_i32 : i32 to index
    %c0_31 = arith.constant 0 : index
    %c0_32 = arith.constant 0 : index
    %57 = vector.load %arg2[%56, %c0_31, %c0_32] : memref<8x8x1xf32, #tpu.memory_space<vmem>>, vector<1x8x1xf32>
    %58 = vector.shape_cast %57 : vector<1x8x1xf32> to vector<8x1xf32>
    %cst_33 = arith.constant 0.000000e+00 : f32
    %59 = vector.broadcast %cst_33 : f32 to vector<8x1xf32>
    %60 = arith.cmpf one, %58, %59 : vector<8x1xf32>
    %61 = arith.index_cast %30 : i32 to index
    %c0_34 = arith.constant 0 : index
    %c0_35 = arith.constant 0 : index
    %62 = vector.load %arg2[%61, %c0_34, %c0_35] : memref<8x8x1xf32, #tpu.memory_space<vmem>>, vector<1x8x1xf32>
    %63 = vector.shape_cast %62 : vector<1x8x1xf32> to vector<8x1xf32>
    %cst_36 = arith.constant 0.000000e+00 : f32
    %64 = vector.broadcast %cst_36 : f32 to vector<8x1xf32>
    %65 = arith.cmpf one, %63, %64 : vector<8x1xf32>
    %66 = vector.extract_strided_slice %55 {offsets = [0, 0], sizes = [8, 128], strides = [1, 1]} : vector<8x256xf32> to vector<8x128xf32>
    %67 = vector.extract_strided_slice %55 {offsets = [0, 128], sizes = [8, 128], strides = [1, 1]} : vector<8x256xf32> to vector<8x128xf32>
    %cst_37 = arith.constant 0.000000e+00 : f32
    %68 = vector.shape_cast %60 : vector<8x1xi1> to vector<8x1xi1>
    %69 = vector.broadcast %68 : vector<8x1xi1> to vector<8x128xi1>
    %70 = vector.broadcast %cst_37 : f32 to vector<8x128xf32>
    %71 = arith.select %69, %66, %70 : vector<8x128xi1>, vector<8x128xf32>
    %72 = arith.index_cast %c0_i32 : i32 to index
    %c0_38 = arith.constant 0 : index
    %c0_39 = arith.constant 0 : index
    %73 = vector.load %arg11[%72, %c0_38, %c0_39] : memref<8x8x128xf32, #tpu.memory_space<vmem>>, vector<1x8x128xf32>
    %74 = vector.shape_cast %73 : vector<1x8x128xf32> to vector<8x128xf32>
    %75 = vector.shape_cast %71 : vector<8x128xf32> to vector<1x8x128xf32>
    tpu.vector_store %arg11[%72, %c0_38, %c0_39], %75 {strides = array<i32>} : memref<8x8x128xf32, #tpu.memory_space<vmem>>, vector<1x8x128xf32>,
    %cst_40 = arith.constant 0.000000e+00 : f32
    %76 = vector.shape_cast %65 : vector<8x1xi1> to vector<8x1xi1>
    %77 = vector.broadcast %76 : vector<8x1xi1> to vector<8x128xi1>
    %78 = vector.broadcast %cst_40 : f32 to vector<8x128xf32>
    %79 = arith.select %77, %67, %78 : vector<8x128xi1>, vector<8x128xf32>
    %80 = arith.index_cast %30 : i32 to index
    %c0_41 = arith.constant 0 : index
    %c0_42 = arith.constant 0 : index
    %81 = vector.load %arg12[%80, %c0_41, %c0_42] : memref<8x8x128xf32, #tpu.memory_space<vmem>>, vector<1x8x128xf32>
    %82 = vector.shape_cast %81 : vector<1x8x128xf32> to vector<8x128xf32>
    %83 = vector.shape_cast %79 : vector<8x128xf32> to vector<1x8x128xf32>
    tpu.vector_store %arg12[%80, %c0_41, %c0_42], %83 {strides = array<i32>} : memref<8x8x128xf32, #tpu.memory_space<vmem>>, vector<1x8x128xf32>,
    %84 = vector.extract_strided_slice %31 {offsets = [0, 0], sizes = [8, 128], strides = [1, 1]} : vector<8x256xf32> to vector<8x128xf32>
    %85 = vector.shape_cast %60 : vector<8x1xi1> to vector<8x1xi1>
    %86 = vector.broadcast %85 : vector<8x1xi1> to vector<8x128xi1>
    %87 = arith.select %86, %66, %84 : vector<8x128xi1>, vector<8x128xf32>
    %c0_43 = arith.constant 0 : index
    %c0_44 = arith.constant 0 : index
    %88 = vector.load %arg14[%c0_43, %c0_44] : memref<8x256xf32, #tpu.memory_space<vmem>>, vector<8x128xf32>
    tpu.vector_store %arg14[%c0_43, %c0_44], %87 {strides = array<i32>} : memref<8x256xf32, #tpu.memory_space<vmem>>, vector<8x128xf32>,
    %89 = vector.extract_strided_slice %31 {offsets = [0, 128], sizes = [8, 128], strides = [1, 1]} : vector<8x256xf32> to vector<8x128xf32>
    %90 = vector.shape_cast %65 : vector<8x1xi1> to vector<8x1xi1>
    %91 = vector.broadcast %90 : vector<8x1xi1> to vector<8x128xi1>
    %92 = arith.select %91, %67, %89 : vector<8x128xi1>, vector<8x128xf32>
    %c0_45 = arith.constant 0 : index
    %c128_46 = arith.constant 128 : index
    %93 = vector.load %arg14[%c0_45, %c128_46] : memref<8x256xf32, #tpu.memory_space<vmem>>, vector<8x128xf32>
    tpu.vector_store %arg14[%c0_45, %c128_46], %92 {strides = array<i32>} : memref<8x256xf32, #tpu.memory_space<vmem>>, vector<8x128xf32>,
    %c1_i32 = arith.constant 1 : i32
    %c7_i32_47 = arith.constant 7 : i32
    %94 = arith.subi %c7_i32_47, %c1_i32 : i32
    %c0_48 = arith.constant 0 : index
    %c0_49 = arith.constant 0 : index
    %95 = vector.load %arg14[%c0_48, %c0_49] : memref<8x256xf32, #tpu.memory_space<vmem>>, vector<8x256xf32>
    %cst_50 = arith.constant dense<0.000000e+00> : vector<8x768xf32>
    %96 = tpu.matmul %95, %24, %cst_50 {dimension_numbers = #tpu.dot_dimension_numbers<[1], [0], [0], [1], [0, 0, 1, 1], [], []>} : vector<8x256xf32>, vector<256x768xf32>, vector<8x768xf32> -> vector<8x768xf32>
    %97 = arith.addf %96, %27 : vector<8x768xf32>
    %c8_i32_51 = arith.constant 8 : i32
    %98 = arith.muli %c1_i32, %c8_i32_51 : i32
    %99 = tpu.assume_multiple %98, 8 : i32
    %100 = arith.index_cast %99 : i32 to index
    %c0_52 = arith.constant 0 : index
    %101 = vector.load %arg15[%100, %c0_52] : memref<64x768xf32, #tpu.memory_space<vmem>>, vector<8x768xf32>
    %102 = vector.extract_strided_slice %101 {offsets = [0, 0], sizes = [8, 512], strides = [1, 1]} : vector<8x768xf32> to vector<8x512xf32>
    %103 = vector.extract_strided_slice %97 {offsets = [0, 0], sizes = [8, 512], strides = [1, 1]} : vector<8x768xf32> to vector<8x512xf32>
    %104 = arith.addf %102, %103 : vector<8x512xf32>
    %105 = arith.negf %104 : vector<8x512xf32>
    %106 = math.exp %105 : vector<8x512xf32>
    %cst_53 = arith.constant 1.000000e+00 : f32
    %107 = vector.broadcast %cst_53 : f32 to vector<8x512xf32>
    %108 = arith.addf %107, %106 : vector<8x512xf32>
    %109 = arith.divf %107, %108 : vector<8x512xf32>
    %110 = vector.extract_strided_slice %109 {offsets = [0, 0], sizes = [8, 256], strides = [1, 1]} : vector<8x512xf32> to vector<8x256xf32>
    %111 = vector.extract_strided_slice %109 {offsets = [0, 256], sizes = [8, 256], strides = [1, 1]} : vector<8x512xf32> to vector<8x256xf32>
    %112 = vector.extract_strided_slice %101 {offsets = [0, 512], sizes = [8, 256], strides = [1, 1]} : vector<8x768xf32> to vector<8x256xf32>
    %113 = vector.extract_strided_slice %97 {offsets = [0, 512], sizes = [8, 256], strides = [1, 1]} : vector<8x768xf32> to vector<8x256xf32>
    %114 = arith.mulf %110, %113 : vector<8x256xf32>
    %115 = arith.addf %112, %114 : vector<8x256xf32>
    %116 = math.tanh %115 : vector<8x256xf32>
    %117 = arith.subf %95, %116 : vector<8x256xf32>
    %118 = arith.mulf %111, %117 : vector<8x256xf32>
    %119 = arith.addf %116, %118 : vector<8x256xf32>
    %120 = arith.index_cast %c1_i32 : i32 to index
    %c0_54 = arith.constant 0 : index
    %c0_55 = arith.constant 0 : index
    %121 = vector.load %arg2[%120, %c0_54, %c0_55] : memref<8x8x1xf32, #tpu.memory_space<vmem>>, vector<1x8x1xf32>
    %122 = vector.shape_cast %121 : vector<1x8x1xf32> to vector<8x1xf32>
    %cst_56 = arith.constant 0.000000e+00 : f32
    %123 = vector.broadcast %cst_56 : f32 to vector<8x1xf32>
    %124 = arith.cmpf one, %122, %123 : vector<8x1xf32>
    %125 = arith.index_cast %94 : i32 to index
    %c0_57 = arith.constant 0 : index
    %c0_58 = arith.constant 0 : index
    %126 = vector.load %arg2[%125, %c0_57, %c0_58] : memref<8x8x1xf32, #tpu.memory_space<vmem>>, vector<1x8x1xf32>
    %127 = vector.shape_cast %126 : vector<1x8x1xf32> to vector<8x1xf32>
    %cst_59 = arith.constant 0.000000e+00 : f32
    %128 = vector.broadcast %cst_59 : f32 to vector<8x1xf32>
    %129 = arith.cmpf one, %127, %128 : vector<8x1xf32>
    %130 = vector.extract_strided_slice %119 {offsets = [0, 0], sizes = [8, 128], strides = [1, 1]} : vector<8x256xf32> to vector<8x128xf32>
    %131 = vector.extract_strided_slice %119 {offsets = [0, 128], sizes = [8, 128], strides = [1, 1]} : vector<8x256xf32> to vector<8x128xf32>
    %cst_60 = arith.constant 0.000000e+00 : f32
    %132 = vector.shape_cast %124 : vector<8x1xi1> to vector<8x1xi1>
    %133 = vector.broadcast %132 : vector<8x1xi1> to vector<8x128xi1>
    %134 = vector.broadcast %cst_60 : f32 to vector<8x128xf32>
    %135 = arith.select %133, %130, %134 : vector<8x128xi1>, vector<8x128xf32>
    %136 = arith.index_cast %c1_i32 : i32 to index
    %c0_61 = arith.constant 0 : index
    %c0_62 = arith.constant 0 : index
    %137 = vector.load %arg11[%136, %c0_61, %c0_62] : memref<8x8x128xf32, #tpu.memory_space<vmem>>, vector<1x8x128xf32>
    %138 = vector.shape_cast %137 : vector<1x8x128xf32> to vector<8x128xf32>
    %139 = vector.shape_cast %135 : vector<8x128xf32> to vector<1x8x128xf32>
    tpu.vector_store %arg11[%136, %c0_61, %c0_62], %139 {strides = array<i32>} : memref<8x8x128xf32, #tpu.memory_space<vmem>>, vector<1x8x128xf32>,
    %cst_63 = arith.constant 0.000000e+00 : f32
    %140 = vector.shape_cast %129 : vector<8x1xi1> to vector<8x1xi1>
    %141 = vector.broadcast %140 : vector<8x1xi1> to vector<8x128xi1>
    %142 = vector.broadcast %cst_63 : f32 to vector<8x128xf32>
    %143 = arith.select %141, %131, %142 : vector<8x128xi1>, vector<8x128xf32>
    %144 = arith.index_cast %94 : i32 to index
    %c0_64 = arith.constant 0 : index
    %c0_65 = arith.constant 0 : index
    %145 = vector.load %arg12[%144, %c0_64, %c0_65] : memref<8x8x128xf32, #tpu.memory_space<vmem>>, vector<1x8x128xf32>
    %146 = vector.shape_cast %145 : vector<1x8x128xf32> to vector<8x128xf32>
    %147 = vector.shape_cast %143 : vector<8x128xf32> to vector<1x8x128xf32>
    tpu.vector_store %arg12[%144, %c0_64, %c0_65], %147 {strides = array<i32>} : memref<8x8x128xf32, #tpu.memory_space<vmem>>, vector<1x8x128xf32>,
    %148 = vector.extract_strided_slice %95 {offsets = [0, 0], sizes = [8, 128], strides = [1, 1]} : vector<8x256xf32> to vector<8x128xf32>
    %149 = vector.shape_cast %124 : vector<8x1xi1> to vector<8x1xi1>
    %150 = vector.broadcast %149 : vector<8x1xi1> to vector<8x128xi1>
    %151 = arith.select %150, %130, %148 : vector<8x128xi1>, vector<8x128xf32>
    %c0_66 = arith.constant 0 : index
    %c0_67 = arith.constant 0 : index
    %152 = vector.load %arg14[%c0_66, %c0_67] : memref<8x256xf32, #tpu.memory_space<vmem>>, vector<8x128xf32>
    tpu.vector_store %arg14[%c0_66, %c0_67], %151 {strides = array<i32>} : memref<8x256xf32, #tpu.memory_space<vmem>>, vector<8x128xf32>,
    %153 = vector.extract_strided_slice %95 {offsets = [0, 128], sizes = [8, 128], strides = [1, 1]} : vector<8x256xf32> to vector<8x128xf32>
    %154 = vector.shape_cast %129 : vector<8x1xi1> to vector<8x1xi1>
    %155 = vector.broadcast %154 : vector<8x1xi1> to vector<8x128xi1>
    %156 = arith.select %155, %131, %153 : vector<8x128xi1>, vector<8x128xf32>
    %c0_68 = arith.constant 0 : index
    %c128_69 = arith.constant 128 : index
    %157 = vector.load %arg14[%c0_68, %c128_69] : memref<8x256xf32, #tpu.memory_space<vmem>>, vector<8x128xf32>
    tpu.vector_store %arg14[%c0_68, %c128_69], %156 {strides = array<i32>} : memref<8x256xf32, #tpu.memory_space<vmem>>, vector<8x128xf32>,
    %c2_i32 = arith.constant 2 : i32
    %c7_i32_70 = arith.constant 7 : i32
    %158 = arith.subi %c7_i32_70, %c2_i32 : i32
    %c0_71 = arith.constant 0 : index
    %c0_72 = arith.constant 0 : index
    %159 = vector.load %arg14[%c0_71, %c0_72] : memref<8x256xf32, #tpu.memory_space<vmem>>, vector<8x256xf32>
    %cst_73 = arith.constant dense<0.000000e+00> : vector<8x768xf32>
    %160 = tpu.matmul %159, %24, %cst_73 {dimension_numbers = #tpu.dot_dimension_numbers<[1], [0], [0], [1], [0, 0, 1, 1], [], []>} : vector<8x256xf32>, vector<256x768xf32>, vector<8x768xf32> -> vector<8x768xf32>
    %161 = arith.addf %160, %27 : vector<8x768xf32>
    %c8_i32_74 = arith.constant 8 : i32
    %162 = arith.muli %c2_i32, %c8_i32_74 : i32
    %163 = tpu.assume_multiple %162, 8 : i32
    %164 = arith.index_cast %163 : i32 to index
    %c0_75 = arith.constant 0 : index
    %165 = vector.load %arg15[%164, %c0_75] : memref<64x768xf32, #tpu.memory_space<vmem>>, vector<8x768xf32>
    %166 = vector.extract_strided_slice %165 {offsets = [0, 0], sizes = [8, 512], strides = [1, 1]} : vector<8x768xf32> to vector<8x512xf32>
    %167 = vector.extract_strided_slice %161 {offsets = [0, 0], sizes = [8, 512], strides = [1, 1]} : vector<8x768xf32> to vector<8x512xf32>
    %168 = arith.addf %166, %167 : vector<8x512xf32>
    %169 = arith.negf %168 : vector<8x512xf32>
    %170 = math.exp %169 : vector<8x512xf32>
    %cst_76 = arith.constant 1.000000e+00 : f32
    %171 = vector.broadcast %cst_76 : f32 to vector<8x512xf32>
    %172 = arith.addf %171, %170 : vector<8x512xf32>
    %173 = arith.divf %171, %172 : vector<8x512xf32>
    %174 = vector.extract_strided_slice %173 {offsets = [0, 0], sizes = [8, 256], strides = [1, 1]} : vector<8x512xf32> to vector<8x256xf32>
    %175 = vector.extract_strided_slice %173 {offsets = [0, 256], sizes = [8, 256], strides = [1, 1]} : vector<8x512xf32> to vector<8x256xf32>
    %176 = vector.extract_strided_slice %165 {offsets = [0, 512], sizes = [8, 256], strides = [1, 1]} : vector<8x768xf32> to vector<8x256xf32>
    %177 = vector.extract_strided_slice %161 {offsets = [0, 512], sizes = [8, 256], strides = [1, 1]} : vector<8x768xf32> to vector<8x256xf32>
    %178 = arith.mulf %174, %177 : vector<8x256xf32>
    %179 = arith.addf %176, %178 : vector<8x256xf32>
    %180 = math.tanh %179 : vector<8x256xf32>
    %181 = arith.subf %159, %180 : vector<8x256xf32>
    %182 = arith.mulf %175, %181 : vector<8x256xf32>
    %183 = arith.addf %180, %182 : vector<8x256xf32>
    %184 = arith.index_cast %c2_i32 : i32 to index
    %c0_77 = arith.constant 0 : index
    %c0_78 = arith.constant 0 : index
    %185 = vector.load %arg2[%184, %c0_77, %c0_78] : memref<8x8x1xf32, #tpu.memory_space<vmem>>, vector<1x8x1xf32>
    %186 = vector.shape_cast %185 : vector<1x8x1xf32> to vector<8x1xf32>
    %cst_79 = arith.constant 0.000000e+00 : f32
    %187 = vector.broadcast %cst_79 : f32 to vector<8x1xf32>
    %188 = arith.cmpf one, %186, %187 : vector<8x1xf32>
    %189 = arith.index_cast %158 : i32 to index
    %c0_80 = arith.constant 0 : index
    %c0_81 = arith.constant 0 : index
    %190 = vector.load %arg2[%189, %c0_80, %c0_81] : memref<8x8x1xf32, #tpu.memory_space<vmem>>, vector<1x8x1xf32>
    %191 = vector.shape_cast %190 : vector<1x8x1xf32> to vector<8x1xf32>
    %cst_82 = arith.constant 0.000000e+00 : f32
    %192 = vector.broadcast %cst_82 : f32 to vector<8x1xf32>
    %193 = arith.cmpf one, %191, %192 : vector<8x1xf32>
    %194 = vector.extract_strided_slice %183 {offsets = [0, 0], sizes = [8, 128], strides = [1, 1]} : vector<8x256xf32> to vector<8x128xf32>
    %195 = vector.extract_strided_slice %183 {offsets = [0, 128], sizes = [8, 128], strides = [1, 1]} : vector<8x256xf32> to vector<8x128xf32>
    %cst_83 = arith.constant 0.000000e+00 : f32
    %196 = vector.shape_cast %188 : vector<8x1xi1> to vector<8x1xi1>
    %197 = vector.broadcast %196 : vector<8x1xi1> to vector<8x128xi1>
    %198 = vector.broadcast %cst_83 : f32 to vector<8x128xf32>
    %199 = arith.select %197, %194, %198 : vector<8x128xi1>, vector<8x128xf32>
    %200 = arith.index_cast %c2_i32 : i32 to index
    %c0_84 = arith.constant 0 : index
    %c0_85 = arith.constant 0 : index
    %201 = vector.load %arg11[%200, %c0_84, %c0_85] : memref<8x8x128xf32, #tpu.memory_space<vmem>>, vector<1x8x128xf32>
    %202 = vector.shape_cast %201 : vector<1x8x128xf32> to vector<8x128xf32>
    %203 = vector.shape_cast %199 : vector<8x128xf32> to vector<1x8x128xf32>
    tpu.vector_store %arg11[%200, %c0_84, %c0_85], %203 {strides = array<i32>} : memref<8x8x128xf32, #tpu.memory_space<vmem>>, vector<1x8x128xf32>,
    %cst_86 = arith.constant 0.000000e+00 : f32
    %204 = vector.shape_cast %193 : vector<8x1xi1> to vector<8x1xi1>
    %205 = vector.broadcast %204 : vector<8x1xi1> to vector<8x128xi1>
    %206 = vector.broadcast %cst_86 : f32 to vector<8x128xf32>
    %207 = arith.select %205, %195, %206 : vector<8x128xi1>, vector<8x128xf32>
    %208 = arith.index_cast %158 : i32 to index
    %c0_87 = arith.constant 0 : index
    %c0_88 = arith.constant 0 : index
    %209 = vector.load %arg12[%208, %c0_87, %c0_88] : memref<8x8x128xf32, #tpu.memory_space<vmem>>, vector<1x8x128xf32>
    %210 = vector.shape_cast %209 : vector<1x8x128xf32> to vector<8x128xf32>
    %211 = vector.shape_cast %207 : vector<8x128xf32> to vector<1x8x128xf32>
    tpu.vector_store %arg12[%208, %c0_87, %c0_88], %211 {strides = array<i32>} : memref<8x8x128xf32, #tpu.memory_space<vmem>>, vector<1x8x128xf32>,
    %212 = vector.extract_strided_slice %159 {offsets = [0, 0], sizes = [8, 128], strides = [1, 1]} : vector<8x256xf32> to vector<8x128xf32>
    %213 = vector.shape_cast %188 : vector<8x1xi1> to vector<8x1xi1>
    %214 = vector.broadcast %213 : vector<8x1xi1> to vector<8x128xi1>
    %215 = arith.select %214, %194, %212 : vector<8x128xi1>, vector<8x128xf32>
    %c0_89 = arith.constant 0 : index
    %c0_90 = arith.constant 0 : index
    %216 = vector.load %arg14[%c0_89, %c0_90] : memref<8x256xf32, #tpu.memory_space<vmem>>, vector<8x128xf32>
    tpu.vector_store %arg14[%c0_89, %c0_90], %215 {strides = array<i32>} : memref<8x256xf32, #tpu.memory_space<vmem>>, vector<8x128xf32>,
    %217 = vector.extract_strided_slice %159 {offsets = [0, 128], sizes = [8, 128], strides = [1, 1]} : vector<8x256xf32> to vector<8x128xf32>
    %218 = vector.shape_cast %193 : vector<8x1xi1> to vector<8x1xi1>
    %219 = vector.broadcast %218 : vector<8x1xi1> to vector<8x128xi1>
    %220 = arith.select %219, %195, %217 : vector<8x128xi1>, vector<8x128xf32>
    %c0_91 = arith.constant 0 : index
    %c128_92 = arith.constant 128 : index
    %221 = vector.load %arg14[%c0_91, %c128_92] : memref<8x256xf32, #tpu.memory_space<vmem>>, vector<8x128xf32>
    tpu.vector_store %arg14[%c0_91, %c128_92], %220 {strides = array<i32>} : memref<8x256xf32, #tpu.memory_space<vmem>>, vector<8x128xf32>,
    %c3_i32 = arith.constant 3 : i32
    %c7_i32_93 = arith.constant 7 : i32
    %222 = arith.subi %c7_i32_93, %c3_i32 : i32
    %c0_94 = arith.constant 0 : index
    %c0_95 = arith.constant 0 : index
    %223 = vector.load %arg14[%c0_94, %c0_95] : memref<8x256xf32, #tpu.memory_space<vmem>>, vector<8x256xf32>
    %cst_96 = arith.constant dense<0.000000e+00> : vector<8x768xf32>
    %224 = tpu.matmul %223, %24, %cst_96 {dimension_numbers = #tpu.dot_dimension_numbers<[1], [0], [0], [1], [0, 0, 1, 1], [], []>} : vector<8x256xf32>, vector<256x768xf32>, vector<8x768xf32> -> vector<8x768xf32>
    %225 = arith.addf %224, %27 : vector<8x768xf32>
    %c8_i32_97 = arith.constant 8 : i32
    %226 = arith.muli %c3_i32, %c8_i32_97 : i32
    %227 = tpu.assume_multiple %226, 8 : i32
    %228 = arith.index_cast %227 : i32 to index
    %c0_98 = arith.constant 0 : index
    %229 = vector.load %arg15[%228, %c0_98] : memref<64x768xf32, #tpu.memory_space<vmem>>, vector<8x768xf32>
    %230 = vector.extract_strided_slice %229 {offsets = [0, 0], sizes = [8, 512], strides = [1, 1]} : vector<8x768xf32> to vector<8x512xf32>
    %231 = vector.extract_strided_slice %225 {offsets = [0, 0], sizes = [8, 512], strides = [1, 1]} : vector<8x768xf32> to vector<8x512xf32>
    %232 = arith.addf %230, %231 : vector<8x512xf32>
    %233 = arith.negf %232 : vector<8x512xf32>
    %234 = math.exp %233 : vector<8x512xf32>
    %cst_99 = arith.constant 1.000000e+00 : f32
    %235 = vector.broadcast %cst_99 : f32 to vector<8x512xf32>
    %236 = arith.addf %235, %234 : vector<8x512xf32>
    %237 = arith.divf %235, %236 : vector<8x512xf32>
    %238 = vector.extract_strided_slice %237 {offsets = [0, 0], sizes = [8, 256], strides = [1, 1]} : vector<8x512xf32> to vector<8x256xf32>
    %239 = vector.extract_strided_slice %237 {offsets = [0, 256], sizes = [8, 256], strides = [1, 1]} : vector<8x512xf32> to vector<8x256xf32>
    %240 = vector.extract_strided_slice %229 {offsets = [0, 512], sizes = [8, 256], strides = [1, 1]} : vector<8x768xf32> to vector<8x256xf32>
    %241 = vector.extract_strided_slice %225 {offsets = [0, 512], sizes = [8, 256], strides = [1, 1]} : vector<8x768xf32> to vector<8x256xf32>
    %242 = arith.mulf %238, %241 : vector<8x256xf32>
    %243 = arith.addf %240, %242 : vector<8x256xf32>
    %244 = math.tanh %243 : vector<8x256xf32>
    %245 = arith.subf %223, %244 : vector<8x256xf32>
    %246 = arith.mulf %239, %245 : vector<8x256xf32>
    %247 = arith.addf %244, %246 : vector<8x256xf32>
    %248 = arith.index_cast %c3_i32 : i32 to index
    %c0_100 = arith.constant 0 : index
    %c0_101 = arith.constant 0 : index
    %249 = vector.load %arg2[%248, %c0_100, %c0_101] : memref<8x8x1xf32, #tpu.memory_space<vmem>>, vector<1x8x1xf32>
    %250 = vector.shape_cast %249 : vector<1x8x1xf32> to vector<8x1xf32>
    %cst_102 = arith.constant 0.000000e+00 : f32
    %251 = vector.broadcast %cst_102 : f32 to vector<8x1xf32>
    %252 = arith.cmpf one, %250, %251 : vector<8x1xf32>
    %253 = arith.index_cast %222 : i32 to index
    %c0_103 = arith.constant 0 : index
    %c0_104 = arith.constant 0 : index
    %254 = vector.load %arg2[%253, %c0_103, %c0_104] : memref<8x8x1xf32, #tpu.memory_space<vmem>>, vector<1x8x1xf32>
    %255 = vector.shape_cast %254 : vector<1x8x1xf32> to vector<8x1xf32>
    %cst_105 = arith.constant 0.000000e+00 : f32
    %256 = vector.broadcast %cst_105 : f32 to vector<8x1xf32>
    %257 = arith.cmpf one, %255, %256 : vector<8x1xf32>
    %258 = vector.extract_strided_slice %247 {offsets = [0, 0], sizes = [8, 128], strides = [1, 1]} : vector<8x256xf32> to vector<8x128xf32>
    %259 = vector.extract_strided_slice %247 {offsets = [0, 128], sizes = [8, 128], strides = [1, 1]} : vector<8x256xf32> to vector<8x128xf32>
    %cst_106 = arith.constant 0.000000e+00 : f32
    %260 = vector.shape_cast %252 : vector<8x1xi1> to vector<8x1xi1>
    %261 = vector.broadcast %260 : vector<8x1xi1> to vector<8x128xi1>
    %262 = vector.broadcast %cst_106 : f32 to vector<8x128xf32>
    %263 = arith.select %261, %258, %262 : vector<8x128xi1>, vector<8x128xf32>
    %264 = arith.index_cast %c3_i32 : i32 to index
    %c0_107 = arith.constant 0 : index
    %c0_108 = arith.constant 0 : index
    %265 = vector.load %arg11[%264, %c0_107, %c0_108] : memref<8x8x128xf32, #tpu.memory_space<vmem>>, vector<1x8x128xf32>
    %266 = vector.shape_cast %265 : vector<1x8x128xf32> to vector<8x128xf32>
    %267 = vector.shape_cast %263 : vector<8x128xf32> to vector<1x8x128xf32>
    tpu.vector_store %arg11[%264, %c0_107, %c0_108], %267 {strides = array<i32>} : memref<8x8x128xf32, #tpu.memory_space<vmem>>, vector<1x8x128xf32>,
    %cst_109 = arith.constant 0.000000e+00 : f32
    %268 = vector.shape_cast %257 : vector<8x1xi1> to vector<8x1xi1>
    %269 = vector.broadcast %268 : vector<8x1xi1> to vector<8x128xi1>
    %270 = vector.broadcast %cst_109 : f32 to vector<8x128xf32>
    %271 = arith.select %269, %259, %270 : vector<8x128xi1>, vector<8x128xf32>
    %272 = arith.index_cast %222 : i32 to index
    %c0_110 = arith.constant 0 : index
    %c0_111 = arith.constant 0 : index
    %273 = vector.load %arg12[%272, %c0_110, %c0_111] : memref<8x8x128xf32, #tpu.memory_space<vmem>>, vector<1x8x128xf32>
    %274 = vector.shape_cast %273 : vector<1x8x128xf32> to vector<8x128xf32>
    %275 = vector.shape_cast %271 : vector<8x128xf32> to vector<1x8x128xf32>
    tpu.vector_store %arg12[%272, %c0_110, %c0_111], %275 {strides = array<i32>} : memref<8x8x128xf32, #tpu.memory_space<vmem>>, vector<1x8x128xf32>,
    %276 = vector.extract_strided_slice %223 {offsets = [0, 0], sizes = [8, 128], strides = [1, 1]} : vector<8x256xf32> to vector<8x128xf32>
    %277 = vector.shape_cast %252 : vector<8x1xi1> to vector<8x1xi1>
    %278 = vector.broadcast %277 : vector<8x1xi1> to vector<8x128xi1>
    %279 = arith.select %278, %258, %276 : vector<8x128xi1>, vector<8x128xf32>
    %c0_112 = arith.constant 0 : index
    %c0_113 = arith.constant 0 : index
    %280 = vector.load %arg14[%c0_112, %c0_113] : memref<8x256xf32, #tpu.memory_space<vmem>>, vector<8x128xf32>
    tpu.vector_store %arg14[%c0_112, %c0_113], %279 {strides = array<i32>} : memref<8x256xf32, #tpu.memory_space<vmem>>, vector<8x128xf32>,
    %281 = vector.extract_strided_slice %223 {offsets = [0, 128], sizes = [8, 128], strides = [1, 1]} : vector<8x256xf32> to vector<8x128xf32>
    %282 = vector.shape_cast %257 : vector<8x1xi1> to vector<8x1xi1>
    %283 = vector.broadcast %282 : vector<8x1xi1> to vector<8x128xi1>
    %284 = arith.select %283, %259, %281 : vector<8x128xi1>, vector<8x128xf32>
    %c0_114 = arith.constant 0 : index
    %c128_115 = arith.constant 128 : index
    %285 = vector.load %arg14[%c0_114, %c128_115] : memref<8x256xf32, #tpu.memory_space<vmem>>, vector<8x128xf32>
    tpu.vector_store %arg14[%c0_114, %c128_115], %284 {strides = array<i32>} : memref<8x256xf32, #tpu.memory_space<vmem>>, vector<8x128xf32>,
    %c4_i32 = arith.constant 4 : i32
    %c7_i32_116 = arith.constant 7 : i32
    %286 = arith.subi %c7_i32_116, %c4_i32 : i32
    %c0_117 = arith.constant 0 : index
    %c0_118 = arith.constant 0 : index
    %287 = vector.load %arg14[%c0_117, %c0_118] : memref<8x256xf32, #tpu.memory_space<vmem>>, vector<8x256xf32>
    %cst_119 = arith.constant dense<0.000000e+00> : vector<8x768xf32>
    %288 = tpu.matmul %287, %24, %cst_119 {dimension_numbers = #tpu.dot_dimension_numbers<[1], [0], [0], [1], [0, 0, 1, 1], [], []>} : vector<8x256xf32>, vector<256x768xf32>, vector<8x768xf32> -> vector<8x768xf32>
    %289 = arith.addf %288, %27 : vector<8x768xf32>
    %c8_i32_120 = arith.constant 8 : i32
    %290 = arith.muli %c4_i32, %c8_i32_120 : i32
    %291 = tpu.assume_multiple %290, 8 : i32
    %292 = arith.index_cast %291 : i32 to index
    %c0_121 = arith.constant 0 : index
    %293 = vector.load %arg15[%292, %c0_121] : memref<64x768xf32, #tpu.memory_space<vmem>>, vector<8x768xf32>
    %294 = vector.extract_strided_slice %293 {offsets = [0, 0], sizes = [8, 512], strides = [1, 1]} : vector<8x768xf32> to vector<8x512xf32>
    %295 = vector.extract_strided_slice %289 {offsets = [0, 0], sizes = [8, 512], strides = [1, 1]} : vector<8x768xf32> to vector<8x512xf32>
    %296 = arith.addf %294, %295 : vector<8x512xf32>
    %297 = arith.negf %296 : vector<8x512xf32>
    %298 = math.exp %297 : vector<8x512xf32>
    %cst_122 = arith.constant 1.000000e+00 : f32
    %299 = vector.broadcast %cst_122 : f32 to vector<8x512xf32>
    %300 = arith.addf %299, %298 : vector<8x512xf32>
    %301 = arith.divf %299, %300 : vector<8x512xf32>
    %302 = vector.extract_strided_slice %301 {offsets = [0, 0], sizes = [8, 256], strides = [1, 1]} : vector<8x512xf32> to vector<8x256xf32>
    %303 = vector.extract_strided_slice %301 {offsets = [0, 256], sizes = [8, 256], strides = [1, 1]} : vector<8x512xf32> to vector<8x256xf32>
    %304 = vector.extract_strided_slice %293 {offsets = [0, 512], sizes = [8, 256], strides = [1, 1]} : vector<8x768xf32> to vector<8x256xf32>
    %305 = vector.extract_strided_slice %289 {offsets = [0, 512], sizes = [8, 256], strides = [1, 1]} : vector<8x768xf32> to vector<8x256xf32>
    %306 = arith.mulf %302, %305 : vector<8x256xf32>
    %307 = arith.addf %304, %306 : vector<8x256xf32>
    %308 = math.tanh %307 : vector<8x256xf32>
    %309 = arith.subf %287, %308 : vector<8x256xf32>
    %310 = arith.mulf %303, %309 : vector<8x256xf32>
    %311 = arith.addf %308, %310 : vector<8x256xf32>
    %312 = arith.index_cast %c4_i32 : i32 to index
    %c0_123 = arith.constant 0 : index
    %c0_124 = arith.constant 0 : index
    %313 = vector.load %arg2[%312, %c0_123, %c0_124] : memref<8x8x1xf32, #tpu.memory_space<vmem>>, vector<1x8x1xf32>
    %314 = vector.shape_cast %313 : vector<1x8x1xf32> to vector<8x1xf32>
    %cst_125 = arith.constant 0.000000e+00 : f32
    %315 = vector.broadcast %cst_125 : f32 to vector<8x1xf32>
    %316 = arith.cmpf one, %314, %315 : vector<8x1xf32>
    %317 = arith.index_cast %286 : i32 to index
    %c0_126 = arith.constant 0 : index
    %c0_127 = arith.constant 0 : index
    %318 = vector.load %arg2[%317, %c0_126, %c0_127] : memref<8x8x1xf32, #tpu.memory_space<vmem>>, vector<1x8x1xf32>
    %319 = vector.shape_cast %318 : vector<1x8x1xf32> to vector<8x1xf32>
    %cst_128 = arith.constant 0.000000e+00 : f32
    %320 = vector.broadcast %cst_128 : f32 to vector<8x1xf32>
    %321 = arith.cmpf one, %319, %320 : vector<8x1xf32>
    %322 = vector.extract_strided_slice %311 {offsets = [0, 0], sizes = [8, 128], strides = [1, 1]} : vector<8x256xf32> to vector<8x128xf32>
    %323 = vector.extract_strided_slice %311 {offsets = [0, 128], sizes = [8, 128], strides = [1, 1]} : vector<8x256xf32> to vector<8x128xf32>
    %cst_129 = arith.constant 0.000000e+00 : f32
    %324 = vector.shape_cast %316 : vector<8x1xi1> to vector<8x1xi1>
    %325 = vector.broadcast %324 : vector<8x1xi1> to vector<8x128xi1>
    %326 = vector.broadcast %cst_129 : f32 to vector<8x128xf32>
    %327 = arith.select %325, %322, %326 : vector<8x128xi1>, vector<8x128xf32>
    %328 = arith.index_cast %c4_i32 : i32 to index
    %c0_130 = arith.constant 0 : index
    %c0_131 = arith.constant 0 : index
    %329 = vector.load %arg11[%328, %c0_130, %c0_131] : memref<8x8x128xf32, #tpu.memory_space<vmem>>, vector<1x8x128xf32>
    %330 = vector.shape_cast %329 : vector<1x8x128xf32> to vector<8x128xf32>
    %331 = vector.shape_cast %327 : vector<8x128xf32> to vector<1x8x128xf32>
    tpu.vector_store %arg11[%328, %c0_130, %c0_131], %331 {strides = array<i32>} : memref<8x8x128xf32, #tpu.memory_space<vmem>>, vector<1x8x128xf32>,
    %cst_132 = arith.constant 0.000000e+00 : f32
    %332 = vector.shape_cast %321 : vector<8x1xi1> to vector<8x1xi1>
    %333 = vector.broadcast %332 : vector<8x1xi1> to vector<8x128xi1>
    %334 = vector.broadcast %cst_132 : f32 to vector<8x128xf32>
    %335 = arith.select %333, %323, %334 : vector<8x128xi1>, vector<8x128xf32>
    %336 = arith.index_cast %286 : i32 to index
    %c0_133 = arith.constant 0 : index
    %c0_134 = arith.constant 0 : index
    %337 = vector.load %arg12[%336, %c0_133, %c0_134] : memref<8x8x128xf32, #tpu.memory_space<vmem>>, vector<1x8x128xf32>
    %338 = vector.shape_cast %337 : vector<1x8x128xf32> to vector<8x128xf32>
    %339 = vector.shape_cast %335 : vector<8x128xf32> to vector<1x8x128xf32>
    tpu.vector_store %arg12[%336, %c0_133, %c0_134], %339 {strides = array<i32>} : memref<8x8x128xf32, #tpu.memory_space<vmem>>, vector<1x8x128xf32>,
    %340 = vector.extract_strided_slice %287 {offsets = [0, 0], sizes = [8, 128], strides = [1, 1]} : vector<8x256xf32> to vector<8x128xf32>
    %341 = vector.shape_cast %316 : vector<8x1xi1> to vector<8x1xi1>
    %342 = vector.broadcast %341 : vector<8x1xi1> to vector<8x128xi1>
    %343 = arith.select %342, %322, %340 : vector<8x128xi1>, vector<8x128xf32>
    %c0_135 = arith.constant 0 : index
    %c0_136 = arith.constant 0 : index
    %344 = vector.load %arg14[%c0_135, %c0_136] : memref<8x256xf32, #tpu.memory_space<vmem>>, vector<8x128xf32>
    tpu.vector_store %arg14[%c0_135, %c0_136], %343 {strides = array<i32>} : memref<8x256xf32, #tpu.memory_space<vmem>>, vector<8x128xf32>,
    %345 = vector.extract_strided_slice %287 {offsets = [0, 128], sizes = [8, 128], strides = [1, 1]} : vector<8x256xf32> to vector<8x128xf32>
    %346 = vector.shape_cast %321 : vector<8x1xi1> to vector<8x1xi1>
    %347 = vector.broadcast %346 : vector<8x1xi1> to vector<8x128xi1>
    %348 = arith.select %347, %323, %345 : vector<8x128xi1>, vector<8x128xf32>
    %c0_137 = arith.constant 0 : index
    %c128_138 = arith.constant 128 : index
    %349 = vector.load %arg14[%c0_137, %c128_138] : memref<8x256xf32, #tpu.memory_space<vmem>>, vector<8x128xf32>
    tpu.vector_store %arg14[%c0_137, %c128_138], %348 {strides = array<i32>} : memref<8x256xf32, #tpu.memory_space<vmem>>, vector<8x128xf32>,
    %c5_i32 = arith.constant 5 : i32
    %c7_i32_139 = arith.constant 7 : i32
    %350 = arith.subi %c7_i32_139, %c5_i32 : i32
    %c0_140 = arith.constant 0 : index
    %c0_141 = arith.constant 0 : index
    %351 = vector.load %arg14[%c0_140, %c0_141] : memref<8x256xf32, #tpu.memory_space<vmem>>, vector<8x256xf32>
    %cst_142 = arith.constant dense<0.000000e+00> : vector<8x768xf32>
    %352 = tpu.matmul %351, %24, %cst_142 {dimension_numbers = #tpu.dot_dimension_numbers<[1], [0], [0], [1], [0, 0, 1, 1], [], []>} : vector<8x256xf32>, vector<256x768xf32>, vector<8x768xf32> -> vector<8x768xf32>
    %353 = arith.addf %352, %27 : vector<8x768xf32>
    %c8_i32_143 = arith.constant 8 : i32
    %354 = arith.muli %c5_i32, %c8_i32_143 : i32
    %355 = tpu.assume_multiple %354, 8 : i32
    %356 = arith.index_cast %355 : i32 to index
    %c0_144 = arith.constant 0 : index
    %357 = vector.load %arg15[%356, %c0_144] : memref<64x768xf32, #tpu.memory_space<vmem>>, vector<8x768xf32>
    %358 = vector.extract_strided_slice %357 {offsets = [0, 0], sizes = [8, 512], strides = [1, 1]} : vector<8x768xf32> to vector<8x512xf32>
    %359 = vector.extract_strided_slice %353 {offsets = [0, 0], sizes = [8, 512], strides = [1, 1]} : vector<8x768xf32> to vector<8x512xf32>
    %360 = arith.addf %358, %359 : vector<8x512xf32>
    %361 = arith.negf %360 : vector<8x512xf32>
    %362 = math.exp %361 : vector<8x512xf32>
    %cst_145 = arith.constant 1.000000e+00 : f32
    %363 = vector.broadcast %cst_145 : f32 to vector<8x512xf32>
    %364 = arith.addf %363, %362 : vector<8x512xf32>
    %365 = arith.divf %363, %364 : vector<8x512xf32>
    %366 = vector.extract_strided_slice %365 {offsets = [0, 0], sizes = [8, 256], strides = [1, 1]} : vector<8x512xf32> to vector<8x256xf32>
    %367 = vector.extract_strided_slice %365 {offsets = [0, 256], sizes = [8, 256], strides = [1, 1]} : vector<8x512xf32> to vector<8x256xf32>
    %368 = vector.extract_strided_slice %357 {offsets = [0, 512], sizes = [8, 256], strides = [1, 1]} : vector<8x768xf32> to vector<8x256xf32>
    %369 = vector.extract_strided_slice %353 {offsets = [0, 512], sizes = [8, 256], strides = [1, 1]} : vector<8x768xf32> to vector<8x256xf32>
    %370 = arith.mulf %366, %369 : vector<8x256xf32>
    %371 = arith.addf %368, %370 : vector<8x256xf32>
    %372 = math.tanh %371 : vector<8x256xf32>
    %373 = arith.subf %351, %372 : vector<8x256xf32>
    %374 = arith.mulf %367, %373 : vector<8x256xf32>
    %375 = arith.addf %372, %374 : vector<8x256xf32>
    %376 = arith.index_cast %c5_i32 : i32 to index
    %c0_146 = arith.constant 0 : index
    %c0_147 = arith.constant 0 : index
    %377 = vector.load %arg2[%376, %c0_146, %c0_147] : memref<8x8x1xf32, #tpu.memory_space<vmem>>, vector<1x8x1xf32>
    %378 = vector.shape_cast %377 : vector<1x8x1xf32> to vector<8x1xf32>
    %cst_148 = arith.constant 0.000000e+00 : f32
    %379 = vector.broadcast %cst_148 : f32 to vector<8x1xf32>
    %380 = arith.cmpf one, %378, %379 : vector<8x1xf32>
    %381 = arith.index_cast %350 : i32 to index
    %c0_149 = arith.constant 0 : index
    %c0_150 = arith.constant 0 : index
    %382 = vector.load %arg2[%381, %c0_149, %c0_150] : memref<8x8x1xf32, #tpu.memory_space<vmem>>, vector<1x8x1xf32>
    %383 = vector.shape_cast %382 : vector<1x8x1xf32> to vector<8x1xf32>
    %cst_151 = arith.constant 0.000000e+00 : f32
    %384 = vector.broadcast %cst_151 : f32 to vector<8x1xf32>
    %385 = arith.cmpf one, %383, %384 : vector<8x1xf32>
    %386 = vector.extract_strided_slice %375 {offsets = [0, 0], sizes = [8, 128], strides = [1, 1]} : vector<8x256xf32> to vector<8x128xf32>
    %387 = vector.extract_strided_slice %375 {offsets = [0, 128], sizes = [8, 128], strides = [1, 1]} : vector<8x256xf32> to vector<8x128xf32>
    %cst_152 = arith.constant 0.000000e+00 : f32
    %388 = vector.shape_cast %380 : vector<8x1xi1> to vector<8x1xi1>
    %389 = vector.broadcast %388 : vector<8x1xi1> to vector<8x128xi1>
    %390 = vector.broadcast %cst_152 : f32 to vector<8x128xf32>
    %391 = arith.select %389, %386, %390 : vector<8x128xi1>, vector<8x128xf32>
    %392 = arith.index_cast %c5_i32 : i32 to index
    %c0_153 = arith.constant 0 : index
    %c0_154 = arith.constant 0 : index
    %393 = vector.load %arg11[%392, %c0_153, %c0_154] : memref<8x8x128xf32, #tpu.memory_space<vmem>>, vector<1x8x128xf32>
    %394 = vector.shape_cast %393 : vector<1x8x128xf32> to vector<8x128xf32>
    %395 = vector.shape_cast %391 : vector<8x128xf32> to vector<1x8x128xf32>
    tpu.vector_store %arg11[%392, %c0_153, %c0_154], %395 {strides = array<i32>} : memref<8x8x128xf32, #tpu.memory_space<vmem>>, vector<1x8x128xf32>,
    %cst_155 = arith.constant 0.000000e+00 : f32
    %396 = vector.shape_cast %385 : vector<8x1xi1> to vector<8x1xi1>
    %397 = vector.broadcast %396 : vector<8x1xi1> to vector<8x128xi1>
    %398 = vector.broadcast %cst_155 : f32 to vector<8x128xf32>
    %399 = arith.select %397, %387, %398 : vector<8x128xi1>, vector<8x128xf32>
    %400 = arith.index_cast %350 : i32 to index
    %c0_156 = arith.constant 0 : index
    %c0_157 = arith.constant 0 : index
    %401 = vector.load %arg12[%400, %c0_156, %c0_157] : memref<8x8x128xf32, #tpu.memory_space<vmem>>, vector<1x8x128xf32>
    %402 = vector.shape_cast %401 : vector<1x8x128xf32> to vector<8x128xf32>
    %403 = vector.shape_cast %399 : vector<8x128xf32> to vector<1x8x128xf32>
    tpu.vector_store %arg12[%400, %c0_156, %c0_157], %403 {strides = array<i32>} : memref<8x8x128xf32, #tpu.memory_space<vmem>>, vector<1x8x128xf32>,
    %404 = vector.extract_strided_slice %351 {offsets = [0, 0], sizes = [8, 128], strides = [1, 1]} : vector<8x256xf32> to vector<8x128xf32>
    %405 = vector.shape_cast %380 : vector<8x1xi1> to vector<8x1xi1>
    %406 = vector.broadcast %405 : vector<8x1xi1> to vector<8x128xi1>
    %407 = arith.select %406, %386, %404 : vector<8x128xi1>, vector<8x128xf32>
    %c0_158 = arith.constant 0 : index
    %c0_159 = arith.constant 0 : index
    %408 = vector.load %arg14[%c0_158, %c0_159] : memref<8x256xf32, #tpu.memory_space<vmem>>, vector<8x128xf32>
    tpu.vector_store %arg14[%c0_158, %c0_159], %407 {strides = array<i32>} : memref<8x256xf32, #tpu.memory_space<vmem>>, vector<8x128xf32>,
    %409 = vector.extract_strided_slice %351 {offsets = [0, 128], sizes = [8, 128], strides = [1, 1]} : vector<8x256xf32> to vector<8x128xf32>
    %410 = vector.shape_cast %385 : vector<8x1xi1> to vector<8x1xi1>
    %411 = vector.broadcast %410 : vector<8x1xi1> to vector<8x128xi1>
    %412 = arith.select %411, %387, %409 : vector<8x128xi1>, vector<8x128xf32>
    %c0_160 = arith.constant 0 : index
    %c128_161 = arith.constant 128 : index
    %413 = vector.load %arg14[%c0_160, %c128_161] : memref<8x256xf32, #tpu.memory_space<vmem>>, vector<8x128xf32>
    tpu.vector_store %arg14[%c0_160, %c128_161], %412 {strides = array<i32>} : memref<8x256xf32, #tpu.memory_space<vmem>>, vector<8x128xf32>,
    %c6_i32 = arith.constant 6 : i32
    %c7_i32_162 = arith.constant 7 : i32
    %414 = arith.subi %c7_i32_162, %c6_i32 : i32
    %c0_163 = arith.constant 0 : index
    %c0_164 = arith.constant 0 : index
    %415 = vector.load %arg14[%c0_163, %c0_164] : memref<8x256xf32, #tpu.memory_space<vmem>>, vector<8x256xf32>
    %cst_165 = arith.constant dense<0.000000e+00> : vector<8x768xf32>
    %416 = tpu.matmul %415, %24, %cst_165 {dimension_numbers = #tpu.dot_dimension_numbers<[1], [0], [0], [1], [0, 0, 1, 1], [], []>} : vector<8x256xf32>, vector<256x768xf32>, vector<8x768xf32> -> vector<8x768xf32>
    %417 = arith.addf %416, %27 : vector<8x768xf32>
    %c8_i32_166 = arith.constant 8 : i32
    %418 = arith.muli %c6_i32, %c8_i32_166 : i32
    %419 = tpu.assume_multiple %418, 8 : i32
    %420 = arith.index_cast %419 : i32 to index
    %c0_167 = arith.constant 0 : index
    %421 = vector.load %arg15[%420, %c0_167] : memref<64x768xf32, #tpu.memory_space<vmem>>, vector<8x768xf32>
    %422 = vector.extract_strided_slice %421 {offsets = [0, 0], sizes = [8, 512], strides = [1, 1]} : vector<8x768xf32> to vector<8x512xf32>
    %423 = vector.extract_strided_slice %417 {offsets = [0, 0], sizes = [8, 512], strides = [1, 1]} : vector<8x768xf32> to vector<8x512xf32>
    %424 = arith.addf %422, %423 : vector<8x512xf32>
    %425 = arith.negf %424 : vector<8x512xf32>
    %426 = math.exp %425 : vector<8x512xf32>
    %cst_168 = arith.constant 1.000000e+00 : f32
    %427 = vector.broadcast %cst_168 : f32 to vector<8x512xf32>
    %428 = arith.addf %427, %426 : vector<8x512xf32>
    %429 = arith.divf %427, %428 : vector<8x512xf32>
    %430 = vector.extract_strided_slice %429 {offsets = [0, 0], sizes = [8, 256], strides = [1, 1]} : vector<8x512xf32> to vector<8x256xf32>
    %431 = vector.extract_strided_slice %429 {offsets = [0, 256], sizes = [8, 256], strides = [1, 1]} : vector<8x512xf32> to vector<8x256xf32>
    %432 = vector.extract_strided_slice %421 {offsets = [0, 512], sizes = [8, 256], strides = [1, 1]} : vector<8x768xf32> to vector<8x256xf32>
    %433 = vector.extract_strided_slice %417 {offsets = [0, 512], sizes = [8, 256], strides = [1, 1]} : vector<8x768xf32> to vector<8x256xf32>
    %434 = arith.mulf %430, %433 : vector<8x256xf32>
    %435 = arith.addf %432, %434 : vector<8x256xf32>
    %436 = math.tanh %435 : vector<8x256xf32>
    %437 = arith.subf %415, %436 : vector<8x256xf32>
    %438 = arith.mulf %431, %437 : vector<8x256xf32>
    %439 = arith.addf %436, %438 : vector<8x256xf32>
    %440 = arith.index_cast %c6_i32 : i32 to index
    %c0_169 = arith.constant 0 : index
    %c0_170 = arith.constant 0 : index
    %441 = vector.load %arg2[%440, %c0_169, %c0_170] : memref<8x8x1xf32, #tpu.memory_space<vmem>>, vector<1x8x1xf32>
    %442 = vector.shape_cast %441 : vector<1x8x1xf32> to vector<8x1xf32>
    %cst_171 = arith.constant 0.000000e+00 : f32
    %443 = vector.broadcast %cst_171 : f32 to vector<8x1xf32>
    %444 = arith.cmpf one, %442, %443 : vector<8x1xf32>
    %445 = arith.index_cast %414 : i32 to index
    %c0_172 = arith.constant 0 : index
    %c0_173 = arith.constant 0 : index
    %446 = vector.load %arg2[%445, %c0_172, %c0_173] : memref<8x8x1xf32, #tpu.memory_space<vmem>>, vector<1x8x1xf32>
    %447 = vector.shape_cast %446 : vector<1x8x1xf32> to vector<8x1xf32>
    %cst_174 = arith.constant 0.000000e+00 : f32
    %448 = vector.broadcast %cst_174 : f32 to vector<8x1xf32>
    %449 = arith.cmpf one, %447, %448 : vector<8x1xf32>
    %450 = vector.extract_strided_slice %439 {offsets = [0, 0], sizes = [8, 128], strides = [1, 1]} : vector<8x256xf32> to vector<8x128xf32>
    %451 = vector.extract_strided_slice %439 {offsets = [0, 128], sizes = [8, 128], strides = [1, 1]} : vector<8x256xf32> to vector<8x128xf32>
    %cst_175 = arith.constant 0.000000e+00 : f32
    %452 = vector.shape_cast %444 : vector<8x1xi1> to vector<8x1xi1>
    %453 = vector.broadcast %452 : vector<8x1xi1> to vector<8x128xi1>
    %454 = vector.broadcast %cst_175 : f32 to vector<8x128xf32>
    %455 = arith.select %453, %450, %454 : vector<8x128xi1>, vector<8x128xf32>
    %456 = arith.index_cast %c6_i32 : i32 to index
    %c0_176 = arith.constant 0 : index
    %c0_177 = arith.constant 0 : index
    %457 = vector.load %arg11[%456, %c0_176, %c0_177] : memref<8x8x128xf32, #tpu.memory_space<vmem>>, vector<1x8x128xf32>
    %458 = vector.shape_cast %457 : vector<1x8x128xf32> to vector<8x128xf32>
    %459 = vector.shape_cast %455 : vector<8x128xf32> to vector<1x8x128xf32>
    tpu.vector_store %arg11[%456, %c0_176, %c0_177], %459 {strides = array<i32>} : memref<8x8x128xf32, #tpu.memory_space<vmem>>, vector<1x8x128xf32>,
    %cst_178 = arith.constant 0.000000e+00 : f32
    %460 = vector.shape_cast %449 : vector<8x1xi1> to vector<8x1xi1>
    %461 = vector.broadcast %460 : vector<8x1xi1> to vector<8x128xi1>
    %462 = vector.broadcast %cst_178 : f32 to vector<8x128xf32>
    %463 = arith.select %461, %451, %462 : vector<8x128xi1>, vector<8x128xf32>
    %464 = arith.index_cast %414 : i32 to index
    %c0_179 = arith.constant 0 : index
    %c0_180 = arith.constant 0 : index
    %465 = vector.load %arg12[%464, %c0_179, %c0_180] : memref<8x8x128xf32, #tpu.memory_space<vmem>>, vector<1x8x128xf32>
    %466 = vector.shape_cast %465 : vector<1x8x128xf32> to vector<8x128xf32>
    %467 = vector.shape_cast %463 : vector<8x128xf32> to vector<1x8x128xf32>
    tpu.vector_store %arg12[%464, %c0_179, %c0_180], %467 {strides = array<i32>} : memref<8x8x128xf32, #tpu.memory_space<vmem>>, vector<1x8x128xf32>,
    %468 = vector.extract_strided_slice %415 {offsets = [0, 0], sizes = [8, 128], strides = [1, 1]} : vector<8x256xf32> to vector<8x128xf32>
    %469 = vector.shape_cast %444 : vector<8x1xi1> to vector<8x1xi1>
    %470 = vector.broadcast %469 : vector<8x1xi1> to vector<8x128xi1>
    %471 = arith.select %470, %450, %468 : vector<8x128xi1>, vector<8x128xf32>
    %c0_181 = arith.constant 0 : index
    %c0_182 = arith.constant 0 : index
    %472 = vector.load %arg14[%c0_181, %c0_182] : memref<8x256xf32, #tpu.memory_space<vmem>>, vector<8x128xf32>
    tpu.vector_store %arg14[%c0_181, %c0_182], %471 {strides = array<i32>} : memref<8x256xf32, #tpu.memory_space<vmem>>, vector<8x128xf32>,
    %473 = vector.extract_strided_slice %415 {offsets = [0, 128], sizes = [8, 128], strides = [1, 1]} : vector<8x256xf32> to vector<8x128xf32>
    %474 = vector.shape_cast %449 : vector<8x1xi1> to vector<8x1xi1>
    %475 = vector.broadcast %474 : vector<8x1xi1> to vector<8x128xi1>
    %476 = arith.select %475, %451, %473 : vector<8x128xi1>, vector<8x128xf32>
    %c0_183 = arith.constant 0 : index
    %c128_184 = arith.constant 128 : index
    %477 = vector.load %arg14[%c0_183, %c128_184] : memref<8x256xf32, #tpu.memory_space<vmem>>, vector<8x128xf32>
    tpu.vector_store %arg14[%c0_183, %c128_184], %476 {strides = array<i32>} : memref<8x256xf32, #tpu.memory_space<vmem>>, vector<8x128xf32>,
    %c7_i32_185 = arith.constant 7 : i32
    %c7_i32_186 = arith.constant 7 : i32
    %478 = arith.subi %c7_i32_186, %c7_i32_185 : i32
    %c0_187 = arith.constant 0 : index
    %c0_188 = arith.constant 0 : index
    %479 = vector.load %arg14[%c0_187, %c0_188] : memref<8x256xf32, #tpu.memory_space<vmem>>, vector<8x256xf32>
    %cst_189 = arith.constant dense<0.000000e+00> : vector<8x768xf32>
    %480 = tpu.matmul %479, %24, %cst_189 {dimension_numbers = #tpu.dot_dimension_numbers<[1], [0], [0], [1], [0, 0, 1, 1], [], []>} : vector<8x256xf32>, vector<256x768xf32>, vector<8x768xf32> -> vector<8x768xf32>
    %481 = arith.addf %480, %27 : vector<8x768xf32>
    %c8_i32_190 = arith.constant 8 : i32
    %482 = arith.muli %c7_i32_185, %c8_i32_190 : i32
    %483 = tpu.assume_multiple %482, 8 : i32
    %484 = arith.index_cast %483 : i32 to index
    %c0_191 = arith.constant 0 : index
    %485 = vector.load %arg15[%484, %c0_191] : memref<64x768xf32, #tpu.memory_space<vmem>>, vector<8x768xf32>
    %486 = vector.extract_strided_slice %485 {offsets = [0, 0], sizes = [8, 512], strides = [1, 1]} : vector<8x768xf32> to vector<8x512xf32>
    %487 = vector.extract_strided_slice %481 {offsets = [0, 0], sizes = [8, 512], strides = [1, 1]} : vector<8x768xf32> to vector<8x512xf32>
    %488 = arith.addf %486, %487 : vector<8x512xf32>
    %489 = arith.negf %488 : vector<8x512xf32>
    %490 = math.exp %489 : vector<8x512xf32>
    %cst_192 = arith.constant 1.000000e+00 : f32
    %491 = vector.broadcast %cst_192 : f32 to vector<8x512xf32>
    %492 = arith.addf %491, %490 : vector<8x512xf32>
    %493 = arith.divf %491, %492 : vector<8x512xf32>
    %494 = vector.extract_strided_slice %493 {offsets = [0, 0], sizes = [8, 256], strides = [1, 1]} : vector<8x512xf32> to vector<8x256xf32>
    %495 = vector.extract_strided_slice %493 {offsets = [0, 256], sizes = [8, 256], strides = [1, 1]} : vector<8x512xf32> to vector<8x256xf32>
    %496 = vector.extract_strided_slice %485 {offsets = [0, 512], sizes = [8, 256], strides = [1, 1]} : vector<8x768xf32> to vector<8x256xf32>
    %497 = vector.extract_strided_slice %481 {offsets = [0, 512], sizes = [8, 256], strides = [1, 1]} : vector<8x768xf32> to vector<8x256xf32>
    %498 = arith.mulf %494, %497 : vector<8x256xf32>
    %499 = arith.addf %496, %498 : vector<8x256xf32>
    %500 = math.tanh %499 : vector<8x256xf32>
    %501 = arith.subf %479, %500 : vector<8x256xf32>
    %502 = arith.mulf %495, %501 : vector<8x256xf32>
    %503 = arith.addf %500, %502 : vector<8x256xf32>
    %504 = arith.index_cast %c7_i32_185 : i32 to index
    %c0_193 = arith.constant 0 : index
    %c0_194 = arith.constant 0 : index
    %505 = vector.load %arg2[%504, %c0_193, %c0_194] : memref<8x8x1xf32, #tpu.memory_space<vmem>>, vector<1x8x1xf32>
    %506 = vector.shape_cast %505 : vector<1x8x1xf32> to vector<8x1xf32>
    %cst_195 = arith.constant 0.000000e+00 : f32
    %507 = vector.broadcast %cst_195 : f32 to vector<8x1xf32>
    %508 = arith.cmpf one, %506, %507 : vector<8x1xf32>
    %509 = arith.index_cast %478 : i32 to index
    %c0_196 = arith.constant 0 : index
    %c0_197 = arith.constant 0 : index
    %510 = vector.load %arg2[%509, %c0_196, %c0_197] : memref<8x8x1xf32, #tpu.memory_space<vmem>>, vector<1x8x1xf32>
    %511 = vector.shape_cast %510 : vector<1x8x1xf32> to vector<8x1xf32>
    %cst_198 = arith.constant 0.000000e+00 : f32
    %512 = vector.broadcast %cst_198 : f32 to vector<8x1xf32>
    %513 = arith.cmpf one, %511, %512 : vector<8x1xf32>
    %514 = vector.extract_strided_slice %503 {offsets = [0, 0], sizes = [8, 128], strides = [1, 1]} : vector<8x256xf32> to vector<8x128xf32>
    %515 = vector.extract_strided_slice %503 {offsets = [0, 128], sizes = [8, 128], strides = [1, 1]} : vector<8x256xf32> to vector<8x128xf32>
    %cst_199 = arith.constant 0.000000e+00 : f32
    %516 = vector.shape_cast %508 : vector<8x1xi1> to vector<8x1xi1>
    %517 = vector.broadcast %516 : vector<8x1xi1> to vector<8x128xi1>
    %518 = vector.broadcast %cst_199 : f32 to vector<8x128xf32>
    %519 = arith.select %517, %514, %518 : vector<8x128xi1>, vector<8x128xf32>
    %520 = arith.index_cast %c7_i32_185 : i32 to index
    %c0_200 = arith.constant 0 : index
    %c0_201 = arith.constant 0 : index
    %521 = vector.load %arg11[%520, %c0_200, %c0_201] : memref<8x8x128xf32, #tpu.memory_space<vmem>>, vector<1x8x128xf32>
    %522 = vector.shape_cast %521 : vector<1x8x128xf32> to vector<8x128xf32>
    %523 = vector.shape_cast %519 : vector<8x128xf32> to vector<1x8x128xf32>
    tpu.vector_store %arg11[%520, %c0_200, %c0_201], %523 {strides = array<i32>} : memref<8x8x128xf32, #tpu.memory_space<vmem>>, vector<1x8x128xf32>,
    %cst_202 = arith.constant 0.000000e+00 : f32
    %524 = vector.shape_cast %513 : vector<8x1xi1> to vector<8x1xi1>
    %525 = vector.broadcast %524 : vector<8x1xi1> to vector<8x128xi1>
    %526 = vector.broadcast %cst_202 : f32 to vector<8x128xf32>
    %527 = arith.select %525, %515, %526 : vector<8x128xi1>, vector<8x128xf32>
    %528 = arith.index_cast %478 : i32 to index
    %c0_203 = arith.constant 0 : index
    %c0_204 = arith.constant 0 : index
    %529 = vector.load %arg12[%528, %c0_203, %c0_204] : memref<8x8x128xf32, #tpu.memory_space<vmem>>, vector<1x8x128xf32>
    %530 = vector.shape_cast %529 : vector<1x8x128xf32> to vector<8x128xf32>
    %531 = vector.shape_cast %527 : vector<8x128xf32> to vector<1x8x128xf32>
    tpu.vector_store %arg12[%528, %c0_203, %c0_204], %531 {strides = array<i32>} : memref<8x8x128xf32, #tpu.memory_space<vmem>>, vector<1x8x128xf32>,
    %532 = vector.extract_strided_slice %479 {offsets = [0, 0], sizes = [8, 128], strides = [1, 1]} : vector<8x256xf32> to vector<8x128xf32>
    %533 = vector.shape_cast %508 : vector<8x1xi1> to vector<8x1xi1>
    %534 = vector.broadcast %533 : vector<8x1xi1> to vector<8x128xi1>
    %535 = arith.select %534, %514, %532 : vector<8x128xi1>, vector<8x128xf32>
    %c0_205 = arith.constant 0 : index
    %c0_206 = arith.constant 0 : index
    %536 = vector.load %arg14[%c0_205, %c0_206] : memref<8x256xf32, #tpu.memory_space<vmem>>, vector<8x128xf32>
    tpu.vector_store %arg14[%c0_205, %c0_206], %535 {strides = array<i32>} : memref<8x256xf32, #tpu.memory_space<vmem>>, vector<8x128xf32>,
    %537 = vector.extract_strided_slice %479 {offsets = [0, 128], sizes = [8, 128], strides = [1, 1]} : vector<8x256xf32> to vector<8x128xf32>
    %538 = vector.shape_cast %513 : vector<8x1xi1> to vector<8x1xi1>
    %539 = vector.broadcast %538 : vector<8x1xi1> to vector<8x128xi1>
    %540 = arith.select %539, %515, %537 : vector<8x128xi1>, vector<8x128xf32>
    %c0_207 = arith.constant 0 : index
    %c128_208 = arith.constant 128 : index
    %541 = vector.load %arg14[%c0_207, %c128_208] : memref<8x256xf32, #tpu.memory_space<vmem>>, vector<8x128xf32>
    tpu.vector_store %arg14[%c0_207, %c128_208], %540 {strides = array<i32>} : memref<8x256xf32, #tpu.memory_space<vmem>>, vector<8x128xf32>,
    %c8_i32_209 = arith.constant 8 : i32
    %c0_210 = arith.constant 0 : index
    %c0_211 = arith.constant 0 : index
    %542 = vector.load %arg14[%c0_210, %c0_211] : memref<8x256xf32, #tpu.memory_space<vmem>>, vector<8x256xf32>
    %c0_212 = arith.constant 0 : index
    %c0_213 = arith.constant 0 : index
    %543 = vector.load %arg9[%c0_212, %c0_213] : memref<256x128xf32, #tpu.memory_space<vmem>>, vector<256x128xf32>
    %cst_214 = arith.constant dense<0.000000e+00> : vector<8x128xf32>
    %544 = tpu.matmul %542, %543, %cst_214 {dimension_numbers = #tpu.dot_dimension_numbers<[1], [0], [0], [1], [0, 0, 1, 1], [], []>} : vector<8x256xf32>, vector<256x128xf32>, vector<8x128xf32> -> vector<8x128xf32>
    %c0_215 = arith.constant 0 : index
    %c0_216 = arith.constant 0 : index
    %545 = vector.load %arg10[%c0_215, %c0_216] : memref<1x128xf32, #tpu.memory_space<vmem>>, vector<1x128xf32>
    %546 = vector.broadcast %545 : vector<1x128xf32> to vector<8x128xf32>
    %547 = arith.addf %544, %546 : vector<8x128xf32>
    %548 = math.tanh %547 : vector<8x128xf32>
    %c0_217 = arith.constant 0 : index
    %c0_218 = arith.constant 0 : index
    %549 = vector.load %arg13[%c0_217, %c0_218] : memref<8x128xf32, #tpu.memory_space<vmem>>, vector<8x128xf32>
    tpu.vector_store %arg13[%c0_217, %c0_218], %548 {strides = array<i32>} : memref<8x128xf32, #tpu.memory_space<vmem>>, vector<8x128xf32>,
    return
  }
}

</mosaic_0001>

<bundles_post_ra>
// kernel: encoder_forward.1
= control target key start
LH: loop header
LB: loop body
LE: loop exit
PB: predicated region body
PF: predicated region fallthrough
CT: control target
= control target key end

     0   :  { %vm118_vm0 = vcmask 261120   ;;  %s11069_s3 = inlined_call_operand.vmem [shape: bf16[32,384], index: 3, kind: input, shape index: {}]   ;;  %s11070_s0 = inlined_call_operand.vmem [shape: bf16[64,32], index: 0, kind: input, shape index: {}]   ;;  %s11071_s4 = inlined_call_operand.vmem [shape: bf16[32,384], index: 4, kind: input, shape index: {}]   ;;  %s11072_s7 = inlined_call_operand.vmem [shape: f32[256,768], index: 7, kind: input, shape index: {}]   ;;  %s11073_s1 = inlined_call_operand.vmem [shape: bf16[64,32], index: 1, kind: input, shape index: {}]   ;;  %s11074_s2 = inlined_call_operand.vmem [shape: f32[8,8,1], index: 2, kind: input, shape index: {}]   ;;  %s11075_s8 = inlined_call_operand.vmem [shape: f32[1,768], index: 8, kind: input, shape index: {}]   ;;  %s11076_s5 = inlined_call_operand.vmem [shape: f32[1,384], index: 5, kind: input, shape index: {}]   ;;  %s11077_s6 = inlined_call_operand.vmem [shape: f32[1,384], index: 6, kind: input, shape index: {}]   ;;  %s11078_s11 = inlined_call_operand.vmem [shape: f32[8,8,128], index: 11, kind: output, shape index: {0}]   ;;  %s11079_s12 = inlined_call_operand.vmem [shape: f32[8,8,128], index: 12, kind: output, shape index: {1}]   ;;  %s11080_s10 = inlined_call_operand.vmem [shape: f32[1,128], index: 10, kind: input, shape index: {}]   ;;  %s11081_s9 = inlined_call_operand.vmem [shape: f32[256,128], index: 9, kind: input, shape index: {}]   ;;  %s11082_s13 = inlined_call_operand.vmem [shape: f32[8,128], index: 13, kind: output, shape index: {2}]  }
   0x1   :  { %v3719_v0 = vld [vmem:[%s11069_s3 + $0x18] sm:$0xf]  ;;  %v3861_v1 = vld [vmem:[%s11069_s3 + $0x20] sm:$0xf0]  ;;  %v3860_v2 = vld [vmem:[%s11069_s3 + $0x1c] sm:$0xf] }
   0x2   :  { %v3720_v3 = vor.u32 %v3861_v1, %v3719_v0  ;;  %v3721_v4 = vld [vmem:[%s11069_s3 + $0x24] sm:$0xf0]  ;;  %v3707_v5 = vld [vmem:[%s11069_s3] sm:$0xf]  ;;  %v3858_v6 = vld [vmem:[%s11069_s3 + $0x8] sm:$0xf0] }
   0x3   :  { %v3724_v7 = vor.u32 %v3860_v2, %v3721_v4  ;;  %v3857_v8 = vld [vmem:[%s11069_s3 + $0x4] sm:$0xf]  ;;  %v3709_v9 = vld [vmem:[%s11069_s3 + $0xc] sm:$0xf0]  ;;  %v3708_v10 = vor.u32 %v3858_v6, %v3707_v5  ;;  %v3727_v11 = vld [vmem:[%s11069_s3 + $0x20] sm:$0xf] }
   0x4   :  { %137 = vmatpush.bf16.msra.mxu0 %v3720_v3  ;;  %3885 = vmatpush.bf16.msra.mxu2 %v3720_v3  ;;  %v3862_v12 = vld [vmem:[%s11069_s3 + $0x28] sm:$0xf0]  ;;  %v3712_v13 = vor.u32 %v3857_v8, %v3709_v9  ;;  %v4769_v14 = vld [vmem:[%s11070_s0] sm:$0xff]  ;;  %v3771_v15 = vld [vmem:[%s11071_s4 + $0x18] sm:$0xf] }
   0x5   :  { %3887 = vmatpush.bf16.msra.mxu3 %v3724_v7  ;;  %166 = vmatpush.bf16.msra.mxu1 %v3724_v7  ;;  %v3871_v16 = vld [vmem:[%s11071_s4 + $0x20] sm:$0xf0]  ;;  %v4780_v17 = vld [vmem:[%s11070_s0 + $0x18] sm:$0xff]  ;;  %v3728_v18 = vor.u32 %v3862_v12, %v3727_v11  ;;  %v3715_v20 = vld [vmem:[%s11069_s3 + $0x8] sm:$0xf] }
   0x6   :  { %v3772_v19 = vor.u32 %v3871_v16, %v3771_v15  ;;  %v3859_v21 = vld [vmem:[%s11069_s3 + $0x10] sm:$0xf0]  ;;  %v3759_v22 = vld [vmem:[%s11071_s4] sm:$0xf]  ;;  %v3868_v23 = vld [vmem:[%s11071_s4 + $0x8] sm:$0xf0] }
   0x7   :  { %v3870_v24 = vld [vmem:[%s11071_s4 + $0x1c] sm:$0xf]  ;;  %v3773_v25 = vld [vmem:[%s11071_s4 + $0x24] sm:$0xf0]  ;;  %v3779_v26 = vld [vmem:[%s11071_s4 + $0x20] sm:$0xf]  ;;  %v3716_v29 = vor.u32 %v3859_v21, %v3715_v20  ;;  %v3760_v30 = vor.u32 %v3868_v23, %v3759_v22 }
   0x8   :  { %138 = vmatpush.bf16.msra.mxu0 %v3708_v10  ;;  %3886 = vmatpush.bf16.msra.mxu2 %v3708_v10  ;;  %v3776_v27 = vor.u32 %v3870_v24, %v3773_v25  ;;  %v3872_v28 = vld [vmem:[%s11071_s4 + $0x28] sm:$0xf0]  ;;  %v4817_v32 = vld [vmem:[%s11072_s7 + $0x2d0] sm:$0xff]  ;;  %v4827_v34 = vld [vmem:[%s11072_s7 + $0x2a0] sm:$0xff] }
   0x9   :  { %3888 = vmatpush.bf16.msra.mxu3 %v3712_v13  ;;  %167 = vmatpush.bf16.msra.mxu1 %v3712_v13  ;;  %v3780_v31 = vor.u32 %v3872_v28, %v3779_v26  ;;  %v4822_v33 = vld [vmem:[%s11072_s7 + $0x5d0] sm:$0xff]  ;;  %v4832_v35 = vld [vmem:[%s11072_s7 + $0x5a0] sm:$0xff]  ;;  %v3767_v43 = vld [vmem:[%s11071_s4 + $0x8] sm:$0xf] }
   0xa   :  { %v4839_v36 = vld [vmem:[%s11072_s7 + $0x270] sm:$0xff]  ;;  %v3867_v38 = vld [vmem:[%s11071_s4 + $0x4] sm:$0xf]  ;;  %v3854_v50 = vld [vmem:[%s11070_s0 + $0x8] sm:$0xff] }
   0xb   :  { %3729 = vmatmul.msk.bf16.vlgmr.msra.gmra.mxu0 %vm118_vm0, %v4769_v14  ;;  %3732 = vmatmul.msk.bf16.vlgmr.msra.gmra.mxu2 %vm118_vm0, %v4780_v17  ;;  %v4844_v37 = vld [vmem:[%s11072_s7 + $0x570] sm:$0xff]  ;;  %v4857_v40 = vld [vmem:[%s11072_s7 + $0x240] sm:$0xff]  ;;  %v5032_v8 = vld [vmem:[%s11073_s1 + $0x8] sm:$0xff] }
   0xc   :  { %195 = vmatpush.bf16.msrb.mxu2 %v3728_v18  ;;  %3736 = vmatmul.msk.bf16.vlgmr.msra.gmra.mxu3 %vm118_vm0, %v4780_v17  ;;  %v3761_v39 = vld [vmem:[%s11071_s4 + $0xc] sm:$0xf0]  ;;  %v4862_v41 = vld [vmem:[%s11072_s7 + $0x540] sm:$0xff]  ;;  %v3869_v44 = vld [vmem:[%s11071_s4 + $0x10] sm:$0xf0] }
   0xd   :  { %312 = vmatpush.bf16.msrb.mxu3 %v3772_v19  ;;  %3733 = vmatmul.msk.bf16.vlgmr.msra.gmra.mxu1 %vm118_vm0, %v4769_v14  ;;  %v3764_v42 = vor.u32 %v3867_v38, %v3761_v39  ;;  %v4875_v45 = vld [vmem:[%s11072_s7 + $0x210] sm:$0xff]  ;;  %v3768_v47 = vor.u32 %v3869_v44, %v3767_v43  ;;  %v4887_v48 = vld [vmem:[%s11072_s7 + $0x1e0] sm:$0xff]  ;;  %v5102_v20 = vld [vmem:[%s11072_s7 + $0x2d8] sm:$0xff] }
   0xe   :  { %341 = vmatpush.bf16.msrb.mxu0 %v3776_v27  ;;  %370 = vmatpush.bf16.msrb.mxu1 %v3780_v31  ;;  %v4880_v46 = vld [vmem:[%s11072_s7 + $0x510] sm:$0xff]  ;;  %v4892_v49 = vld [vmem:[%s11072_s7 + $0x4e0] sm:$0xff]  ;;  %v5107_v21 = vld [vmem:[%s11072_s7 + $0x5d8] sm:$0xff] }
   0xf   :  { %v4902_v51 = vld [vmem:[%s11073_s1] sm:$0xff]  ;;  %v4909_v52 = vld [vmem:[%s11072_s7 + $0x1b0] sm:$0xff]  ;;  %v5126_v24 = vld [vmem:[%s11072_s7 + $0x2a8] sm:$0xff] }
  0x10   :  { %196 = vmatpush.bf16.msrb.mxu2 %v3716_v29  ;;  %v4914_v53 = vld [vmem:[%s11072_s7 + $0x4b0] sm:$0xff]  ;;  %v4925_v54 = vld [vmem:[%s11072_s7 + $0x180] sm:$0xff]  ;;  %v5131_v25 = vld [vmem:[%s11072_s7 + $0x5a8] sm:$0xff] }
  0x11   :  { %313 = vmatpush.bf16.msrb.mxu3 %v3760_v30  ;;  %v4930_v55 = vld [vmem:[%s11072_s7 + $0x480] sm:$0xff]  ;;  %v4937_v56 = vld [vmem:[%s11072_s7 + $0x150] sm:$0xff]  ;;  %v5148_v28 = vld [vmem:[%s11072_s7 + $0x278] sm:$0xff] }
  0x12   :  { %342 = vmatpush.bf16.msrb.mxu0 %v3764_v42  ;;  %371 = vmatpush.bf16.msrb.mxu1 %v3768_v47  ;;  %v4942_v57 = vld [vmem:[%s11072_s7 + $0x450] sm:$0xff]  ;;  %v4949_v58 = vld [vmem:[%s11072_s7 + $0x120] sm:$0xff]  ;;  %v5153_v29 = vld [vmem:[%s11072_s7 + $0x578] sm:$0xff] }
  0x13   :  { %v4954_v59 = vld [vmem:[%s11072_s7 + $0x2e0] sm:$0xff]  ;;  %v4965_v61 = vld [vmem:[%s11072_s7 + $0x2b0] sm:$0xff]  ;;  %v5172_v38 = vld [vmem:[%s11072_s7 + $0x248] sm:$0xff] }
  0x14   :  { %651 = vmatpush.msra.mxu2 %v4817_v32  ;;  %v4959_v60 = vld [vmem:[%s11072_s7 + $0x420] sm:$0xff]  ;;  %v4982_v0 = vld [vmem:[%s11072_s7 + $0xf0] sm:$0xff]  ;;  %v5177_v39 = vld [vmem:[%s11072_s7 + $0x548] sm:$0xff] }
  0x15   :  { %671 = vmatpush.msra.mxu3 %v4822_v33  ;;  %v4970_v62 = vld [vmem:[%s11072_s7 + $0x5e0] sm:$0xff]  ;;  %v4987_v1 = vld [vmem:[%s11072_s7 + $0x3f0] sm:$0xff]  ;;  %v5196_v44 = vld [vmem:[%s11072_s7 + $0x218] sm:$0xff] }
  0x16   :  { %652 = vmatpush.msra.mxu2 %v4827_v34  ;;  %731 = vmatpush.msra.mxu0 %v4954_v59  ;;  %11581 = vst [vmem:[#allocation4_spill] sm:$0xff] %v4970_v62  ;;  %v4977_v63 = vld [vmem:[%s11072_s7 + $0x280] sm:$0xff]  ;;  %v4994_v2 = vld [vmem:[%s11072_s7 + $0x5b0] sm:$0xff]  ;;  %v5201_v47 = vld [vmem:[%s11072_s7 + $0x518] sm:$0xff] }
  0x17   :  { %672 = vmatpush.msra.mxu3 %v4832_v35  ;;  %751 = vmatpush.msra.mxu1 %v4970_v62  ;;  %11582 = vst [vmem:[#allocation5_spill] sm:$0xff] %v4994_v2  ;;  %v5001_v3 = vld [vmem:[%s11072_s7 + $0xc0] sm:$0xff]  ;;  %v5015_v5 = vld [vmem:[%s11072_s7 + $0x90] sm:$0xff] }
  0x18   :  { %653 = vmatpush.msra.mxu2 %v4839_v36  ;;  %732 = vmatpush.msra.mxu0 %v4965_v61  ;;  %v5006_v4 = vld [vmem:[%s11072_s7 + $0x3c0] sm:$0xff]  ;;  %v5020_v6 = vld [vmem:[%s11072_s7 + $0x390] sm:$0xff] }
  0x19   :  { %673 = vmatpush.msra.mxu3 %v4844_v37  ;;  %752 = vmatpush.msra.mxu1 %v4994_v2  ;;  %v5025_v7 = vld [vmem:[%s11070_s0 + $0x10] sm:$0xff]  ;;  %v5039_v9 = vld [vmem:[%s11072_s7 + $0x60] sm:$0xff]  ;;  %v5269_v2 = vld [vmem:[%s11072_s7 + $0x188] sm:$0xff] }
  0x1a   :  { %654 = vmatpush.msra.mxu2 %v4857_v40  ;;  %733 = vmatpush.msra.mxu0 %v4977_v63  ;;  %v5044_v10 = vld [vmem:[%s11072_s7 + $0x360] sm:$0xff]  ;;  %v5052_v11 = vld [vmem:[%s11072_s7 + $0x250] sm:$0xff] }
  0x1b   :  { %674 = vmatpush.msra.mxu3 %v4862_v41  ;;  %3730 = vmatmul.msk.bf16.gmra.mxu0 %vm118_vm0, %v3854_v50  ;;  %v5057_v12 = vld [vmem:[%s11072_s7 + $0x580] sm:$0xff]  ;;  %v5066_v13 = vld [vmem:[%s11072_s7 + $0x30] sm:$0xff] }
  0x1c   :  { %655 = vmatpush.msra.mxu2 %v4875_v45  ;;  %3781 = vmatmul.msk.bf16.vlgmr.msrb.gmra.mxu3 %vm118_vm0, %v4902_v51  ;;  %11583 = vst [vmem:[#allocation6_spill] sm:$0xff] %v5057_v12  ;;  %v5078_v15 = vld [vmem:[%s11072_s7 + $0x220] sm:$0xff]  ;;  %v5083_v16 = vld [vmem:[%s11072_s7 + $0x550] sm:$0xff] }
  0x1d   :  { %675 = vmatpush.msra.mxu3 %v4880_v46  ;;  %3737 = vmatmul.msk.bf16.vlgmr.msrb.gmra.mxu2 %vm118_vm0, %v4769_v14  ;;  %v5071_v14 = vld [vmem:[%s11072_s7 + $0x330] sm:$0xff]  ;;  %11585 = vst [vmem:[#allocation8_spill] sm:$0xff] %v5083_v16  ;;  %v5088_v18 = vld [vmem:[%s11072_s7] sm:$0xff] }
  0x1e   :  { %656 = vmatpush.msra.mxu2 %v4887_v48  ;;  %3734 = vmatmul.msk.bf16.gmra.mxu1 %vm118_vm0, %v3854_v50  ;;  %11584 = vst [vmem:[#allocation7_spill] sm:$0xff] %v5071_v14  ;;  %v5093_v19 = vld [vmem:[%s11072_s7 + $0x300] sm:$0xff]  ;;  %v5114_v22 = vld [vmem:[%s11072_s7 + $0x1f0] sm:$0xff] }
  0x1f   :  { %676 = vmatpush.msra.mxu3 %v4892_v49  ;;  %11586 = vst [vmem:[#allocation9_spill] sm:$0xff] %v5093_v19  ;;  %734 = vmatpush.msra.mxu0 %v5052_v11  ;;  %v5119_v23 = vld [vmem:[%s11072_s7 + $0x520] sm:$0xff]  ;;  %v5143_v27 = vld [vmem:[%s11072_s7 + $0x4f0] sm:$0xff] }
  0x20   :  { %657 = vmatpush.msra.mxu2 %v4909_v52  ;;  %753 = vmatpush.msra.mxu1 %v5057_v12  ;;  %11587 = vst [vmem:[#allocation10_spill] sm:$0xff] %v5119_v23  ;;  %v5138_v26 = vld [vmem:[%s11072_s7 + $0x1c0] sm:$0xff]  ;;  %v5162_v30 = vld [vmem:[%s11072_s7 + $0x190] sm:$0xff] }
  0x21   :  { %677 = vmatpush.msra.mxu3 %v4914_v53  ;;  %735 = vmatpush.msra.mxu0 %v5078_v15  ;;  %11588 = vst [vmem:[#allocation11_spill] sm:$0xff] %v5138_v26  ;;  %v5167_v31 = vld [vmem:[%s11072_s7 + $0x4c0] sm:$0xff]  ;;  %v5191_v43 = vld [vmem:[%s11072_s7 + $0x490] sm:$0xff] }
  0x22   :  { %658 = vmatpush.msra.mxu2 %v4925_v54  ;;  %754 = vmatpush.msra.mxu1 %v5083_v16  ;;  %11589 = vst [vmem:[#allocation12_spill] sm:$0xff] %v5143_v27  ;;  %v5186_v42 = vld [vmem:[%s11072_s7 + $0x160] sm:$0xff]  ;;  %v5252_v16 = vld [vmem:[%s11072_s7 + $0x4b8] sm:$0xff]  ;;  %v5283_v62 = vld [vmem:[%s11072_s7 + $0xd0] sm:$0xff] }
  0x23   :  { %678 = vmatpush.msra.mxu3 %v4930_v55  ;;  %736 = vmatpush.msra.mxu0 %v5114_v22  ;;  %11590 = vst [vmem:[#allocation13_spill] sm:$0xff] %v5162_v30  ;;  %v5259_v12 = vld [vmem:[%s11072_s7 + $0x100] sm:$0xff] }
  0x24   :  { %659 = vmatpush.msra.mxu2 %v4937_v56  ;;  %755 = vmatpush.msra.mxu1 %v5119_v23  ;;  %11591 = vst [vmem:[#allocation14_spill] sm:$0xff] %v5167_v31  ;;  %v5238_v23 = vld [vmem:[%s11072_s7 + $0x460] sm:$0xff] }
  0x25   :  { %679 = vmatpush.msra.mxu3 %v4942_v57  ;;  %737 = vmatpush.msra.mxu0 %v5138_v26  ;;  %11592 = vst [vmem:[#allocation15_spill] sm:$0xff] %v5186_v42  ;;  %v5312_v26 = vld [vmem:[%s11072_s7 + $0x3d0] sm:$0xff] }
  0x26   :  { %660 = vmatpush.msra.mxu2 %v4949_v58  ;;  %756 = vmatpush.msra.mxu1 %v5143_v27  ;;  %11593 = vst [vmem:[#allocation16_spill] sm:$0xff] %v5191_v43  ;;  %v5218_v27 = vld [vmem:[%s11072_s7 + $0x1e8] sm:$0xff] }
  0x27   :  { %680 = vmatpush.msra.mxu3 %v4959_v60  ;;  %738 = vmatpush.msra.mxu0 %v5162_v30  ;;  %11595 = vst [vmem:[#allocation18_spill] sm:$0xff] %v5238_v23  ;;  %v5288_v30 = vld [vmem:[%s11072_s7 + $0x400] sm:$0xff] }
  0x28   :  { %661 = vmatpush.msra.mxu2 %v4982_v0  ;;  %757 = vmatpush.msra.mxu1 %v5167_v31  ;;  %v5224_v31 = vld [vmem:[%s11072_s7 + $0x4e8] sm:$0xff]  ;;  %11596 = vst [vmem:[#allocation19_spill] sm:$0xff] %v5259_v12 }
  0x29   :  { %681 = vmatpush.msra.mxu3 %v4987_v1  ;;  %739 = vmatpush.msra.mxu0 %v5186_v42  ;;  %v5274_v42 = vld [vmem:[%s11072_s7 + $0x488] sm:$0xff]  ;;  %11599 = vst [vmem:[#allocation22_spill] sm:$0xff] %v5283_v62 }
  0x2a   :  { %662 = vmatpush.msra.mxu2 %v5001_v3  ;;  %758 = vmatpush.msra.mxu1 %v5191_v43  ;;  %v5233_v43 = vld [vmem:[%s11072_s7 + $0x130] sm:$0xff]  ;;  %11598 = vst [vmem:[#allocation21_spill] sm:$0xff] %v5274_v42 }
  0x2b   :  { %682 = vmatpush.msra.mxu3 %v5006_v4  ;;  %3731 = vmatmul.msk.bf16.gmra.mxu0 %vm118_vm0, %v5025_v7  ;;  %11594 = vst [vmem:[#allocation17_spill] sm:$0xff] %v5233_v43 }
  0x2c   :  { %663 = vmatpush.msra.mxu2 %v5015_v5  ;;  %3782 = vmatmul.msk.bf16.gmra.mxu3 %vm118_vm0, %v5032_v8  ;;  %11600 = vst [vmem:[#allocation23_spill] sm:$0xff] %v5288_v30 }
  0x2d   :  { %683 = vmatpush.msra.mxu3 %v5020_v6  ;;  %3738 = vmatmul.msk.bf16.gmra.mxu2 %vm118_vm0, %v3854_v50  ;;  %v5208_v50 = vld [vmem:[%s11073_s1 + $0x10] sm:$0xff]  ;;  %11604 = vst [vmem:[#allocation27_spill] sm:$0xff] %v5312_v26 }
  0x2e   :  { %3735 = vmatmul.msk.bf16.gmra.mxu1 %vm118_vm0, %v5025_v7  ;;  %664 = vmatpush.msra.mxu2 %v5039_v9 }
  0x2f   :  { %684 = vmatpush.msra.mxu3 %v5044_v10  ;;  %740 = vmatpush.msra.mxu0 %v5233_v43  ;;  %v5293_v43 = vld [vmem:[%s11072_s7 + $0x158] sm:$0xff] }
  0x30   :  { %665 = vmatpush.msra.mxu2 %v5066_v13  ;;  %759 = vmatpush.msra.mxu1 %v5238_v23  ;;  %11601 = vst [vmem:[#allocation24_spill] sm:$0xff] %v5293_v43  ;;  %v5298_v23 = vld [vmem:[%s11072_s7 + $0x458] sm:$0xff] }
  0x31   :  { %685 = vmatpush.msra.mxu3 %v5071_v14  ;;  %11602 = vst [vmem:[#allocation25_spill] sm:$0xff] %v5298_v23  ;;  %741 = vmatpush.msra.mxu0 %v5259_v12  ;;  %v5317_v12 = vld [vmem:[%s11072_s7 + $0x128] sm:$0xff]  ;;  %v5336_v14 = vld [vmem:[%s11072_s7 + $0x3a0] sm:$0xff] }
  0x32   :  { %666 = vmatpush.msra.mxu2 %v5088_v18  ;;  %11605 = vst [vmem:[#allocation28_spill] sm:$0xff] %v5317_v12 }
  0x33   :  { %686 = vmatpush.msra.mxu3 %v5093_v19  ;;  %v5307_v19 = vld [vmem:[%s11072_s7 + $0xa0] sm:$0xff]  ;;  %742 = vmatpush.msra.mxu0 %v5283_v62  ;;  %11608 = vst [vmem:[#allocation31_spill] sm:$0xff] %v5336_v14  ;;  %v5341_v62 = vld [vmem:[%s11072_s7 + $0xf8] sm:$0xff] }
  0x34   :  { %691 = vmatpush.msrb.mxu2 %v5102_v20  ;;  %11603 = vst [vmem:[#allocation26_spill] sm:$0xff] %v5307_v19 }
  0x35   :  { %711 = vmatpush.msrb.mxu3 %v5107_v21  ;;  %11609 = vst [vmem:[#allocation32_spill] sm:$0xff] %v5341_v62  ;;  %743 = vmatpush.msra.mxu0 %v5307_v19  ;;  %v5365_v19 = vld [vmem:[%s11072_s7 + $0xc8] sm:$0xff] }
  0x36   :  { %692 = vmatpush.msrb.mxu2 %v5126_v24  ;;  %11613 = vst [vmem:[#allocation36_spill] sm:$0xff] %v5365_v19 }
  0x37   :  { %712 = vmatpush.msrb.mxu3 %v5131_v25 }
  0x38   :  { %693 = vmatpush.msrb.mxu2 %v5148_v28 }
  0x39   :  { %713 = vmatpush.msrb.mxu3 %v5153_v29 }
  0x3a   :  { %694 = vmatpush.msrb.mxu2 %v5172_v38 }
  0x3b   :  { %714 = vmatpush.msrb.mxu3 %v5177_v39  ;;  %3785 = vmatmul.msk.bf16.vlgmr.msrb.gmra.mxu0 %vm118_vm0, %v4902_v51 }
  0x3c   :  { %695 = vmatpush.msrb.mxu2 %v5196_v44  ;;  %3783 = vmatmul.msk.bf16.gmra.mxu3 %vm118_vm0, %v5208_v50 }
  0x3d   :  { %715 = vmatpush.msrb.mxu3 %v5201_v47  ;;  %3739 = vmatmul.msk.bf16.gmra.mxu2 %vm118_vm0, %v5025_v7  ;;  %v5247_v7 = vld [vmem:[%s11072_s7 + $0x1b8] sm:$0xff] }
  0x3e   :  { %3789 = vmatmul.msk.bf16.vlgmr.msrb.gmra.mxu1 %vm118_vm0, %v4902_v51  ;;  %696 = vmatpush.msrb.mxu2 %v5218_v27  ;;  %v5264_v51 = vld [vmem:[%s11072_s7 + $0x430] sm:$0xff] }
  0x3f   :  { %716 = vmatpush.msrb.mxu3 %v5224_v31  ;;  %11597 = vst [vmem:[#allocation20_spill] sm:$0xff] %v5264_v51  ;;  %760 = vmatpush.msra.mxu1 %v5264_v51  ;;  %v5322_v51 = vld [vmem:[%s11072_s7 + $0x428] sm:$0xff] }
  0x40   :  { %697 = vmatpush.msrb.mxu2 %v5247_v7  ;;  %11606 = vst [vmem:[#allocation29_spill] sm:$0xff] %v5322_v51 }
  0x41   :  { %717 = vmatpush.msrb.mxu3 %v5252_v16  ;;  %761 = vmatpush.msra.mxu1 %v5288_v30  ;;  %v5346_v30 = vld [vmem:[%s11072_s7 + $0x3f8] sm:$0xff] }
  0x42   :  { %698 = vmatpush.msrb.mxu2 %v5269_v2  ;;  %11610 = vst [vmem:[#allocation33_spill] sm:$0xff] %v5346_v30 }
  0x43   :  { %718 = vmatpush.msrb.mxu3 %v5274_v42  ;;  %v5331_v42 = vld [vmem:[%s11072_s7 + $0x70] sm:$0xff]  ;;  %762 = vmatpush.msra.mxu1 %v5312_v26  ;;  %v5370_v26 = vld [vmem:[%s11072_s7 + $0x3c8] sm:$0xff] }
  0x44   :  { %699 = vmatpush.msrb.mxu2 %v5293_v43  ;;  %11607 = vst [vmem:[#allocation30_spill] sm:$0xff] %v5331_v42  ;;  %v5360_v43 = vld [vmem:[%s11072_s7 + $0x370] sm:$0xff]  ;;  %744 = vmatpush.msra.mxu0 %v5331_v42  ;;  %v5389_v42 = vld [vmem:[%s11073_s1 + $0x18] sm:$0xff] }
  0x45   :  { %719 = vmatpush.msrb.mxu3 %v5298_v23  ;;  %v5355_v23 = vld [vmem:[%s11072_s7 + $0x40] sm:$0xff]  ;;  %11612 = vst [vmem:[#allocation35_spill] sm:$0xff] %v5360_v43  ;;  %763 = vmatpush.msra.mxu1 %v5336_v14  ;;  %v5398_v14 = vld [vmem:[%s11072_s7 + $0x98] sm:$0xff] }
  0x46   :  { %700 = vmatpush.msrb.mxu2 %v5317_v12  ;;  %11611 = vst [vmem:[#allocation34_spill] sm:$0xff] %v5355_v23  ;;  %v5384_v12 = vld [vmem:[%s11072_s7 + $0x340] sm:$0xff]  ;;  %745 = vmatpush.msra.mxu0 %v5355_v23  ;;  %v5417_v23 = vld [vmem:[%s11072_s7 + $0x310] sm:$0xff] }
  0x47   :  { %720 = vmatpush.msrb.mxu3 %v5322_v51  ;;  %11614 = vst [vmem:[#allocation37_spill] sm:$0xff] %v5370_v26  ;;  %v5379_v51 = vld [vmem:[%s11072_s7 + $0x10] sm:$0xff]  ;;  %764 = vmatpush.msra.mxu1 %v5360_v43 }
  0x48   :  { %701 = vmatpush.msrb.mxu2 %v5341_v62  ;;  %11615 = vst [vmem:[#allocation38_spill] sm:$0xff] %v5379_v51  ;;  %746 = vmatpush.msra.mxu0 %v5379_v51  ;;  %v535_v43 = vld [vmem:[%s11072_s7 + $0x2f0] sm:$0xff]  ;;  %v529_v51 = vld [vmem:[%s11072_s7 + $0x2c0] sm:$0xff]  ;;  %v5463_v62 = vld [vmem:[%s11072_s7 + $0x8] sm:$0xff] }
  0x49   :  { %721 = vmatpush.msrb.mxu3 %v5346_v30  ;;  %11616 = vst [vmem:[#allocation39_spill] sm:$0xff] %v5384_v12  ;;  %v5403_v30 = vld [vmem:[%s11072_s7 + $0x398] sm:$0xff]  ;;  %765 = vmatpush.msra.mxu1 %v5384_v12  ;;  %v5431_v12 = vld [vmem:[%s11072_s7 + $0x368] sm:$0xff] }
  0x4a   :  { %702 = vmatpush.msrb.mxu2 %v5365_v19  ;;  %11617 = vst [vmem:[#allocation40_spill] sm:$0xff] %v5398_v14  ;;  %v5449_v19 = vld [vmem:[%s11072_s7 + $0x338] sm:$0xff]  ;;  %811 = vmatpush.msrb.mxu0 %v535_v43  ;;  %v5468_v43 = vld [vmem:[%s11072_s7 + $0x308] sm:$0xff] }
  0x4b   :  { %722 = vmatpush.msrb.mxu3 %v5370_v26  ;;  %11618 = vst [vmem:[#allocation41_spill] sm:$0xff] %v5403_v30  ;;  %3786 = vmatmul.msk.bf16.gmra.mxu0 %vm118_vm0, %v5032_v8  ;;  %v5444_v26 = vld [vmem:[%s11072_s7 + $0x38] sm:$0xff] }
  0x4c   :  { %11619 = vst [vmem:[#allocation42_spill] sm:$0xff] %v5417_v23  ;;  %3784 = vmatmul.msk.bf16.gmra.mxu3 %vm118_vm0, %v5389_v42  ;;  %703 = vmatpush.msrb.mxu2 %v5398_v14  ;;  %v625_v14 = vld [vmem:[%s11072_s7 + $0x5c0] sm:$0xff] }
  0x4d   :  { %3740 = vmatmul.msk.bf16.gmra.mxu2 %vm118_vm0, %v4780_v17  ;;  %v5426_v17 = vld [vmem:[%s11072_s7 + $0x68] sm:$0xff]  ;;  %11621 = vst [vmem:[#allocation44_spill] sm:$0xff] %v5431_v12  ;;  %723 = vmatpush.msrb.mxu3 %v5403_v30  ;;  %v523_v30 = vld [vmem:[%s11072_s7 + $0x290] sm:$0xff] }
  0x4e   :  { %3790 = vmatmul.msk.bf16.gmra.mxu1 %vm118_vm0, %v5032_v8  ;;  %11620 = vst [vmem:[#allocation43_spill] sm:$0xff] %v5426_v17  ;;  %v631_v8 = vld [vmem:[%s11072_s7 + $0x5f0] sm:$0xff]  ;;  %704 = vmatpush.msrb.mxu2 %v5426_v17  ;;  %v5638_v17 = vld [vmem:[%s11072_s7 + $0x498] sm:$0xff] }
  0x4f   :  { %11622 = vst [vmem:[#allocation45_spill] sm:$0xff] %v5444_v26  ;;  %766 = vmatpush.msra.mxu1 %v5417_v23  ;;  %724 = vmatpush.msrb.mxu3 %v5431_v12  ;;  %v517_v23 = vld [vmem:[%s11072_s7 + $0x260] sm:$0xff]  ;;  %v619_v12 = vld [vmem:[%s11072_s7 + $0x590] sm:$0xff] }
  0x50   :  { %11623 = vst [vmem:[#allocation46_spill] sm:$0xff] %v5449_v19  ;;  %812 = vmatpush.msrb.mxu0 %v529_v51  ;;  %705 = vmatpush.msrb.mxu2 %v5444_v26  ;;  %v511_v51 = vld [vmem:[%s11072_s7 + $0x230] sm:$0xff]  ;;  %v5570_v26 = vld [vmem:[%s11072_s7 + $0x558] sm:$0xff] }
  0x51   :  { %11624 = vst [vmem:[#allocation47_spill] sm:$0xff] %v5463_v62  ;;  %831 = vmatpush.msrb.mxu1 %v631_v8  ;;  %725 = vmatpush.msrb.mxu3 %v5449_v19  ;;  %v613_v8 = vld [vmem:[%s11072_s7 + $0x560] sm:$0xff] }
  0x52   :  { %11625 = vst [vmem:[#allocation48_spill] sm:$0xff] %v5468_v43  ;;  %813 = vmatpush.msrb.mxu0 %v523_v30  ;;  %706 = vmatpush.msrb.mxu2 %v5463_v62  ;;  %v505_v19 = vld [vmem:[%s11072_s7 + $0x200] sm:$0xff]  ;;  %v499_v30 = vld [vmem:[%s11072_s7 + $0x1d0] sm:$0xff]  ;;  %v5550_v62 = vld [vmem:[%s11072_s7 + $0x258] sm:$0xff] }
  0x53   :  { %832 = vmatpush.msrb.mxu1 %v625_v14  ;;  %726 = vmatpush.msrb.mxu3 %v5468_v43  ;;  %v607_v14 = vld [vmem:[%s11072_s7 + $0x530] sm:$0xff]  ;;  %v601_v43 = vld [vmem:[%s11072_s7 + $0x500] sm:$0xff]  ;;  %11631 = vst [vmem:[#allocation54_spill] sm:$0xff] %v5550_v62 }
  0x54   :  { %814 = vmatpush.msrb.mxu0 %v517_v23  ;;  %v493_v23 = vld [vmem:[%s11072_s7 + $0x1a0] sm:$0xff]  ;;  %11634 = vst [vmem:[#allocation57_spill] sm:$0xff] %v5570_v26 }
  0x55   :  { %833 = vmatpush.msrb.mxu1 %v619_v12  ;;  %v5501_v12 = vld [vmem:[%s11072_s7 + $0x2e8] sm:$0xff]  ;;  %11643 = vst [vmem:[#allocation65_spill] sm:$0xff] %v5638_v17 }
  0x56   :  { %815 = vmatpush.msrb.mxu0 %v511_v51  ;;  %11626 = vst [vmem:[#allocation49_spill] sm:$0xff] %v5501_v12  ;;  %v11126_v51 = vmov 0.0  }
  0x57   :  { %834 = vmatpush.msrb.mxu1 %v613_v8  ;;  %v5517_v8 = vld [vmem:[%s11072_s7 + $0x5e8] sm:$0xff] }
  0x58   :  { %816 = vmatpush.msrb.mxu0 %v505_v19  ;;  %v5512_v19 = vld [vmem:[%s11072_s7 + $0x2b8] sm:$0xff]  ;;  %11628 = vst [vmem:[#allocation51_spill] sm:$0xff] %v5517_v8 }
  0x59   :  { %835 = vmatpush.msrb.mxu1 %v607_v14  ;;  %11627 = vst [vmem:[#allocation50_spill] sm:$0xff] %v5512_v19  ;;  %v487_v14 = vld [vmem:[%s11072_s7 + $0x170] sm:$0xff] }
  0x5a   :  { %817 = vmatpush.msrb.mxu0 %v499_v30  ;;  %v5532_v30 = vld [vmem:[%s11072_s7 + $0x288] sm:$0xff] }
  0x5b   :  { %836 = vmatpush.msrb.mxu1 %v601_v43  ;;  %3787 = vmatmul.msk.bf16.gmra.mxu0 %vm118_vm0, %v5208_v50  ;;  %v595_v43 = vld [vmem:[%s11072_s7 + $0x4d0] sm:$0xff]  ;;  %11629 = vst [vmem:[#allocation52_spill] sm:$0xff] %v5532_v30 }
  0x5c   :  { %687 = vmatmul.f32.vlgmr.msra.gmra.mxu3 %v11126_v51  ;;  %818 = vmatpush.msrb.mxu0 %v493_v23  ;;  %v5555_v23 = vld [vmem:[%s11072_s7 + $0x588] sm:$0xff] }
  0x5d   :  { %667 = vmatmul.f32.vlgmr.msra.gmra.mxu2 %v11126_v51  ;;  %791 = vmatpush.msra.mxu3 %v5517_v8  ;;  %v481_v51 = vld [vmem:[%s11072_s7 + $0x140] sm:$0xff]  ;;  %11632 = vst [vmem:[#allocation55_spill] sm:$0xff] %v5555_v23  ;;  %v583_v8 = vld [vmem:[%s11072_s7 + $0x470] sm:$0xff] }
  0x5e   :  { %771 = vmatpush.msra.mxu2 %v5501_v12  ;;  %3791 = vmatmul.msk.bf16.gmra.mxu1 %vm118_vm0, %v5208_v50  ;;  %v5537_v12 = vld [vmem:[%s11072_s7 + $0x5b8] sm:$0xff]  ;;  %v589_v50 = vld [vmem:[%s11072_s7 + $0x4a0] sm:$0xff] }
  0x5f   :  { %11630 = vst [vmem:[#allocation53_spill] sm:$0xff] %v5537_v12  ;;  %837 = vmatpush.msrb.mxu1 %v595_v43  ;;  %819 = vmatpush.msrb.mxu0 %v487_v14  ;;  %v475_v43 = vld [vmem:[%s11072_s7 + $0x110] sm:$0xff]  ;;  %v11635_v14 = vmov 0.0  }
  0x60   :  { %772 = vmatpush.msra.mxu2 %v5512_v19  ;;  %792 = vmatpush.msra.mxu3 %v5537_v12  ;;  %v5565_v19 = vld [vmem:[%s11072_s7 + $0x228] sm:$0xff]  ;;  %v5581_v12 = vld [vmem:[%s11072_s7 + $0x1f8] sm:$0xff] }
  0x61   :  { %11633 = vst [vmem:[#allocation56_spill] sm:$0xff] %v5565_v19  ;;  %838 = vmatpush.msrb.mxu1 %v589_v50  ;;  %820 = vmatpush.msrb.mxu0 %v481_v51  ;;  %v5586_v50 = vld [vmem:[%s11072_s7 + $0x528] sm:$0xff]  ;;  %v577_v51 = vld [vmem:[%s11072_s7 + $0x440] sm:$0xff] }
  0x62   :  { %773 = vmatpush.msra.mxu2 %v5532_v30  ;;  %793 = vmatpush.msra.mxu3 %v5555_v23  ;;  %11636 = vst [vmem:[#allocation58_spill] sm:$0xff] %v5581_v12  ;;  %v469_v23 = vld [vmem:[%s11072_s7 + $0xe0] sm:$0xff]  ;;  %v5618_v30 = vld [vmem:[%s11072_s7 + $0x198] sm:$0xff] }
  0x63   :  { %11637 = vst [vmem:[#allocation59_spill] sm:$0xff] %v5586_v50  ;;  %839 = vmatpush.msrb.mxu1 %v583_v8  ;;  %v5605_v8 = vld [vmem:[%s11072_s7 + $0x4f8] sm:$0xff]  ;;  %821 = vmatpush.msrb.mxu0 %v475_v43  ;;  %v5623_v43 = vld [vmem:[%s11072_s7 + $0x4c8] sm:$0xff] }
  0x64   :  { %774 = vmatpush.msra.mxu2 %v5550_v62  ;;  %794 = vmatpush.msra.mxu3 %v5570_v26  ;;  %v5600_v62 = vld [vmem:[%s11072_s7 + $0x1c8] sm:$0xff]  ;;  %11639 = vst [vmem:[#allocation61_spill] sm:$0xff] %v5605_v8  ;;  %v571_v26 = vld [vmem:[%s11072_s7 + $0x410] sm:$0xff] }
  0x65   :  { %707 = vmatmul.f32.vlgmr.msrb.gmra.mxu2 %v11635_v14  ;;  %727 = vmatmul.f32.vlgmr.msrb.gmra.mxu3 %v11635_v14  ;;  %11638 = vst [vmem:[#allocation60_spill] sm:$0xff] %v5600_v62 }
  0x66   :  { %775 = vmatpush.msra.mxu2 %v5565_v19  ;;  %795 = vmatpush.msra.mxu3 %v5586_v50  ;;  %v463_v19 = vld [vmem:[%s11072_s7 + $0xb0] sm:$0xff]  ;;  %11640 = vst [vmem:[#allocation62_spill] sm:$0xff] %v5618_v30  ;;  %v565_v50 = vld [vmem:[%s11072_s7 + $0x3e0] sm:$0xff] }
  0x67   :  { %11641 = vst [vmem:[#allocation63_spill] sm:$0xff] %v5623_v43  ;;  %840 = vmatpush.msrb.mxu1 %v577_v51  ;;  %822 = vmatpush.msrb.mxu0 %v469_v23  ;;  %v457_v23 = vld [vmem:[%s11072_s7 + $0x80] sm:$0xff]  ;;  %v5650_v51 = vld [vmem:[%s11072_s7 + $0x138] sm:$0xff] }
  0x68   :  { %776 = vmatpush.msra.mxu2 %v5581_v12  ;;  %796 = vmatpush.msra.mxu3 %v5605_v8  ;;  %v5633_v12 = vld [vmem:[%s11072_s7 + $0x168] sm:$0xff]  ;;  %11644 = vst [vmem:[#allocation66_spill] sm:$0xff] %v5650_v51 }
  0x69   :  { %11642 = vst [vmem:[#allocation64_spill] sm:$0xff] %v5633_v12  ;;  %841 = vmatpush.msrb.mxu1 %v571_v26  ;;  %823 = vmatpush.msrb.mxu0 %v463_v19  ;;  %v5655_v26 = vld [vmem:[%s11072_s7 + $0x468] sm:$0xff]  ;;  %v559_v19 = vld [vmem:[%s11072_s7 + $0x3b0] sm:$0xff] }
  0x6a   :  { %777 = vmatpush.msra.mxu2 %v5600_v62  ;;  %797 = vmatpush.msra.mxu3 %v5623_v43  ;;  %11645 = vst [vmem:[#allocation67_spill] sm:$0xff] %v5655_v26  ;;  %v451_v43 = vld [vmem:[%s11072_s7 + $0x50] sm:$0xff]  ;;  %v5708_v8 = vld [vmem:[%s11072_s7 + $0xa8] sm:$0xff]  ;;  %v5713_v62 = vld [vmem:[%s11072_s7 + $0x3d8] sm:$0xff] }
  0x6b   :  { %3788 = vmatmul.msk.bf16.gmra.mxu0 %vm118_vm0, %v5389_v42  ;;  %842 = vmatpush.msrb.mxu1 %v565_v50  ;;  %v5675_v50 = vld [vmem:[%s11072_s7 + $0x438] sm:$0xff]  ;;  %11649 = vst [vmem:[#allocation71_spill] sm:$0xff] %v5708_v8 }
  0x6c   :  { %778 = vmatpush.msra.mxu2 %v5618_v30  ;;  %798 = vmatpush.msra.mxu3 %v5638_v17  ;;  %v5670_v30 = vld [vmem:[%s11072_s7 + $0x108] sm:$0xff]  ;;  %11646 = vst [vmem:[#allocation68_spill] sm:$0xff] %v5675_v50  ;;  %v992_v17 = vld [vmem:[%s11074_s2] sm:$0xff] }
  0x6d   :  { %824 = vmatpush.msrb.mxu0 %v457_v23  ;;  %v5693_v23 = vld [vmem:[%s11072_s7 + $0xd8] sm:$0xff]  ;;  %843 = vmatpush.msrb.mxu1 %v559_v19  ;;  %vm993_vm1 = vcmp.ne.f32.partialorder %v992_v17, 0.0  ;;  %11650 = vst [vmem:[#allocation72_spill] sm:$0xff] %v5713_v62  ;;  %v541_v17 = vld [vmem:[%s11072_s7 + $0x320] sm:$0xff] }
  0x6e   :  { %779 = vmatpush.msra.mxu2 %v5633_v12  ;;  %3792 = vmatmul.msk.bf16.gmra.mxu1 %vm118_vm0, %v5389_v42  ;;  %v553_v42 = vld [vmem:[%s11072_s7 + $0x380] sm:$0xff] }
  0x6f   :  { %799 = vmatpush.msra.mxu3 %v5655_v26  ;;  %v5688_v12 = vld [vmem:[%s11072_s7 + $0x20] sm:$0xff]  ;;  %825 = vmatpush.msrb.mxu0 %v451_v43  ;;  %v547_v26 = vld [vmem:[%s11072_s7 + $0x350] sm:$0xff]  ;;  %v11152_v43 = vmov 0  }
  0x70   :  { %780 = vmatpush.msra.mxu2 %v5650_v51  ;;  %11647 = vst [vmem:[#allocation69_spill] sm:$0xff] %v5688_v12  ;;  %v5698_v51 = vld [vmem:[%s11072_s7 + $0x408] sm:$0xff]  ;;  %844 = vmatpush.msrb.mxu1 %v553_v42  ;;  %v5722_v19 = vsel %vm993_vm1, 1, %v11152_v43 }
  0x71   :  { %11648 = vst [vmem:[#allocation70_spill] sm:$0xff] %v5698_v51  ;;  %800 = vmatpush.msra.mxu3 %v5675_v50  ;;  %826 = vmatpush.msrb.mxu0 %v5688_v12  ;;  %v5727_v50 = vld [vmem:[%s11072_s7 + $0x78] sm:$0xff]  ;;  %v5732_v42 = vld [vmem:[%s11072_s7 + $0x3a8] sm:$0xff] }
  0x72   :  { %781 = vmatpush.msra.mxu2 %v5670_v30  ;;  %11651 = vst [vmem:[#allocation73_spill] sm:$0xff] %v5727_v50  ;;  %845 = vmatpush.msrb.mxu1 %v547_v26  ;;  %v5740_v12 = vld [vmem:[%s11072_s7 + $0x48] sm:$0xff]  ;;  %v3797_v26 = vld [vmem:[%s11074_s2 + $0x38] sm:$0xff] }
  0x73   :  { %801 = vmatpush.msra.mxu3 %v5698_v51  ;;  %11652 = vst [vmem:[#allocation74_spill] sm:$0xff] %v5732_v42  ;;  %3891 = vset.pattern.permute.xlu0 %v11152_v43  ;;  %v5745_v51 = vld [vmem:[%s11072_s7 + $0x378] sm:$0xff]  ;;  %vm996_vm2 = vcmp.ne.f32.partialorder %v3797_v26, 0.0 }
  0x74   :  { %782 = vmatpush.msra.mxu2 %v5693_v23  ;;  %11653 = vst [vmem:[#allocation75_spill] sm:$0xff] %v5740_v12  ;;  %846 = vmatpush.msrb.mxu1 %v541_v17  ;;  %v5756_v43 = vld [vmem:[%s11072_s7 + $0x18] sm:$0xff]  ;;  %v11657_v17 = vmov 0  }
  0x75   :  { %802 = vmatpush.msra.mxu3 %v5713_v62  ;;  %11654 = vst [vmem:[#allocation76_spill] sm:$0xff] %v5745_v51  ;;  %999 = vperm.xlu0 %3891, %v5722_v19   ;;  %v5761_v62 = vld [vmem:[%s11072_s7 + $0x348] sm:$0xff]  ;;  %v1004_v26 = vsel %vm996_vm2, 1, %v11657_v17 }
  0x76   :  { %783 = vmatpush.msra.mxu2 %v5708_v8  ;;  %11655 = vst [vmem:[#allocation77_spill] sm:$0xff] %v5756_v43  ;;  %3892 = vset.pattern.permute.xlu1 %v11657_v17  ;;  %v5819_v8 = vld [vmem:[%s11072_s7 + $0x598] sm:$0xff] }
  0x77   :  { %803 = vmatpush.msra.mxu3 %v5732_v42  ;;  %11656 = vst [vmem:[#allocation78_spill] sm:$0xff] %v5761_v62  ;;  %3893 = vset.pattern.permute.xlu2 %v11657_v17  ;;  %v5770_v42 = vld [vmem:[%s11072_s7 + $0x2f8] sm:$0xff] }
  0x78   :  { %784 = vmatpush.msra.mxu2 %v5727_v50  ;;  %11658 = vst [vmem:[#allocation79_spill] sm:$0xff] %v5770_v42  ;;  %v5775_v50 = vld [vmem:[%s11072_s7 + $0x318] sm:$0xff] }
  0x79   :  { %804 = vmatpush.msra.mxu3 %v5745_v51  ;;  %11659 = vst [vmem:[#allocation80_spill] sm:$0xff] %v5775_v50  ;;  %v5784_v51 = vld [vmem:[%s11072_s7 + $0x2c8] sm:$0xff] }
  0x7a   :  { %785 = vmatpush.msra.mxu2 %v5740_v12  ;;  %11660 = vst [vmem:[#allocation81_spill] sm:$0xff] %v5784_v51  ;;  %v5789_v12 = vld [vmem:[%s11072_s7 + $0x5f8] sm:$0xff] }
  0x7b   :  { %805 = vmatpush.msra.mxu3 %v5761_v62  ;;  %747 = vmatmul.f32.vlgmr.msra.gmra.mxu0 %v11635_v14  ;;  %11661 = vst [vmem:[#allocation82_spill] sm:$0xff] %v5789_v12  ;;  %v5799_v62 = vld [vmem:[%s11072_s7 + $0x298] sm:$0xff] }
  0x7c   :  { %786 = vmatpush.msra.mxu2 %v5756_v43  ;;  %v5804_v43 = vld [vmem:[%s11072_s7 + $0x5c8] sm:$0xff]  ;;  %11663 = vst [vmem:[#allocation84_spill] sm:$0xff] %v5819_v8  ;;  %1018 = vmatpush.msra.mxu0 %v4817_v32 }
  0x7d   :  { %787 = vmatmul.f32.vlgmr.msra.gmra.mxu2 %v11635_v14  ;;  %806 = vmatpush.msra.mxu3 %v5775_v50  ;;  %11662 = vst [vmem:[#allocation83_spill] sm:$0xff] %v5804_v43  ;;  %v5814_v50 = vld [vmem:[%s11072_s7 + $0x268] sm:$0xff] }
  0x7e   :  { %851 = vmatpush.msrb.mxu2 %v5770_v42  ;;  %807 = vmatmul.f32.vlgmr.msra.gmra.mxu3 %v11635_v14  ;;  %v3819_v42 = vld [vmem:[%s11074_s2 + $0x18] sm:$0xff]  ;;  %v5842_v32 = vld [vmem:[%s11072_s7 + $0x208] sm:$0xff] }
  0x7f   :  { %767 = vmatmul.f32.vlgmr.msra.gmra.mxu1 %v11635_v14  ;;  %871 = vmatpush.msrb.mxu3 %v5789_v12  ;;  %v5827_v12 = vld [vmem:[%s11072_s7 + $0x238] sm:$0xff]  ;;  %vm2099_vm3 = vcmp.ne.f32.partialorder %v3819_v42, 0.0  ;;  %v5862_v42 = vld [vmem:[%s11072_s7 + $0x508] sm:$0xff] }
  0x80   :  { %852 = vmatpush.msrb.mxu2 %v5784_v51  ;;  %1006 = vperm.xlu0 %3891, %v1004_v26   ;;  %v5832_v51 = vld [vmem:[%s11072_s7 + $0x568] sm:$0xff]  ;;  %v5847_v26 = vld [vmem:[%s11072_s7 + $0x538] sm:$0xff]  ;;  %11666 = vst [vmem:[#allocation87_spill] sm:$0xff] %v5862_v42 }
  0x81   :  { %872 = vmatpush.msrb.mxu3 %v5804_v43  ;;  %11664 = vst [vmem:[#allocation85_spill] sm:$0xff] %v5832_v51  ;;  %1019 = vmatpush.msra.mxu0 %v4827_v34  ;;  %v5857_v34 = vld [vmem:[%s11072_s7 + $0x1d8] sm:$0xff]  ;;  %v5892_v43 = vld [vmem:[%s11072_s7 + $0x4a8] sm:$0xff] }
  0x82   :  { %853 = vmatpush.msrb.mxu2 %v5799_v62  ;;  %1038 = vmatpush.msra.mxu1 %v4822_v33  ;;  %11665 = vst [vmem:[#allocation86_spill] sm:$0xff] %v5847_v26  ;;  %v2103_v33 = vsel %vm2099_vm3, 1, %v11657_v17 }
  0x83   :  { %873 = vmatpush.msrb.mxu3 %v5819_v8  ;;  %827 = vmatmul.f32.vlgmr.msrb.gmra.mxu0 %v11635_v14  ;;  %v5887_v8 = vld [vmem:[%s11072_s7 + $0x178] sm:$0xff]  ;;  %11668 = vst [vmem:[#allocation89_spill] sm:$0xff] %v5892_v43 }
  0x84   :  { %854 = vmatpush.msrb.mxu2 %v5814_v50  ;;  %1039 = vmatpush.msra.mxu1 %v4832_v35  ;;  %v5870_v35 = vld [vmem:[%s11072_s7 + $0x1a8] sm:$0xff] }
  0x85   :  { %874 = vmatpush.msrb.mxu3 %v5832_v51  ;;  %1020 = vmatpush.msra.mxu0 %v4839_v36  ;;  %v5875_v51 = vld [vmem:[%s11072_s7 + $0x4d8] sm:$0xff] }
  0x86   :  { %855 = vmatpush.msrb.mxu2 %v5827_v12  ;;  %11667 = vst [vmem:[#allocation88_spill] sm:$0xff] %v5875_v51  ;;  %1040 = vmatpush.msra.mxu1 %v4844_v37  ;;  %v5915_v37 = vld [vmem:[%s11072_s7 + $0x118] sm:$0xff] }
  0x87   :  { %847 = vmatmul.f32.vlgmr.msrb.gmra.mxu1 %v11635_v14  ;;  %875 = vmatpush.msrb.mxu3 %v5847_v26 }
  0x88   :  { %856 = vmatpush.msrb.mxu2 %v5842_v32  ;;  %2105 = vperm.xlu0 %3891, %v2103_v33   ;;  %v5880_v36 = vpop.f32.mrf.mxu0 }
  0x89   :  { %1021 = vmatpush.msra.mxu0 %v4857_v40  ;;  %876 = vmatpush.msrb.mxu3 %v5862_v42  ;;  %v5901_v40 = vld [vmem:[%s11072_s7 + $0x148] sm:$0xff]  ;;  %v5906_v42 = vld [vmem:[%s11072_s7 + $0x478] sm:$0xff] }
  0x8a   :  { %857 = vmatpush.msrb.mxu2 %v5857_v34  ;;  %v5882_v26 = vpop.f32.mrf.mxu1  ;;  %11669 = vst [vmem:[#allocation90_spill] sm:$0xff] %v5906_v42  ;;  %1041 = vmatpush.msra.mxu1 %v4862_v41 }
  0x8b   :  { %1022 = vmatpush.msra.mxu0 %v4875_v45  ;;  %877 = vmatpush.msrb.mxu3 %v5875_v51  ;;  %v5920_v45 = vld [vmem:[%s11072_s7 + $0x448] sm:$0xff] }
  0x8c   :  { %858 = vmatpush.msrb.mxu2 %v5870_v35  ;;  %1042 = vmatpush.msra.mxu1 %v4880_v46  ;;  %v5936_v51 = vld [vmem:[%s11072_s7 + $0xe8] sm:$0xff]  ;;  %v5941_v46 = vld [vmem:[%s11072_s7 + $0x418] sm:$0xff] }
  0x8d   :  { %1023 = vmatpush.msra.mxu0 %v4887_v48  ;;  %878 = vmatpush.msrb.mxu3 %v5892_v43  ;;  %v3843_v48 = vld [vmem:[%s11074_s2 + $0x30] sm:$0xff] }
  0x8e   :  { %859 = vmatpush.msrb.mxu2 %v5887_v8  ;;  %v5926_v41 = vpop.f32.mrf.mxu2  ;;  %vm3201_vm4 = vcmp.ne.f32.partialorder %v3843_v48, 0.0  ;;  %1043 = vmatpush.msra.mxu1 %v4892_v49  ;;  %v5989_v48 = vld [vmem:[%s11072_s7 + $0x388] sm:$0xff] }
  0x8f   :  { %1024 = vmatpush.msra.mxu0 %v4909_v52  ;;  %879 = vmatpush.msrb.mxu3 %v5906_v42  ;;  %11670 = vst [vmem:[#allocation91_spill] sm:$0xff] %v5926_v41  ;;  %v5931_v43 = vpop.f32.mrf.mxu3  ;;  %v5953_v41 = vld [vmem:[%s11072_s7 + $0xb8] sm:$0xff]  ;;  %v5958_v42 = vld [vmem:[%s11072_s7 + $0x3e8] sm:$0xff]  ;;  %v5979_v49 = vsel %vm3201_vm4, 1, %v11657_v17 }
  0x90   :  { %860 = vmatpush.msrb.mxu2 %v5901_v40  ;;  %11671 = vst [vmem:[#allocation92_spill] sm:$0xff] %v5931_v43  ;;  %2480 = vperm.xlu0 %3891, %v2103_v33   ;;  %v5946_v52 = vpop.f32.mrf.mxu0  ;;  %v5972_v33 = vld [vmem:[%s11072_s7 + $0x3b8] sm:$0xff] }
  0x91   :  { %1025 = vmatpush.msra.mxu0 %v4925_v54  ;;  %880 = vmatpush.msrb.mxu3 %v5920_v45  ;;  %11672 = vst [vmem:[#allocation93_spill] sm:$0xff] %v5946_v52  ;;  %v5967_v54 = vld [vmem:[%s11072_s7 + $0x88] sm:$0xff]  ;;  %v6007_v52 = vld [vmem:[%s11072_s7 + $0x358] sm:$0xff] }
  0x92   :  { %861 = vmatpush.msrb.mxu2 %v5915_v37  ;;  %v5948_v43 = vpop.f32.mrf.mxu1  ;;  %1044 = vmatpush.msra.mxu1 %v4914_v53 }
  0x93   :  { %11673 = vst [vmem:[#allocation94_spill] sm:$0xff] %v5948_v43  ;;  %1026 = vmatpush.msra.mxu0 %v4937_v56  ;;  %881 = vmatpush.msrb.mxu3 %v5941_v46  ;;  %v5984_v56 = vld [vmem:[%s11072_s7 + $0x58] sm:$0xff]  ;;  %v6002_v43 = vld [vmem:[%s11072_s7 + $0x28] sm:$0xff] }
  0x94   :  { %862 = vmatpush.msrb.mxu2 %v5936_v51  ;;  %1045 = vmatpush.msra.mxu1 %v4930_v55 }
  0x95   :  { %1027 = vmatpush.msra.mxu0 %v4949_v58  ;;  %882 = vmatpush.msrb.mxu3 %v5958_v42 }
  0x96   :  { %863 = vmatpush.msrb.mxu2 %v5953_v41  ;;  %v5995_v53 = vpop.f32.mrf.mxu2  ;;  %1046 = vmatpush.msra.mxu1 %v4942_v57 }
  0x97   :  { %1028 = vmatpush.msra.mxu0 %v4982_v0  ;;  %883 = vmatpush.msrb.mxu3 %v5972_v33  ;;  %11674 = vst [vmem:[#allocation95_spill] sm:$0xff] %v5995_v53  ;;  %v5997_v58 = vpop.f32.mrf.mxu3 }
  0x98   :  { %864 = vmatpush.msrb.mxu2 %v5967_v54  ;;  %11675 = vst [vmem:[#allocation96_spill] sm:$0xff] %v5997_v58  ;;  %3206 = vperm.xlu0 %3891, %v5979_v49   ;;  %v6013_v55 = vpop.f32.mrf.mxu0  ;;  %v6020_v58 = vld [vmem:[%s11072_s7 + $0x328] sm:$0xff] }
  0x99   :  { %1029 = vmatpush.msra.mxu0 %v5001_v3  ;;  %884 = vmatpush.msrb.mxu3 %v5989_v48  ;;  %11676 = vst [vmem:[#allocation97_spill] sm:$0xff] %v6013_v55  ;;  %v6612_v55 = vld [vmem:[%s11072_s7 + $0x3e0] sm:$0xff] }
  0x9a   :  { %865 = vmatpush.msrb.mxu2 %v5984_v56  ;;  %1047 = vmatpush.msra.mxu1 %v4959_v60 }
  0x9b   :  { %v6015_v0 = vpop.f32.mrf.mxu1  ;;  %1030 = vmatpush.msra.mxu0 %v5015_v5  ;;  %885 = vmatpush.msrb.mxu3 %v6007_v52 }
  0x9c   :  { %11677 = vst [vmem:[#allocation98_spill] sm:$0xff] %v6015_v0  ;;  %866 = vmatpush.msrb.mxu2 %v6002_v43  ;;  %1048 = vmatpush.msra.mxu1 %v4987_v1  ;;  %v11683_v1 = vld [vmem:[#allocation24_spill] sm:$0xff] }
  0x9d   :  { %867 = vmatmul.f32.vlgmr.msrb.gmra.mxu2 %v11635_v14  ;;  %1031 = vmatpush.msra.mxu0 %v5039_v9 }
  0x9e   :  { %886 = vmatpush.msrb.mxu3 %v6020_v58  ;;  %1058 = vmatpush.msra.mxu2 %v5102_v20  ;;  %v11692_v20 = vld [vmem:[#allocation4_spill] sm:$0xff] }
  0x9f   :  { %887 = vmatmul.f32.vlgmr.msrb.gmra.mxu3 %v11635_v14  ;;  %1032 = vmatpush.msra.mxu0 %v5066_v13  ;;  %v6036_v57 = vpop.f32.mrf.mxu3  ;;  %v11706_v14 = vld [vmem:[#allocation8_spill] sm:$0xff] }
  0xa0   :  { %v6032_v3 = vpop.f32.mrf.mxu2  ;;  %1059 = vmatpush.msra.mxu2 %v5126_v24  ;;  %1078 = vmatpush.msra.mxu3 %v5107_v21  ;;  %v6040_v5 = vpop.f32.mrf.mxu0  ;;  %v11695_v24 = vld [vmem:[#allocation29_spill] sm:$0xff] }
  0xa1   :  { %3581 = vperm.xlu0 %3891, %v5722_v19   ;;  %1033 = vmatpush.msra.mxu0 %v5088_v18  ;;  %11678 = vst [vmem:[#allocation99_spill] sm:$0xff] %v6040_v5 }
  0xa2   :  { %1060 = vmatpush.msra.mxu2 %v5148_v28  ;;  %1079 = vmatpush.msra.mxu3 %v5131_v25  ;;  %v11698_v28 = vld [vmem:[#allocation5_spill] sm:$0xff] }
  0xa3   :  { %v6044_v9 = vpop.f32.mrf.mxu1  ;;  %1098 = vmatpush.msrb.mxu0 %v4954_v59  ;;  %1049 = vmatpush.msra.mxu1 %v5006_v4  ;;  %v11684_v4 = vld [vmem:[#allocation21_spill] sm:$0xff] }
  0xa4   :  { %11679 = vst [vmem:[#allocation100_spill] sm:$0xff] %v6044_v9  ;;  %1061 = vmatpush.msra.mxu2 %v5172_v38  ;;  %1080 = vmatpush.msra.mxu3 %v5153_v29  ;;  %v11699_v29 = vld [vmem:[#allocation36_spill] sm:$0xff]  ;;  %v11701_v38 = vld [vmem:[#allocation17_spill] sm:$0xff] }
  0xa5   :  { %1099 = vmatpush.msrb.mxu0 %v4965_v61  ;;  %1050 = vmatpush.msra.mxu1 %v5020_v6  ;;  %v11685_v6 = vld [vmem:[#allocation11_spill] sm:$0xff] }
  0xa6   :  { %1062 = vmatpush.msra.mxu2 %v5196_v44  ;;  %1081 = vmatpush.msra.mxu3 %v5177_v39  ;;  %v11702_v39 = vld [vmem:[#allocation6_spill] sm:$0xff]  ;;  %v11703_v44 = vld [vmem:[#allocation40_spill] sm:$0xff] }
  0xa7   :  { %1100 = vmatpush.msrb.mxu0 %v4977_v63  ;;  %v6060_v59 = vpop.f32.mrf.mxu3  ;;  %1051 = vmatpush.msra.mxu1 %v5044_v10  ;;  %v11682_v63 = vld [vmem:[#allocation7_spill] sm:$0xff]  ;;  %v11689_v10 = vld [vmem:[#allocation25_spill] sm:$0xff] }
  0xa8   :  { %v6056_v13 = vpop.f32.mrf.mxu2  ;;  %1063 = vmatpush.msra.mxu2 %v5218_v27  ;;  %1082 = vmatpush.msra.mxu3 %v5201_v47  ;;  %v6064_v60 = vpop.f32.mrf.mxu0  ;;  %v11697_v27 = vld [vmem:[#allocation15_spill] sm:$0xff]  ;;  %v11704_v47 = vld [vmem:[#allocation37_spill] sm:$0xff] }
  0xa9   :  { %1101 = vmatpush.msrb.mxu0 %v5052_v11  ;;  %11680 = vst [vmem:[#allocation101_spill] sm:$0xff] %v6064_v60  ;;  %1052 = vmatpush.msra.mxu1 %v11682_v63  ;;  %v11686_v11 = vld [vmem:[#allocation9_spill] sm:$0xff]  ;;  %v11708_v63 = vld [vmem:[#allocation43_spill] sm:$0xff] }
  0xaa   :  { %1064 = vmatpush.msra.mxu2 %v5247_v7  ;;  %1083 = vmatpush.msra.mxu3 %v5224_v31  ;;  %v11700_v31 = vld [vmem:[#allocation33_spill] sm:$0xff]  ;;  %v11705_v7 = vld [vmem:[#allocation19_spill] sm:$0xff] }
  0xab   :  { %v6068_v61 = vpop.f32.mrf.mxu1  ;;  %1102 = vmatpush.msrb.mxu0 %v5078_v15  ;;  %1053 = vmatpush.msra.mxu1 %v11686_v11  ;;  %v11688_v15 = vld [vmem:[#allocation28_spill] sm:$0xff]  ;;  %v11712_v11 = vld [vmem:[#allocation10_spill] sm:$0xff] }
  0xac   :  { %11681 = vst [vmem:[#allocation102_spill] sm:$0xff] %v6068_v61  ;;  %1065 = vmatpush.msra.mxu2 %v5269_v2  ;;  %1084 = vmatpush.msra.mxu3 %v5252_v16  ;;  %v11691_v16 = vld [vmem:[#allocation13_spill] sm:$0xff] }
  0xad   :  { %1103 = vmatpush.msrb.mxu0 %v5114_v22  ;;  %1118 = vmatpush.msrb.mxu1 %v11692_v20  ;;  %v11694_v22 = vld [vmem:[#allocation32_spill] sm:$0xff] }
  0xae   :  { %1066 = vmatpush.msra.mxu2 %v11683_v1  ;;  %1085 = vmatpush.msra.mxu3 %v11684_v4  ;;  %v11709_v1 = vld [vmem:[#allocation41_spill] sm:$0xff] }
  0xaf   :  { %1104 = vmatpush.msrb.mxu0 %v11685_v6  ;;  %v6084_v2 = vpop.f32.mrf.mxu3  ;;  %1119 = vmatpush.msrb.mxu1 %v11698_v28  ;;  %v11711_v6 = vld [vmem:[#allocation22_spill] sm:$0xff] }
  0xb0   :  { %v6080_v18 = vpop.f32.mrf.mxu2  ;;  %1067 = vmatpush.msra.mxu2 %v11688_v15  ;;  %1086 = vmatpush.msra.mxu3 %v11689_v10  ;;  %11690 = vst [vmem:[#allocation24_spill] sm:$0xff] %v6084_v2  ;;  %v6088_v21 = vpop.f32.mrf.mxu0  ;;  %v11713_v10 = vld [vmem:[#allocation45_spill] sm:$0xff]  ;;  %v11718_v28 = vld [vmem:[#allocation46_spill] sm:$0xff] }
  0xb1   :  { %11687 = vst [vmem:[#allocation7_spill] sm:$0xff] %v6080_v18  ;;  %1105 = vmatpush.msrb.mxu0 %v11691_v16  ;;  %1120 = vmatpush.msrb.mxu1 %v11702_v39  ;;  %v11714_v16 = vld [vmem:[#allocation44_spill] sm:$0xff]  ;;  %v11722_v39 = vld [vmem:[#allocation14_spill] sm:$0xff] }
  0xb2   :  { %11693 = vst [vmem:[#allocation21_spill] sm:$0xff] %v6088_v21  ;;  %1068 = vmatpush.msra.mxu2 %v11694_v22  ;;  %1087 = vmatpush.msra.mxu3 %v11695_v24  ;;  %v11715_v22 = vld [vmem:[#allocation26_spill] sm:$0xff]  ;;  %v11716_v24 = vld [vmem:[#allocation12_spill] sm:$0xff] }
  0xb3   :  { %v6092_v25 = vpop.f32.mrf.mxu1  ;;  %1106 = vmatpush.msrb.mxu0 %v11697_v27  ;;  %1121 = vmatpush.msrb.mxu1 %v11706_v14  ;;  %v11717_v27 = vld [vmem:[#allocation47_spill] sm:$0xff]  ;;  %v11726_v14 = vld [vmem:[#allocation34_spill] sm:$0xff] }
  0xb4   :  { %11696 = vst [vmem:[#allocation11_spill] sm:$0xff] %v6092_v25  ;;  %1069 = vmatpush.msra.mxu2 %v11699_v29  ;;  %1088 = vmatpush.msra.mxu3 %v11700_v31  ;;  %v11719_v29 = vld [vmem:[#allocation49_spill] sm:$0xff]  ;;  %v11720_v31 = vld [vmem:[#allocation30_spill] sm:$0xff] }
  0xb5   :  { %1107 = vmatpush.msrb.mxu0 %v11701_v38  ;;  %1122 = vmatpush.msrb.mxu1 %v11712_v11  ;;  %v11721_v38 = vld [vmem:[#allocation48_spill] sm:$0xff]  ;;  %v11730_v11 = vld [vmem:[#allocation53_spill] sm:$0xff] }
  0xb6   :  { %1070 = vmatpush.msra.mxu2 %v11703_v44  ;;  %1089 = vmatpush.msra.mxu3 %v11704_v47  ;;  %v11723_v44 = vld [vmem:[#allocation50_spill] sm:$0xff]  ;;  %v11724_v47 = vld [vmem:[#allocation51_spill] sm:$0xff] }
  0xb7   :  { %1108 = vmatpush.msrb.mxu0 %v11705_v7  ;;  %v6108_v4 = vpop.f32.mrf.mxu3  ;;  %1123 = vmatpush.msrb.mxu1 %v11716_v24 }
  0xb8   :  { %v6104_v19 = vpop.f32.mrf.mxu2  ;;  %1071 = vmatpush.msra.mxu2 %v11708_v63  ;;  %1090 = vmatpush.msra.mxu3 %v11709_v1  ;;  %11710 = vst [vmem:[#allocation28_spill] sm:$0xff] %v6108_v4  ;;  %v6112_v15 = vpop.f32.mrf.mxu0  ;;  %v11727_v63 = vld [vmem:[#allocation16_spill] sm:$0xff] }
  0xb9   :  { %11707 = vst [vmem:[#allocation9_spill] sm:$0xff] %v6104_v19  ;;  %1109 = vmatpush.msrb.mxu0 %v11711_v6  ;;  %1124 = vmatpush.msrb.mxu1 %v11722_v39  ;;  %v11729_v6 = vld [vmem:[#allocation52_spill] sm:$0xff]  ;;  %v11738_v39 = vld [vmem:[#allocation23_spill] sm:$0xff] }
  0xba   :  { %1072 = vmatpush.msra.mxu2 %v11713_v10  ;;  %1091 = vmatpush.msra.mxu3 %v11714_v16  ;;  %v11731_v16 = vld [vmem:[#allocation38_spill] sm:$0xff] }
  0xbb   :  { %v6116_v20 = vpop.f32.mrf.mxu1  ;;  %1110 = vmatpush.msrb.mxu0 %v11715_v22  ;;  %1125 = vmatpush.msrb.mxu1 %v11727_v63  ;;  %v11732_v22 = vld [vmem:[#allocation18_spill] sm:$0xff]  ;;  %v11742_v63 = vld [vmem:[#allocation27_spill] sm:$0xff] }
  0xbc   :  { %1073 = vmatpush.msra.mxu2 %v11717_v27  ;;  %1092 = vmatpush.msra.mxu3 %v11718_v28  ;;  %v11733_v27 = vld [vmem:[#allocation54_spill] sm:$0xff]  ;;  %v11734_v28 = vld [vmem:[#allocation55_spill] sm:$0xff] }
  0xbd   :  { %1111 = vmatpush.msrb.mxu0 %v11720_v31  ;;  %1126 = vmatpush.msrb.mxu1 %v11732_v22  ;;  %v11736_v31 = vld [vmem:[#allocation56_spill] sm:$0xff] }
  0xbe   :  { %1138 = vmatpush.msrb.mxu2 %v11719_v29  ;;  %1093 = vmatpush.msra.mxu3 %v11721_v38  ;;  %v11735_v29 = vld [vmem:[#allocation20_spill] sm:$0xff]  ;;  %v11737_v38 = vld [vmem:[#allocation57_spill] sm:$0xff] }
  0xbf   :  { %1112 = vmatpush.msrb.mxu0 %v11726_v14  ;;  %v6132_v1 = vpop.f32.mrf.mxu3  ;;  %1127 = vmatpush.msrb.mxu1 %v11735_v29  ;;  %v11749_v29 = vld [vmem:[#allocation62_spill] sm:$0xff] }
  0xc0   :  { %1139 = vmatpush.msrb.mxu2 %v11723_v44  ;;  %1158 = vmatpush.msrb.mxu3 %v11724_v47  ;;  %v6128_v7 = vpop.f32.mrf.mxu2  ;;  %11728 = vst [vmem:[#allocation13_spill] sm:$0xff] %v6132_v1  ;;  %v6136_v10 = vpop.f32.mrf.mxu0  ;;  %v11739_v44 = vld [vmem:[#allocation58_spill] sm:$0xff]  ;;  %v11740_v47 = vld [vmem:[#allocation59_spill] sm:$0xff] }
  0xc1   :  { %11725 = vst [vmem:[#allocation25_spill] sm:$0xff] %v6128_v7  ;;  %1113 = vmatpush.msrb.mxu0 %v11731_v16  ;;  %1128 = vmatpush.msrb.mxu1 %v11738_v39  ;;  %v11745_v16 = vld [vmem:[#allocation61_spill] sm:$0xff]  ;;  %v11752_v39 = vld [vmem:[#allocation64_spill] sm:$0xff] }
  0xc2   :  { %1140 = vmatpush.msrb.mxu2 %v11729_v6  ;;  %1159 = vmatpush.msrb.mxu3 %v11730_v11  ;;  %v11744_v11 = vld [vmem:[#allocation60_spill] sm:$0xff] }
  0xc3   :  { %v6140_v24 = vpop.f32.mrf.mxu1  ;;  %1129 = vmatpush.msrb.mxu1 %v11742_v63  ;;  %v11755_v63 = vld [vmem:[#allocation66_spill] sm:$0xff] }
  0xc4   :  { %1141 = vmatpush.msrb.mxu2 %v11733_v27  ;;  %1160 = vmatpush.msrb.mxu3 %v11734_v28  ;;  %v11747_v27 = vld [vmem:[#allocation31_spill] sm:$0xff] }
  0xc5   :  { %1130 = vmatpush.msrb.mxu1 %v11747_v27  ;;  %v11758_v27 = vld [vmem:[#allocation42_spill] sm:$0xff] }
  0xc6   :  { %1142 = vmatpush.msrb.mxu2 %v11736_v31  ;;  %1161 = vmatpush.msrb.mxu3 %v11737_v38  ;;  %v11750_v31 = vld [vmem:[#allocation63_spill] sm:$0xff] }
  0xc7   :  { %v6153_v6 = vpop.f32.mrf.mxu3  ;;  %v11751_v38 = vld [vmem:[#allocation35_spill] sm:$0xff] }
  0xc8   :  { %1143 = vmatpush.msrb.mxu2 %v11739_v44  ;;  %1162 = vmatpush.msrb.mxu3 %v11740_v47  ;;  %v6150_v14 = vpop.f32.mrf.mxu2  ;;  %11743 = vst [vmem:[#allocation32_spill] sm:$0xff] %v6153_v6  ;;  %v6157_v22 = vpop.f32.mrf.mxu0  ;;  %v11753_v44 = vld [vmem:[#allocation65_spill] sm:$0xff]  ;;  %v11754_v47 = vld [vmem:[#allocation39_spill] sm:$0xff] }
  0xc9   :  { %11741 = vst [vmem:[#allocation4_spill] sm:$0xff] %v6150_v14  ;;  %1131 = vmatpush.msrb.mxu1 %v11751_v38 }
  0xca   :  { %1144 = vmatpush.msrb.mxu2 %v11744_v11  ;;  %1163 = vmatpush.msrb.mxu3 %v11745_v16  ;;  %11746 = vst [vmem:[#allocation29_spill] sm:$0xff] %v6157_v22  ;;  %v11756_v11 = vld [vmem:[#allocation67_spill] sm:$0xff] }
  0xcb   :  { %v6160_v28 = vpop.f32.mrf.mxu1  ;;  %1132 = vmatpush.msrb.mxu1 %v11754_v47  ;;  %v11765_v47 = vld [vmem:[#allocation72_spill] sm:$0xff] }
  0xcc   :  { %11748 = vst [vmem:[#allocation15_spill] sm:$0xff] %v6160_v28  ;;  %1145 = vmatpush.msrb.mxu2 %v11749_v29  ;;  %1164 = vmatpush.msrb.mxu3 %v11750_v31  ;;  %v11760_v29 = vld [vmem:[#allocation68_spill] sm:$0xff] }
  0xcd   :  { %1133 = vmatpush.msrb.mxu1 %v11758_v27 }
  0xce   :  { %1146 = vmatpush.msrb.mxu2 %v11752_v39  ;;  %1165 = vmatpush.msrb.mxu3 %v11753_v44  ;;  %v11763_v39 = vld [vmem:[#allocation70_spill] sm:$0xff]  ;;  %v11764_v44 = vld [vmem:[#allocation71_spill] sm:$0xff] }
  0xcf   :  { %v6173_v53 = vpop.f32.mrf.mxu3 }
  0xd0   :  { %1147 = vmatpush.msrb.mxu2 %v11755_v63  ;;  %1166 = vmatpush.msrb.mxu3 %v11756_v11  ;;  %v6170_v16 = vpop.f32.mrf.mxu2  ;;  %11759 = vst [vmem:[#allocation36_spill] sm:$0xff] %v6173_v53  ;;  %v6177_v31 = vpop.f32.mrf.mxu0  ;;  %v11766_v63 = vld [vmem:[#allocation73_spill] sm:$0xff]  ;;  %v11767_v11 = vld [vmem:[#allocation74_spill] sm:$0xff] }
  0xd1   :  { %11757 = vst [vmem:[#allocation5_spill] sm:$0xff] %v6170_v16 }
  0xd2   :  { %1148 = vmatpush.msrb.mxu2 %v5670_v30  ;;  %1167 = vmatpush.msrb.mxu3 %v11760_v29  ;;  %11761 = vst [vmem:[#allocation33_spill] sm:$0xff] %v6177_v31  ;;  %v11769_v30 = vld [vmem:[#allocation75_spill] sm:$0xff]  ;;  %v11770_v29 = vld [vmem:[#allocation76_spill] sm:$0xff] }
  0xd3   :  { %v6179_v38 = vpop.f32.mrf.mxu1 }
  0xd4   :  { %11762 = vst [vmem:[#allocation17_spill] sm:$0xff] %v6179_v38  ;;  %1149 = vmatpush.msrb.mxu2 %v5693_v23  ;;  %1168 = vmatpush.msrb.mxu3 %v11763_v39  ;;  %v6198_v23 = vld [vmem:[%s11075_s8] sm:$0x3f] }
  0xd5   :  { %v6261_v31 = vperm.slane %v6198_v23, 4 }
  0xd6   :  { %1150 = vmatpush.msrb.mxu2 %v11764_v44  ;;  %1169 = vmatpush.msrb.mxu3 %v11765_v47  ;;  %v11774_v44 = vld [vmem:[#allocation77_spill] sm:$0xff]  ;;  %v11775_v47 = vld [vmem:[#allocation78_spill] sm:$0xff] }
  0xd7   :  { %v6191_v16 = vpop.f32.mrf.mxu3  ;;  %11791 = vst [vmem:[#allocation14_spill] sm:$0xff] %v6261_v31 }
  0xd8   :  { %1151 = vmatpush.msrb.mxu2 %v11766_v63  ;;  %1170 = vmatpush.msrb.mxu3 %v11767_v11  ;;  %v6187_v27 = vpop.f32.mrf.mxu2  ;;  %11771 = vst [vmem:[#allocation40_spill] sm:$0xff] %v6191_v16  ;;  %v6193_v53 = vpop.f32.mrf.mxu0  ;;  %v6205_v63 = vperm.slane %v6198_v23, 0  ;;  %v11777_v11 = vld [vmem:[#allocation80_spill] sm:$0xff] }
  0xd9   :  { %11768 = vst [vmem:[#allocation6_spill] sm:$0xff] %v6187_v27 }
  0xda   :  { %1152 = vmatpush.msrb.mxu2 %v11769_v30  ;;  %1171 = vmatpush.msrb.mxu3 %v11770_v29  ;;  %11772 = vst [vmem:[#allocation37_spill] sm:$0xff] %v6193_v53  ;;  %v6211_v30 = vld [vmem:[%s11076_s5] sm:$0x7] }
  0xdb   :  { %v6200_v39 = vpop.f32.mrf.mxu1  ;;  %11776 = vst [vmem:[#allocation8_spill] sm:$0xff] %v6205_v63  ;;  %v6214_v27 = vperm.slane %v6211_v30, 0  ;;  %v6249_v19 = vperm.slane %v6211_v30, 1  ;;  %v6270_v2 = vperm.slane %v6211_v30, 2 }
  0xdc   :  { %11773 = vst [vmem:[#allocation19_spill] sm:$0xff] %v6200_v39  ;;  %1153 = vmatpush.msrb.mxu2 %v11774_v44  ;;  %1172 = vmatpush.msrb.mxu3 %v11775_v47  ;;  %v6224_v39 = vperm.slane %v6198_v23, 1 }
  0xdd   :  { %11778 = vst [vmem:[#allocation43_spill] sm:$0xff] %v6214_v27  ;;  %v141_v47 = vadd.f32 %v5880_v36, %v6214_v27 }
  0xde   :  { %1173 = vmatpush.msrb.mxu3 %v11777_v11  ;;  %11781 = vst [vmem:[#allocation10_spill] sm:$0xff] %v6224_v39 }
  0xdf   :  { %v688_v44 = vpop.f32.mrf.mxu3  ;;  %11788 = vst [vmem:[#allocation49_spill] sm:$0xff] %v6249_v19 }
  0xe0   :  { %v668_v29 = vpop.f32.mrf.mxu2  ;;  %v6217_v14 = vpop.f32.mrf.mxu0 }
  0xe1   :  { %v669_v16 = vadd.f32 %v668_v29, %v6205_v63  ;;  %11779 = vst [vmem:[#allocation41_spill] sm:$0xff] %v6217_v14  ;;  %v6229_v29 = vld [vmem:[%s11077_s6] sm:$0x7] }
  0xe3   :  { %v689_v25 = vadd.f32 %v688_v44, %v669_v16  ;;  %v6221_v6 = vpop.f32.mrf.mxu1 }
  0xe4   :  { %11780 = vst [vmem:[#allocation22_spill] sm:$0xff] %v6221_v6 }
  0xe5   :  { %v900_v11 = vadd.f32 %v689_v25, %v141_v47  ;;  %v6237_v25 = vperm.slane %v6229_v29, 0 }
  0xe7   :  { %v3793_v21 = vmul.f32 -1.442695, %v900_v11  ;;  %11784 = vst [vmem:[#allocation26_spill] sm:$0xff] %v6237_v25 }
  0xe8   :  { %v708_v7 = vpop.f32.mrf.mxu2  ;;  %v6231_v14 = vpop.f32.mrf.mxu0 }
  0xe9   :  { %3895 = vpow2.f32 %v3793_v21  ;;  %11782 = vst [vmem:[#allocation45_spill] sm:$0xff] %v6231_v14  ;;  %v709_v53 = vadd.f32 %v708_v7, %v6224_v39  ;;  %v728_v36 = vpop.f32.mrf.mxu3  ;;  %v316_v21 = vadd.f32 %v6036_v57, %v6237_v25  ;;  %v6246_v7 = vperm.slane %v6198_v23, 2 }
  0xeb   :  { %v6234_v16 = vpop.f32.mrf.mxu1  ;;  %v729_v47 = vadd.f32 %v728_v36, %v709_v53  ;;  %11787 = vst [vmem:[#allocation46_spill] sm:$0xff] %v6246_v7 }
  0xec   :  { %11783 = vst [vmem:[#allocation44_spill] sm:$0xff] %v6234_v16 }
  0xed   :  { %v901_v61 = vadd.f32 %v729_v47, %v316_v21  ;;  %v6258_v21 = vperm.slane %v6229_v29, 1 }
  0xef   :  { %v3896_v44 = vpop.eup %3895  ;;  %v3794_v14 = vmul.f32 -1.442695, %v901_v61  ;;  %v6255_v61 = vperm.slane %v6198_v23, 3  ;;  %11790 = vst [vmem:[#allocation48_spill] sm:$0xff] %v6258_v21 }
  0xf0   :  { %v916_v11 = vadd.f32 1.0, %v3896_v44  ;;  %v6241_v6 = vpop.f32.mrf.mxu0  ;;  %v170_v44 = vadd.f32 %v5882_v26, %v6249_v19  ;;  %v345_v26 = vadd.f32 %v6112_v15, %v6258_v21 }
  0xf1   :  { %11785 = vst [vmem:[#allocation12_spill] sm:$0xff] %v6241_v6 }
  0xf2   :  { %3897 = vrcp.f32 %v916_v11  ;;  %11789 = vst [vmem:[#allocation30_spill] sm:$0xff] %v6255_v61  ;;  %vm925_vm6 = vweird.f32 %v916_v11  ;;  %v929_v18 = vand.u32 2147483647, %v916_v11 }
  0xf3   :  { %v6243_v1 = vpop.f32.mrf.mxu1  ;;  %3899 = vpow2.f32 %v3794_v14 }
  0xf4   :  { %11786 = vst [vmem:[#allocation47_spill] sm:$0xff] %v6243_v1  ;;  %vm930_vm8 = vcmp.eq.f32.partialorder %v929_v18, 8.507059e+37 }
  0xf8   :  { %v3898_v16 = vpop.eup %3897  ;;  %v748_v38 = vpop.f32.mrf.mxu0 }
  0xf9   :  { %v921_v60 = vmul.f32 %v3898_v16, %v916_v11  ;;  %v749_v53 = vadd.f32 %v748_v38, %v6246_v7  ;;  %v3900_v9 = vpop.eup %3899  ;;  %vm926_vm5 = vweird.f32 %v3898_v16 }
  0xfa   :  { %vm927_vm7 = vmor %vm925_vm6, %vm926_vm5 }
  0xfb   :  { %v922_v57 = vsub.f32 1.0, %v921_v60 }
  0xfc   :  { %v768_v36 = vpop.f32.mrf.mxu1 }
  0xfd   :  { %v769_v47 = vadd.f32 %v768_v36, %v749_v53  ;;  %v923_v1 = vmul.f32 %v3898_v16, %v922_v57 }
  0xff   :  { %v902_v6 = vadd.f32 %v769_v47, %v170_v44  ;;  %v924_v4 = vadd.f32 %v3898_v16, %v923_v1  ;;  %v931_v44 = vand.u32 2147483648, %v916_v11  ;;  %v6267_v47 = vadd.f32 1.0, %v3900_v9 }
 0x100   :  { %v788_v14 = vpop.f32.mrf.mxu2  ;;  %v828_v36 = vpop.f32.mrf.mxu0  ;;  %v199_v11 = vadd.f32 %v6032_v3, %v6270_v2 }
 0x101   :  { %v3795_v38 = vmul.f32 -1.442695, %v902_v6  ;;  %v789_v60 = vadd.f32 %v788_v14, %v6255_v61  ;;  %v808_v53 = vpop.f32.mrf.mxu3  ;;  %v829_v57 = vadd.f32 %v828_v36, %v6261_v31  ;;  %v928_v22 = vsel %vm927_vm7, %v3898_v16, %v924_v4 }
 0x102   :  { %v932_v15 = vor.u32 1.1754944e-38, %v931_v44  ;;  %vm940_vm15 = vweird.f32 %v6267_v47 }
 0x103   :  { %3901 = vpow2.f32 %v3795_v38  ;;  %v809_v5 = vadd.f32 %v808_v53, %v789_v60 }
 0x104   :  { %v848_v28 = vpop.f32.mrf.mxu1  ;;  %3903 = vrcp.f32 %v6267_v47  ;;  %v933_v38 = vsel %vm930_vm8, %v932_v15, %v928_v22 }
 0x105   :  { %v903_v6 = vadd.f32 %v809_v5, %v345_v26  ;;  %v849_v14 = vadd.f32 %v848_v28, %v829_v57 }
 0x107   :  { %v3796_v0 = vmul.f32 -1.442695, %v903_v6  ;;  %v980_v60 = vmul.f32 %v933_v38, %v849_v14 }
 0x109   :  { %v3902_v1 = vpop.eup %3901  ;;  %3905 = vpow2.f32 %v3796_v0  ;;  %v982_v28 = vadd.f32 %v980_v60, %v199_v11  ;;  %v6281_v11 = vpop.permute.xlu0 %999 }
 0x10a   :  { %v918_v9 = vadd.f32 1.0, %v3902_v1  ;;  %v3904_v5 = vpop.eup %3903  ;;  %vm1001_vm14 = vcmp.eq.s32.totalorder %v6281_v11, 1  ;;  %v6543_v11 = vld [vmem:[%s11072_s7 + $0x2d0] sm:$0xff] }
 0x10b   :  { %v936_v30 = vmul.f32 %v3904_v5, %v6267_v47  ;;  %vm941_vm13 = vweird.f32 %v3904_v5  ;;  %11805 = vst [vmem:[#allocation50_spill] sm:$0xff] %v6543_v11 }
 0x10c   :  { %3907 = vrcp.f32 %v918_v9  ;;  %v961_v22 = vand.u32 2147483648, %v918_v9  ;;  %v959_v57 = vand.u32 2147483647, %v918_v9  ;;  %vm955_vm10 = vweird.f32 %v918_v9  ;;  %vm6294_vm0 = vmor %vm940_vm15, %vm941_vm13 }
 0x10d   :  { %3909 = vtanh.f32 %v982_v28  ;;  %v937_v0 = vsub.f32 1.0, %v936_v30 }
 0x10e   :  { %v962_v14 = vor.u32 1.1754944e-38, %v961_v22  ;;  %vm960_vm12 = vcmp.eq.f32.partialorder %v959_v57, 8.507059e+37 }
 0x10f   :  { %v3906_v4 = vpop.eup %3905  ;;  %v938_v6 = vmul.f32 %v3904_v5, %v937_v0 }
 0x110   :  { %v6275_v16 = vadd.f32 1.0, %v3906_v4  ;;  %v6284_v4 = vperm.slane %v6198_v23, 5  ;;  %v6299_v23 = vperm.slane %v6229_v29, 2 }
 0x111   :  { %v939_v30 = vadd.f32 %v3904_v5, %v938_v6  ;;  %v11794_v6 = vld [vmem:[#allocation79_spill] sm:$0xff] }
 0x112   :  { %v3908_v26 = vpop.eup %3907  ;;  %3911 = vrcp.f32 %v6275_v16  ;;  %vm970_vm3 = vweird.f32 %v6275_v16  ;;  %v974_v22 = vand.u32 2147483647, %v6275_v16 }
 0x113   :  { %v951_v53 = vmul.f32 %v3908_v26, %v918_v9  ;;  %vm956_vm9 = vweird.f32 %v3908_v26  ;;  %v3910_v3 = vpop.eup %3909  ;;  %v943_v57 = vsel %vm6294_vm0, %v3904_v5, %v939_v30  ;;  %v6318_v5 = vld [vmem:[%s11072_s7 + $0x2f0] sm:$0xff] }
 0x114   :  { %vm957_vm11 = vmor %vm955_vm10, %vm956_vm9  ;;  %v986_v38 = vsub.f32 0.0, %v3910_v3  ;;  %vm975_vm5 = vcmp.eq.f32.partialorder %v974_v22, 8.507059e+37  ;;  %v6469_v22 = vld [vmem:[%s11072_s7 + $0xb0] sm:$0xff] }
 0x115   :  { %v952_v18 = vsub.f32 1.0, %v951_v53  ;;  %v946_v53 = vand.u32 2147483648, %v6267_v47 }
 0x117   :  { %v953_v36 = vmul.f32 %v3908_v26, %v952_v18 }
 0x118   :  { %v6279_v15 = vpop.eup %3911 }
 0x119   :  { %v954_v44 = vadd.f32 %v3908_v26, %v953_v36  ;;  %v966_v9 = vmul.f32 %v6279_v15, %v6275_v16  ;;  %vm971_vm2 = vweird.f32 %v6279_v15 }
 0x11a   :  { %vm972_vm4 = vmor %vm970_vm3, %vm971_vm2 }
 0x11b   :  { %v958_v1 = vsel %vm957_vm11, %v3908_v26, %v954_v44  ;;  %v944_v26 = vand.u32 2147483647, %v6267_v47  ;;  %v967_v29 = vsub.f32 1.0, %v966_v9  ;;  %v947_v44 = vor.u32 1.1754944e-38, %v946_v53  ;;  %v6339_v53 = vld [vmem:[%s11072_s7 + $0x290] sm:$0xff] }
 0x11c   :  { %v963_v60 = vsel %vm960_vm12, %v962_v14, %v958_v1 }
 0x11d   :  { %v988_v28 = vmul.f32 %v986_v38, %v963_v60  ;;  %vm945_vm1 = vcmp.eq.f32.partialorder %v944_v26, 8.507059e+37  ;;  %v6329_v38 = vld [vmem:[%s11072_s7 + $0x2c0] sm:$0xff]  ;;  %v11795_v60 = vld [vmem:[#allocation81_spill] sm:$0xff]  ;;  %v968_v9 = vmul.f32 %v6279_v15, %v967_v29 }
 0x11e   :  { %v948_v1 = vsel %vm945_vm1, %v947_v44, %v943_v57 }
 0x11f   :  { %v6290_v18 = vadd.f32 %v3910_v3, %v988_v28  ;;  %v374_v28 = vadd.f32 %v6116_v20, %v6299_v23  ;;  %v6361_v20 = vld [vmem:[%s11072_s7 + $0x230] sm:$0xff] }
 0x120   :  { %v868_v0 = vpop.f32.mrf.mxu2 }
 0x121   :  { %v869_v36 = vadd.f32 %v868_v0, %v6284_v4  ;;  %3873 = vmatmul.msk.f32.vlgmr.msra.gmra.mxu0 %vm1001_vm14, %v6290_v18  ;;  %3875 = vmatmul.msk.f32.vlgmr.msra.gmra.mxu2 %vm1001_vm14, %v6290_v18  ;;  %v6313_v47 = vsel %vm1001_vm14, %v6290_v18, 0.0  ;;  %v6346_v0 = vld [vmem:[%s11072_s7 + $0x260] sm:$0xff] }
 0x122   :  { %v888_v3 = vpop.f32.mrf.mxu3  ;;  %1178 = vmatpush.msra.mxu0 %v6318_v5  ;;  %1218 = vmatpush.msra.mxu2 %v11794_v6  ;;  %1003 = vst [vmem:[%s11078_s11] sm:$0xff] %v6313_v47  ;;  %v6396_v6 = vld [vmem:[%s11072_s7 + $0x170] sm:$0xff] }
 0x123   :  { %v889_v14 = vadd.f32 %v888_v3, %v869_v36  ;;  %v6371_v36 = vld [vmem:[%s11072_s7 + $0x200] sm:$0xff] }
 0x124   :  { %1179 = vmatpush.msra.mxu0 %v6329_v38  ;;  %1219 = vmatpush.msra.mxu2 %v11795_v60  ;;  %v6411_v60 = vld [vmem:[%s11072_s7 + $0x140] sm:$0xff] }
 0x125   :  { %v981_v30 = vmul.f32 %v948_v1, %v889_v14 }
 0x126   :  { %1180 = vmatpush.msra.mxu0 %v6339_v53  ;;  %1220 = vmatpush.msra.mxu2 %v5799_v62  ;;  %v969_v62 = vadd.f32 %v6279_v15, %v968_v9  ;;  %v6448_v9 = vld [vmem:[%s11072_s7 + $0x5c0] sm:$0xff] }
 0x127   :  { %v983_v26 = vadd.f32 %v981_v30, %v374_v28  ;;  %v6430_v28 = vld [vmem:[%s11072_s7 + $0x5f0] sm:$0xff] }
 0x128   :  { %1181 = vmatpush.msra.mxu0 %v6346_v0  ;;  %1221 = vmatpush.msra.mxu2 %v5814_v50  ;;  %v976_v50 = vand.u32 2147483648, %v6275_v16  ;;  %v973_v57 = vsel %vm972_vm4, %v6279_v15, %v969_v62  ;;  %v3803_v15 = vld [vmem:[%s11074_s2 + $0x8] sm:$0xff]  ;;  %v6441_v30 = vld [vmem:[%s11072_s7 + $0x110] sm:$0xff]  ;;  %v6455_v62 = vld [vmem:[%s11072_s7 + $0xe0] sm:$0xff] }
 0x129   :  { %3913 = vtanh.f32 %v983_v26  ;;  %3877 = vmatmul.msk.f32.vlgmr.msrb.gmra.mxu0 %vm1001_vm14, %v6290_v18  ;;  %3879 = vmatmul.msk.f32.vlgmr.msrb.gmra.mxu2 %vm1001_vm14, %v6290_v18  ;;  %vm1361_vm6 = vcmp.ne.f32.partialorder %v3803_v15, 0.0  ;;  %v11797_v26 = vld [vmem:[#allocation83_spill] sm:$0xff] }
 0x12a   :  { %1182 = vmatpush.msra.mxu0 %v6361_v20  ;;  %1222 = vmatpush.msra.mxu2 %v5827_v12  ;;  %v6379_v12 = vld [vmem:[%s11072_s7 + $0x1d0] sm:$0xff]  ;;  %v977_v29 = vor.u32 1.1754944e-38, %v976_v50  ;;  %v6401_v14 = vsel %vm1361_vm6, 1, %v11657_v17  ;;  %v11798_v50 = vld [vmem:[#allocation84_spill] sm:$0xff]  ;;  %v11801_v15 = vld [vmem:[#allocation87_spill] sm:$0xff] }
 0x12b   :  { %1367 = vperm.xlu1 %3892, %v6401_v14  }
 0x12c   :  { %1183 = vmatpush.msra.mxu0 %v6371_v36  ;;  %1223 = vmatpush.msra.mxu2 %v5842_v32  ;;  %v6386_v32 = vld [vmem:[%s11072_s7 + $0x1a0] sm:$0xff]  ;;  %v978_v44 = vsel %vm975_vm5, %v977_v29, %v973_v57  ;;  %v11799_v57 = vld [vmem:[#allocation85_spill] sm:$0xff]  ;;  %v11800_v29 = vld [vmem:[#allocation86_spill] sm:$0xff] }
 0x12e   :  { %1184 = vmatpush.msra.mxu0 %v6379_v12  ;;  %1224 = vmatpush.msra.mxu2 %v5857_v34 }
 0x12f   :  { %v3914_v16 = vpop.eup %3913 }
 0x130   :  { %v987_v3 = vsub.f32 0.0, %v3914_v16  ;;  %1185 = vmatpush.msra.mxu0 %v6386_v32  ;;  %1225 = vmatpush.msra.mxu2 %v5870_v35  ;;  %v6404_v35 = vpop.permute.xlu0 %1006 }
 0x131   :  { %vm1008_vm7 = vcmp.eq.s32.totalorder %v6404_v35, 1  ;;  %v6718_v35 = vld [vmem:[%s11072_s7 + $0x5a0] sm:$0xff] }
 0x132   :  { %v989_v34 = vmul.f32 %v987_v3, %v978_v44  ;;  %1186 = vmatpush.msra.mxu0 %v6396_v6  ;;  %1226 = vmatpush.msra.mxu2 %v5887_v8  ;;  %v6510_v3 = vld [vmem:[%s11072_s7 + $0x500] sm:$0xff]  ;;  %v11802_v44 = vld [vmem:[#allocation69_spill] sm:$0xff]  ;;  %11827 = vst [vmem:[#allocation63_spill] sm:$0xff] %v6718_v35 }
 0x133   :  { %1375 = vperm.xlu1 %3892, %v5979_v49   ;;  %v6555_v49 = vld [vmem:[%s11072_s7 + $0x2d8] sm:$0xff] }
 0x134   :  { %v6406_v1 = vadd.f32 %v3914_v16, %v989_v34  ;;  %1187 = vmatpush.msra.mxu0 %v6411_v60  ;;  %1227 = vmatpush.msra.mxu2 %v5901_v40  ;;  %v11796_v40 = vld [vmem:[#allocation82_spill] sm:$0xff]  ;;  %v6483_v16 = vld [vmem:[%s11072_s7 + $0x80] sm:$0xff]  ;;  %11806 = vst [vmem:[#allocation51_spill] sm:$0xff] %v6555_v49 }
 0x135   :  { %v11803_v34 = vld [vmem:[#allocation88_spill] sm:$0xff] }
 0x136   :  { %3874 = vmatmul.msk.f32.vlgmr.msra.gmra.mxu1 %vm1008_vm7, %v6406_v1  ;;  %3876 = vmatmul.msk.f32.vlgmr.msra.gmra.mxu3 %vm1008_vm7, %v6406_v1  ;;  %v6425_v8 = vsel %vm1008_vm7, %v6406_v1, 0.0 }
 0x137   :  { %1198 = vmatpush.msra.mxu1 %v6430_v28  ;;  %1238 = vmatpush.msra.mxu3 %v11796_v40  ;;  %3798 = vst [vmem:[%s11079_s12 + $0x38] sm:$0xff] %v6425_v8  ;;  %v6535_v40 = vld [vmem:[%s11072_s7 + $0x4a0] sm:$0xff] }
 0x138   :  { %1188 = vmatpush.msra.mxu0 %v6441_v30  ;;  %1228 = vmatpush.msra.mxu2 %v5915_v37  ;;  %v6462_v37 = vld [vmem:[%s11072_s7 + $0x590] sm:$0xff] }
 0x139   :  { %1199 = vmatpush.msra.mxu1 %v6448_v9  ;;  %1239 = vmatpush.msra.mxu3 %v11797_v26  ;;  %v11804_v26 = vld [vmem:[#allocation89_spill] sm:$0xff] }
 0x13a   :  { %1189 = vmatpush.msra.mxu0 %v6455_v62  ;;  %1229 = vmatpush.msra.mxu2 %v5936_v51  ;;  %v6476_v51 = vld [vmem:[%s11072_s7 + $0x560] sm:$0xff] }
 0x13b   :  { %1200 = vmatpush.msra.mxu1 %v6462_v37  ;;  %1240 = vmatpush.msra.mxu3 %v11798_v50  ;;  %v11807_v50 = vld [vmem:[#allocation90_spill] sm:$0xff] }
 0x13c   :  { %1190 = vmatpush.msra.mxu0 %v6469_v22  ;;  %1230 = vmatpush.msra.mxu2 %v5953_v41  ;;  %v6496_v41 = vld [vmem:[%s11072_s7 + $0x530] sm:$0xff] }
 0x13d   :  { %1201 = vmatpush.msra.mxu1 %v6476_v51  ;;  %1241 = vmatpush.msra.mxu3 %v11799_v57  ;;  %v6562_v57 = vld [vmem:[%s11072_s7 + $0x2a0] sm:$0xff] }
 0x13e   :  { %1191 = vmatpush.msra.mxu0 %v6483_v16  ;;  %1231 = vmatpush.msra.mxu2 %v5967_v54  ;;  %v6503_v54 = vld [vmem:[%s11072_s7 + $0x50] sm:$0xff]  ;;  %11808 = vst [vmem:[#allocation34_spill] sm:$0xff] %v6562_v57 }
 0x13f   :  { %3878 = vmatmul.msk.f32.vlgmr.msrb.gmra.mxu1 %vm1008_vm7, %v6406_v1  ;;  %3880 = vmatmul.msk.f32.vlgmr.msrb.gmra.mxu3 %vm1008_vm7, %v6406_v1 }
 0x140   :  { %1202 = vmatpush.msra.mxu1 %v6496_v41  ;;  %1242 = vmatpush.msra.mxu3 %v11800_v29  ;;  %v6568_v29 = vld [vmem:[%s11072_s7 + $0x440] sm:$0xff] }
 0x141   :  { %1192 = vmatpush.msra.mxu0 %v6503_v54  ;;  %1232 = vmatpush.msra.mxu2 %v5984_v56  ;;  %v6522_v56 = vld [vmem:[%s11072_s7 + $0x4d0] sm:$0xff] }
 0x142   :  { %1203 = vmatpush.msra.mxu1 %v6510_v3  ;;  %1243 = vmatpush.msra.mxu3 %v11801_v15  ;;  %v6574_v15 = vld [vmem:[%s11072_s7 + $0x2a8] sm:$0xff] }
 0x143   :  { %1193 = vmatpush.msra.mxu0 %v11802_v44  ;;  %1233 = vmatpush.msra.mxu2 %v6002_v43  ;;  %v3820_v43 = vld [vmem:[%s11074_s2 + $0x20] sm:$0xff]  ;;  %11809 = vst [vmem:[#allocation16_spill] sm:$0xff] %v6574_v15 }
 0x144   :  { %3881 = vmatmul.msk.f32.vlgmr.msra.gmra.mxu0 %vm1001_vm14, %v6290_v18  ;;  %1204 = vmatpush.msra.mxu1 %v6522_v56  ;;  %vm2102_vm8 = vcmp.ne.f32.partialorder %v3820_v43, 0.0  ;;  %v6590_v43 = vld [vmem:[%s11072_s7 + $0x410] sm:$0xff] }
 0x145   :  { %3883 = vmatmul.msk.f32.vlgmr.msra.gmra.mxu2 %vm1001_vm14, %v6290_v18  ;;  %1244 = vmatpush.msra.mxu3 %v11803_v34  ;;  %v6549_v18 = vld [vmem:[%s11072_s7 + $0x470] sm:$0xff]  ;;  %v6579_v44 = vsel %vm2102_vm8, 1, %v11657_v17 }
 0x146   :  { %1205 = vmatpush.msra.mxu1 %v6535_v40  ;;  %1387 = vmatpush.msrb.mxu0 %v6543_v11  ;;  %11810 = vst [vmem:[#allocation52_spill] sm:$0xff] %v6579_v44  ;;  %v6584_v34 = vld [vmem:[%s11072_s7 + $0x270] sm:$0xff] }
 0x147   :  { %1245 = vmatpush.msra.mxu3 %v11804_v26  ;;  %1427 = vmatpush.msrb.mxu2 %v6555_v49  ;;  %11811 = vst [vmem:[#allocation53_spill] sm:$0xff] %v6584_v34  ;;  %v3835_v26 = vld [vmem:[%s11074_s2 + $0x28] sm:$0xff]  ;;  %v318_v49 = vadd.f32 %v6060_v59, %v6237_v25  ;;  %v11939_v11 = vld [vmem:[#allocation94_spill] sm:$0xff] }
 0x148   :  { %1206 = vmatpush.msra.mxu1 %v6549_v18  ;;  %1388 = vmatpush.msrb.mxu0 %v6562_v57  ;;  %vm2834_vm9 = vcmp.ne.f32.partialorder %v3835_v26, 0.0  ;;  %v6645_v26 = vld [vmem:[%s11072_s7 + $0x380] sm:$0xff] }
 0x149   :  { %1246 = vmatpush.msra.mxu3 %v11807_v50  ;;  %1428 = vmatpush.msrb.mxu2 %v6574_v15  ;;  %v6606_v50 = vld [vmem:[%s11072_s7 + $0x240] sm:$0xff] }
 0x14a   :  { %1207 = vmatpush.msra.mxu1 %v6568_v29  ;;  %1389 = vmatpush.msrb.mxu0 %v6584_v34  ;;  %11813 = vst [vmem:[#allocation18_spill] sm:$0xff] %v6606_v50 }
 0x14b   :  { %1247 = vmatpush.msra.mxu3 %v5920_v45  ;;  %v6596_v45 = vld [vmem:[%s11072_s7 + $0x278] sm:$0xff]  ;;  %2113 = vperm.xlu1 %3892, %v6579_v44   ;;  %v6632_v44 = vld [vmem:[%s11072_s7 + $0x210] sm:$0xff] }
 0x14c   :  { %1208 = vmatpush.msra.mxu1 %v6590_v43  ;;  %11812 = vst [vmem:[#allocation38_spill] sm:$0xff] %v6596_v45  ;;  %1429 = vmatpush.msrb.mxu2 %v6596_v45 }
 0x14d   :  { %1248 = vmatpush.msra.mxu3 %v5941_v46  ;;  %1390 = vmatpush.msrb.mxu0 %v6606_v50  ;;  %v6620_v46 = vld [vmem:[%s11072_s7 + $0x248] sm:$0xff]  ;;  %v6626_v50 = vld [vmem:[%s11072_s7 + $0x3b0] sm:$0xff]  ;;  %11815 = vst [vmem:[#allocation55_spill] sm:$0xff] %v6632_v44 }
 0x14e   :  { %1209 = vmatpush.msra.mxu1 %v6612_v55  ;;  %11814 = vst [vmem:[#allocation54_spill] sm:$0xff] %v6620_v46  ;;  %1430 = vmatpush.msrb.mxu2 %v6620_v46  ;;  %v6667_v46 = vld [vmem:[%s11072_s7 + $0x350] sm:$0xff] }
 0x14f   :  { %1249 = vmatpush.msra.mxu3 %v5958_v42  ;;  %1391 = vmatpush.msrb.mxu0 %v6632_v44  ;;  %v6639_v42 = vld [vmem:[%s11072_s7 + $0x218] sm:$0xff]  ;;  %v6651_v44 = vld [vmem:[%s11072_s7 + $0x1e0] sm:$0xff]  ;;  %11820 = vst [vmem:[#allocation58_spill] sm:$0xff] %v6667_v46 }
 0x150   :  { %1210 = vmatpush.msra.mxu1 %v6626_v50  ;;  %11816 = vst [vmem:[#allocation20_spill] sm:$0xff] %v6639_v42  ;;  %1431 = vmatpush.msrb.mxu2 %v6639_v42  ;;  %v6661_v42 = vld [vmem:[%s11072_s7 + $0x1e8] sm:$0xff] }
 0x151   :  { %1250 = vmatpush.msra.mxu3 %v5972_v33  ;;  %11817 = vst [vmem:[#allocation56_spill] sm:$0xff] %v6651_v44  ;;  %1392 = vmatpush.msrb.mxu0 %v6651_v44  ;;  %v6656_v33 = vsel %vm2834_vm9, 1, %v11657_v17  ;;  %v6686_v44 = vld [vmem:[%s11072_s7 + $0x320] sm:$0xff] }
 0x152   :  { %1211 = vmatpush.msra.mxu1 %v6645_v26  ;;  %11818 = vst [vmem:[#allocation57_spill] sm:$0xff] %v6656_v33  ;;  %1432 = vmatpush.msrb.mxu2 %v6661_v42 }
 0x153   :  { %1251 = vmatpush.msra.mxu3 %v5989_v48  ;;  %11819 = vst [vmem:[#allocation23_spill] sm:$0xff] %v6661_v42  ;;  %v6673_v48 = vld [vmem:[%s11072_s7 + $0x1b0] sm:$0xff]  ;;  %v6680_v42 = vld [vmem:[%s11072_s7 + $0x1b8] sm:$0xff]  ;;  %2839 = vperm.xlu1 %3892, %v6656_v33  }
 0x154   :  { %1212 = vmatpush.msra.mxu1 %v6667_v46  ;;  %11821 = vst [vmem:[#allocation59_spill] sm:$0xff] %v6673_v48  ;;  %1393 = vmatpush.msrb.mxu0 %v6673_v48  ;;  %v6730_v48 = vld [vmem:[%s11072_s7 + $0x5a8] sm:$0xff] }
 0x155   :  { %1252 = vmatpush.msra.mxu3 %v6007_v52  ;;  %11822 = vst [vmem:[#allocation27_spill] sm:$0xff] %v6680_v42  ;;  %1433 = vmatpush.msrb.mxu2 %v6680_v42  ;;  %v6700_v52 = vld [vmem:[%s11072_s7 + $0x5d0] sm:$0xff]  ;;  %v6706_v42 = vld [vmem:[%s11072_s7 + $0x5d8] sm:$0xff] }
 0x156   :  { %11823 = vst [vmem:[#allocation60_spill] sm:$0xff] %v6686_v44  ;;  %1213 = vmatpush.msra.mxu1 %v6686_v44 }
 0x157   :  { %1253 = vmatpush.msra.mxu3 %v6020_v58  ;;  %3882 = vmatmul.msk.f32.vlgmr.msra.gmra.mxu1 %vm1008_vm7, %v6406_v1  ;;  %11824 = vst [vmem:[#allocation61_spill] sm:$0xff] %v6700_v52  ;;  %v6712_v58 = vld [vmem:[%s11072_s7 + $0x180] sm:$0xff] }
 0x158   :  { %3884 = vmatmul.msk.f32.vlgmr.msra.gmra.mxu3 %vm1008_vm7, %v6406_v1  ;;  %1407 = vmatpush.msrb.mxu1 %v6700_v52  ;;  %11825 = vst [vmem:[#allocation31_spill] sm:$0xff] %v6706_v42  ;;  %v6724_v1 = vld [vmem:[%s11072_s7 + $0x188] sm:$0xff] }
 0x159   :  { %1447 = vmatpush.msrb.mxu3 %v6706_v42  ;;  %11826 = vst [vmem:[#allocation62_spill] sm:$0xff] %v6712_v58  ;;  %1394 = vmatpush.msrb.mxu0 %v6712_v58  ;;  %v6736_v58 = vld [vmem:[%s11072_s7 + $0x150] sm:$0xff] }
 0x15a   :  { %1408 = vmatpush.msrb.mxu1 %v6718_v35  ;;  %11828 = vst [vmem:[#allocation35_spill] sm:$0xff] %v6724_v1  ;;  %1434 = vmatpush.msrb.mxu2 %v6724_v1  ;;  %v6742_v35 = vld [vmem:[%s11072_s7 + $0x570] sm:$0xff]  ;;  %v6748_v1 = vld [vmem:[%s11072_s7 + $0x158] sm:$0xff] }
 0x15b   :  { %11829 = vst [vmem:[#allocation64_spill] sm:$0xff] %v6730_v48  ;;  %1448 = vmatpush.msrb.mxu3 %v6730_v48  ;;  %1395 = vmatpush.msrb.mxu0 %v6736_v58  ;;  %v6754_v48 = vld [vmem:[%s11072_s7 + $0x578] sm:$0xff] }
 0x15c   :  { %11830 = vst [vmem:[#allocation65_spill] sm:$0xff] %v6736_v58  ;;  %1409 = vmatpush.msrb.mxu1 %v6742_v35  ;;  %1435 = vmatpush.msrb.mxu2 %v6748_v1  ;;  %v6760_v58 = vld [vmem:[%s11072_s7 + $0x120] sm:$0xff] }
 0x15d   :  { %11831 = vst [vmem:[#allocation39_spill] sm:$0xff] %v6742_v35  ;;  %1449 = vmatpush.msrb.mxu3 %v6754_v48  ;;  %1396 = vmatpush.msrb.mxu0 %v6760_v58 }
 0x15e   :  { %11832 = vst [vmem:[#allocation66_spill] sm:$0xff] %v6748_v1  ;;  %3214 = vperm.xlu1 %3892, %v6401_v14   ;;  %v6767_v1 = vld [vmem:[%s11072_s7 + $0x540] sm:$0xff]  ;;  %v6785_v14 = vld [vmem:[%s11072_s7 + $0x510] sm:$0xff] }
 0x15f   :  { %11833 = vst [vmem:[#allocation67_spill] sm:$0xff] %v6754_v48  ;;  %1410 = vmatpush.msrb.mxu1 %v6767_v1  ;;  %v6773_v48 = vld [vmem:[%s11072_s7 + $0x548] sm:$0xff] }
 0x160   :  { %11834 = vst [vmem:[#allocation42_spill] sm:$0xff] %v6760_v58  ;;  %1450 = vmatpush.msrb.mxu3 %v6773_v48  ;;  %v6779_v58 = vld [vmem:[%s11072_s7 + $0x128] sm:$0xff] }
 0x161   :  { %11835 = vst [vmem:[#allocation68_spill] sm:$0xff] %v6767_v1  ;;  %1436 = vmatpush.msrb.mxu2 %v6779_v58  ;;  %1411 = vmatpush.msrb.mxu1 %v6785_v14  ;;  %v6791_v1 = vld [vmem:[%s11072_s7 + $0xf0] sm:$0xff] }
 0x162   :  { %11836 = vst [vmem:[#allocation70_spill] sm:$0xff] %v6773_v48  ;;  %1397 = vmatpush.msrb.mxu0 %v6791_v1  ;;  %v6797_v48 = vld [vmem:[%s11072_s7 + $0x518] sm:$0xff] }
 0x163   :  { %11837 = vst [vmem:[#allocation71_spill] sm:$0xff] %v6779_v58  ;;  %1451 = vmatpush.msrb.mxu3 %v6797_v48  ;;  %v6803_v58 = vld [vmem:[%s11072_s7 + $0xf8] sm:$0xff] }
 0x164   :  { %11838 = vst [vmem:[#allocation72_spill] sm:$0xff] %v6785_v14  ;;  %1437 = vmatpush.msrb.mxu2 %v6803_v58  ;;  %v6809_v14 = vld [vmem:[%s11072_s7 + $0x4e0] sm:$0xff] }
 0x165   :  { %11839 = vst [vmem:[#allocation73_spill] sm:$0xff] %v6791_v1  ;;  %1412 = vmatpush.msrb.mxu1 %v6809_v14  ;;  %v6815_v1 = vld [vmem:[%s11072_s7 + $0xc0] sm:$0xff] }
 0x166   :  { %11840 = vst [vmem:[#allocation74_spill] sm:$0xff] %v6797_v48  ;;  %1398 = vmatpush.msrb.mxu0 %v6815_v1  ;;  %v6821_v48 = vld [vmem:[%s11072_s7 + $0x4e8] sm:$0xff] }
 0x167   :  { %11841 = vst [vmem:[#allocation75_spill] sm:$0xff] %v6803_v58  ;;  %1452 = vmatpush.msrb.mxu3 %v6821_v48  ;;  %v6827_v58 = vld [vmem:[%s11072_s7 + $0xc8] sm:$0xff] }
 0x168   :  { %11842 = vst [vmem:[#allocation76_spill] sm:$0xff] %v6809_v14  ;;  %1438 = vmatpush.msrb.mxu2 %v6827_v58  ;;  %v6833_v14 = vld [vmem:[%s11072_s7 + $0x4b0] sm:$0xff] }
 0x169   :  { %11843 = vst [vmem:[#allocation77_spill] sm:$0xff] %v6815_v1  ;;  %1413 = vmatpush.msrb.mxu1 %v6833_v14  ;;  %v6839_v1 = vld [vmem:[%s11072_s7 + $0x90] sm:$0xff] }
 0x16a   :  { %11844 = vst [vmem:[#allocation78_spill] sm:$0xff] %v6821_v48  ;;  %1399 = vmatpush.msrb.mxu0 %v6839_v1  ;;  %v6845_v48 = vld [vmem:[%s11072_s7 + $0x4b8] sm:$0xff] }
 0x16b   :  { %11845 = vst [vmem:[#allocation80_spill] sm:$0xff] %v6827_v58  ;;  %1453 = vmatpush.msrb.mxu3 %v6845_v48  ;;  %v6851_v58 = vld [vmem:[%s11072_s7 + $0x98] sm:$0xff] }
 0x16c   :  { %11846 = vst [vmem:[#allocation79_spill] sm:$0xff] %v6833_v14  ;;  %1439 = vmatpush.msrb.mxu2 %v6851_v58  ;;  %v6857_v14 = vld [vmem:[%s11072_s7 + $0x480] sm:$0xff] }
 0x16d   :  { %11847 = vst [vmem:[#allocation81_spill] sm:$0xff] %v6839_v1  ;;  %1414 = vmatpush.msrb.mxu1 %v6857_v14  ;;  %v6863_v1 = vld [vmem:[%s11072_s7 + $0x60] sm:$0xff] }
 0x16e   :  { %11848 = vst [vmem:[#allocation82_spill] sm:$0xff] %v6845_v48  ;;  %1400 = vmatpush.msrb.mxu0 %v6863_v1  ;;  %v6869_v48 = vld [vmem:[%s11072_s7 + $0x488] sm:$0xff] }
 0x16f   :  { %11849 = vst [vmem:[#allocation83_spill] sm:$0xff] %v6851_v58  ;;  %1454 = vmatpush.msrb.mxu3 %v6869_v48  ;;  %v6875_v58 = vld [vmem:[%s11072_s7 + $0x68] sm:$0xff] }
 0x170   :  { %11850 = vst [vmem:[#allocation84_spill] sm:$0xff] %v6857_v14  ;;  %1440 = vmatpush.msrb.mxu2 %v6875_v58  ;;  %v6881_v14 = vld [vmem:[%s11072_s7 + $0x450] sm:$0xff] }
 0x171   :  { %11851 = vst [vmem:[#allocation85_spill] sm:$0xff] %v6863_v1  ;;  %1415 = vmatpush.msrb.mxu1 %v6881_v14  ;;  %v6887_v1 = vld [vmem:[%s11072_s7 + $0x30] sm:$0xff] }
 0x172   :  { %11852 = vst [vmem:[#allocation86_spill] sm:$0xff] %v6869_v48  ;;  %1401 = vmatpush.msrb.mxu0 %v6887_v1  ;;  %v6893_v48 = vld [vmem:[%s11072_s7 + $0x458] sm:$0xff] }
 0x173   :  { %11853 = vst [vmem:[#allocation87_spill] sm:$0xff] %v6875_v58  ;;  %1455 = vmatpush.msrb.mxu3 %v6893_v48  ;;  %v6899_v58 = vld [vmem:[%s11072_s7 + $0x38] sm:$0xff] }
 0x174   :  { %11854 = vst [vmem:[#allocation69_spill] sm:$0xff] %v6881_v14  ;;  %1441 = vmatpush.msrb.mxu2 %v6899_v58  ;;  %v6905_v14 = vld [vmem:[%s11072_s7 + $0x420] sm:$0xff] }
 0x175   :  { %11855 = vst [vmem:[#allocation88_spill] sm:$0xff] %v6887_v1  ;;  %1416 = vmatpush.msrb.mxu1 %v6905_v14  ;;  %v6911_v1 = vld [vmem:[%s11072_s7] sm:$0xff] }
 0x176   :  { %11856 = vst [vmem:[#allocation89_spill] sm:$0xff] %v6893_v48  ;;  %1402 = vmatpush.msrb.mxu0 %v6911_v1  ;;  %v6917_v48 = vld [vmem:[%s11072_s7 + $0x428] sm:$0xff] }
 0x177   :  { %11857 = vst [vmem:[#allocation90_spill] sm:$0xff] %v6899_v58  ;;  %1456 = vmatpush.msrb.mxu3 %v6917_v48  ;;  %v6923_v58 = vld [vmem:[%s11072_s7 + $0x8] sm:$0xff] }
 0x178   :  { %11858 = vst [vmem:[#allocation103_spill] sm:$0xff] %v6905_v14  ;;  %1442 = vmatpush.msrb.mxu2 %v6923_v58  ;;  %v6929_v14 = vld [vmem:[%s11072_s7 + $0x3f0] sm:$0xff] }
 0x179   :  { %11859 = vst [vmem:[#allocation104_spill] sm:$0xff] %v6911_v1  ;;  %1417 = vmatpush.msrb.mxu1 %v6929_v14  ;;  %v6935_v1 = vld [vmem:[%s11072_s7 + $0x2e0] sm:$0xff] }
 0x17a   :  { %11860 = vst [vmem:[#allocation105_spill] sm:$0xff] %v6917_v48  ;;  %1467 = vmatpush.msra.mxu0 %v6935_v1  ;;  %v6941_v48 = vld [vmem:[%s11072_s7 + $0x3f8] sm:$0xff] }
 0x17b   :  { %11861 = vst [vmem:[#allocation106_spill] sm:$0xff] %v6923_v58  ;;  %1457 = vmatpush.msrb.mxu3 %v6941_v48  ;;  %v6947_v58 = vld [vmem:[%s11072_s7 + $0x2e8] sm:$0xff] }
 0x17c   :  { %11862 = vst [vmem:[#allocation107_spill] sm:$0xff] %v6929_v14  ;;  %1507 = vmatpush.msra.mxu2 %v6947_v58  ;;  %v6953_v14 = vld [vmem:[%s11072_s7 + $0x3c0] sm:$0xff] }
 0x17d   :  { %11863 = vst [vmem:[#allocation108_spill] sm:$0xff] %v6935_v1  ;;  %1418 = vmatpush.msrb.mxu1 %v6953_v14  ;;  %v6959_v1 = vld [vmem:[%s11072_s7 + $0x2b0] sm:$0xff] }
 0x17e   :  { %11864 = vst [vmem:[#allocation109_spill] sm:$0xff] %v6941_v48  ;;  %1468 = vmatpush.msra.mxu0 %v6959_v1  ;;  %v6965_v48 = vld [vmem:[%s11072_s7 + $0x3c8] sm:$0xff] }
 0x17f   :  { %11865 = vst [vmem:[#allocation110_spill] sm:$0xff] %v6947_v58  ;;  %1458 = vmatpush.msrb.mxu3 %v6965_v48  ;;  %v6971_v58 = vld [vmem:[%s11072_s7 + $0x2b8] sm:$0xff] }
 0x180   :  { %11866 = vst [vmem:[#allocation111_spill] sm:$0xff] %v6953_v14  ;;  %1508 = vmatpush.msra.mxu2 %v6971_v58  ;;  %v6977_v14 = vld [vmem:[%s11072_s7 + $0x390] sm:$0xff] }
 0x181   :  { %11867 = vst [vmem:[#allocation112_spill] sm:$0xff] %v6959_v1  ;;  %1419 = vmatpush.msrb.mxu1 %v6977_v14  ;;  %v6983_v1 = vld [vmem:[%s11072_s7 + $0x280] sm:$0xff] }
 0x182   :  { %11868 = vst [vmem:[#allocation113_spill] sm:$0xff] %v6965_v48  ;;  %1469 = vmatpush.msra.mxu0 %v6983_v1  ;;  %v6989_v48 = vld [vmem:[%s11072_s7 + $0x398] sm:$0xff] }
 0x183   :  { %11869 = vst [vmem:[#allocation114_spill] sm:$0xff] %v6971_v58  ;;  %1459 = vmatpush.msrb.mxu3 %v6989_v48  ;;  %v6995_v58 = vld [vmem:[%s11072_s7 + $0x288] sm:$0xff] }
 0x184   :  { %11870 = vst [vmem:[#allocation115_spill] sm:$0xff] %v6977_v14  ;;  %1509 = vmatpush.msra.mxu2 %v6995_v58  ;;  %v7001_v14 = vld [vmem:[%s11072_s7 + $0x360] sm:$0xff] }
 0x185   :  { %11871 = vst [vmem:[#allocation116_spill] sm:$0xff] %v6983_v1  ;;  %1420 = vmatpush.msrb.mxu1 %v7001_v14  ;;  %v7007_v1 = vld [vmem:[%s11072_s7 + $0x250] sm:$0xff] }
 0x186   :  { %11872 = vst [vmem:[#allocation117_spill] sm:$0xff] %v6989_v48  ;;  %1470 = vmatpush.msra.mxu0 %v7007_v1  ;;  %v7013_v48 = vld [vmem:[%s11072_s7 + $0x368] sm:$0xff] }
 0x187   :  { %11873 = vst [vmem:[#allocation118_spill] sm:$0xff] %v6995_v58  ;;  %1460 = vmatpush.msrb.mxu3 %v7013_v48  ;;  %v7019_v58 = vld [vmem:[%s11072_s7 + $0x258] sm:$0xff] }
 0x188   :  { %11874 = vst [vmem:[#allocation119_spill] sm:$0xff] %v7001_v14  ;;  %1510 = vmatpush.msra.mxu2 %v7019_v58  ;;  %v7025_v14 = vld [vmem:[%s11072_s7 + $0x330] sm:$0xff] }
 0x189   :  { %11875 = vst [vmem:[#allocation120_spill] sm:$0xff] %v7007_v1  ;;  %1421 = vmatpush.msrb.mxu1 %v7025_v14  ;;  %v7031_v1 = vld [vmem:[%s11072_s7 + $0x220] sm:$0xff] }
 0x18a   :  { %11876 = vst [vmem:[#allocation121_spill] sm:$0xff] %v7013_v48  ;;  %1471 = vmatpush.msra.mxu0 %v7031_v1  ;;  %v7037_v48 = vld [vmem:[%s11072_s7 + $0x338] sm:$0xff] }
 0x18b   :  { %11877 = vst [vmem:[#allocation122_spill] sm:$0xff] %v7019_v58  ;;  %1461 = vmatpush.msrb.mxu3 %v7037_v48  ;;  %v7043_v58 = vld [vmem:[%s11072_s7 + $0x228] sm:$0xff] }
 0x18c   :  { %11878 = vst [vmem:[#allocation123_spill] sm:$0xff] %v7025_v14  ;;  %1511 = vmatpush.msra.mxu2 %v7043_v58  ;;  %v7049_v14 = vld [vmem:[%s11072_s7 + $0x300] sm:$0xff] }
 0x18d   :  { %11879 = vst [vmem:[#allocation124_spill] sm:$0xff] %v7031_v1  ;;  %1422 = vmatpush.msrb.mxu1 %v7049_v14  ;;  %v7055_v1 = vld [vmem:[%s11072_s7 + $0x1f0] sm:$0xff] }
 0x18e   :  { %11880 = vst [vmem:[#allocation125_spill] sm:$0xff] %v7037_v48  ;;  %1472 = vmatpush.msra.mxu0 %v7055_v1  ;;  %v7061_v48 = vld [vmem:[%s11072_s7 + $0x308] sm:$0xff] }
 0x18f   :  { %11881 = vst [vmem:[#allocation126_spill] sm:$0xff] %v7043_v58  ;;  %1462 = vmatpush.msrb.mxu3 %v7061_v48  ;;  %v7067_v58 = vld [vmem:[%s11072_s7 + $0x5e0] sm:$0xff] }
 0x190   :  { %11882 = vst [vmem:[#allocation127_spill] sm:$0xff] %v7049_v14  ;;  %1487 = vmatpush.msra.mxu1 %v7067_v58  ;;  %v7073_v14 = vld [vmem:[%s11072_s7 + $0x5e8] sm:$0xff] }
 0x191   :  { %11883 = vst [vmem:[#allocation128_spill] sm:$0xff] %v7055_v1  ;;  %1527 = vmatpush.msra.mxu3 %v7073_v14  ;;  %v7079_v1 = vld [vmem:[%s11072_s7 + $0x1f8] sm:$0xff] }
 0x192   :  { %11884 = vst [vmem:[#allocation129_spill] sm:$0xff] %v7061_v48  ;;  %1512 = vmatpush.msra.mxu2 %v7079_v1  ;;  %v7085_v48 = vld [vmem:[%s11072_s7 + $0x5b0] sm:$0xff] }
 0x193   :  { %11885 = vst [vmem:[#allocation130_spill] sm:$0xff] %v7067_v58  ;;  %1488 = vmatpush.msra.mxu1 %v7085_v48  ;;  %v7091_v58 = vld [vmem:[%s11072_s7 + $0x1c0] sm:$0xff] }
 0x194   :  { %11886 = vst [vmem:[#allocation131_spill] sm:$0xff] %v7073_v14  ;;  %1473 = vmatpush.msra.mxu0 %v7091_v58  ;;  %v7097_v14 = vld [vmem:[%s11072_s7 + $0x5b8] sm:$0xff] }
 0x195   :  { %11887 = vst [vmem:[#allocation132_spill] sm:$0xff] %v7079_v1  ;;  %1528 = vmatpush.msra.mxu3 %v7097_v14  ;;  %v7103_v1 = vld [vmem:[%s11072_s7 + $0x1c8] sm:$0xff] }
 0x196   :  { %11888 = vst [vmem:[#allocation133_spill] sm:$0xff] %v7085_v48  ;;  %1513 = vmatpush.msra.mxu2 %v7103_v1  ;;  %v7109_v48 = vld [vmem:[%s11072_s7 + $0x580] sm:$0xff] }
 0x197   :  { %11889 = vst [vmem:[#allocation134_spill] sm:$0xff] %v7091_v58  ;;  %1489 = vmatpush.msra.mxu1 %v7109_v48  ;;  %v7115_v58 = vld [vmem:[%s11072_s7 + $0x190] sm:$0xff] }
 0x198   :  { %11890 = vst [vmem:[#allocation135_spill] sm:$0xff] %v7097_v14  ;;  %1474 = vmatpush.msra.mxu0 %v7115_v58  ;;  %v7121_v14 = vld [vmem:[%s11072_s7 + $0x588] sm:$0xff] }
 0x199   :  { %11891 = vst [vmem:[#allocation136_spill] sm:$0xff] %v7103_v1  ;;  %1529 = vmatpush.msra.mxu3 %v7121_v14  ;;  %v7127_v1 = vld [vmem:[%s11072_s7 + $0x198] sm:$0xff] }
 0x19a   :  { %11892 = vst [vmem:[#allocation137_spill] sm:$0xff] %v7109_v48  ;;  %1514 = vmatpush.msra.mxu2 %v7127_v1  ;;  %v7133_v48 = vld [vmem:[%s11072_s7 + $0x550] sm:$0xff] }
 0x19b   :  { %11893 = vst [vmem:[#allocation138_spill] sm:$0xff] %v7115_v58  ;;  %1490 = vmatpush.msra.mxu1 %v7133_v48  ;;  %v7139_v58 = vld [vmem:[%s11072_s7 + $0x160] sm:$0xff] }
 0x19c   :  { %11894 = vst [vmem:[#allocation139_spill] sm:$0xff] %v7121_v14  ;;  %1475 = vmatpush.msra.mxu0 %v7139_v58  ;;  %v7145_v14 = vld [vmem:[%s11072_s7 + $0x558] sm:$0xff] }
 0x19d   :  { %11895 = vst [vmem:[#allocation140_spill] sm:$0xff] %v7127_v1  ;;  %1530 = vmatpush.msra.mxu3 %v7145_v14  ;;  %v7151_v1 = vld [vmem:[%s11072_s7 + $0x168] sm:$0xff] }
 0x19e   :  { %11896 = vst [vmem:[#allocation141_spill] sm:$0xff] %v7133_v48  ;;  %1515 = vmatpush.msra.mxu2 %v7151_v1  ;;  %v7157_v48 = vld [vmem:[%s11072_s7 + $0x520] sm:$0xff] }
 0x19f   :  { %11897 = vst [vmem:[#allocation142_spill] sm:$0xff] %v7139_v58  ;;  %1491 = vmatpush.msra.mxu1 %v7157_v48  ;;  %v7163_v58 = vld [vmem:[%s11072_s7 + $0x130] sm:$0xff] }
 0x1a0   :  { %11898 = vst [vmem:[#allocation143_spill] sm:$0xff] %v7145_v14  ;;  %1476 = vmatpush.msra.mxu0 %v7163_v58  ;;  %v7169_v14 = vld [vmem:[%s11072_s7 + $0x528] sm:$0xff] }
 0x1a1   :  { %11899 = vst [vmem:[#allocation144_spill] sm:$0xff] %v7151_v1  ;;  %1531 = vmatpush.msra.mxu3 %v7169_v14  ;;  %v7175_v1 = vld [vmem:[%s11072_s7 + $0x138] sm:$0xff] }
 0x1a2   :  { %11900 = vst [vmem:[#allocation145_spill] sm:$0xff] %v7157_v48  ;;  %1516 = vmatpush.msra.mxu2 %v7175_v1  ;;  %v7181_v48 = vld [vmem:[%s11072_s7 + $0x4f0] sm:$0xff] }
 0x1a3   :  { %11901 = vst [vmem:[#allocation146_spill] sm:$0xff] %v7163_v58  ;;  %1492 = vmatpush.msra.mxu1 %v7181_v48  ;;  %v7187_v58 = vld [vmem:[%s11072_s7 + $0x100] sm:$0xff] }
 0x1a4   :  { %11902 = vst [vmem:[#allocation147_spill] sm:$0xff] %v7169_v14  ;;  %1477 = vmatpush.msra.mxu0 %v7187_v58  ;;  %v7193_v14 = vld [vmem:[%s11072_s7 + $0x4f8] sm:$0xff]  ;;  %v1075_v42 = vpop.f32.mrf.mxu2 }
 0x1a5   :  { %11903 = vst [vmem:[#allocation148_spill] sm:$0xff] %v7175_v1  ;;  %1532 = vmatpush.msra.mxu3 %v7193_v14  ;;  %v7199_v1 = vld [vmem:[%s11072_s7 + $0x108] sm:$0xff]  ;;  %v1076_v15 = vadd.f32 %v1075_v42, %v6224_v39 }
 0x1a6   :  { %11904 = vst [vmem:[#allocation149_spill] sm:$0xff] %v7181_v48  ;;  %1517 = vmatpush.msra.mxu2 %v7199_v1  ;;  %v7205_v48 = vld [vmem:[%s11072_s7 + $0x4c0] sm:$0xff] }
 0x1a7   :  { %11905 = vst [vmem:[#allocation150_spill] sm:$0xff] %v7187_v58  ;;  %1493 = vmatpush.msra.mxu1 %v7205_v48  ;;  %v7211_v58 = vld [vmem:[%s11072_s7 + $0xd0] sm:$0xff] }
 0x1a8   :  { %11906 = vst [vmem:[#allocation151_spill] sm:$0xff] %v7193_v14  ;;  %1478 = vmatpush.msra.mxu0 %v7211_v58  ;;  %v7217_v14 = vld [vmem:[%s11072_s7 + $0x4c8] sm:$0xff] }
 0x1a9   :  { %11907 = vst [vmem:[#allocation152_spill] sm:$0xff] %v7199_v1  ;;  %1533 = vmatpush.msra.mxu3 %v7217_v14  ;;  %v7223_v1 = vld [vmem:[%s11072_s7 + $0xd8] sm:$0xff] }
 0x1aa   :  { %11908 = vst [vmem:[#allocation153_spill] sm:$0xff] %v7205_v48  ;;  %1518 = vmatpush.msra.mxu2 %v7223_v1  ;;  %v7229_v48 = vld [vmem:[%s11072_s7 + $0x490] sm:$0xff] }
 0x1ab   :  { %11909 = vst [vmem:[#allocation154_spill] sm:$0xff] %v7211_v58  ;;  %1494 = vmatpush.msra.mxu1 %v7229_v48  ;;  %v7235_v58 = vld [vmem:[%s11072_s7 + $0xa0] sm:$0xff] }
 0x1ac   :  { %11910 = vst [vmem:[#allocation155_spill] sm:$0xff] %v7217_v14  ;;  %1479 = vmatpush.msra.mxu0 %v7235_v58  ;;  %v7241_v14 = vld [vmem:[%s11072_s7 + $0x498] sm:$0xff] }
 0x1ad   :  { %11911 = vst [vmem:[#allocation156_spill] sm:$0xff] %v7223_v1  ;;  %1534 = vmatpush.msra.mxu3 %v7241_v14  ;;  %v7247_v1 = vld [vmem:[%s11072_s7 + $0xa8] sm:$0xff] }
 0x1ae   :  { %11912 = vst [vmem:[#allocation157_spill] sm:$0xff] %v7229_v48  ;;  %1519 = vmatpush.msra.mxu2 %v7247_v1  ;;  %v7253_v48 = vld [vmem:[%s11072_s7 + $0x460] sm:$0xff] }
 0x1af   :  { %11913 = vst [vmem:[#allocation158_spill] sm:$0xff] %v7235_v58  ;;  %1495 = vmatpush.msra.mxu1 %v7253_v48  ;;  %v7259_v58 = vld [vmem:[%s11072_s7 + $0x70] sm:$0xff] }
 0x1b0   :  { %11914 = vst [vmem:[#allocation159_spill] sm:$0xff] %v7241_v14  ;;  %1480 = vmatpush.msra.mxu0 %v7259_v58  ;;  %v7265_v14 = vld [vmem:[%s11072_s7 + $0x468] sm:$0xff] }
 0x1b1   :  { %11915 = vst [vmem:[#allocation160_spill] sm:$0xff] %v7247_v1  ;;  %1535 = vmatpush.msra.mxu3 %v7265_v14  ;;  %v7271_v1 = vld [vmem:[%s11072_s7 + $0x78] sm:$0xff] }
 0x1b2   :  { %11916 = vst [vmem:[#allocation161_spill] sm:$0xff] %v7253_v48  ;;  %1520 = vmatpush.msra.mxu2 %v7271_v1  ;;  %v7277_v48 = vld [vmem:[%s11072_s7 + $0x430] sm:$0xff] }
 0x1b3   :  { %11917 = vst [vmem:[#allocation162_spill] sm:$0xff] %v7259_v58  ;;  %1496 = vmatpush.msra.mxu1 %v7277_v48  ;;  %v7283_v58 = vld [vmem:[%s11072_s7 + $0x40] sm:$0xff]  ;;  %v1055_v33 = vpop.f32.mrf.mxu1 }
 0x1b4   :  { %11918 = vst [vmem:[#allocation163_spill] sm:$0xff] %v7265_v14  ;;  %1481 = vmatpush.msra.mxu0 %v7283_v58  ;;  %v7289_v14 = vld [vmem:[%s11072_s7 + $0x438] sm:$0xff] }
 0x1b5   :  { %11919 = vst [vmem:[#allocation164_spill] sm:$0xff] %v7271_v1  ;;  %1536 = vmatpush.msra.mxu3 %v7289_v14  ;;  %v7295_v1 = vld [vmem:[%s11072_s7 + $0x48] sm:$0xff] }
 0x1b6   :  { %11920 = vst [vmem:[#allocation165_spill] sm:$0xff] %v7277_v48  ;;  %1521 = vmatpush.msra.mxu2 %v7295_v1  ;;  %v7301_v48 = vld [vmem:[%s11072_s7 + $0x400] sm:$0xff] }
 0x1b7   :  { %11921 = vst [vmem:[#allocation166_spill] sm:$0xff] %v7283_v58  ;;  %1497 = vmatpush.msra.mxu1 %v7301_v48  ;;  %v7307_v58 = vld [vmem:[%s11072_s7 + $0x10] sm:$0xff] }
 0x1b8   :  { %11922 = vst [vmem:[#allocation167_spill] sm:$0xff] %v7289_v14  ;;  %1482 = vmatpush.msra.mxu0 %v7307_v58  ;;  %v7313_v14 = vld [vmem:[%s11072_s7 + $0x408] sm:$0xff] }
 0x1b9   :  { %11923 = vst [vmem:[#allocation168_spill] sm:$0xff] %v7295_v1  ;;  %1537 = vmatpush.msra.mxu3 %v7313_v14  ;;  %v7319_v1 = vld [vmem:[%s11072_s7 + $0x18] sm:$0xff]  ;;  %v1095_v57 = vpop.f32.mrf.mxu3 }
 0x1ba   :  { %11924 = vst [vmem:[#allocation169_spill] sm:$0xff] %v7301_v48  ;;  %1522 = vmatpush.msra.mxu2 %v7319_v1  ;;  %v7325_v48 = vld [vmem:[%s11072_s7 + $0x3d0] sm:$0xff] }
 0x1bb   :  { %11925 = vst [vmem:[#allocation170_spill] sm:$0xff] %v7307_v58  ;;  %1498 = vmatpush.msra.mxu1 %v7325_v48  ;;  %v7331_v58 = vld [vmem:[%s11072_s7 + $0x3d8] sm:$0xff] }
 0x1bc   :  { %11926 = vst [vmem:[#allocation171_spill] sm:$0xff] %v7313_v14  ;;  %1538 = vmatpush.msra.mxu3 %v7331_v58  ;;  %v7337_v14 = vld [vmem:[%s11072_s7 + $0x3a0] sm:$0xff] }
 0x1bd   :  { %11927 = vst [vmem:[#allocation172_spill] sm:$0xff] %v7319_v1  ;;  %1499 = vmatpush.msra.mxu1 %v7337_v14  ;;  %v7343_v1 = vld [vmem:[%s11072_s7 + $0x3a8] sm:$0xff] }
 0x1be   :  { %11928 = vst [vmem:[#allocation173_spill] sm:$0xff] %v7325_v48  ;;  %1539 = vmatpush.msra.mxu3 %v7343_v1  ;;  %v7349_v48 = vld [vmem:[%s11072_s7 + $0x370] sm:$0xff] }
 0x1bf   :  { %11929 = vst [vmem:[#allocation174_spill] sm:$0xff] %v7331_v58  ;;  %1500 = vmatpush.msra.mxu1 %v7349_v48  ;;  %v7355_v58 = vld [vmem:[%s11072_s7 + $0x378] sm:$0xff] }
 0x1c0   :  { %11930 = vst [vmem:[#allocation175_spill] sm:$0xff] %v7337_v14  ;;  %1540 = vmatpush.msra.mxu3 %v7355_v58  ;;  %v7361_v14 = vld [vmem:[%s11072_s7 + $0x340] sm:$0xff] }
 0x1c1   :  { %11931 = vst [vmem:[#allocation176_spill] sm:$0xff] %v7343_v1  ;;  %1501 = vmatpush.msra.mxu1 %v7361_v14  ;;  %v7367_v1 = vld [vmem:[%s11072_s7 + $0x348] sm:$0xff] }
 0x1c2   :  { %11932 = vst [vmem:[#allocation177_spill] sm:$0xff] %v7349_v48  ;;  %1541 = vmatpush.msra.mxu3 %v7367_v1  ;;  %v7373_v48 = vld [vmem:[%s11072_s7 + $0x310] sm:$0xff]  ;;  %v1175_v59 = vpop.f32.mrf.mxu3 }
 0x1c3   :  { %11933 = vst [vmem:[#allocation178_spill] sm:$0xff] %v7355_v58  ;;  %1502 = vmatpush.msra.mxu1 %v7373_v48  ;;  %v7379_v58 = vld [vmem:[%s11072_s7 + $0x318] sm:$0xff] }
 0x1c4   :  { %11934 = vst [vmem:[#allocation179_spill] sm:$0xff] %v7361_v14  ;;  %1542 = vmatpush.msra.mxu3 %v7379_v58  ;;  %v1035_v14 = vpop.f32.mrf.mxu0 }
 0x1c5   :  { %11935 = vst [vmem:[#allocation180_spill] sm:$0xff] %v7367_v1  ;;  %v1036_v35 = vadd.f32 %v1035_v14, %v6205_v63  ;;  %v11938_v1 = vld [vmem:[#allocation93_spill] sm:$0xff]  ;;  %v1135_v63 = vpop.f32.mrf.mxu1 }
 0x1c6   :  { %11936 = vst [vmem:[#allocation181_spill] sm:$0xff] %v7373_v48  ;;  %v143_v45 = vadd.f32 %v11938_v1, %v6214_v27  ;;  %v172_v1 = vadd.f32 %v11939_v11, %v6249_v19 }
 0x1c7   :  { %11937 = vst [vmem:[#allocation182_spill] sm:$0xff] %v7379_v58  ;;  %v1056_v52 = vadd.f32 %v1055_v33, %v1036_v35  ;;  %v1096_v58 = vadd.f32 %v1095_v57, %v1076_v15  ;;  %v1155_v33 = vpop.f32.mrf.mxu2  ;;  %v347_v57 = vadd.f32 %v6136_v10, %v6258_v21 }
 0x1c9   :  { %v1267_v34 = vadd.f32 %v1056_v52, %v143_v45  ;;  %v1268_v14 = vadd.f32 %v1096_v58, %v318_v49 }
 0x1cb   :  { %v3799_v44 = vmul.f32 -1.442695, %v1267_v34  ;;  %v3800_v45 = vmul.f32 -1.442695, %v1268_v14  ;;  %v1156_v34 = vadd.f32 %v1155_v33, %v6255_v61 }
 0x1cc   :  { %v1115_v48 = vpop.f32.mrf.mxu0 }
 0x1cd   :  { %3915 = vpow2.f32 %v3799_v44  ;;  %v1116_v46 = vadd.f32 %v1115_v48, %v6246_v7  ;;  %v1176_v49 = vadd.f32 %v1175_v59, %v1156_v34 }
 0x1ce   :  { %3917 = vpow2.f32 %v3800_v45 }
 0x1cf   :  { %v1136_v27 = vadd.f32 %v1135_v63, %v1116_v46  ;;  %v1270_v15 = vadd.f32 %v1176_v49, %v347_v57 }
 0x1d1   :  { %v1269_v52 = vadd.f32 %v1136_v27, %v172_v1  ;;  %v3802_v63 = vmul.f32 -1.442695, %v1270_v15 }
 0x1d3   :  { %v3916_v42 = vpop.eup %3915  ;;  %v3801_v39 = vmul.f32 -1.442695, %v1269_v52 }
 0x1d4   :  { %v1283_v35 = vadd.f32 1.0, %v3916_v42  ;;  %v3918_v44 = vpop.eup %3917  ;;  %v1195_v52 = vpop.f32.mrf.mxu0 }
 0x1d5   :  { %v1284_v11 = vadd.f32 1.0, %v3918_v44 }
 0x1d6   :  { %3919 = vrcp.f32 %v1283_v35  ;;  %v1298_v10 = vand.u32 2147483648, %v1283_v35  ;;  %v1296_v45 = vand.u32 2147483647, %v1283_v35  ;;  %vm1292_vm11 = vweird.f32 %v1283_v35 }
 0x1d7   :  { %3921 = vpow2.f32 %v3801_v39  ;;  %vm1307_vm15 = vweird.f32 %v1284_v11 }
 0x1d8   :  { %3923 = vrcp.f32 %v1284_v11  ;;  %v1299_v49 = vor.u32 1.1754944e-38, %v1298_v10  ;;  %vm1297_vm13 = vcmp.eq.f32.partialorder %v1296_v45, 8.507059e+37  ;;  %v201_v10 = vadd.f32 %v6056_v13, %v6270_v2 }
 0x1d9   :  { %3925 = vpow2.f32 %v3802_v63  ;;  %v1196_v63 = vadd.f32 %v1195_v52, %v6261_v31 }
 0x1dc   :  { %v3920_v46 = vpop.eup %3919 }
 0x1dd   :  { %v3922_v27 = vpop.eup %3921  ;;  %v1288_v48 = vmul.f32 %v3920_v46, %v1283_v35  ;;  %vm1293_vm10 = vweird.f32 %v3920_v46 }
 0x1de   :  { %v7394_v58 = vadd.f32 1.0, %v3922_v27  ;;  %v3924_v33 = vpop.eup %3923  ;;  %vm1294_vm12 = vmor %vm1292_vm11, %vm1293_vm10 }
 0x1df   :  { %v1289_v14 = vsub.f32 1.0, %v1288_v48  ;;  %v3926_v39 = vpop.eup %3925  ;;  %v1303_v34 = vmul.f32 %v3924_v33, %v1284_v11  ;;  %v1215_v48 = vpop.f32.mrf.mxu1  ;;  %vm1308_vm14 = vweird.f32 %v3924_v33 }
 0x1e0   :  { %3927 = vrcp.f32 %v7394_v58  ;;  %v7397_v59 = vadd.f32 1.0, %v3926_v39  ;;  %v1216_v35 = vadd.f32 %v1215_v48, %v1196_v63  ;;  %vm1309_vm0 = vmor %vm1307_vm15, %vm1308_vm14  ;;  %vm1322_vm3 = vweird.f32 %v7394_v58 }
 0x1e1   :  { %v1290_v1 = vmul.f32 %v3920_v46, %v1289_v14  ;;  %v1304_v15 = vsub.f32 1.0, %v1303_v34 }
 0x1e2   :  { %3929 = vrcp.f32 %v7397_v59  ;;  %vm1337_vm7 = vweird.f32 %v7397_v59 }
 0x1e3   :  { %v1291_v42 = vadd.f32 %v3920_v46, %v1290_v1  ;;  %v1305_v21 = vmul.f32 %v3924_v33, %v1304_v15  ;;  %v1313_v1 = vand.u32 2147483648, %v1284_v11 }
 0x1e5   :  { %v1295_v57 = vsel %vm1294_vm12, %v3920_v46, %v1291_v42  ;;  %v1306_v61 = vadd.f32 %v3924_v33, %v1305_v21  ;;  %v1311_v46 = vand.u32 2147483647, %v1284_v11  ;;  %v1235_v42 = vpop.f32.mrf.mxu2  ;;  %v1314_v7 = vor.u32 1.1754944e-38, %v1313_v1  ;;  %v1255_v21 = vpop.f32.mrf.mxu3 }
 0x1e6   :  { %v3928_v44 = vpop.eup %3927  ;;  %v1300_v14 = vsel %vm1297_vm13, %v1299_v49, %v1295_v57  ;;  %v1236_v49 = vadd.f32 %v1235_v42, %v6284_v4 }
 0x1e7   :  { %v1318_v27 = vmul.f32 %v3928_v44, %v7394_v58  ;;  %v1347_v52 = vmul.f32 %v1300_v14, %v1216_v35  ;;  %v1310_v45 = vsel %vm1309_vm0, %v3924_v33, %v1306_v61  ;;  %vm1312_vm1 = vcmp.eq.f32.partialorder %v1311_v46, 8.507059e+37  ;;  %v1368_v46 = vpop.permute.xlu1 %1367 }
 0x1e8   :  { %v3930_v31 = vpop.eup %3929  ;;  %v1315_v15 = vsel %vm1312_vm1, %v1314_v7, %v1310_v45  ;;  %vm1323_vm2 = vweird.f32 %v3928_v44  ;;  %v1256_v13 = vadd.f32 %v1255_v21, %v1236_v49  ;;  %v376_v61 = vadd.f32 %v6140_v24, %v6299_v23 }
 0x1e9   :  { %v1319_v39 = vsub.f32 1.0, %v1318_v27  ;;  %v1349_v19 = vadd.f32 %v1347_v52, %v201_v10  ;;  %v1333_v57 = vmul.f32 %v3930_v31, %v7397_v59  ;;  %v1328_v27 = vand.u32 2147483648, %v7394_v58  ;;  %vm1324_vm4 = vmor %vm1322_vm3, %vm1323_vm2 }
 0x1ea   :  { %v1326_v33 = vand.u32 2147483647, %v7394_v58  ;;  %v1348_v48 = vmul.f32 %v1315_v15, %v1256_v13  ;;  %vm1338_vm6 = vweird.f32 %v3930_v31  ;;  %v1343_v24 = vand.u32 2147483648, %v7397_v59 }
 0x1eb   :  { %v1320_v34 = vmul.f32 %v3928_v44, %v1319_v39  ;;  %3931 = vtanh.f32 %v1349_v19  ;;  %v1334_v11 = vsub.f32 1.0, %v1333_v57  ;;  %v1329_v7 = vor.u32 1.1754944e-38, %v1328_v27  ;;  %vm1339_vm8 = vmor %vm1337_vm7, %vm1338_vm6 }
 0x1ec   :  { %v1350_v19 = vadd.f32 %v1348_v48, %v376_v61  ;;  %vm1327_vm5 = vcmp.eq.f32.partialorder %v1326_v33, 8.507059e+37  ;;  %v1341_v58 = vand.u32 2147483647, %v7397_v59  ;;  %vm1369_vm9 = vcmp.eq.s32.totalorder %v1368_v46, 1  ;;  %v7611_v61 = vld [vmem:[%s11072_s7 + $0x418] sm:$0xff]  ;;  %v11946_v46 = vld [vmem:[#allocation16_spill] sm:$0xff] }
 0x1ed   :  { %v1321_v63 = vadd.f32 %v3928_v44, %v1320_v34  ;;  %v1335_v14 = vmul.f32 %v3930_v31, %v1334_v11  ;;  %v1344_v57 = vor.u32 1.1754944e-38, %v1343_v24  ;;  %v7435_v11 = vld [vmem:[%s11072_s7 + $0x2c8] sm:$0xff]  ;;  %v7644_v33 = vld [vmem:[%s11072_s7 + $0x3b8] sm:$0xff] }
 0x1ee   :  { %3933 = vtanh.f32 %v1350_v19  ;;  %vm1342_vm10 = vcmp.eq.f32.partialorder %v1341_v58, 8.507059e+37  ;;  %v7662_v19 = vld [vmem:[%s11072_s7 + $0x358] sm:$0xff]  ;;  %v11951_v58 = vld [vmem:[#allocation18_spill] sm:$0xff] }
 0x1ef   :  { %v1325_v35 = vsel %vm1324_vm4, %v3928_v44, %v1321_v63  ;;  %v1336_v42 = vadd.f32 %v3930_v31, %v1335_v14  ;;  %v1376_v63 = vpop.permute.xlu1 %1375  ;;  %v11940_v14 = vld [vmem:[#allocation50_spill] sm:$0xff]  ;;  %v11949_v24 = vld [vmem:[#allocation31_spill] sm:$0xff] }
 0x1f0   :  { %v1330_v10 = vsel %vm1327_vm5, %v1329_v7, %v1325_v35  ;;  %vm1377_vm11 = vcmp.eq.s32.totalorder %v1376_v63, 1  ;;  %v11941_v35 = vld [vmem:[#allocation58_spill] sm:$0xff]  ;;  %v11944_v7 = vld [vmem:[#allocation60_spill] sm:$0xff]  ;;  %v11960_v63 = vld [vmem:[#allocation67_spill] sm:$0xff] }
 0x1f1   :  { %v3932_v1 = vpop.eup %3931  ;;  %v1340_v34 = vsel %vm1339_vm8, %v3930_v31, %v1336_v42  ;;  %v7428_v31 = vld [vmem:[%s11072_s7 + $0x2f8] sm:$0xff]  ;;  %v11948_v42 = vld [vmem:[#allocation61_spill] sm:$0xff] }
 0x1f2   :  { %v1353_v39 = vsub.f32 %v6313_v47, %v3932_v1  ;;  %v1345_v59 = vsel %vm1342_vm10, %v1344_v57, %v1340_v34  ;;  %v11953_v34 = vld [vmem:[#allocation63_spill] sm:$0xff] }
 0x1f3   :  { %v11955_v57 = vld [vmem:[#allocation55_spill] sm:$0xff] }
 0x1f4   :  { %v1355_v52 = vmul.f32 %v1353_v39, %v1330_v10  ;;  %v3934_v45 = vpop.eup %3933  ;;  %v7671_v39 = vld [vmem:[%s11072_s7 + $0x328] sm:$0xff] }
 0x1f5   :  { %v1354_v15 = vsub.f32 %v6425_v8, %v3934_v45  ;;  %11945 = vst [vmem:[#allocation93_spill] sm:$0xff] %v7671_v39  ;;  %v11947_v10 = vld [vmem:[#allocation53_spill] sm:$0xff] }
 0x1f6   :  { %v1357_v44 = vadd.f32 %v3932_v1, %v1355_v52  ;;  %v11943_v1 = vld [vmem:[#allocation34_spill] sm:$0xff] }
 0x1f7   :  { %v11950_v52 = vld [vmem:[#allocation38_spill] sm:$0xff] }
 0x1f8   :  { %v1370_v49 = vsel %vm1369_vm9, %v1357_v44, 0.0  ;;  %v7416_v21 = vsel %vm1369_vm9, %v1357_v44, %v6313_v47  ;;  %v1356_v47 = vmul.f32 %v1354_v15, %v1345_v59  ;;  %v11952_v44 = vld [vmem:[#allocation57_spill] sm:$0xff]  ;;  %v11957_v15 = vld [vmem:[#allocation39_spill] sm:$0xff]  ;;  %v11958_v59 = vld [vmem:[#allocation20_spill] sm:$0xff] }
 0x1f9   :  { %3805 = vst [vmem:[%s11078_s11 + $0x8] sm:$0xff] %v1370_v49  ;;  %1403 = vmatmul.f32.vlgmr.msrb.gmra.mxu0 %v7416_v21  ;;  %1443 = vmatmul.f32.vlgmr.msrb.gmra.mxu2 %v7416_v21  ;;  %v11956_v49 = vld [vmem:[#allocation64_spill] sm:$0xff] }
 0x1fa   :  { %1547 = vmatpush.msrb.mxu0 %v6318_v5  ;;  %1587 = vmatpush.msrb.mxu2 %v7428_v31  ;;  %v1358_v13 = vadd.f32 %v3934_v45, %v1356_v47  ;;  %v7442_v5 = vld [vmem:[%s11072_s7 + $0x298] sm:$0xff]  ;;  %v11954_v45 = vld [vmem:[#allocation54_spill] sm:$0xff]  ;;  %v11959_v47 = vld [vmem:[#allocation56_spill] sm:$0xff] }
 0x1fc   :  { %1548 = vmatpush.msrb.mxu0 %v6329_v38  ;;  %1588 = vmatpush.msrb.mxu2 %v7435_v11  ;;  %v1378_v38 = vsel %vm1377_vm11, %v1358_v13, 0.0  ;;  %v7446_v27 = vsel %vm1377_vm11, %v1358_v13, %v6425_v8  ;;  %v7464_v8 = vld [vmem:[%s11072_s7 + $0x5f8] sm:$0xff]  ;;  %v11961_v13 = vld [vmem:[#allocation68_spill] sm:$0xff] }
 0x1fd   :  { %3806 = vst [vmem:[%s11079_s12 + $0x30] sm:$0xff] %v1378_v38  ;;  %1423 = vmatmul.f32.vlgmr.msrb.gmra.mxu1 %v7446_v27  ;;  %1463 = vmatmul.f32.vlgmr.msrb.gmra.mxu3 %v7446_v27  ;;  %v11962_v38 = vld [vmem:[#allocation23_spill] sm:$0xff] }
 0x1fe   :  { %1549 = vmatpush.msrb.mxu0 %v6339_v53  ;;  %1589 = vmatpush.msrb.mxu2 %v7442_v5  ;;  %v7458_v53 = vld [vmem:[%s11072_s7 + $0x268] sm:$0xff] }
 0x1ff   :  { %1567 = vmatpush.msrb.mxu1 %v6430_v28  ;;  %1607 = vmatpush.msrb.mxu3 %v7464_v8  ;;  %v7480_v28 = vld [vmem:[%s11072_s7 + $0x5c8] sm:$0xff] }
 0x200   :  { %1550 = vmatpush.msrb.mxu0 %v6346_v0  ;;  %1590 = vmatpush.msrb.mxu2 %v7458_v53  ;;  %v7474_v0 = vld [vmem:[%s11072_s7 + $0x238] sm:$0xff] }
 0x201   :  { %1483 = vmatmul.f32.vlgmr.msra.gmra.mxu0 %v7416_v21  ;;  %1523 = vmatmul.f32.vlgmr.msra.gmra.mxu2 %v7416_v21 }
 0x202   :  { %1551 = vmatpush.msrb.mxu0 %v6361_v20  ;;  %1568 = vmatpush.msrb.mxu1 %v6448_v9  ;;  %v7488_v20 = vld [vmem:[%s11072_s7 + $0x208] sm:$0xff]  ;;  %v7494_v9 = vld [vmem:[%s11072_s7 + $0x598] sm:$0xff] }
 0x203   :  { %1591 = vmatpush.msrb.mxu2 %v7474_v0  ;;  %1608 = vmatpush.msrb.mxu3 %v7480_v28 }
 0x204   :  { %1552 = vmatpush.msrb.mxu0 %v6371_v36  ;;  %1569 = vmatpush.msrb.mxu1 %v6462_v37  ;;  %v7502_v36 = vld [vmem:[%s11072_s7 + $0x1d8] sm:$0xff]  ;;  %v7508_v37 = vld [vmem:[%s11072_s7 + $0x568] sm:$0xff] }
 0x205   :  { %1592 = vmatpush.msrb.mxu2 %v7488_v20  ;;  %1609 = vmatpush.msrb.mxu3 %v7494_v9 }
 0x206   :  { %1553 = vmatpush.msrb.mxu0 %v6379_v12  ;;  %1570 = vmatpush.msrb.mxu1 %v6476_v51  ;;  %v7518_v12 = vld [vmem:[%s11072_s7 + $0x1a8] sm:$0xff]  ;;  %v7524_v51 = vld [vmem:[%s11072_s7 + $0x538] sm:$0xff] }
 0x207   :  { %1593 = vmatpush.msrb.mxu2 %v7502_v36  ;;  %1610 = vmatpush.msrb.mxu3 %v7508_v37 }
 0x208   :  { %1503 = vmatmul.f32.vlgmr.msra.gmra.mxu1 %v7446_v27  ;;  %1543 = vmatmul.f32.vlgmr.msra.gmra.mxu3 %v7446_v27 }
 0x209   :  { %1554 = vmatpush.msrb.mxu0 %v6386_v32  ;;  %1571 = vmatpush.msrb.mxu1 %v6496_v41  ;;  %v7532_v32 = vld [vmem:[%s11072_s7 + $0x178] sm:$0xff]  ;;  %v7538_v41 = vld [vmem:[%s11072_s7 + $0x508] sm:$0xff] }
 0x20a   :  { %1594 = vmatpush.msrb.mxu2 %v7518_v12  ;;  %1611 = vmatpush.msrb.mxu3 %v7524_v51 }
 0x20b   :  { %1555 = vmatpush.msrb.mxu0 %v6396_v6  ;;  %1572 = vmatpush.msrb.mxu1 %v6510_v3  ;;  %v7546_v6 = vld [vmem:[%s11072_s7 + $0x148] sm:$0xff]  ;;  %v7552_v3 = vld [vmem:[%s11072_s7 + $0x4d8] sm:$0xff] }
 0x20c   :  { %1595 = vmatpush.msrb.mxu2 %v7532_v32  ;;  %1612 = vmatpush.msrb.mxu3 %v7538_v41 }
 0x20d   :  { %1556 = vmatpush.msrb.mxu0 %v6411_v60  ;;  %1573 = vmatpush.msrb.mxu1 %v6522_v56  ;;  %v7560_v60 = vld [vmem:[%s11072_s7 + $0x118] sm:$0xff]  ;;  %v7566_v56 = vld [vmem:[%s11072_s7 + $0x4a8] sm:$0xff] }
 0x20e   :  { %1596 = vmatpush.msrb.mxu2 %v7546_v6  ;;  %1613 = vmatpush.msrb.mxu3 %v7552_v3 }
 0x20f   :  { %1557 = vmatpush.msrb.mxu0 %v6441_v30  ;;  %1574 = vmatpush.msrb.mxu1 %v6535_v40  ;;  %v7574_v30 = vld [vmem:[%s11072_s7 + $0xe8] sm:$0xff]  ;;  %v7580_v40 = vld [vmem:[%s11072_s7 + $0x478] sm:$0xff] }
 0x210   :  { %1597 = vmatpush.msrb.mxu2 %v7560_v60  ;;  %1614 = vmatpush.msrb.mxu3 %v7566_v56 }
 0x211   :  { %1558 = vmatpush.msrb.mxu0 %v6455_v62  ;;  %1575 = vmatpush.msrb.mxu1 %v6549_v18  ;;  %v7588_v62 = vld [vmem:[%s11072_s7 + $0xb8] sm:$0xff]  ;;  %v7594_v18 = vld [vmem:[%s11072_s7 + $0x448] sm:$0xff] }
 0x212   :  { %1598 = vmatpush.msrb.mxu2 %v7574_v30  ;;  %1615 = vmatpush.msrb.mxu3 %v7580_v40 }
 0x213   :  { %1559 = vmatpush.msrb.mxu0 %v6469_v22  ;;  %1576 = vmatpush.msrb.mxu1 %v6568_v29  ;;  %v3811_v22 = vld [vmem:[%s11074_s2 + $0x10] sm:$0xff]  ;;  %v7605_v29 = vld [vmem:[%s11072_s7 + $0x88] sm:$0xff] }
 0x214   :  { %1599 = vmatpush.msrb.mxu2 %v7588_v62  ;;  %1616 = vmatpush.msrb.mxu3 %v7594_v18  ;;  %vm1730_vm12 = vcmp.ne.f32.partialorder %v3811_v22, 0.0  ;;  %v11963_v22 = vld [vmem:[#allocation59_spill] sm:$0xff] }
 0x215   :  { %1560 = vmatpush.msrb.mxu0 %v6483_v16  ;;  %1577 = vmatpush.msrb.mxu1 %v6590_v43  ;;  %v7619_v16 = vld [vmem:[%s11072_s7 + $0x58] sm:$0xff]  ;;  %v7625_v43 = vld [vmem:[%s11072_s7 + $0x3e8] sm:$0xff]  ;;  %v1734_v48 = vsel %vm1730_vm12, 1, %v11657_v17 }
 0x216   :  { %1600 = vmatpush.msrb.mxu2 %v7605_v29  ;;  %1617 = vmatpush.msrb.mxu3 %v7611_v61 }
 0x217   :  { %1561 = vmatpush.msrb.mxu0 %v6503_v54  ;;  %1578 = vmatpush.msrb.mxu1 %v6612_v55  ;;  %v7631_v54 = vld [vmem:[%s11072_s7 + $0x20] sm:$0xff]  ;;  %v7638_v55 = vld [vmem:[%s11072_s7 + $0x28] sm:$0xff] }
 0x218   :  { %1601 = vmatpush.msrb.mxu2 %v7619_v16  ;;  %1618 = vmatpush.msrb.mxu3 %v7625_v43 }
 0x219   :  { %1562 = vmatpush.msrb.mxu0 %v7631_v54  ;;  %1579 = vmatpush.msrb.mxu1 %v6626_v50  ;;  %v7654_v50 = vld [vmem:[%s11072_s7 + $0x388] sm:$0xff] }
 0x21a   :  { %1602 = vmatpush.msrb.mxu2 %v7638_v55  ;;  %1619 = vmatpush.msrb.mxu3 %v7644_v33 }
 0x21b   :  { %1563 = vmatmul.f32.vlgmr.msrb.gmra.mxu0 %v7416_v21  ;;  %1603 = vmatmul.f32.vlgmr.msrb.gmra.mxu2 %v7416_v21 }
 0x21c   :  { %1580 = vmatpush.msrb.mxu1 %v6645_v26  ;;  %1620 = vmatpush.msrb.mxu3 %v7654_v50  ;;  %v11942_v26 = vld [vmem:[#allocation51_spill] sm:$0xff] }
 0x21d   :  { %1736 = vperm.xlu2 %3893, %v1734_v48   ;;  %1756 = vmatpush.msra.mxu0 %v11940_v14  ;;  %v11964_v14 = vld [vmem:[#allocation70_spill] sm:$0xff] }
 0x21e   :  { %1581 = vmatpush.msrb.mxu1 %v11941_v35  ;;  %1621 = vmatpush.msrb.mxu3 %v7662_v19  ;;  %v11965_v35 = vld [vmem:[#allocation72_spill] sm:$0xff] }
 0x21f   :  { %1796 = vmatpush.msra.mxu2 %v11942_v26  ;;  %1757 = vmatpush.msra.mxu0 %v11943_v1  ;;  %v11966_v26 = vld [vmem:[#allocation27_spill] sm:$0xff]  ;;  %v11967_v1 = vld [vmem:[#allocation62_spill] sm:$0xff] }
 0x220   :  { %1582 = vmatpush.msrb.mxu1 %v11944_v7  ;;  %1622 = vmatpush.msrb.mxu3 %v7671_v39  ;;  %v11968_v7 = vld [vmem:[#allocation52_spill] sm:$0xff] }
 0x221   :  { %1583 = vmatmul.f32.vlgmr.msrb.gmra.mxu1 %v7446_v27  ;;  %1623 = vmatmul.f32.vlgmr.msrb.gmra.mxu3 %v7446_v27 }
 0x222   :  { %1797 = vmatpush.msra.mxu2 %v11946_v46  ;;  %1758 = vmatpush.msra.mxu0 %v11947_v10  ;;  %v11969_v46 = vld [vmem:[#allocation74_spill] sm:$0xff]  ;;  %v11970_v10 = vld [vmem:[#allocation35_spill] sm:$0xff] }
 0x223   :  { %1776 = vmatpush.msra.mxu1 %v11948_v42  ;;  %1816 = vmatpush.msra.mxu3 %v11949_v24  ;;  %v11971_v42 = vld [vmem:[#allocation65_spill] sm:$0xff]  ;;  %v11972_v24 = vld [vmem:[#allocation76_spill] sm:$0xff] }
 0x224   :  { %1798 = vmatpush.msra.mxu2 %v11950_v52  ;;  %1759 = vmatpush.msra.mxu0 %v11951_v58  ;;  %v11973_v52 = vld [vmem:[#allocation78_spill] sm:$0xff] }
 0x225   :  { %1744 = vperm.xlu2 %3893, %v11952_v44   ;;  %1777 = vmatpush.msra.mxu1 %v11953_v34  ;;  %v11974_v58 = vld [vmem:[#allocation66_spill] sm:$0xff]  ;;  %v11976_v34 = vld [vmem:[#allocation79_spill] sm:$0xff] }
 0x226   :  { %1799 = vmatpush.msra.mxu2 %v11954_v45  ;;  %1760 = vmatpush.msra.mxu0 %v11955_v57  ;;  %v11975_v44 = vld [vmem:[#allocation42_spill] sm:$0xff]  ;;  %v11978_v57 = vld [vmem:[#allocation71_spill] sm:$0xff] }
 0x227   :  { %1817 = vmatpush.msra.mxu3 %v11956_v49  ;;  %1778 = vmatpush.msra.mxu1 %v11957_v15  ;;  %v11977_v45 = vld [vmem:[#allocation82_spill] sm:$0xff]  ;;  %v11979_v49 = vld [vmem:[#allocation73_spill] sm:$0xff]  ;;  %v11980_v15 = vld [vmem:[#allocation84_spill] sm:$0xff] }
 0x228   :  { %1800 = vmatpush.msra.mxu2 %v11958_v59  ;;  %1761 = vmatpush.msra.mxu0 %v11959_v47  ;;  %v11981_v59 = vld [vmem:[#allocation86_spill] sm:$0xff]  ;;  %v3851_v47 = vld [vmem:[%s11074_s2 + $0x38] sm:$0xff] }
 0x229   :  { %1818 = vmatpush.msra.mxu3 %v11960_v63  ;;  %1779 = vmatpush.msra.mxu1 %v11961_v13  ;;  %v11982_v63 = vld [vmem:[#allocation75_spill] sm:$0xff]  ;;  %v11983_v13 = vld [vmem:[#allocation77_spill] sm:$0xff]  ;;  %vm3568_vm13 = vcmp.ne.f32.partialorder %v3851_v47, 0.0 }
 0x22a   :  { %1801 = vmatpush.msra.mxu2 %v11962_v38  ;;  %1762 = vmatpush.msra.mxu0 %v11963_v22  ;;  %v11984_v38 = vld [vmem:[#allocation69_spill] sm:$0xff]  ;;  %v11985_v22 = vld [vmem:[#allocation80_spill] sm:$0xff]  ;;  %v12005_v47 = vld [vmem:[#allocation119_spill] sm:$0xff] }
 0x22b   :  { %1819 = vmatpush.msra.mxu3 %v11964_v14  ;;  %1780 = vmatpush.msra.mxu1 %v11965_v35  ;;  %v11986_v14 = vld [vmem:[#allocation89_spill] sm:$0xff] }
 0x22c   :  { %1802 = vmatpush.msra.mxu2 %v11966_v26  ;;  %1763 = vmatpush.msra.mxu0 %v11967_v1  ;;  %v11987_v35 = vld [vmem:[#allocation81_spill] sm:$0xff]  ;;  %v11988_v26 = vld [vmem:[#allocation103_spill] sm:$0xff] }
 0x22d   :  { %2472 = vperm.xlu2 %3893, %v11968_v7   ;;  %1820 = vmatpush.msra.mxu3 %v11969_v46  ;;  %v11989_v1 = vld [vmem:[#allocation83_spill] sm:$0xff]  ;;  %v11990_v7 = vld [vmem:[#allocation105_spill] sm:$0xff] }
 0x22e   :  { %1803 = vmatpush.msra.mxu2 %v11970_v10  ;;  %1764 = vmatpush.msra.mxu0 %v11971_v42  ;;  %v11991_v46 = vld [vmem:[#allocation85_spill] sm:$0xff]  ;;  %v11992_v10 = vld [vmem:[#allocation107_spill] sm:$0xff] }
 0x22f   :  { %1781 = vmatpush.msra.mxu1 %v11972_v24  ;;  %1821 = vmatpush.msra.mxu3 %v11973_v52  ;;  %v11993_v42 = vld [vmem:[#allocation87_spill] sm:$0xff]  ;;  %v11994_v24 = vld [vmem:[#allocation109_spill] sm:$0xff]  ;;  %v11995_v52 = vld [vmem:[#allocation88_spill] sm:$0xff] }
 0x230   :  { %1804 = vmatpush.msra.mxu2 %v11974_v58  ;;  %1765 = vmatpush.msra.mxu0 %v11975_v44  ;;  %v11996_v58 = vld [vmem:[#allocation111_spill] sm:$0xff]  ;;  %v11997_v44 = vld [vmem:[#allocation90_spill] sm:$0xff] }
 0x231   :  { %1782 = vmatpush.msra.mxu1 %v11976_v34  ;;  %1822 = vmatpush.msra.mxu3 %v11977_v45  ;;  %v11998_v34 = vld [vmem:[#allocation113_spill] sm:$0xff]  ;;  %v11999_v45 = vld [vmem:[#allocation104_spill] sm:$0xff] }
 0x232   :  { %1805 = vmatpush.msra.mxu2 %v11978_v57  ;;  %1766 = vmatpush.msra.mxu0 %v11979_v49  ;;  %v12000_v57 = vld [vmem:[#allocation115_spill] sm:$0xff]  ;;  %v12001_v49 = vld [vmem:[#allocation106_spill] sm:$0xff] }
 0x233   :  { %1783 = vmatpush.msra.mxu1 %v11980_v15  ;;  %1823 = vmatpush.msra.mxu3 %v11981_v59  ;;  %v12003_v15 = vld [vmem:[#allocation108_spill] sm:$0xff]  ;;  %v12004_v59 = vld [vmem:[#allocation110_spill] sm:$0xff] }
 0x234   :  { %1806 = vmatpush.msra.mxu2 %v11982_v63  ;;  %1767 = vmatpush.msra.mxu0 %v11983_v13  ;;  %v12006_v63 = vld [vmem:[#allocation121_spill] sm:$0xff]  ;;  %v12007_v13 = vld [vmem:[#allocation112_spill] sm:$0xff] }
 0x235   :  { %2847 = vperm.xlu2 %3893, %v1734_v48   ;;  %1784 = vmatpush.msra.mxu1 %v11984_v38  ;;  %v3571_v48 = vsel %vm3568_vm13, 1, %v11657_v17  ;;  %v12002_v17 = vld [vmem:[#allocation117_spill] sm:$0xff]  ;;  %v12008_v38 = vld [vmem:[#allocation114_spill] sm:$0xff] }
 0x236   :  { %1807 = vmatpush.msra.mxu2 %v11985_v22  ;;  %1824 = vmatpush.msra.mxu3 %v11986_v14  ;;  %v12009_v22 = vld [vmem:[#allocation123_spill] sm:$0xff]  ;;  %v12010_v14 = vld [vmem:[#allocation125_spill] sm:$0xff] }
 0x237   :  { %1768 = vmatpush.msra.mxu0 %v11987_v35  ;;  %1785 = vmatpush.msra.mxu1 %v11988_v26  ;;  %v12011_v35 = vld [vmem:[#allocation116_spill] sm:$0xff]  ;;  %v12012_v26 = vld [vmem:[#allocation118_spill] sm:$0xff] }
 0x238   :  { %1808 = vmatpush.msra.mxu2 %v11989_v1  ;;  %1825 = vmatpush.msra.mxu3 %v11990_v7  ;;  %v12013_v1 = vld [vmem:[#allocation127_spill] sm:$0xff]  ;;  %v12014_v7 = vld [vmem:[#allocation129_spill] sm:$0xff] }
 0x239   :  { %1769 = vmatpush.msra.mxu0 %v11991_v46  ;;  %1786 = vmatpush.msra.mxu1 %v11992_v10  ;;  %v12015_v46 = vld [vmem:[#allocation120_spill] sm:$0xff]  ;;  %v12016_v10 = vld [vmem:[#allocation130_spill] sm:$0xff] }
 0x23a   :  { %1809 = vmatpush.msra.mxu2 %v11993_v42  ;;  %1826 = vmatpush.msra.mxu3 %v11994_v24  ;;  %v12018_v42 = vld [vmem:[#allocation131_spill] sm:$0xff]  ;;  %v12019_v24 = vld [vmem:[#allocation124_spill] sm:$0xff] }
 0x23b   :  { %1770 = vmatpush.msra.mxu0 %v11995_v52  ;;  %1787 = vmatpush.msra.mxu1 %v11996_v58  ;;  %v12020_v52 = vld [vmem:[#allocation133_spill] sm:$0xff]  ;;  %v12021_v58 = vld [vmem:[#allocation126_spill] sm:$0xff] }
 0x23c   :  { %1810 = vmatpush.msra.mxu2 %v11997_v44  ;;  %1827 = vmatpush.msra.mxu3 %v11998_v34  ;;  %v12022_v44 = vld [vmem:[#allocation135_spill] sm:$0xff]  ;;  %v12023_v34 = vld [vmem:[#allocation128_spill] sm:$0xff] }
 0x23d   :  { %3573 = vperm.xlu2 %3893, %v3571_v48   ;;  %1771 = vmatpush.msra.mxu0 %v11999_v45  ;;  %v12017_v48 = vld [vmem:[#allocation122_spill] sm:$0xff]  ;;  %v12024_v45 = vld [vmem:[#allocation137_spill] sm:$0xff] }
 0x23e   :  { %1788 = vmatpush.msra.mxu1 %v12000_v57  ;;  %1811 = vmatpush.msra.mxu2 %v12001_v49  ;;  %v12025_v57 = vld [vmem:[#allocation132_spill] sm:$0xff]  ;;  %v12026_v49 = vld [vmem:[#allocation139_spill] sm:$0xff] }
 0x23f   :  { %1828 = vmatpush.msra.mxu3 %v12002_v17  ;;  %1836 = vmatpush.msrb.mxu0 %v12003_v15  ;;  %v12027_v17 = vld [vmem:[#allocation134_spill] sm:$0xff]  ;;  %v12028_v15 = vld [vmem:[#allocation141_spill] sm:$0xff] }
 0x240   :  { %1876 = vmatpush.msrb.mxu2 %v12004_v59  ;;  %1789 = vmatpush.msra.mxu1 %v12005_v47  ;;  %v12029_v59 = vld [vmem:[#allocation136_spill] sm:$0xff]  ;;  %v12030_v47 = vld [vmem:[#allocation143_spill] sm:$0xff] }
 0x241   :  { %1829 = vmatpush.msra.mxu3 %v12006_v63  ;;  %1837 = vmatpush.msrb.mxu0 %v12007_v13  ;;  %v12031_v63 = vld [vmem:[#allocation138_spill] sm:$0xff]  ;;  %v12032_v13 = vld [vmem:[#allocation145_spill] sm:$0xff] }
 0x242   :  { %1877 = vmatpush.msrb.mxu2 %v12008_v38  ;;  %1790 = vmatpush.msra.mxu1 %v12009_v22  ;;  %v12033_v38 = vld [vmem:[#allocation140_spill] sm:$0xff]  ;;  %v12034_v22 = vld [vmem:[#allocation147_spill] sm:$0xff] }
 0x243   :  { %1830 = vmatpush.msra.mxu3 %v12010_v14  ;;  %1838 = vmatpush.msrb.mxu0 %v12011_v35  ;;  %v12035_v14 = vld [vmem:[#allocation142_spill] sm:$0xff]  ;;  %v12036_v35 = vld [vmem:[#allocation149_spill] sm:$0xff] }
 0x244   :  { %1878 = vmatpush.msrb.mxu2 %v12012_v26  ;;  %1791 = vmatpush.msra.mxu1 %v12013_v1  ;;  %v12037_v26 = vld [vmem:[#allocation144_spill] sm:$0xff]  ;;  %v12038_v1 = vld [vmem:[#allocation151_spill] sm:$0xff] }
 0x245   :  { %1831 = vmatpush.msra.mxu3 %v12014_v7  ;;  %1839 = vmatpush.msrb.mxu0 %v12015_v46  ;;  %v12039_v7 = vld [vmem:[#allocation146_spill] sm:$0xff]  ;;  %v12040_v46 = vld [vmem:[#allocation153_spill] sm:$0xff] }
 0x246   :  { %1856 = vmatpush.msrb.mxu1 %v12016_v10  ;;  %1879 = vmatpush.msrb.mxu2 %v12017_v48  ;;  %v12041_v10 = vld [vmem:[#allocation148_spill] sm:$0xff]  ;;  %v12042_v48 = vld [vmem:[#allocation155_spill] sm:$0xff] }
 0x247   :  { %1896 = vmatpush.msrb.mxu3 %v12018_v42  ;;  %1840 = vmatpush.msrb.mxu0 %v12019_v24  ;;  %v12043_v42 = vld [vmem:[#allocation150_spill] sm:$0xff]  ;;  %v12044_v24 = vld [vmem:[#allocation157_spill] sm:$0xff] }
 0x248   :  { %1857 = vmatpush.msrb.mxu1 %v12020_v52  ;;  %1880 = vmatpush.msrb.mxu2 %v12021_v58  ;;  %v12045_v52 = vld [vmem:[#allocation152_spill] sm:$0xff]  ;;  %v12046_v58 = vld [vmem:[#allocation159_spill] sm:$0xff] }
 0x249   :  { %1897 = vmatpush.msrb.mxu3 %v12022_v44  ;;  %1841 = vmatpush.msrb.mxu0 %v12023_v34  ;;  %v12047_v44 = vld [vmem:[#allocation154_spill] sm:$0xff]  ;;  %v12048_v34 = vld [vmem:[#allocation161_spill] sm:$0xff] }
 0x24a   :  { %1858 = vmatpush.msrb.mxu1 %v12024_v45  ;;  %1881 = vmatpush.msrb.mxu2 %v12025_v57  ;;  %v12049_v45 = vld [vmem:[#allocation156_spill] sm:$0xff]  ;;  %v12050_v57 = vld [vmem:[#allocation163_spill] sm:$0xff] }
 0x24b   :  { %1898 = vmatpush.msrb.mxu3 %v12026_v49  ;;  %1842 = vmatpush.msrb.mxu0 %v12027_v17  ;;  %v12051_v49 = vld [vmem:[#allocation158_spill] sm:$0xff]  ;;  %v12052_v17 = vld [vmem:[#allocation165_spill] sm:$0xff] }
 0x24c   :  { %1859 = vmatpush.msrb.mxu1 %v12028_v15  ;;  %1882 = vmatpush.msrb.mxu2 %v12029_v59  ;;  %v12053_v15 = vld [vmem:[#allocation160_spill] sm:$0xff]  ;;  %v12054_v59 = vld [vmem:[#allocation167_spill] sm:$0xff] }
 0x24d   :  { %1899 = vmatpush.msrb.mxu3 %v12030_v47  ;;  %1843 = vmatpush.msrb.mxu0 %v12031_v63  ;;  %v12055_v47 = vld [vmem:[#allocation162_spill] sm:$0xff]  ;;  %v12056_v63 = vld [vmem:[#allocation169_spill] sm:$0xff] }
 0x24e   :  { %1860 = vmatpush.msrb.mxu1 %v12032_v13  ;;  %1883 = vmatpush.msrb.mxu2 %v12033_v38  ;;  %v12057_v13 = vld [vmem:[#allocation164_spill] sm:$0xff]  ;;  %v12058_v38 = vld [vmem:[#allocation171_spill] sm:$0xff] }
 0x24f   :  { %1900 = vmatpush.msrb.mxu3 %v12034_v22  ;;  %1844 = vmatpush.msrb.mxu0 %v12035_v14  ;;  %v12059_v22 = vld [vmem:[#allocation166_spill] sm:$0xff]  ;;  %v12060_v14 = vld [vmem:[#allocation173_spill] sm:$0xff] }
 0x250   :  { %1861 = vmatpush.msrb.mxu1 %v12036_v35  ;;  %1884 = vmatpush.msrb.mxu2 %v12037_v26  ;;  %v12061_v35 = vld [vmem:[#allocation168_spill] sm:$0xff]  ;;  %v12062_v26 = vld [vmem:[#allocation174_spill] sm:$0xff] }
 0x251   :  { %1901 = vmatpush.msrb.mxu3 %v12038_v1  ;;  %1845 = vmatpush.msrb.mxu0 %v12039_v7  ;;  %v12063_v1 = vld [vmem:[#allocation170_spill] sm:$0xff]  ;;  %v12064_v7 = vld [vmem:[#allocation175_spill] sm:$0xff] }
 0x252   :  { %1862 = vmatpush.msrb.mxu1 %v12040_v46  ;;  %1885 = vmatpush.msrb.mxu2 %v12041_v10  ;;  %v12065_v46 = vld [vmem:[#allocation172_spill] sm:$0xff] }
 0x253   :  { %1902 = vmatpush.msrb.mxu3 %v12042_v48  ;;  %1846 = vmatpush.msrb.mxu0 %v12043_v42  ;;  %v12066_v10 = vld [vmem:[#allocation176_spill] sm:$0xff]  ;;  %v12067_v48 = vld [vmem:[#allocation177_spill] sm:$0xff]  ;;  %v12068_v42 = vld [vmem:[#allocation178_spill] sm:$0xff] }
 0x254   :  { %1863 = vmatpush.msrb.mxu1 %v12044_v24  ;;  %1886 = vmatpush.msrb.mxu2 %v12045_v52  ;;  %v12069_v24 = vld [vmem:[#allocation179_spill] sm:$0xff]  ;;  %v12070_v52 = vld [vmem:[#allocation180_spill] sm:$0xff] }
 0x255   :  { %1903 = vmatpush.msrb.mxu3 %v12046_v58  ;;  %1847 = vmatpush.msrb.mxu0 %v12047_v44  ;;  %v12071_v58 = vld [vmem:[#allocation181_spill] sm:$0xff]  ;;  %v12072_v44 = vld [vmem:[#allocation182_spill] sm:$0xff] }
 0x256   :  { %1864 = vmatpush.msrb.mxu1 %v12048_v34  ;;  %1887 = vmatpush.msrb.mxu2 %v12049_v45  ;;  %v12073_v45 = vld [vmem:[#allocation8_spill] sm:$0xff] }
 0x257   :  { %1904 = vmatpush.msrb.mxu3 %v12050_v57  ;;  %1848 = vmatpush.msrb.mxu0 %v12051_v49 }
 0x258   :  { %1865 = vmatpush.msrb.mxu1 %v12052_v17  ;;  %1888 = vmatpush.msrb.mxu2 %v12053_v15  ;;  %v12074_v17 = vld [vmem:[#allocation43_spill] sm:$0xff]  ;;  %v12075_v15 = vld [vmem:[#allocation97_spill] sm:$0xff] }
 0x259   :  { %1905 = vmatpush.msrb.mxu3 %v12054_v59  ;;  %1849 = vmatpush.msrb.mxu0 %v12055_v47  ;;  %v146_v59 = vadd.f32 %v12075_v15, %v12074_v17 }
 0x25a   :  { %1866 = vmatpush.msrb.mxu1 %v12056_v63  ;;  %1889 = vmatpush.msrb.mxu2 %v12057_v13 }
 0x25b   :  { %1906 = vmatpush.msrb.mxu3 %v12058_v38  ;;  %1850 = vmatpush.msrb.mxu0 %v12059_v22  ;;  %v12076_v22 = vld [vmem:[#allocation10_spill] sm:$0xff] }
 0x25c   :  { %1867 = vmatpush.msrb.mxu1 %v12060_v14  ;;  %1890 = vmatpush.msrb.mxu2 %v12061_v35 }
 0x25d   :  { %1907 = vmatpush.msrb.mxu3 %v12062_v26  ;;  %1851 = vmatpush.msrb.mxu0 %v12063_v1  ;;  %v12077_v1 = vld [vmem:[#allocation24_spill] sm:$0xff] }
 0x25e   :  { %1868 = vmatpush.msrb.mxu1 %v12064_v7  ;;  %1891 = vmatpush.msrb.mxu2 %v12065_v46  ;;  %v321_v7 = vadd.f32 %v12077_v1, %v6237_v25 }
 0x25f   :  { %1908 = vmatpush.msrb.mxu3 %v12066_v10  ;;  %v12078_v10 = vld [vmem:[#allocation46_spill] sm:$0xff] }
 0x260   :  { %1869 = vmatpush.msrb.mxu1 %v12067_v48 }
 0x261   :  { %1909 = vmatpush.msrb.mxu3 %v12068_v42 }
 0x262   :  { %1870 = vmatpush.msrb.mxu1 %v12069_v24 }
 0x263   :  { %1910 = vmatpush.msrb.mxu3 %v12070_v52  ;;  %v12079_v52 = vld [vmem:[#allocation49_spill] sm:$0xff] }
 0x264   :  { %1871 = vmatpush.msrb.mxu1 %v12071_v58  ;;  %v12080_v58 = vld [vmem:[#allocation98_spill] sm:$0xff] }
 0x265   :  { %1911 = vmatpush.msrb.mxu3 %v12072_v44  ;;  %v175_v44 = vadd.f32 %v12080_v58, %v12079_v52 }
 0x276   :  { %v1404_v34 = vpop.f32.mrf.mxu0 }
 0x277   :  { %v1405_v57 = vadd.f32 %v1404_v34, %v12073_v45 }
 0x27a   :  { %v1424_v49 = vpop.f32.mrf.mxu1 }
 0x27b   :  { %v1425_v47 = vadd.f32 %v1424_v49, %v1405_v57 }
 0x27c   :  { %v1444_v63 = vpop.f32.mrf.mxu2 }
 0x27d   :  { %v1636_v13 = vadd.f32 %v1425_v47, %v146_v59  ;;  %v1445_v14 = vadd.f32 %v1444_v63, %v12076_v22 }
 0x27e   :  { %v1484_v35 = vpop.f32.mrf.mxu0 }
 0x27f   :  { %v3807_v38 = vmul.f32 -1.442695, %v1636_v13  ;;  %v1485_v48 = vadd.f32 %v1484_v35, %v12078_v10  ;;  %v12081_v13 = vld [vmem:[#allocation30_spill] sm:$0xff] }
 0x280   :  { %v1464_v26 = vpop.f32.mrf.mxu3 }
 0x281   :  { %3935 = vpow2.f32 %v3807_v38  ;;  %v1465_v46 = vadd.f32 %v1464_v26, %v1445_v14  ;;  %v12082_v14 = vld [vmem:[#allocation48_spill] sm:$0xff]  ;;  %v12083_v26 = vld [vmem:[#allocation29_spill] sm:$0xff] }
 0x282   :  { %v350_v35 = vadd.f32 %v12083_v26, %v12082_v14  ;;  %v12084_v14 = vld [vmem:[#allocation14_spill] sm:$0xff] }
 0x283   :  { %v1637_v42 = vadd.f32 %v1465_v46, %v321_v7 }
 0x284   :  { %v1524_v49 = vpop.f32.mrf.mxu2 }
 0x285   :  { %v1504_v24 = vpop.f32.mrf.mxu1  ;;  %v3808_v34 = vmul.f32 -1.442695, %v1637_v42  ;;  %v1525_v22 = vadd.f32 %v1524_v49, %v12081_v13 }
 0x286   :  { %v1505_v57 = vadd.f32 %v1504_v24, %v1485_v48 }
 0x287   :  { %v3936_v15 = vpop.eup %3935  ;;  %3937 = vpow2.f32 %v3808_v34 }
 0x288   :  { %v1638_v59 = vadd.f32 %v1505_v57, %v175_v44  ;;  %v1652_v47 = vadd.f32 1.0, %v3936_v15 }
 0x28a   :  { %v3809_v63 = vmul.f32 -1.442695, %v1638_v59  ;;  %3939 = vrcp.f32 %v1652_v47  ;;  %vm1661_vm15 = vweird.f32 %v1652_v47 }
 0x28b   :  { %v1544_v38 = vpop.f32.mrf.mxu3 }
 0x28c   :  { %3941 = vpow2.f32 %v3809_v63  ;;  %v1545_v1 = vadd.f32 %v1544_v38, %v1525_v22  ;;  %v1667_v22 = vand.u32 2147483648, %v1652_v47 }
 0x28d   :  { %v3938_v7 = vpop.eup %3937 }
 0x28e   :  { %v1639_v46 = vadd.f32 %v1545_v1, %v350_v35  ;;  %v1653_v58 = vadd.f32 1.0, %v3938_v7  ;;  %v1665_v35 = vand.u32 2147483647, %v1652_v47 }
 0x290   :  { %v3810_v42 = vmul.f32 -1.442695, %v1639_v46  ;;  %v3940_v48 = vpop.eup %3939  ;;  %3943 = vrcp.f32 %v1653_v58  ;;  %vm1666_vm1 = vcmp.eq.f32.partialorder %v1665_v35, 8.507059e+37  ;;  %vm1676_vm3 = vweird.f32 %v1653_v58 }
 0x291   :  { %v1657_v44 = vmul.f32 %v3940_v48, %v1652_v47  ;;  %vm1662_vm14 = vweird.f32 %v3940_v48  ;;  %v1682_v47 = vand.u32 2147483648, %v1653_v58 }
 0x292   :  { %v3942_v24 = vpop.eup %3941  ;;  %3945 = vpow2.f32 %v3810_v42  ;;  %vm1663_vm0 = vmor %vm1661_vm15, %vm1662_vm14 }
 0x293   :  { %v7819_v34 = vadd.f32 1.0, %v3942_v24  ;;  %v1658_v57 = vsub.f32 1.0, %v1657_v44  ;;  %v1668_v44 = vor.u32 1.1754944e-38, %v1667_v22 }
 0x295   :  { %3947 = vrcp.f32 %v7819_v34  ;;  %v1659_v49 = vmul.f32 %v3940_v48, %v1658_v57  ;;  %vm1691_vm7 = vweird.f32 %v7819_v34 }
 0x296   :  { %v3944_v15 = vpop.eup %3943 }
 0x297   :  { %v1660_v63 = vadd.f32 %v3940_v48, %v1659_v49  ;;  %v1672_v38 = vmul.f32 %v3944_v15, %v1653_v58  ;;  %vm1677_vm2 = vweird.f32 %v3944_v15 }
 0x298   :  { %v3946_v59 = vpop.eup %3945  ;;  %v1564_v1 = vpop.f32.mrf.mxu0  ;;  %vm1678_vm4 = vmor %vm1676_vm3, %vm1677_vm2 }
 0x299   :  { %v7822_v26 = vadd.f32 1.0, %v3946_v59  ;;  %v1673_v7 = vsub.f32 1.0, %v1672_v38  ;;  %v1664_v42 = vsel %vm1663_vm0, %v3940_v48, %v1660_v63  ;;  %v1565_v13 = vadd.f32 %v1564_v1, %v12084_v14  ;;  %v12085_v48 = vld [vmem:[#allocation7_spill] sm:$0xff] }
 0x29a   :  { %v1669_v52 = vsel %vm1666_vm1, %v1668_v44, %v1664_v42  ;;  %v1680_v38 = vand.u32 2147483647, %v1653_v58  ;;  %v204_v63 = vadd.f32 %v12085_v48, %v6270_v2  ;;  %v1683_v1 = vor.u32 1.1754944e-38, %v1682_v47  ;;  %v12086_v14 = vld [vmem:[#allocation15_spill] sm:$0xff] }
 0x29b   :  { %v3948_v46 = vpop.eup %3947  ;;  %3949 = vrcp.f32 %v7822_v26  ;;  %v1674_v57 = vmul.f32 %v3944_v15, %v1673_v7  ;;  %v379_v48 = vadd.f32 %v12086_v14, %v6299_v23  ;;  %vm1706_vm11 = vweird.f32 %v7822_v26 }
 0x29c   :  { %v1687_v24 = vmul.f32 %v3948_v46, %v7819_v34  ;;  %vm1681_vm5 = vcmp.eq.f32.partialorder %v1680_v38, 8.507059e+37  ;;  %vm1692_vm6 = vweird.f32 %v3948_v46 }
 0x29d   :  { %v1675_v10 = vadd.f32 %v3944_v15, %v1674_v57  ;;  %vm1693_vm8 = vmor %vm1691_vm7, %vm1692_vm6 }
 0x29e   :  { %v1688_v49 = vsub.f32 1.0, %v1687_v24  ;;  %v1584_v59 = vpop.f32.mrf.mxu1  ;;  %v1604_v17 = vpop.f32.mrf.mxu2 }
 0x29f   :  { %v1585_v25 = vadd.f32 %v1584_v59, %v1565_v13  ;;  %v1679_v7 = vsel %vm1678_vm4, %v3944_v15, %v1675_v10  ;;  %v1605_v42 = vadd.f32 %v1604_v17, %v6284_v4  ;;  %v1695_v15 = vand.u32 2147483647, %v7819_v34 }
 0x2a0   :  { %v1689_v39 = vmul.f32 %v3948_v46, %v1688_v49  ;;  %v1684_v57 = vsel %vm1681_vm5, %v1683_v1, %v1679_v7 }
 0x2a1   :  { %v3950_v45 = vpop.eup %3949  ;;  %v1716_v22 = vmul.f32 %v1669_v52, %v1585_v25  ;;  %v1697_v25 = vand.u32 2147483648, %v7819_v34  ;;  %vm1696_vm10 = vcmp.eq.f32.partialorder %v1695_v15, 8.507059e+37  ;;  %v1710_v34 = vand.u32 2147483647, %v7822_v26  ;;  %v8111_v15 = vld [vmem:[%s11072_s7 + $0x270] sm:$0xff] }
 0x2a2   :  { %v1702_v35 = vmul.f32 %v3950_v45, %v7822_v26  ;;  %v1690_v59 = vadd.f32 %v3948_v46, %v1689_v39  ;;  %vm1707_vm9 = vweird.f32 %v3950_v45  ;;  %12091 = vst [vmem:[#allocation51_spill] sm:$0xff] %v8111_v15 }
 0x2a3   :  { %v1718_v24 = vadd.f32 %v1716_v22, %v204_v63  ;;  %v1698_v38 = vor.u32 1.1754944e-38, %v1697_v25  ;;  %v1737_v63 = vpop.permute.xlu2 %1736  ;;  %v1712_v22 = vand.u32 2147483648, %v7822_v26  ;;  %vm1708_vm12 = vmor %vm1706_vm11, %vm1707_vm9  ;;  %vm1711_vm14 = vcmp.eq.f32.partialorder %v1710_v34, 8.507059e+37  ;;  %v7852_v26 = vld [vmem:[%s11072_s7 + $0x2f0] sm:$0xff]  ;;  %v8177_v34 = vld [vmem:[%s11072_s7 + $0x578] sm:$0xff] }
 0x2a4   :  { %v1703_v44 = vsub.f32 1.0, %v1702_v35  ;;  %v1624_v13 = vpop.f32.mrf.mxu3  ;;  %v1694_v49 = vsel %vm1693_vm8, %v3948_v46, %v1690_v59  ;;  %vm1738_vm13 = vcmp.eq.s32.totalorder %v1737_v63, 1  ;;  %v8141_v63 = vld [vmem:[%s11072_s7 + $0x248] sm:$0xff]  ;;  %12102 = vst [vmem:[#allocation54_spill] sm:$0xff] %v8177_v34 }
 0x2a5   :  { %3951 = vtanh.f32 %v1718_v24  ;;  %v1625_v58 = vadd.f32 %v1624_v13, %v1605_v42  ;;  %v1699_v7 = vsel %vm1696_vm10, %v1698_v38, %v1694_v49  ;;  %v1713_v42 = vor.u32 1.1754944e-38, %v1712_v22  ;;  %v8123_v49 = vld [vmem:[%s11072_s7 + $0x5d0] sm:$0xff]  ;;  %v8135_v38 = vld [vmem:[%s11072_s7 + $0x240] sm:$0xff]  ;;  %12096 = vst [vmem:[#allocation61_spill] sm:$0xff] %v8141_v63 }
 0x2a6   :  { %v1704_v52 = vmul.f32 %v3950_v45, %v1703_v44  ;;  %12093 = vst [vmem:[#allocation60_spill] sm:$0xff] %v8123_v49  ;;  %v8159_v22 = vld [vmem:[%s11072_s7 + $0x210] sm:$0xff] }
 0x2a7   :  { %v1717_v10 = vmul.f32 %v1684_v57, %v1625_v58  ;;  %12095 = vst [vmem:[#allocation53_spill] sm:$0xff] %v8135_v38 }
 0x2a8   :  { %v1705_v14 = vadd.f32 %v3950_v45, %v1704_v52  ;;  %v7903_v52 = vld [vmem:[%s11072_s7 + $0x5c0] sm:$0xff]  ;;  %12099 = vst [vmem:[#allocation18_spill] sm:$0xff] %v8159_v22 }
 0x2a9   :  { %v1719_v17 = vadd.f32 %v1717_v10, %v379_v48  ;;  %v7859_v48 = vld [vmem:[%s11072_s7 + $0x2c0] sm:$0xff]  ;;  %v7866_v10 = vld [vmem:[%s11072_s7 + $0x290] sm:$0xff] }
 0x2aa   :  { %v1709_v46 = vsel %vm1708_vm12, %v3950_v45, %v1705_v14  ;;  %v8153_v14 = vld [vmem:[%s11072_s7 + $0x5a8] sm:$0xff] }
 0x2ab   :  { %v3952_v47 = vpop.eup %3951  ;;  %3953 = vtanh.f32 %v1719_v17  ;;  %v1714_v58 = vsel %vm1711_vm14, %v1713_v42, %v1709_v46  ;;  %v8117_v17 = vld [vmem:[%s11072_s7 + $0x278] sm:$0xff]  ;;  %12098 = vst [vmem:[#allocation38_spill] sm:$0xff] %v8153_v14  ;;  %v8189_v46 = vld [vmem:[%s11072_s7 + $0x1e8] sm:$0xff] }
 0x2ac   :  { %v1722_v39 = vsub.f32 %v7416_v21, %v3952_v47  ;;  %12092 = vst [vmem:[#allocation34_spill] sm:$0xff] %v8117_v17  ;;  %v8201_v42 = vld [vmem:[%s11072_s7 + $0x548] sm:$0xff] }
 0x2ad   :  { %12104 = vst [vmem:[#allocation64_spill] sm:$0xff] %v8189_v46 }
 0x2ae   :  { %v1724_v35 = vmul.f32 %v1722_v39, %v1699_v7  ;;  %v8147_v39 = vld [vmem:[%s11072_s7 + $0x5a0] sm:$0xff]  ;;  %v8165_v7 = vld [vmem:[%s11072_s7 + $0x218] sm:$0xff]  ;;  %12106 = vst [vmem:[#allocation20_spill] sm:$0xff] %v8201_v42 }
 0x2af   :  { %12097 = vst [vmem:[#allocation31_spill] sm:$0xff] %v8147_v39 }
 0x2b0   :  { %v1726_v1 = vadd.f32 %v3952_v47, %v1724_v35  ;;  %v8129_v47 = vld [vmem:[%s11072_s7 + $0x5d8] sm:$0xff]  ;;  %12100 = vst [vmem:[#allocation57_spill] sm:$0xff] %v8165_v7  ;;  %v8171_v35 = vld [vmem:[%s11072_s7 + $0x570] sm:$0xff] }
 0x2b1   :  { %v3954_v24 = vpop.eup %3953  ;;  %12094 = vst [vmem:[#allocation16_spill] sm:$0xff] %v8129_v47 }
 0x2b2   :  { %v1739_v44 = vsel %vm1738_vm13, %v1726_v1, 0.0  ;;  %v1723_v13 = vsub.f32 %v7446_v27, %v3954_v24  ;;  %v7842_v57 = vsel %vm1738_vm13, %v1726_v1, %v7416_v21  ;;  %v1745_v21 = vpop.permute.xlu2 %1744  ;;  %12101 = vst [vmem:[#allocation63_spill] sm:$0xff] %v8171_v35  ;;  %v8183_v1 = vld [vmem:[%s11072_s7 + $0x1e0] sm:$0xff] }
 0x2b3   :  { %3813 = vst [vmem:[%s11078_s11 + $0x10] sm:$0xff] %v1739_v44  ;;  %1772 = vmatmul.f32.vlgmr.msra.gmra.mxu0 %v7842_v57  ;;  %1812 = vmatmul.f32.vlgmr.msra.gmra.mxu2 %v7842_v57  ;;  %vm1746_vm15 = vcmp.eq.s32.totalorder %v1745_v21, 1  ;;  %v8207_v44 = vld [vmem:[%s11072_s7 + $0x1b0] sm:$0xff]  ;;  %v8231_v21 = vld [vmem:[%s11072_s7 + $0x180] sm:$0xff] }
 0x2b4   :  { %v1725_v45 = vmul.f32 %v1723_v13, %v1714_v58  ;;  %1916 = vmatpush.msra.mxu0 %v7852_v26  ;;  %1956 = vmatpush.msra.mxu2 %v7428_v31  ;;  %12103 = vst [vmem:[#allocation55_spill] sm:$0xff] %v8183_v1  ;;  %v8213_v13 = vld [vmem:[%s11072_s7 + $0x1b8] sm:$0xff]  ;;  %v8219_v58 = vld [vmem:[%s11072_s7 + $0x510] sm:$0xff] }
 0x2b5   :  { %12107 = vst [vmem:[#allocation56_spill] sm:$0xff] %v8207_v44 }
 0x2b6   :  { %v1727_v59 = vadd.f32 %v3954_v24, %v1725_v45  ;;  %1917 = vmatpush.msra.mxu0 %v7859_v48  ;;  %1957 = vmatpush.msra.mxu2 %v7435_v11  ;;  %v7881_v11 = vld [vmem:[%s11072_s7 + $0x260] sm:$0xff]  ;;  %12108 = vst [vmem:[#allocation67_spill] sm:$0xff] %v8213_v13  ;;  %v8225_v45 = vld [vmem:[%s11072_s7 + $0x518] sm:$0xff] }
 0x2b7   :  { %v8195_v24 = vld [vmem:[%s11072_s7 + $0x540] sm:$0xff]  ;;  %12109 = vst [vmem:[#allocation68_spill] sm:$0xff] %v8219_v58 }
 0x2b8   :  { %v1747_v25 = vsel %vm1746_vm15, %v1727_v59, 0.0  ;;  %1918 = vmatpush.msra.mxu0 %v7866_v10  ;;  %1958 = vmatpush.msra.mxu2 %v7442_v5  ;;  %v7871_v31 = vsel %vm1746_vm15, %v1727_v59, %v7446_v27  ;;  %v7887_v5 = vld [vmem:[%s11072_s7 + $0x5f0] sm:$0xff]  ;;  %12105 = vst [vmem:[#allocation39_spill] sm:$0xff] %v8195_v24  ;;  %v8237_v59 = vld [vmem:[%s11072_s7 + $0x188] sm:$0xff] }
 0x2b9   :  { %3814 = vst [vmem:[%s11079_s12 + $0x28] sm:$0xff] %v1747_v25  ;;  %1792 = vmatmul.f32.vlgmr.msra.gmra.mxu1 %v7871_v31  ;;  %1832 = vmatmul.f32.vlgmr.msra.gmra.mxu3 %v7871_v31  ;;  %v7897_v27 = vld [vmem:[%s11072_s7 + $0x230] sm:$0xff]  ;;  %v8243_v25 = vld [vmem:[%s11072_s7 + $0x4e0] sm:$0xff] }
 0x2ba   :  { %1919 = vmatpush.msra.mxu0 %v7881_v11  ;;  %1936 = vmatpush.msra.mxu1 %v7887_v5  ;;  %12110 = vst [vmem:[#allocation23_spill] sm:$0xff] %v8225_v45 }
 0x2bb   :  { %1959 = vmatpush.msra.mxu2 %v7458_v53  ;;  %1976 = vmatpush.msra.mxu3 %v7464_v8  ;;  %v7911_v53 = vld [vmem:[%s11072_s7 + $0x200] sm:$0xff]  ;;  %v7917_v8 = vld [vmem:[%s11072_s7 + $0x590] sm:$0xff]  ;;  %12111 = vst [vmem:[#allocation59_spill] sm:$0xff] %v8231_v21 }
 0x2bc   :  { %1852 = vmatmul.f32.vlgmr.msrb.gmra.mxu0 %v7842_v57  ;;  %1892 = vmatmul.f32.vlgmr.msrb.gmra.mxu2 %v7842_v57  ;;  %12112 = vst [vmem:[#allocation70_spill] sm:$0xff] %v8237_v59 }
 0x2bd   :  { %1920 = vmatpush.msra.mxu0 %v7897_v27  ;;  %1937 = vmatpush.msra.mxu1 %v7903_v52  ;;  %12113 = vst [vmem:[#allocation72_spill] sm:$0xff] %v8243_v25 }
 0x2be   :  { %1960 = vmatpush.msra.mxu2 %v7474_v0  ;;  %1977 = vmatpush.msra.mxu3 %v7480_v28  ;;  %v7925_v0 = vld [vmem:[%s11072_s7 + $0x1d0] sm:$0xff]  ;;  %v7931_v28 = vld [vmem:[%s11072_s7 + $0x560] sm:$0xff] }
 0x2bf   :  { %1921 = vmatpush.msra.mxu0 %v7911_v53  ;;  %1938 = vmatpush.msra.mxu1 %v7917_v8 }
 0x2c0   :  { %1961 = vmatpush.msra.mxu2 %v7488_v20  ;;  %1978 = vmatpush.msra.mxu3 %v7494_v9  ;;  %v7941_v20 = vld [vmem:[%s11072_s7 + $0x1a0] sm:$0xff]  ;;  %v7947_v9 = vld [vmem:[%s11072_s7 + $0x530] sm:$0xff] }
 0x2c1   :  { %1922 = vmatpush.msra.mxu0 %v7925_v0  ;;  %1939 = vmatpush.msra.mxu1 %v7931_v28 }
 0x2c2   :  { %1962 = vmatpush.msra.mxu2 %v7502_v36  ;;  %1979 = vmatpush.msra.mxu3 %v7508_v37  ;;  %v7955_v36 = vld [vmem:[%s11072_s7 + $0x170] sm:$0xff]  ;;  %v7961_v37 = vld [vmem:[%s11072_s7 + $0x500] sm:$0xff] }
 0x2c3   :  { %1872 = vmatmul.f32.vlgmr.msrb.gmra.mxu1 %v7871_v31  ;;  %1912 = vmatmul.f32.vlgmr.msrb.gmra.mxu3 %v7871_v31 }
 0x2c4   :  { %1923 = vmatpush.msra.mxu0 %v7941_v20  ;;  %1940 = vmatpush.msra.mxu1 %v7947_v9 }
 0x2c5   :  { %1963 = vmatpush.msra.mxu2 %v7518_v12  ;;  %1980 = vmatpush.msra.mxu3 %v7524_v51  ;;  %v7969_v12 = vld [vmem:[%s11072_s7 + $0x140] sm:$0xff]  ;;  %v7975_v51 = vld [vmem:[%s11072_s7 + $0x4d0] sm:$0xff] }
 0x2c6   :  { %1924 = vmatpush.msra.mxu0 %v7955_v36  ;;  %1941 = vmatpush.msra.mxu1 %v7961_v37 }
 0x2c7   :  { %1964 = vmatpush.msra.mxu2 %v7532_v32  ;;  %1981 = vmatpush.msra.mxu3 %v7538_v41  ;;  %v7983_v32 = vld [vmem:[%s11072_s7 + $0x110] sm:$0xff]  ;;  %v7989_v41 = vld [vmem:[%s11072_s7 + $0x4a0] sm:$0xff] }
 0x2c8   :  { %1925 = vmatpush.msra.mxu0 %v7969_v12  ;;  %1942 = vmatpush.msra.mxu1 %v7975_v51 }
 0x2c9   :  { %1965 = vmatpush.msra.mxu2 %v7546_v6  ;;  %1982 = vmatpush.msra.mxu3 %v7552_v3  ;;  %v7997_v6 = vld [vmem:[%s11072_s7 + $0xe0] sm:$0xff]  ;;  %v8003_v3 = vld [vmem:[%s11072_s7 + $0x470] sm:$0xff] }
 0x2ca   :  { %1926 = vmatpush.msra.mxu0 %v7983_v32  ;;  %1943 = vmatpush.msra.mxu1 %v7989_v41 }
 0x2cb   :  { %1966 = vmatpush.msra.mxu2 %v7560_v60  ;;  %1983 = vmatpush.msra.mxu3 %v7566_v56  ;;  %v8011_v60 = vld [vmem:[%s11072_s7 + $0xb0] sm:$0xff]  ;;  %v8017_v56 = vld [vmem:[%s11072_s7 + $0x440] sm:$0xff] }
 0x2cc   :  { %1927 = vmatpush.msra.mxu0 %v7997_v6  ;;  %1944 = vmatpush.msra.mxu1 %v8003_v3 }
 0x2cd   :  { %1967 = vmatpush.msra.mxu2 %v7574_v30  ;;  %1984 = vmatpush.msra.mxu3 %v7580_v40  ;;  %v8025_v30 = vld [vmem:[%s11072_s7 + $0x80] sm:$0xff]  ;;  %v8031_v40 = vld [vmem:[%s11072_s7 + $0x410] sm:$0xff] }
 0x2ce   :  { %1928 = vmatpush.msra.mxu0 %v8011_v60  ;;  %1945 = vmatpush.msra.mxu1 %v8017_v56 }
 0x2cf   :  { %1968 = vmatpush.msra.mxu2 %v7588_v62  ;;  %1985 = vmatpush.msra.mxu3 %v7594_v18  ;;  %v8039_v62 = vld [vmem:[%s11072_s7 + $0x50] sm:$0xff]  ;;  %v8045_v18 = vld [vmem:[%s11072_s7 + $0x3e0] sm:$0xff] }
 0x2d0   :  { %1929 = vmatpush.msra.mxu0 %v8025_v30  ;;  %1946 = vmatpush.msra.mxu1 %v8031_v40 }
 0x2d1   :  { %1969 = vmatpush.msra.mxu2 %v7605_v29  ;;  %1986 = vmatpush.msra.mxu3 %v7611_v61  ;;  %v8054_v29 = vld [vmem:[%s11072_s7 + $0x3b0] sm:$0xff]  ;;  %v8064_v61 = vld [vmem:[%s11072_s7 + $0x380] sm:$0xff] }
 0x2d2   :  { %1930 = vmatpush.msra.mxu0 %v8039_v62  ;;  %1947 = vmatpush.msra.mxu1 %v8045_v18 }
 0x2d3   :  { %1970 = vmatpush.msra.mxu2 %v7619_v16  ;;  %1987 = vmatpush.msra.mxu3 %v7625_v43  ;;  %v8071_v16 = vld [vmem:[%s11072_s7 + $0x2d0] sm:$0xff]  ;;  %v8077_v43 = vld [vmem:[%s11072_s7 + $0x2d8] sm:$0xff] }
 0x2d4   :  { %1931 = vmatpush.msra.mxu0 %v7631_v54  ;;  %1948 = vmatpush.msra.mxu1 %v8054_v29  ;;  %v8083_v54 = vld [vmem:[%s11072_s7 + $0x350] sm:$0xff] }
 0x2d5   :  { %1971 = vmatpush.msra.mxu2 %v7638_v55  ;;  %1988 = vmatpush.msra.mxu3 %v7644_v33  ;;  %v8090_v55 = vld [vmem:[%s11072_s7 + $0x2a0] sm:$0xff]  ;;  %v8096_v33 = vld [vmem:[%s11072_s7 + $0x2a8] sm:$0xff] }
 0x2d6   :  { %1932 = vmatmul.f32.vlgmr.msra.gmra.mxu0 %v7842_v57  ;;  %1972 = vmatmul.f32.vlgmr.msra.gmra.mxu2 %v7842_v57  ;;  %12087 = vst [vmem:[#allocation94_spill] sm:$0xff] %v8090_v55 }
 0x2d7   :  { %1949 = vmatpush.msra.mxu1 %v8064_v61  ;;  %1989 = vmatpush.msra.mxu3 %v7654_v50  ;;  %12088 = vst [vmem:[#allocation50_spill] sm:$0xff] %v8096_v33  ;;  %v8102_v50 = vld [vmem:[%s11072_s7 + $0x320] sm:$0xff] }
 0x2d8   :  { %2125 = vmatpush.msrb.mxu0 %v8071_v16  ;;  %2165 = vmatpush.msrb.mxu2 %v8077_v43  ;;  %12089 = vst [vmem:[#allocation58_spill] sm:$0xff] %v8102_v50 }
 0x2d9   :  { %1950 = vmatpush.msra.mxu1 %v8083_v54  ;;  %1990 = vmatpush.msra.mxu3 %v7662_v19  ;;  %v12090_v19 = vld [vmem:[#allocation93_spill] sm:$0xff] }
 0x2da   :  { %2126 = vmatpush.msrb.mxu0 %v8090_v55  ;;  %2166 = vmatpush.msrb.mxu2 %v8096_v33 }
 0x2db   :  { %1951 = vmatpush.msra.mxu1 %v8102_v50  ;;  %1991 = vmatpush.msra.mxu3 %v12090_v19  ;;  %v8249_v19 = vld [vmem:[%s11072_s7 + $0x4e8] sm:$0xff] }
 0x2dc   :  { %1952 = vmatmul.f32.vlgmr.msra.gmra.mxu1 %v7871_v31  ;;  %1992 = vmatmul.f32.vlgmr.msra.gmra.mxu3 %v7871_v31  ;;  %12114 = vst [vmem:[#allocation27_spill] sm:$0xff] %v8249_v19 }
 0x2dd   :  { %2127 = vmatpush.msrb.mxu0 %v8111_v15  ;;  %2167 = vmatpush.msrb.mxu2 %v8117_v17  ;;  %v12223_v17 = vld [vmem:[#allocation100_spill] sm:$0xff] }
 0x2de   :  { %2145 = vmatpush.msrb.mxu1 %v8123_v49  ;;  %2185 = vmatpush.msrb.mxu3 %v8129_v47  ;;  %v12222_v49 = vld [vmem:[#allocation49_spill] sm:$0xff] }
 0x2df   :  { %2128 = vmatpush.msrb.mxu0 %v8135_v38  ;;  %2168 = vmatpush.msrb.mxu2 %v8141_v63  ;;  %v12221_v38 = vld [vmem:[#allocation46_spill] sm:$0xff] }
 0x2e0   :  { %2146 = vmatpush.msrb.mxu1 %v8147_v39  ;;  %2186 = vmatpush.msrb.mxu3 %v8153_v14  ;;  %v12219_v14 = vld [vmem:[#allocation26_spill] sm:$0xff]  ;;  %v12220_v39 = vld [vmem:[#allocation28_spill] sm:$0xff] }
 0x2e1   :  { %2129 = vmatpush.msrb.mxu0 %v8159_v22  ;;  %2169 = vmatpush.msrb.mxu2 %v8165_v7  ;;  %v323_v63 = vadd.f32 %v12220_v39, %v12219_v14 }
 0x2e2   :  { %2147 = vmatpush.msrb.mxu1 %v8171_v35  ;;  %2187 = vmatpush.msrb.mxu3 %v8177_v34  ;;  %v12218_v35 = vld [vmem:[#allocation10_spill] sm:$0xff] }
 0x2e3   :  { %2130 = vmatpush.msrb.mxu0 %v8183_v1  ;;  %2170 = vmatpush.msrb.mxu2 %v8189_v46 }
 0x2e4   :  { %2148 = vmatpush.msrb.mxu1 %v8195_v24  ;;  %2188 = vmatpush.msrb.mxu3 %v8201_v42 }
 0x2e5   :  { %2131 = vmatpush.msrb.mxu0 %v8207_v44  ;;  %2171 = vmatpush.msrb.mxu2 %v8213_v13  ;;  %v12216_v44 = vld [vmem:[#allocation43_spill] sm:$0xff] }
 0x2e6   :  { %2149 = vmatpush.msrb.mxu1 %v8219_v58  ;;  %2189 = vmatpush.msrb.mxu3 %v8225_v45  ;;  %v12215_v45 = vld [vmem:[#allocation8_spill] sm:$0xff] }
 0x2e7   :  { %2132 = vmatpush.msrb.mxu0 %v8231_v21  ;;  %2172 = vmatpush.msrb.mxu2 %v8237_v59  ;;  %v8255_v21 = vld [vmem:[%s11072_s7 + $0x150] sm:$0xff]  ;;  %v8261_v59 = vld [vmem:[%s11072_s7 + $0x158] sm:$0xff] }
 0x2e8   :  { %2150 = vmatpush.msrb.mxu1 %v8243_v25  ;;  %2190 = vmatpush.msrb.mxu3 %v8249_v19  ;;  %12115 = vst [vmem:[#allocation62_spill] sm:$0xff] %v8255_v21  ;;  %v8267_v25 = vld [vmem:[%s11072_s7 + $0x4b0] sm:$0xff]  ;;  %v8273_v19 = vld [vmem:[%s11072_s7 + $0x4b8] sm:$0xff] }
 0x2e9   :  { %2133 = vmatpush.msrb.mxu0 %v8255_v21  ;;  %12116 = vst [vmem:[#allocation52_spill] sm:$0xff] %v8261_v59  ;;  %2173 = vmatpush.msrb.mxu2 %v8261_v59  ;;  %v8279_v21 = vld [vmem:[%s11072_s7 + $0x120] sm:$0xff]  ;;  %v8285_v59 = vld [vmem:[%s11072_s7 + $0x128] sm:$0xff] }
 0x2ea   :  { %12117 = vst [vmem:[#allocation74_spill] sm:$0xff] %v8267_v25  ;;  %2151 = vmatpush.msrb.mxu1 %v8267_v25  ;;  %2191 = vmatpush.msrb.mxu3 %v8273_v19  ;;  %v8291_v25 = vld [vmem:[%s11072_s7 + $0x480] sm:$0xff] }
 0x2eb   :  { %12118 = vst [vmem:[#allocation35_spill] sm:$0xff] %v8273_v19  ;;  %2134 = vmatpush.msrb.mxu0 %v8279_v21  ;;  %2174 = vmatpush.msrb.mxu2 %v8285_v59  ;;  %v8297_v19 = vld [vmem:[%s11072_s7 + $0x488] sm:$0xff] }
 0x2ec   :  { %12119 = vst [vmem:[#allocation65_spill] sm:$0xff] %v8279_v21  ;;  %2152 = vmatpush.msrb.mxu1 %v8291_v25  ;;  %2192 = vmatpush.msrb.mxu3 %v8297_v19  ;;  %v8303_v21 = vld [vmem:[%s11072_s7 + $0xf0] sm:$0xff] }
 0x2ed   :  { %12120 = vst [vmem:[#allocation76_spill] sm:$0xff] %v8285_v59  ;;  %2135 = vmatpush.msrb.mxu0 %v8303_v21  ;;  %v8309_v59 = vld [vmem:[%s11072_s7 + $0xf8] sm:$0xff] }
 0x2ee   :  { %12121 = vst [vmem:[#allocation78_spill] sm:$0xff] %v8291_v25  ;;  %2175 = vmatpush.msrb.mxu2 %v8309_v59  ;;  %v8315_v25 = vld [vmem:[%s11072_s7 + $0x450] sm:$0xff] }
 0x2ef   :  { %12122 = vst [vmem:[#allocation66_spill] sm:$0xff] %v8297_v19  ;;  %2153 = vmatpush.msrb.mxu1 %v8315_v25  ;;  %v8321_v19 = vld [vmem:[%s11072_s7 + $0x458] sm:$0xff] }
 0x2f0   :  { %12123 = vst [vmem:[#allocation42_spill] sm:$0xff] %v8303_v21  ;;  %2193 = vmatpush.msrb.mxu3 %v8321_v19  ;;  %v8327_v21 = vld [vmem:[%s11072_s7 + $0xc0] sm:$0xff] }
 0x2f1   :  { %12124 = vst [vmem:[#allocation79_spill] sm:$0xff] %v8309_v59  ;;  %2136 = vmatpush.msrb.mxu0 %v8327_v21  ;;  %v8333_v59 = vld [vmem:[%s11072_s7 + $0xc8] sm:$0xff] }
 0x2f2   :  { %12125 = vst [vmem:[#allocation82_spill] sm:$0xff] %v8315_v25  ;;  %2176 = vmatpush.msrb.mxu2 %v8333_v59  ;;  %v8339_v25 = vld [vmem:[%s11072_s7 + $0x420] sm:$0xff] }
 0x2f3   :  { %12126 = vst [vmem:[#allocation71_spill] sm:$0xff] %v8321_v19  ;;  %2154 = vmatpush.msrb.mxu1 %v8339_v25  ;;  %v8345_v19 = vld [vmem:[%s11072_s7 + $0x428] sm:$0xff] }
 0x2f4   :  { %12127 = vst [vmem:[#allocation73_spill] sm:$0xff] %v8327_v21  ;;  %2194 = vmatpush.msrb.mxu3 %v8345_v19  ;;  %v8351_v21 = vld [vmem:[%s11072_s7 + $0x90] sm:$0xff] }
 0x2f5   :  { %12128 = vst [vmem:[#allocation84_spill] sm:$0xff] %v8333_v59  ;;  %2137 = vmatpush.msrb.mxu0 %v8351_v21  ;;  %v8357_v59 = vld [vmem:[%s11072_s7 + $0x98] sm:$0xff] }
 0x2f6   :  { %12129 = vst [vmem:[#allocation86_spill] sm:$0xff] %v8339_v25  ;;  %2177 = vmatpush.msrb.mxu2 %v8357_v59  ;;  %v8363_v25 = vld [vmem:[%s11072_s7 + $0x3f0] sm:$0xff] }
 0x2f7   :  { %12130 = vst [vmem:[#allocation75_spill] sm:$0xff] %v8345_v19  ;;  %2155 = vmatpush.msrb.mxu1 %v8363_v25  ;;  %v8369_v19 = vld [vmem:[%s11072_s7 + $0x3f8] sm:$0xff] }
 0x2f8   :  { %12131 = vst [vmem:[#allocation77_spill] sm:$0xff] %v8351_v21  ;;  %2195 = vmatpush.msrb.mxu3 %v8369_v19  ;;  %v8375_v21 = vld [vmem:[%s11072_s7 + $0x60] sm:$0xff] }
 0x2f9   :  { %12132 = vst [vmem:[#allocation69_spill] sm:$0xff] %v8357_v59  ;;  %2138 = vmatpush.msrb.mxu0 %v8375_v21  ;;  %v8381_v59 = vld [vmem:[%s11072_s7 + $0x68] sm:$0xff] }
 0x2fa   :  { %12133 = vst [vmem:[#allocation80_spill] sm:$0xff] %v8363_v25  ;;  %2178 = vmatpush.msrb.mxu2 %v8381_v59  ;;  %v8387_v25 = vld [vmem:[%s11072_s7 + $0x3c0] sm:$0xff] }
 0x2fb   :  { %12134 = vst [vmem:[#allocation89_spill] sm:$0xff] %v8369_v19  ;;  %2156 = vmatpush.msrb.mxu1 %v8387_v25  ;;  %v8393_v19 = vld [vmem:[%s11072_s7 + $0x3c8] sm:$0xff] }
 0x2fc   :  { %12135 = vst [vmem:[#allocation81_spill] sm:$0xff] %v8375_v21  ;;  %2196 = vmatpush.msrb.mxu3 %v8393_v19  ;;  %v8399_v21 = vld [vmem:[%s11072_s7 + $0x30] sm:$0xff] }
 0x2fd   :  { %12136 = vst [vmem:[#allocation103_spill] sm:$0xff] %v8381_v59  ;;  %2139 = vmatpush.msrb.mxu0 %v8399_v21  ;;  %v8405_v59 = vld [vmem:[%s11072_s7 + $0x38] sm:$0xff] }
 0x2fe   :  { %12137 = vst [vmem:[#allocation83_spill] sm:$0xff] %v8387_v25  ;;  %2179 = vmatpush.msrb.mxu2 %v8405_v59  ;;  %v8411_v25 = vld [vmem:[%s11072_s7 + $0x390] sm:$0xff] }
 0x2ff   :  { %12138 = vst [vmem:[#allocation105_spill] sm:$0xff] %v8393_v19  ;;  %2157 = vmatpush.msrb.mxu1 %v8411_v25  ;;  %v8417_v19 = vld [vmem:[%s11072_s7 + $0x398] sm:$0xff] }
 0x300   :  { %12139 = vst [vmem:[#allocation85_spill] sm:$0xff] %v8399_v21  ;;  %2197 = vmatpush.msrb.mxu3 %v8417_v19  ;;  %v8423_v21 = vld [vmem:[%s11072_s7] sm:$0xff] }
 0x301   :  { %12140 = vst [vmem:[#allocation107_spill] sm:$0xff] %v8405_v59  ;;  %2140 = vmatpush.msrb.mxu0 %v8423_v21  ;;  %v8429_v59 = vld [vmem:[%s11072_s7 + $0x8] sm:$0xff] }
 0x302   :  { %12141 = vst [vmem:[#allocation87_spill] sm:$0xff] %v8411_v25  ;;  %2180 = vmatpush.msrb.mxu2 %v8429_v59  ;;  %v8435_v25 = vld [vmem:[%s11072_s7 + $0x2e0] sm:$0xff] }
 0x303   :  { %12142 = vst [vmem:[#allocation109_spill] sm:$0xff] %v8417_v19  ;;  %2205 = vmatpush.msra.mxu0 %v8435_v25  ;;  %v8441_v19 = vld [vmem:[%s11072_s7 + $0x2e8] sm:$0xff] }
 0x304   :  { %12143 = vst [vmem:[#allocation88_spill] sm:$0xff] %v8423_v21  ;;  %2245 = vmatpush.msra.mxu2 %v8441_v19  ;;  %v8447_v21 = vld [vmem:[%s11072_s7 + $0x360] sm:$0xff] }
 0x305   :  { %12144 = vst [vmem:[#allocation111_spill] sm:$0xff] %v8429_v59  ;;  %2158 = vmatpush.msrb.mxu1 %v8447_v21  ;;  %v8453_v59 = vld [vmem:[%s11072_s7 + $0x368] sm:$0xff] }
 0x306   :  { %12145 = vst [vmem:[#allocation90_spill] sm:$0xff] %v8435_v25  ;;  %2198 = vmatpush.msrb.mxu3 %v8453_v59  ;;  %v8459_v25 = vld [vmem:[%s11072_s7 + $0x2b0] sm:$0xff] }
 0x307   :  { %12146 = vst [vmem:[#allocation113_spill] sm:$0xff] %v8441_v19  ;;  %2206 = vmatpush.msra.mxu0 %v8459_v25  ;;  %v8465_v19 = vld [vmem:[%s11072_s7 + $0x2b8] sm:$0xff] }
 0x308   :  { %12147 = vst [vmem:[#allocation104_spill] sm:$0xff] %v8447_v21  ;;  %2246 = vmatpush.msra.mxu2 %v8465_v19  ;;  %v8471_v21 = vld [vmem:[%s11072_s7 + $0x330] sm:$0xff] }
 0x309   :  { %12148 = vst [vmem:[#allocation115_spill] sm:$0xff] %v8453_v59  ;;  %2159 = vmatpush.msrb.mxu1 %v8471_v21  ;;  %v8477_v59 = vld [vmem:[%s11072_s7 + $0x338] sm:$0xff] }
 0x30a   :  { %12149 = vst [vmem:[#allocation106_spill] sm:$0xff] %v8459_v25  ;;  %2199 = vmatpush.msrb.mxu3 %v8477_v59  ;;  %v8483_v25 = vld [vmem:[%s11072_s7 + $0x280] sm:$0xff] }
 0x30b   :  { %12150 = vst [vmem:[#allocation117_spill] sm:$0xff] %v8465_v19  ;;  %2207 = vmatpush.msra.mxu0 %v8483_v25  ;;  %v8489_v19 = vld [vmem:[%s11072_s7 + $0x288] sm:$0xff] }
 0x30c   :  { %12151 = vst [vmem:[#allocation108_spill] sm:$0xff] %v8471_v21  ;;  %2247 = vmatpush.msra.mxu2 %v8489_v19  ;;  %v8495_v21 = vld [vmem:[%s11072_s7 + $0x300] sm:$0xff] }
 0x30d   :  { %12152 = vst [vmem:[#allocation110_spill] sm:$0xff] %v8477_v59  ;;  %2160 = vmatpush.msrb.mxu1 %v8495_v21  ;;  %v8501_v59 = vld [vmem:[%s11072_s7 + $0x308] sm:$0xff] }
 0x30e   :  { %12153 = vst [vmem:[#allocation119_spill] sm:$0xff] %v8483_v25  ;;  %2200 = vmatpush.msrb.mxu3 %v8501_v59  ;;  %v8507_v25 = vld [vmem:[%s11072_s7 + $0x250] sm:$0xff] }
 0x30f   :  { %12154 = vst [vmem:[#allocation121_spill] sm:$0xff] %v8489_v19  ;;  %2208 = vmatpush.msra.mxu0 %v8507_v25  ;;  %v8513_v19 = vld [vmem:[%s11072_s7 + $0x5e0] sm:$0xff] }
 0x310   :  { %12155 = vst [vmem:[#allocation112_spill] sm:$0xff] %v8495_v21  ;;  %2225 = vmatpush.msra.mxu1 %v8513_v19  ;;  %v8519_v21 = vld [vmem:[%s11072_s7 + $0x258] sm:$0xff] }
 0x311   :  { %12156 = vst [vmem:[#allocation114_spill] sm:$0xff] %v8501_v59  ;;  %2248 = vmatpush.msra.mxu2 %v8519_v21  ;;  %v8525_v59 = vld [vmem:[%s11072_s7 + $0x5e8] sm:$0xff] }
 0x312   :  { %12157 = vst [vmem:[#allocation123_spill] sm:$0xff] %v8507_v25  ;;  %2265 = vmatpush.msra.mxu3 %v8525_v59  ;;  %v8531_v25 = vld [vmem:[%s11072_s7 + $0x220] sm:$0xff] }
 0x313   :  { %12158 = vst [vmem:[#allocation125_spill] sm:$0xff] %v8513_v19  ;;  %2209 = vmatpush.msra.mxu0 %v8531_v25  ;;  %v8537_v19 = vld [vmem:[%s11072_s7 + $0x5b0] sm:$0xff] }
 0x314   :  { %12159 = vst [vmem:[#allocation116_spill] sm:$0xff] %v8519_v21  ;;  %2226 = vmatpush.msra.mxu1 %v8537_v19  ;;  %v8543_v21 = vld [vmem:[%s11072_s7 + $0x228] sm:$0xff] }
 0x315   :  { %12160 = vst [vmem:[#allocation118_spill] sm:$0xff] %v8525_v59  ;;  %2249 = vmatpush.msra.mxu2 %v8543_v21  ;;  %v8549_v59 = vld [vmem:[%s11072_s7 + $0x5b8] sm:$0xff] }
 0x316   :  { %12161 = vst [vmem:[#allocation127_spill] sm:$0xff] %v8531_v25  ;;  %2266 = vmatpush.msra.mxu3 %v8549_v59  ;;  %v8555_v25 = vld [vmem:[%s11072_s7 + $0x1f0] sm:$0xff] }
 0x317   :  { %12162 = vst [vmem:[#allocation129_spill] sm:$0xff] %v8537_v19  ;;  %2210 = vmatpush.msra.mxu0 %v8555_v25  ;;  %v8561_v19 = vld [vmem:[%s11072_s7 + $0x580] sm:$0xff] }
 0x318   :  { %12163 = vst [vmem:[#allocation120_spill] sm:$0xff] %v8543_v21  ;;  %2227 = vmatpush.msra.mxu1 %v8561_v19  ;;  %v8567_v21 = vld [vmem:[%s11072_s7 + $0x1f8] sm:$0xff] }
 0x319   :  { %12164 = vst [vmem:[#allocation130_spill] sm:$0xff] %v8549_v59  ;;  %2250 = vmatpush.msra.mxu2 %v8567_v21  ;;  %v8573_v59 = vld [vmem:[%s11072_s7 + $0x588] sm:$0xff] }
 0x31a   :  { %12165 = vst [vmem:[#allocation122_spill] sm:$0xff] %v8555_v25  ;;  %2267 = vmatpush.msra.mxu3 %v8573_v59  ;;  %v8579_v25 = vld [vmem:[%s11072_s7 + $0x1c0] sm:$0xff] }
 0x31b   :  { %12166 = vst [vmem:[#allocation131_spill] sm:$0xff] %v8561_v19  ;;  %2211 = vmatpush.msra.mxu0 %v8579_v25  ;;  %v8585_v19 = vld [vmem:[%s11072_s7 + $0x550] sm:$0xff] }
 0x31c   :  { %12167 = vst [vmem:[#allocation124_spill] sm:$0xff] %v8567_v21  ;;  %2228 = vmatpush.msra.mxu1 %v8585_v19  ;;  %v8591_v21 = vld [vmem:[%s11072_s7 + $0x1c8] sm:$0xff] }
 0x31d   :  { %12168 = vst [vmem:[#allocation133_spill] sm:$0xff] %v8573_v59  ;;  %2251 = vmatpush.msra.mxu2 %v8591_v21  ;;  %v8597_v59 = vld [vmem:[%s11072_s7 + $0x558] sm:$0xff] }
 0x31e   :  { %12169 = vst [vmem:[#allocation126_spill] sm:$0xff] %v8579_v25  ;;  %2268 = vmatpush.msra.mxu3 %v8597_v59  ;;  %v8603_v25 = vld [vmem:[%s11072_s7 + $0x190] sm:$0xff] }
 0x31f   :  { %12170 = vst [vmem:[#allocation135_spill] sm:$0xff] %v8585_v19  ;;  %2212 = vmatpush.msra.mxu0 %v8603_v25  ;;  %v8609_v19 = vld [vmem:[%s11072_s7 + $0x520] sm:$0xff] }
 0x320   :  { %12171 = vst [vmem:[#allocation128_spill] sm:$0xff] %v8591_v21  ;;  %2229 = vmatpush.msra.mxu1 %v8609_v19  ;;  %v8615_v21 = vld [vmem:[%s11072_s7 + $0x198] sm:$0xff] }
 0x321   :  { %12172 = vst [vmem:[#allocation137_spill] sm:$0xff] %v8597_v59  ;;  %2252 = vmatpush.msra.mxu2 %v8615_v21  ;;  %v8621_v59 = vld [vmem:[%s11072_s7 + $0x528] sm:$0xff] }
 0x322   :  { %12173 = vst [vmem:[#allocation132_spill] sm:$0xff] %v8603_v25  ;;  %2269 = vmatpush.msra.mxu3 %v8621_v59  ;;  %v8627_v25 = vld [vmem:[%s11072_s7 + $0x160] sm:$0xff] }
 0x323   :  { %12174 = vst [vmem:[#allocation139_spill] sm:$0xff] %v8609_v19  ;;  %2213 = vmatpush.msra.mxu0 %v8627_v25  ;;  %v8633_v19 = vld [vmem:[%s11072_s7 + $0x4f0] sm:$0xff] }
 0x324   :  { %12175 = vst [vmem:[#allocation134_spill] sm:$0xff] %v8615_v21  ;;  %2230 = vmatpush.msra.mxu1 %v8633_v19  ;;  %v8639_v21 = vld [vmem:[%s11072_s7 + $0x168] sm:$0xff] }
 0x325   :  { %12176 = vst [vmem:[#allocation141_spill] sm:$0xff] %v8621_v59  ;;  %2253 = vmatpush.msra.mxu2 %v8639_v21  ;;  %v8645_v59 = vld [vmem:[%s11072_s7 + $0x4f8] sm:$0xff] }
 0x326   :  { %12177 = vst [vmem:[#allocation136_spill] sm:$0xff] %v8627_v25  ;;  %2270 = vmatpush.msra.mxu3 %v8645_v59  ;;  %v8651_v25 = vld [vmem:[%s11072_s7 + $0x130] sm:$0xff] }
 0x327   :  { %12178 = vst [vmem:[#allocation143_spill] sm:$0xff] %v8633_v19  ;;  %2214 = vmatpush.msra.mxu0 %v8651_v25  ;;  %v8657_v19 = vld [vmem:[%s11072_s7 + $0x4c0] sm:$0xff] }
 0x328   :  { %12179 = vst [vmem:[#allocation138_spill] sm:$0xff] %v8639_v21  ;;  %2231 = vmatpush.msra.mxu1 %v8657_v19  ;;  %v8663_v21 = vld [vmem:[%s11072_s7 + $0x138] sm:$0xff] }
 0x329   :  { %12180 = vst [vmem:[#allocation145_spill] sm:$0xff] %v8645_v59  ;;  %2254 = vmatpush.msra.mxu2 %v8663_v21  ;;  %v8669_v59 = vld [vmem:[%s11072_s7 + $0x4c8] sm:$0xff] }
 0x32a   :  { %12181 = vst [vmem:[#allocation140_spill] sm:$0xff] %v8651_v25  ;;  %2271 = vmatpush.msra.mxu3 %v8669_v59  ;;  %v8675_v25 = vld [vmem:[%s11072_s7 + $0x100] sm:$0xff] }
 0x32b   :  { %12182 = vst [vmem:[#allocation147_spill] sm:$0xff] %v8657_v19  ;;  %2215 = vmatpush.msra.mxu0 %v8675_v25  ;;  %v8681_v19 = vld [vmem:[%s11072_s7 + $0x490] sm:$0xff] }
 0x32c   :  { %12183 = vst [vmem:[#allocation142_spill] sm:$0xff] %v8663_v21  ;;  %2232 = vmatpush.msra.mxu1 %v8681_v19  ;;  %v8687_v21 = vld [vmem:[%s11072_s7 + $0x108] sm:$0xff] }
 0x32d   :  { %12184 = vst [vmem:[#allocation149_spill] sm:$0xff] %v8669_v59  ;;  %2255 = vmatpush.msra.mxu2 %v8687_v21  ;;  %v8693_v59 = vld [vmem:[%s11072_s7 + $0x498] sm:$0xff] }
 0x32e   :  { %12185 = vst [vmem:[#allocation144_spill] sm:$0xff] %v8675_v25  ;;  %2272 = vmatpush.msra.mxu3 %v8693_v59  ;;  %v8699_v25 = vld [vmem:[%s11072_s7 + $0xd0] sm:$0xff] }
 0x32f   :  { %12186 = vst [vmem:[#allocation151_spill] sm:$0xff] %v8681_v19  ;;  %2216 = vmatpush.msra.mxu0 %v8699_v25  ;;  %v8705_v19 = vld [vmem:[%s11072_s7 + $0x460] sm:$0xff] }
 0x330   :  { %12187 = vst [vmem:[#allocation146_spill] sm:$0xff] %v8687_v21  ;;  %2233 = vmatpush.msra.mxu1 %v8705_v19  ;;  %v8711_v21 = vld [vmem:[%s11072_s7 + $0xd8] sm:$0xff] }
 0x331   :  { %12188 = vst [vmem:[#allocation153_spill] sm:$0xff] %v8693_v59  ;;  %2256 = vmatpush.msra.mxu2 %v8711_v21  ;;  %v8717_v59 = vld [vmem:[%s11072_s7 + $0x468] sm:$0xff] }
 0x332   :  { %12189 = vst [vmem:[#allocation148_spill] sm:$0xff] %v8699_v25  ;;  %2273 = vmatpush.msra.mxu3 %v8717_v59  ;;  %v8723_v25 = vld [vmem:[%s11072_s7 + $0xa0] sm:$0xff] }
 0x333   :  { %12190 = vst [vmem:[#allocation155_spill] sm:$0xff] %v8705_v19  ;;  %2217 = vmatpush.msra.mxu0 %v8723_v25  ;;  %v8729_v19 = vld [vmem:[%s11072_s7 + $0x430] sm:$0xff] }
 0x334   :  { %12191 = vst [vmem:[#allocation150_spill] sm:$0xff] %v8711_v21  ;;  %2234 = vmatpush.msra.mxu1 %v8729_v19  ;;  %v8735_v21 = vld [vmem:[%s11072_s7 + $0xa8] sm:$0xff] }
 0x335   :  { %12192 = vst [vmem:[#allocation157_spill] sm:$0xff] %v8717_v59  ;;  %2257 = vmatpush.msra.mxu2 %v8735_v21  ;;  %v8741_v59 = vld [vmem:[%s11072_s7 + $0x438] sm:$0xff] }
 0x336   :  { %12193 = vst [vmem:[#allocation152_spill] sm:$0xff] %v8723_v25  ;;  %2274 = vmatpush.msra.mxu3 %v8741_v59  ;;  %v8747_v25 = vld [vmem:[%s11072_s7 + $0x70] sm:$0xff]  ;;  %v1793_v13 = vpop.f32.mrf.mxu1  ;;  %v1813_v46 = vpop.f32.mrf.mxu2 }
 0x337   :  { %12194 = vst [vmem:[#allocation159_spill] sm:$0xff] %v8729_v19  ;;  %2218 = vmatpush.msra.mxu0 %v8747_v25  ;;  %v8753_v19 = vld [vmem:[%s11072_s7 + $0x400] sm:$0xff] }
 0x338   :  { %12195 = vst [vmem:[#allocation154_spill] sm:$0xff] %v8735_v21  ;;  %2235 = vmatpush.msra.mxu1 %v8753_v19  ;;  %v8759_v21 = vld [vmem:[%s11072_s7 + $0x78] sm:$0xff] }
 0x339   :  { %12196 = vst [vmem:[#allocation161_spill] sm:$0xff] %v8741_v59  ;;  %2258 = vmatpush.msra.mxu2 %v8759_v21  ;;  %v8765_v59 = vld [vmem:[%s11072_s7 + $0x408] sm:$0xff] }
 0x33a   :  { %12197 = vst [vmem:[#allocation156_spill] sm:$0xff] %v8747_v25  ;;  %2275 = vmatpush.msra.mxu3 %v8765_v59  ;;  %v8771_v25 = vld [vmem:[%s11072_s7 + $0x40] sm:$0xff] }
 0x33b   :  { %12198 = vst [vmem:[#allocation163_spill] sm:$0xff] %v8753_v19  ;;  %2219 = vmatpush.msra.mxu0 %v8771_v25  ;;  %v8777_v19 = vld [vmem:[%s11072_s7 + $0x3d0] sm:$0xff] }
 0x33c   :  { %12199 = vst [vmem:[#allocation158_spill] sm:$0xff] %v8759_v21  ;;  %2236 = vmatpush.msra.mxu1 %v8777_v19  ;;  %v8783_v21 = vld [vmem:[%s11072_s7 + $0x48] sm:$0xff]  ;;  %v1833_v22 = vpop.f32.mrf.mxu3 }
 0x33d   :  { %12200 = vst [vmem:[#allocation165_spill] sm:$0xff] %v8765_v59  ;;  %2259 = vmatpush.msra.mxu2 %v8783_v21  ;;  %v8789_v59 = vld [vmem:[%s11072_s7 + $0x3d8] sm:$0xff] }
 0x33e   :  { %12201 = vst [vmem:[#allocation160_spill] sm:$0xff] %v8771_v25  ;;  %2276 = vmatpush.msra.mxu3 %v8789_v59  ;;  %v8795_v25 = vld [vmem:[%s11072_s7 + $0x10] sm:$0xff] }
 0x33f   :  { %12202 = vst [vmem:[#allocation167_spill] sm:$0xff] %v8777_v19  ;;  %2220 = vmatpush.msra.mxu0 %v8795_v25  ;;  %v8801_v19 = vld [vmem:[%s11072_s7 + $0x3a0] sm:$0xff] }
 0x340   :  { %12203 = vst [vmem:[#allocation162_spill] sm:$0xff] %v8783_v21  ;;  %2237 = vmatpush.msra.mxu1 %v8801_v19  ;;  %v8807_v21 = vld [vmem:[%s11072_s7 + $0x18] sm:$0xff] }
 0x341   :  { %12204 = vst [vmem:[#allocation169_spill] sm:$0xff] %v8789_v59  ;;  %2260 = vmatpush.msra.mxu2 %v8807_v21  ;;  %v8813_v59 = vld [vmem:[%s11072_s7 + $0x3a8] sm:$0xff] }
 0x342   :  { %12205 = vst [vmem:[#allocation164_spill] sm:$0xff] %v8795_v25  ;;  %2277 = vmatpush.msra.mxu3 %v8813_v59  ;;  %v8819_v25 = vld [vmem:[%s11072_s7 + $0x370] sm:$0xff] }
 0x343   :  { %12206 = vst [vmem:[#allocation171_spill] sm:$0xff] %v8801_v19  ;;  %2238 = vmatpush.msra.mxu1 %v8819_v25  ;;  %v8825_v19 = vld [vmem:[%s11072_s7 + $0x378] sm:$0xff] }
 0x344   :  { %12207 = vst [vmem:[#allocation166_spill] sm:$0xff] %v8807_v21  ;;  %2278 = vmatpush.msra.mxu3 %v8825_v19  ;;  %v8831_v21 = vld [vmem:[%s11072_s7 + $0x340] sm:$0xff] }
 0x345   :  { %12208 = vst [vmem:[#allocation173_spill] sm:$0xff] %v8813_v59  ;;  %2239 = vmatpush.msra.mxu1 %v8831_v21  ;;  %v8837_v59 = vld [vmem:[%s11072_s7 + $0x348] sm:$0xff] }
 0x346   :  { %12209 = vst [vmem:[#allocation168_spill] sm:$0xff] %v8819_v25  ;;  %2279 = vmatpush.msra.mxu3 %v8837_v59  ;;  %v8843_v25 = vld [vmem:[%s11072_s7 + $0x310] sm:$0xff]  ;;  %v1913_v39 = vpop.f32.mrf.mxu3 }
 0x347   :  { %12210 = vst [vmem:[#allocation174_spill] sm:$0xff] %v8825_v19  ;;  %2240 = vmatpush.msra.mxu1 %v8843_v25  ;;  %v8849_v19 = vld [vmem:[%s11072_s7 + $0x318] sm:$0xff] }
 0x348   :  { %12211 = vst [vmem:[#allocation170_spill] sm:$0xff] %v8831_v21  ;;  %2280 = vmatpush.msra.mxu3 %v8849_v19  ;;  %v1773_v21 = vpop.f32.mrf.mxu0 }
 0x349   :  { %12212 = vst [vmem:[#allocation175_spill] sm:$0xff] %v8837_v59  ;;  %v1774_v58 = vadd.f32 %v1773_v21, %v12215_v45  ;;  %v12217_v59 = vld [vmem:[#allocation99_spill] sm:$0xff]  ;;  %v1873_v45 = vpop.f32.mrf.mxu1 }
 0x34a   :  { %12213 = vst [vmem:[#allocation172_spill] sm:$0xff] %v8843_v25  ;;  %v148_v42 = vadd.f32 %v12217_v59, %v12216_v44  ;;  %v1814_v25 = vadd.f32 %v1813_v46, %v12218_v35  ;;  %v177_v59 = vadd.f32 %v12223_v17, %v12222_v49  ;;  %v12224_v44 = vld [vmem:[#allocation30_spill] sm:$0xff] }
 0x34b   :  { %12214 = vst [vmem:[#allocation176_spill] sm:$0xff] %v8849_v19  ;;  %v1794_v24 = vadd.f32 %v1793_v13, %v1774_v58 }
 0x34c   :  { %v1834_v19 = vadd.f32 %v1833_v22, %v1814_v25  ;;  %v12225_v22 = vld [vmem:[#allocation48_spill] sm:$0xff] }
 0x34d   :  { %v2005_v1 = vadd.f32 %v1794_v24, %v148_v42  ;;  %v1893_v24 = vpop.f32.mrf.mxu2 }
 0x34e   :  { %v2006_v21 = vadd.f32 %v1834_v19, %v323_v63  ;;  %v1894_v15 = vadd.f32 %v1893_v24, %v12224_v44 }
 0x34f   :  { %v3815_v34 = vmul.f32 -1.442695, %v2005_v1 }
 0x350   :  { %v1853_v7 = vpop.f32.mrf.mxu0  ;;  %v3816_v13 = vmul.f32 -1.442695, %v2006_v21  ;;  %v1914_v63 = vadd.f32 %v1913_v39, %v1894_v15 }
 0x351   :  { %3955 = vpow2.f32 %v3815_v34  ;;  %v1854_v47 = vadd.f32 %v1853_v7, %v12221_v38  ;;  %v12226_v34 = vld [vmem:[#allocation33_spill] sm:$0xff] }
 0x352   :  { %3957 = vpow2.f32 %v3816_v13  ;;  %v352_v7 = vadd.f32 %v12226_v34, %v12225_v22  ;;  %v12227_v22 = vld [vmem:[#allocation14_spill] sm:$0xff] }
 0x353   :  { %v1874_v58 = vadd.f32 %v1873_v45, %v1854_v47 }
 0x354   :  { %v2008_v19 = vadd.f32 %v1914_v63, %v352_v7 }
 0x355   :  { %v2007_v46 = vadd.f32 %v1874_v58, %v177_v59 }
 0x356   :  { %v3818_v21 = vmul.f32 -1.442695, %v2008_v19 }
 0x357   :  { %v3956_v1 = vpop.eup %3955  ;;  %v3817_v35 = vmul.f32 -1.442695, %v2007_v46 }
 0x358   :  { %v2021_v42 = vadd.f32 1.0, %v3956_v1  ;;  %v3958_v25 = vpop.eup %3957  ;;  %v1933_v63 = vpop.f32.mrf.mxu0 }
 0x359   :  { %v2022_v17 = vadd.f32 1.0, %v3958_v25  ;;  %v1934_v44 = vadd.f32 %v1933_v63, %v12227_v22  ;;  %v1973_v50 = vpop.f32.mrf.mxu2  ;;  %v12229_v22 = vld [vmem:[#allocation17_spill] sm:$0xff] }
 0x35a   :  { %3959 = vrcp.f32 %v2021_v42  ;;  %v2036_v15 = vand.u32 2147483648, %v2021_v42  ;;  %vm2030_vm1 = vweird.f32 %v2021_v42  ;;  %v2034_v7 = vand.u32 2147483647, %v2021_v42 }
 0x35b   :  { %3961 = vpow2.f32 %v3817_v35  ;;  %vm2045_vm5 = vweird.f32 %v2022_v17 }
 0x35c   :  { %3963 = vrcp.f32 %v2022_v17  ;;  %vm2035_vm3 = vcmp.eq.f32.partialorder %v2034_v7, 8.507059e+37 }
 0x35d   :  { %3965 = vpow2.f32 %v3818_v21 }
 0x360   :  { %v3960_v47 = vpop.eup %3959 }
 0x361   :  { %v3962_v45 = vpop.eup %3961  ;;  %v2026_v59 = vmul.f32 %v3960_v47, %v2021_v42  ;;  %vm2031_vm0 = vweird.f32 %v3960_v47  ;;  %v2051_v42 = vand.u32 2147483648, %v2022_v17 }
 0x362   :  { %v8864_v13 = vadd.f32 1.0, %v3962_v45  ;;  %v3964_v1 = vpop.eup %3963  ;;  %vm2032_vm2 = vmor %vm2030_vm1, %vm2031_vm0 }
 0x363   :  { %v2027_v58 = vsub.f32 1.0, %v2026_v59  ;;  %v3966_v46 = vpop.eup %3965  ;;  %v2041_v39 = vmul.f32 %v3964_v1, %v2022_v17  ;;  %v2037_v59 = vor.u32 1.1754944e-38, %v2036_v15  ;;  %vm2046_vm4 = vweird.f32 %v3964_v1 }
 0x364   :  { %3967 = vrcp.f32 %v8864_v13  ;;  %v8867_v34 = vadd.f32 1.0, %v3966_v46  ;;  %v1953_v46 = vpop.f32.mrf.mxu1  ;;  %vm2047_vm6 = vmor %vm2045_vm5, %vm2046_vm4  ;;  %v2052_v63 = vor.u32 1.1754944e-38, %v2051_v42  ;;  %vm2060_vm9 = vweird.f32 %v8864_v13 }
 0x365   :  { %v2028_v24 = vmul.f32 %v3960_v47, %v2027_v58  ;;  %v2042_v25 = vsub.f32 1.0, %v2041_v39  ;;  %v1954_v14 = vadd.f32 %v1953_v46, %v1934_v44  ;;  %v2049_v39 = vand.u32 2147483647, %v2022_v17  ;;  %v1993_v44 = vpop.f32.mrf.mxu3 }
 0x366   :  { %3969 = vrcp.f32 %v8867_v34  ;;  %vm2075_vm13 = vweird.f32 %v8867_v34 }
 0x367   :  { %v2029_v35 = vadd.f32 %v3960_v47, %v2028_v24  ;;  %v2043_v58 = vmul.f32 %v3964_v1, %v2042_v25  ;;  %vm2050_vm7 = vcmp.eq.f32.partialorder %v2049_v39, 8.507059e+37 }
 0x369   :  { %v2033_v21 = vsel %vm2032_vm2, %v3960_v47, %v2029_v35  ;;  %v2044_v38 = vadd.f32 %v3964_v1, %v2043_v58  ;;  %v12228_v47 = vld [vmem:[#allocation9_spill] sm:$0xff] }
 0x36a   :  { %v3968_v19 = vpop.eup %3967  ;;  %v2038_v49 = vsel %vm2035_vm3, %v2037_v59, %v2033_v21  ;;  %v206_v35 = vadd.f32 %v12228_v47, %v6270_v2  ;;  %v1974_v21 = vadd.f32 %v1973_v50, %v6284_v4  ;;  %v381_v47 = vadd.f32 %v12229_v22, %v6299_v23 }
 0x36b   :  { %v2056_v45 = vmul.f32 %v3968_v19, %v8864_v13  ;;  %v2085_v15 = vmul.f32 %v2038_v49, %v1954_v14  ;;  %v2048_v25 = vsel %vm2047_vm6, %v3964_v1, %v2044_v38  ;;  %vm2061_vm8 = vweird.f32 %v3968_v19 }
 0x36c   :  { %v3970_v33 = vpop.eup %3969  ;;  %v2053_v58 = vsel %vm2050_vm7, %v2052_v63, %v2048_v25  ;;  %v1994_v17 = vadd.f32 %v1993_v44, %v1974_v21  ;;  %v2066_v49 = vand.u32 2147483648, %v8864_v13  ;;  %v2064_v1 = vand.u32 2147483647, %v8864_v13  ;;  %vm2062_vm10 = vmor %vm2060_vm9, %vm2061_vm8  ;;  %v2106_v13 = vpop.permute.xlu0 %2105 }
 0x36d   :  { %v2057_v24 = vsub.f32 1.0, %v2056_v45  ;;  %v2071_v7 = vmul.f32 %v3970_v33, %v8867_v34  ;;  %v2087_v45 = vadd.f32 %v2085_v15, %v206_v35  ;;  %vm2076_vm11 = vweird.f32 %v3970_v33 }
 0x36e   :  { %v2086_v38 = vmul.f32 %v2053_v58, %v1994_v17  ;;  %v2067_v39 = vor.u32 1.1754944e-38, %v2066_v49  ;;  %vm2065_vm12 = vcmp.eq.f32.partialorder %v2064_v1, 8.507059e+37  ;;  %v2081_v22 = vand.u32 2147483648, %v8867_v34  ;;  %vm2077_vm14 = vmor %vm2075_vm13, %vm2076_vm11  ;;  %v8912_v49 = vld [vmem:[%s11072_s7 + $0x298] sm:$0xff]  ;;  %v12231_v1 = vld [vmem:[#allocation50_spill] sm:$0xff] }
 0x36f   :  { %v2058_v55 = vmul.f32 %v3968_v19, %v2057_v24  ;;  %v2072_v59 = vsub.f32 1.0, %v2071_v7  ;;  %3971 = vtanh.f32 %v2087_v45  ;;  %v2079_v7 = vand.u32 2147483647, %v8867_v34  ;;  %v8898_v34 = vld [vmem:[%s11072_s7 + $0x2f8] sm:$0xff] }
 0x370   :  { %v2088_v50 = vadd.f32 %v2086_v38, %v381_v47  ;;  %vm2107_vm15 = vcmp.eq.s32.totalorder %v2106_v13, 1  ;;  %v2082_v21 = vor.u32 1.1754944e-38, %v2081_v22  ;;  %v8905_v47 = vld [vmem:[%s11072_s7 + $0x2c8] sm:$0xff]  ;;  %v9111_v38 = vld [vmem:[%s11072_s7 + $0x3b8] sm:$0xff]  ;;  %v12241_v22 = vld [vmem:[#allocation38_spill] sm:$0xff] }
 0x371   :  { %v2059_v46 = vadd.f32 %v3968_v19, %v2058_v55  ;;  %v2073_v14 = vmul.f32 %v3970_v33, %v2072_v59  ;;  %vm2080_vm0 = vcmp.eq.f32.partialorder %v2079_v7, 8.507059e+37  ;;  %v12244_v7 = vld [vmem:[#allocation63_spill] sm:$0xff]  ;;  %v12245_v13 = vld [vmem:[#allocation54_spill] sm:$0xff] }
 0x372   :  { %3973 = vtanh.f32 %v2088_v50  ;;  %v12232_v50 = vld [vmem:[#allocation58_spill] sm:$0xff] }
 0x373   :  { %v2063_v24 = vsel %vm2062_vm10, %v3968_v19, %v2059_v46  ;;  %v2074_v35 = vadd.f32 %v3970_v33, %v2073_v14  ;;  %v9129_v14 = vld [vmem:[%s11072_s7 + $0x358] sm:$0xff] }
 0x374   :  { %v2068_v15 = vsel %vm2065_vm12, %v2067_v39, %v2063_v24  ;;  %v12236_v24 = vld [vmem:[#allocation60_spill] sm:$0xff]  ;;  %v12238_v39 = vld [vmem:[#allocation53_spill] sm:$0xff] }
 0x375   :  { %v3972_v42 = vpop.eup %3971  ;;  %v2078_v19 = vsel %vm2077_vm14, %v3970_v33, %v2074_v35  ;;  %v12240_v35 = vld [vmem:[#allocation31_spill] sm:$0xff] }
 0x376   :  { %v2091_v55 = vsub.f32 %v7842_v57, %v3972_v42  ;;  %v2083_v17 = vsel %vm2080_vm0, %v2082_v21, %v2078_v19  ;;  %v12247_v19 = vld [vmem:[#allocation64_spill] sm:$0xff] }
 0x377   :  { %v12249_v21 = vld [vmem:[#allocation20_spill] sm:$0xff] }
 0x378   :  { %v2093_v25 = vmul.f32 %v2091_v55, %v2068_v15  ;;  %v3974_v45 = vpop.eup %3973  ;;  %v12239_v55 = vld [vmem:[#allocation61_spill] sm:$0xff]  ;;  %v12242_v15 = vld [vmem:[#allocation18_spill] sm:$0xff] }
 0x379   :  { %v2092_v44 = vsub.f32 %v7871_v31, %v3974_v45 }
 0x37a   :  { %v2095_v63 = vadd.f32 %v3972_v42, %v2093_v25  ;;  %v12237_v42 = vld [vmem:[#allocation16_spill] sm:$0xff]  ;;  %v12243_v25 = vld [vmem:[#allocation57_spill] sm:$0xff] }
 0x37b   :  { %v2094_v33 = vmul.f32 %v2092_v44, %v2083_v17  ;;  %v12251_v44 = vld [vmem:[#allocation67_spill] sm:$0xff]  ;;  %v12252_v17 = vld [vmem:[#allocation68_spill] sm:$0xff] }
 0x37c   :  { %v2108_v59 = vsel %vm2107_vm15, %v2095_v63, 0.0  ;;  %v8887_v58 = vsel %vm2107_vm15, %v2095_v63, %v7842_v57  ;;  %v2114_v57 = vpop.permute.xlu1 %2113  ;;  %v12246_v63 = vld [vmem:[#allocation55_spill] sm:$0xff] }
 0x37d   :  { %3821 = vst [vmem:[%s11078_s11 + $0x18] sm:$0xff] %v2108_v59  ;;  %2141 = vmatmul.f32.vlgmr.msrb.gmra.mxu0 %v8887_v58  ;;  %2181 = vmatmul.f32.vlgmr.msrb.gmra.mxu2 %v8887_v58  ;;  %v2096_v46 = vadd.f32 %v3974_v45, %v2094_v33  ;;  %vm2115_vm1 = vcmp.eq.s32.totalorder %v2114_v57, 1  ;;  %v12248_v45 = vld [vmem:[#allocation39_spill] sm:$0xff]  ;;  %v12250_v59 = vld [vmem:[#allocation56_spill] sm:$0xff] }
 0x37e   :  { %2285 = vmatpush.msrb.mxu0 %v7852_v26  ;;  %2325 = vmatpush.msrb.mxu2 %v8898_v34  ;;  %v12253_v33 = vld [vmem:[#allocation23_spill] sm:$0xff] }
 0x37f   :  { %v2116_v26 = vsel %vm2115_vm1, %v2096_v46, 0.0  ;;  %v12254_v57 = vld [vmem:[#allocation59_spill] sm:$0xff] }
 0x380   :  { %2286 = vmatpush.msrb.mxu0 %v7859_v48  ;;  %2326 = vmatpush.msrb.mxu2 %v8905_v47  ;;  %v8916_v48 = vsel %vm2115_vm1, %v2096_v46, %v7871_v31  ;;  %3822 = vst [vmem:[%s11079_s12 + $0x20] sm:$0xff] %v2116_v26  ;;  %v8934_v31 = vld [vmem:[%s11072_s7 + $0x5f8] sm:$0xff]  ;;  %v12255_v46 = vld [vmem:[#allocation70_spill] sm:$0xff]  ;;  %v12256_v26 = vld [vmem:[#allocation72_spill] sm:$0xff] }
 0x381   :  { %2161 = vmatmul.f32.vlgmr.msrb.gmra.mxu1 %v8916_v48  ;;  %2201 = vmatmul.f32.vlgmr.msrb.gmra.mxu3 %v8916_v48 }
 0x382   :  { %2287 = vmatpush.msrb.mxu0 %v7866_v10  ;;  %2327 = vmatpush.msrb.mxu2 %v8912_v49  ;;  %v8928_v10 = vld [vmem:[%s11072_s7 + $0x268] sm:$0xff] }
 0x383   :  { %2305 = vmatpush.msrb.mxu1 %v7887_v5  ;;  %2345 = vmatpush.msrb.mxu3 %v8934_v31  ;;  %v8950_v5 = vld [vmem:[%s11072_s7 + $0x5c8] sm:$0xff] }
 0x384   :  { %2288 = vmatpush.msrb.mxu0 %v7881_v11  ;;  %2328 = vmatpush.msrb.mxu2 %v8928_v10  ;;  %v8944_v11 = vld [vmem:[%s11072_s7 + $0x238] sm:$0xff] }
 0x385   :  { %2221 = vmatmul.f32.vlgmr.msra.gmra.mxu0 %v8887_v58  ;;  %2261 = vmatmul.f32.vlgmr.msra.gmra.mxu2 %v8887_v58 }
 0x386   :  { %2289 = vmatpush.msrb.mxu0 %v7897_v27  ;;  %2306 = vmatpush.msrb.mxu1 %v7903_v52  ;;  %v8958_v27 = vld [vmem:[%s11072_s7 + $0x208] sm:$0xff]  ;;  %v8964_v52 = vld [vmem:[%s11072_s7 + $0x598] sm:$0xff] }
 0x387   :  { %2329 = vmatpush.msrb.mxu2 %v8944_v11  ;;  %2346 = vmatpush.msrb.mxu3 %v8950_v5 }
 0x388   :  { %2290 = vmatpush.msrb.mxu0 %v7911_v53  ;;  %2307 = vmatpush.msrb.mxu1 %v7917_v8  ;;  %v8972_v53 = vld [vmem:[%s11072_s7 + $0x1d8] sm:$0xff]  ;;  %v8978_v8 = vld [vmem:[%s11072_s7 + $0x568] sm:$0xff] }
 0x389   :  { %2330 = vmatpush.msrb.mxu2 %v8958_v27  ;;  %2347 = vmatpush.msrb.mxu3 %v8964_v52 }
 0x38a   :  { %2291 = vmatpush.msrb.mxu0 %v7925_v0  ;;  %2308 = vmatpush.msrb.mxu1 %v7931_v28  ;;  %v8988_v0 = vld [vmem:[%s11072_s7 + $0x1a8] sm:$0xff]  ;;  %v8994_v28 = vld [vmem:[%s11072_s7 + $0x538] sm:$0xff] }
 0x38b   :  { %2331 = vmatpush.msrb.mxu2 %v8972_v53  ;;  %2348 = vmatpush.msrb.mxu3 %v8978_v8 }
 0x38c   :  { %2241 = vmatmul.f32.vlgmr.msra.gmra.mxu1 %v8916_v48  ;;  %2281 = vmatmul.f32.vlgmr.msra.gmra.mxu3 %v8916_v48 }
 0x38d   :  { %2292 = vmatpush.msrb.mxu0 %v7941_v20  ;;  %2309 = vmatpush.msrb.mxu1 %v7947_v9  ;;  %v9002_v20 = vld [vmem:[%s11072_s7 + $0x178] sm:$0xff]  ;;  %v9008_v9 = vld [vmem:[%s11072_s7 + $0x508] sm:$0xff] }
 0x38e   :  { %2332 = vmatpush.msrb.mxu2 %v8988_v0  ;;  %2349 = vmatpush.msrb.mxu3 %v8994_v28 }
 0x38f   :  { %2293 = vmatpush.msrb.mxu0 %v7955_v36  ;;  %2310 = vmatpush.msrb.mxu1 %v7961_v37  ;;  %v9016_v36 = vld [vmem:[%s11072_s7 + $0x148] sm:$0xff]  ;;  %v9022_v37 = vld [vmem:[%s11072_s7 + $0x4d8] sm:$0xff] }
 0x390   :  { %2333 = vmatpush.msrb.mxu2 %v9002_v20  ;;  %2350 = vmatpush.msrb.mxu3 %v9008_v9 }
 0x391   :  { %2294 = vmatpush.msrb.mxu0 %v7969_v12  ;;  %2311 = vmatpush.msrb.mxu1 %v7975_v51  ;;  %v9030_v12 = vld [vmem:[%s11072_s7 + $0x118] sm:$0xff]  ;;  %v9036_v51 = vld [vmem:[%s11072_s7 + $0x4a8] sm:$0xff] }
 0x392   :  { %2334 = vmatpush.msrb.mxu2 %v9016_v36  ;;  %2351 = vmatpush.msrb.mxu3 %v9022_v37 }
 0x393   :  { %2295 = vmatpush.msrb.mxu0 %v7983_v32  ;;  %2312 = vmatpush.msrb.mxu1 %v7989_v41  ;;  %v9044_v32 = vld [vmem:[%s11072_s7 + $0xe8] sm:$0xff]  ;;  %v9050_v41 = vld [vmem:[%s11072_s7 + $0x478] sm:$0xff] }
 0x394   :  { %2335 = vmatpush.msrb.mxu2 %v9030_v12  ;;  %2352 = vmatpush.msrb.mxu3 %v9036_v51 }
 0x395   :  { %2296 = vmatpush.msrb.mxu0 %v7997_v6  ;;  %2313 = vmatpush.msrb.mxu1 %v8003_v3  ;;  %v9058_v6 = vld [vmem:[%s11072_s7 + $0xb8] sm:$0xff]  ;;  %v9064_v3 = vld [vmem:[%s11072_s7 + $0x448] sm:$0xff] }
 0x396   :  { %2336 = vmatpush.msrb.mxu2 %v9044_v32  ;;  %2353 = vmatpush.msrb.mxu3 %v9050_v41 }
 0x397   :  { %2297 = vmatpush.msrb.mxu0 %v8011_v60  ;;  %2314 = vmatpush.msrb.mxu1 %v8017_v56  ;;  %v9072_v60 = vld [vmem:[%s11072_s7 + $0x88] sm:$0xff]  ;;  %v9078_v56 = vld [vmem:[%s11072_s7 + $0x418] sm:$0xff] }
 0x398   :  { %2337 = vmatpush.msrb.mxu2 %v9058_v6  ;;  %2354 = vmatpush.msrb.mxu3 %v9064_v3 }
 0x399   :  { %2298 = vmatpush.msrb.mxu0 %v8025_v30  ;;  %2315 = vmatpush.msrb.mxu1 %v8031_v40  ;;  %v9086_v30 = vld [vmem:[%s11072_s7 + $0x58] sm:$0xff]  ;;  %v9092_v40 = vld [vmem:[%s11072_s7 + $0x3e8] sm:$0xff] }
 0x39a   :  { %2338 = vmatpush.msrb.mxu2 %v9072_v60  ;;  %2355 = vmatpush.msrb.mxu3 %v9078_v56 }
 0x39b   :  { %2299 = vmatpush.msrb.mxu0 %v8039_v62  ;;  %2316 = vmatpush.msrb.mxu1 %v8045_v18  ;;  %v9098_v62 = vld [vmem:[%s11072_s7 + $0x20] sm:$0xff]  ;;  %v9105_v18 = vld [vmem:[%s11072_s7 + $0x28] sm:$0xff] }
 0x39c   :  { %2339 = vmatpush.msrb.mxu2 %v9086_v30  ;;  %2356 = vmatpush.msrb.mxu3 %v9092_v40 }
 0x39d   :  { %2300 = vmatpush.msrb.mxu0 %v9098_v62  ;;  %2317 = vmatpush.msrb.mxu1 %v8054_v29  ;;  %v9120_v29 = vld [vmem:[%s11072_s7 + $0x388] sm:$0xff] }
 0x39e   :  { %2340 = vmatpush.msrb.mxu2 %v9105_v18  ;;  %2357 = vmatpush.msrb.mxu3 %v9111_v38 }
 0x39f   :  { %2301 = vmatmul.f32.vlgmr.msrb.gmra.mxu0 %v8887_v58  ;;  %2341 = vmatmul.f32.vlgmr.msrb.gmra.mxu2 %v8887_v58 }
 0x3a0   :  { %2318 = vmatpush.msrb.mxu1 %v8064_v61  ;;  %2358 = vmatpush.msrb.mxu3 %v9120_v29  ;;  %v12230_v61 = vld [vmem:[#allocation94_spill] sm:$0xff] }
 0x3a1   :  { %2492 = vmatpush.msra.mxu0 %v8071_v16  ;;  %2532 = vmatpush.msra.mxu2 %v8077_v43  ;;  %v9138_v16 = vld [vmem:[%s11072_s7 + $0x328] sm:$0xff]  ;;  %v12234_v43 = vld [vmem:[#allocation51_spill] sm:$0xff] }
 0x3a2   :  { %2319 = vmatpush.msrb.mxu1 %v8083_v54  ;;  %2359 = vmatpush.msrb.mxu3 %v9129_v14  ;;  %12233 = vst [vmem:[#allocation177_spill] sm:$0xff] %v9138_v16  ;;  %v12235_v54 = vld [vmem:[#allocation34_spill] sm:$0xff] }
 0x3a3   :  { %2493 = vmatpush.msra.mxu0 %v12230_v61  ;;  %2533 = vmatpush.msra.mxu2 %v12231_v1  ;;  %v12257_v61 = vld [vmem:[#allocation27_spill] sm:$0xff]  ;;  %v12258_v1 = vld [vmem:[#allocation62_spill] sm:$0xff] }
 0x3a4   :  { %2320 = vmatpush.msrb.mxu1 %v12232_v50  ;;  %2360 = vmatpush.msrb.mxu3 %v9138_v16  ;;  %v12259_v50 = vld [vmem:[#allocation52_spill] sm:$0xff] }
 0x3a5   :  { %2321 = vmatmul.f32.vlgmr.msrb.gmra.mxu1 %v8916_v48  ;;  %2361 = vmatmul.f32.vlgmr.msrb.gmra.mxu3 %v8916_v48 }
 0x3a6   :  { %2494 = vmatpush.msra.mxu0 %v12234_v43  ;;  %2534 = vmatpush.msra.mxu2 %v12235_v54  ;;  %v12260_v43 = vld [vmem:[#allocation74_spill] sm:$0xff]  ;;  %v12261_v54 = vld [vmem:[#allocation35_spill] sm:$0xff] }
 0x3a7   :  { %2512 = vmatpush.msra.mxu1 %v12236_v24  ;;  %2552 = vmatpush.msra.mxu3 %v12237_v42  ;;  %v12262_v24 = vld [vmem:[#allocation65_spill] sm:$0xff]  ;;  %v12263_v42 = vld [vmem:[#allocation76_spill] sm:$0xff] }
 0x3a8   :  { %2495 = vmatpush.msra.mxu0 %v12238_v39  ;;  %2535 = vmatpush.msra.mxu2 %v12239_v55  ;;  %v12264_v39 = vld [vmem:[#allocation78_spill] sm:$0xff] }
 0x3a9   :  { %2513 = vmatpush.msra.mxu1 %v12240_v35  ;;  %2553 = vmatpush.msra.mxu3 %v12241_v22  ;;  %v12265_v55 = vld [vmem:[#allocation66_spill] sm:$0xff]  ;;  %v12267_v22 = vld [vmem:[#allocation79_spill] sm:$0xff] }
 0x3aa   :  { %2496 = vmatpush.msra.mxu0 %v12242_v15  ;;  %2536 = vmatpush.msra.mxu2 %v12243_v25  ;;  %v12266_v35 = vld [vmem:[#allocation42_spill] sm:$0xff]  ;;  %v12269_v25 = vld [vmem:[#allocation71_spill] sm:$0xff] }
 0x3ab   :  { %2514 = vmatpush.msra.mxu1 %v12244_v7  ;;  %2554 = vmatpush.msra.mxu3 %v12245_v13  ;;  %v12268_v15 = vld [vmem:[#allocation82_spill] sm:$0xff]  ;;  %v12270_v7 = vld [vmem:[#allocation73_spill] sm:$0xff]  ;;  %v12271_v13 = vld [vmem:[#allocation84_spill] sm:$0xff] }
 0x3ac   :  { %2497 = vmatpush.msra.mxu0 %v12246_v63  ;;  %2537 = vmatpush.msra.mxu2 %v12247_v19  ;;  %v12272_v63 = vld [vmem:[#allocation86_spill] sm:$0xff]  ;;  %v12273_v19 = vld [vmem:[#allocation75_spill] sm:$0xff] }
 0x3ad   :  { %2515 = vmatpush.msra.mxu1 %v12248_v45  ;;  %2555 = vmatpush.msra.mxu3 %v12249_v21  ;;  %v12274_v45 = vld [vmem:[#allocation77_spill] sm:$0xff] }
 0x3ae   :  { %2498 = vmatpush.msra.mxu0 %v12250_v59  ;;  %2538 = vmatpush.msra.mxu2 %v12251_v44  ;;  %v12275_v21 = vld [vmem:[#allocation69_spill] sm:$0xff]  ;;  %v12276_v59 = vld [vmem:[#allocation80_spill] sm:$0xff] }
 0x3af   :  { %2516 = vmatpush.msra.mxu1 %v12252_v17  ;;  %2556 = vmatpush.msra.mxu3 %v12253_v33  ;;  %v12277_v44 = vld [vmem:[#allocation89_spill] sm:$0xff]  ;;  %v12279_v33 = vld [vmem:[#allocation103_spill] sm:$0xff] }
 0x3b0   :  { %2499 = vmatpush.msra.mxu0 %v12254_v57  ;;  %2539 = vmatpush.msra.mxu2 %v12255_v46  ;;  %v12278_v17 = vld [vmem:[#allocation81_spill] sm:$0xff]  ;;  %v12280_v57 = vld [vmem:[#allocation83_spill] sm:$0xff] }
 0x3b1   :  { %2517 = vmatpush.msra.mxu1 %v12256_v26  ;;  %2557 = vmatpush.msra.mxu3 %v12257_v61  ;;  %v12281_v46 = vld [vmem:[#allocation105_spill] sm:$0xff]  ;;  %v12283_v61 = vld [vmem:[#allocation107_spill] sm:$0xff] }
 0x3b2   :  { %2500 = vmatpush.msra.mxu0 %v12258_v1  ;;  %2540 = vmatpush.msra.mxu2 %v12259_v50  ;;  %v12282_v26 = vld [vmem:[#allocation85_spill] sm:$0xff]  ;;  %v12284_v1 = vld [vmem:[#allocation87_spill] sm:$0xff] }
 0x3b3   :  { %2518 = vmatpush.msra.mxu1 %v12260_v43  ;;  %2558 = vmatpush.msra.mxu3 %v12261_v54  ;;  %v12285_v50 = vld [vmem:[#allocation109_spill] sm:$0xff]  ;;  %v12286_v43 = vld [vmem:[#allocation88_spill] sm:$0xff]  ;;  %v12287_v54 = vld [vmem:[#allocation111_spill] sm:$0xff] }
 0x3b4   :  { %2501 = vmatpush.msra.mxu0 %v12262_v24  ;;  %2541 = vmatpush.msra.mxu2 %v12263_v42  ;;  %v12288_v24 = vld [vmem:[#allocation90_spill] sm:$0xff]  ;;  %v12289_v42 = vld [vmem:[#allocation113_spill] sm:$0xff] }
 0x3b5   :  { %2519 = vmatpush.msra.mxu1 %v12264_v39  ;;  %2559 = vmatpush.msra.mxu3 %v12265_v55  ;;  %v12290_v39 = vld [vmem:[#allocation104_spill] sm:$0xff]  ;;  %v12291_v55 = vld [vmem:[#allocation115_spill] sm:$0xff] }
 0x3b6   :  { %2502 = vmatpush.msra.mxu0 %v12266_v35  ;;  %2542 = vmatpush.msra.mxu2 %v12267_v22  ;;  %v12292_v35 = vld [vmem:[#allocation106_spill] sm:$0xff]  ;;  %v12293_v22 = vld [vmem:[#allocation117_spill] sm:$0xff] }
 0x3b7   :  { %2520 = vmatpush.msra.mxu1 %v12268_v15  ;;  %2560 = vmatpush.msra.mxu3 %v12269_v25  ;;  %v12294_v15 = vld [vmem:[#allocation108_spill] sm:$0xff]  ;;  %v12295_v25 = vld [vmem:[#allocation110_spill] sm:$0xff] }
 0x3b8   :  { %2503 = vmatpush.msra.mxu0 %v12270_v7  ;;  %2543 = vmatpush.msra.mxu2 %v12271_v13  ;;  %v12296_v7 = vld [vmem:[#allocation119_spill] sm:$0xff]  ;;  %v12297_v13 = vld [vmem:[#allocation121_spill] sm:$0xff] }
 0x3b9   :  { %2521 = vmatpush.msra.mxu1 %v12272_v63  ;;  %2561 = vmatpush.msra.mxu3 %v12273_v19  ;;  %v12298_v63 = vld [vmem:[#allocation112_spill] sm:$0xff]  ;;  %v12299_v19 = vld [vmem:[#allocation114_spill] sm:$0xff] }
 0x3ba   :  { %2504 = vmatpush.msra.mxu0 %v12274_v45  ;;  %2544 = vmatpush.msra.mxu2 %v12275_v21  ;;  %v12300_v45 = vld [vmem:[#allocation123_spill] sm:$0xff]  ;;  %v12301_v21 = vld [vmem:[#allocation125_spill] sm:$0xff] }
 0x3bb   :  { %2522 = vmatpush.msra.mxu1 %v12276_v59  ;;  %2562 = vmatpush.msra.mxu3 %v12277_v44  ;;  %v12302_v59 = vld [vmem:[#allocation116_spill] sm:$0xff]  ;;  %v12303_v44 = vld [vmem:[#allocation118_spill] sm:$0xff] }
 0x3bc   :  { %2505 = vmatpush.msra.mxu0 %v12278_v17  ;;  %2545 = vmatpush.msra.mxu2 %v12279_v33  ;;  %v12304_v17 = vld [vmem:[#allocation127_spill] sm:$0xff]  ;;  %v12305_v33 = vld [vmem:[#allocation129_spill] sm:$0xff] }
 0x3bd   :  { %2523 = vmatpush.msra.mxu1 %v12280_v57  ;;  %2563 = vmatpush.msra.mxu3 %v12281_v46  ;;  %v12306_v57 = vld [vmem:[#allocation120_spill] sm:$0xff]  ;;  %v12307_v46 = vld [vmem:[#allocation130_spill] sm:$0xff] }
 0x3be   :  { %2506 = vmatpush.msra.mxu0 %v12282_v26  ;;  %2546 = vmatpush.msra.mxu2 %v12283_v61  ;;  %v12308_v26 = vld [vmem:[#allocation122_spill] sm:$0xff]  ;;  %v12309_v61 = vld [vmem:[#allocation131_spill] sm:$0xff] }
 0x3bf   :  { %2524 = vmatpush.msra.mxu1 %v12284_v1  ;;  %2564 = vmatpush.msra.mxu3 %v12285_v50  ;;  %v12310_v1 = vld [vmem:[#allocation124_spill] sm:$0xff]  ;;  %v12311_v50 = vld [vmem:[#allocation133_spill] sm:$0xff] }
 0x3c0   :  { %2507 = vmatpush.msra.mxu0 %v12286_v43  ;;  %2547 = vmatpush.msra.mxu2 %v12287_v54  ;;  %v12312_v43 = vld [vmem:[#allocation126_spill] sm:$0xff]  ;;  %v12313_v54 = vld [vmem:[#allocation135_spill] sm:$0xff] }
 0x3c1   :  { %2525 = vmatpush.msra.mxu1 %v12290_v39  ;;  %2565 = vmatpush.msra.mxu3 %v12291_v55  ;;  %v12316_v39 = vld [vmem:[#allocation132_spill] sm:$0xff]  ;;  %v12317_v55 = vld [vmem:[#allocation139_spill] sm:$0xff] }
 0x3c2   :  { %2572 = vmatpush.msrb.mxu0 %v12288_v24  ;;  %2612 = vmatpush.msrb.mxu2 %v12289_v42  ;;  %v12314_v24 = vld [vmem:[#allocation128_spill] sm:$0xff]  ;;  %v12315_v42 = vld [vmem:[#allocation137_spill] sm:$0xff] }
 0x3c3   :  { %2526 = vmatpush.msra.mxu1 %v12294_v15  ;;  %2566 = vmatpush.msra.mxu3 %v12295_v25  ;;  %v12320_v15 = vld [vmem:[#allocation136_spill] sm:$0xff]  ;;  %v12321_v25 = vld [vmem:[#allocation143_spill] sm:$0xff] }
 0x3c4   :  { %2573 = vmatpush.msrb.mxu0 %v12292_v35  ;;  %2613 = vmatpush.msrb.mxu2 %v12293_v22  ;;  %v12318_v35 = vld [vmem:[#allocation134_spill] sm:$0xff]  ;;  %v12319_v22 = vld [vmem:[#allocation141_spill] sm:$0xff] }
 0x3c5   :  { %2527 = vmatpush.msra.mxu1 %v12298_v63  ;;  %2567 = vmatpush.msra.mxu3 %v12299_v19  ;;  %v12324_v63 = vld [vmem:[#allocation140_spill] sm:$0xff]  ;;  %v12325_v19 = vld [vmem:[#allocation147_spill] sm:$0xff] }
 0x3c6   :  { %2574 = vmatpush.msrb.mxu0 %v12296_v7  ;;  %2614 = vmatpush.msrb.mxu2 %v12297_v13  ;;  %v12322_v7 = vld [vmem:[#allocation138_spill] sm:$0xff]  ;;  %v12323_v13 = vld [vmem:[#allocation145_spill] sm:$0xff] }
 0x3c7   :  { %2592 = vmatpush.msrb.mxu1 %v12301_v21  ;;  %2632 = vmatpush.msrb.mxu3 %v12303_v44  ;;  %v12327_v21 = vld [vmem:[#allocation149_spill] sm:$0xff]  ;;  %v12329_v44 = vld [vmem:[#allocation151_spill] sm:$0xff] }
 0x3c8   :  { %2575 = vmatpush.msrb.mxu0 %v12300_v45  ;;  %2615 = vmatpush.msrb.mxu2 %v12302_v59  ;;  %v12326_v45 = vld [vmem:[#allocation142_spill] sm:$0xff]  ;;  %v12328_v59 = vld [vmem:[#allocation144_spill] sm:$0xff] }
 0x3c9   :  { %2593 = vmatpush.msrb.mxu1 %v12305_v33  ;;  %2633 = vmatpush.msrb.mxu3 %v12307_v46  ;;  %v12331_v33 = vld [vmem:[#allocation153_spill] sm:$0xff]  ;;  %v12333_v46 = vld [vmem:[#allocation155_spill] sm:$0xff] }
 0x3ca   :  { %2576 = vmatpush.msrb.mxu0 %v12304_v17  ;;  %2616 = vmatpush.msrb.mxu2 %v12306_v57  ;;  %v12330_v17 = vld [vmem:[#allocation146_spill] sm:$0xff]  ;;  %v12332_v57 = vld [vmem:[#allocation148_spill] sm:$0xff] }
 0x3cb   :  { %2594 = vmatpush.msrb.mxu1 %v12309_v61  ;;  %2634 = vmatpush.msrb.mxu3 %v12311_v50  ;;  %v12335_v61 = vld [vmem:[#allocation157_spill] sm:$0xff]  ;;  %v12337_v50 = vld [vmem:[#allocation159_spill] sm:$0xff] }
 0x3cc   :  { %2577 = vmatpush.msrb.mxu0 %v12308_v26  ;;  %2617 = vmatpush.msrb.mxu2 %v12310_v1  ;;  %v12334_v26 = vld [vmem:[#allocation150_spill] sm:$0xff]  ;;  %v12336_v1 = vld [vmem:[#allocation152_spill] sm:$0xff] }
 0x3cd   :  { %2595 = vmatpush.msrb.mxu1 %v12313_v54  ;;  %2635 = vmatpush.msrb.mxu3 %v12315_v42  ;;  %v12339_v54 = vld [vmem:[#allocation161_spill] sm:$0xff]  ;;  %v12341_v42 = vld [vmem:[#allocation163_spill] sm:$0xff] }
 0x3ce   :  { %2578 = vmatpush.msrb.mxu0 %v12312_v43  ;;  %2618 = vmatpush.msrb.mxu2 %v12314_v24  ;;  %v12338_v43 = vld [vmem:[#allocation154_spill] sm:$0xff]  ;;  %v12340_v24 = vld [vmem:[#allocation156_spill] sm:$0xff] }
 0x3cf   :  { %2596 = vmatpush.msrb.mxu1 %v12317_v55  ;;  %2636 = vmatpush.msrb.mxu3 %v12319_v22  ;;  %v12343_v55 = vld [vmem:[#allocation165_spill] sm:$0xff]  ;;  %v12345_v22 = vld [vmem:[#allocation167_spill] sm:$0xff] }
 0x3d0   :  { %2579 = vmatpush.msrb.mxu0 %v12316_v39  ;;  %2619 = vmatpush.msrb.mxu2 %v12318_v35  ;;  %v12342_v39 = vld [vmem:[#allocation158_spill] sm:$0xff]  ;;  %v12344_v35 = vld [vmem:[#allocation160_spill] sm:$0xff] }
 0x3d1   :  { %2597 = vmatpush.msrb.mxu1 %v12321_v25  ;;  %2637 = vmatpush.msrb.mxu3 %v12323_v13  ;;  %v12347_v25 = vld [vmem:[#allocation169_spill] sm:$0xff]  ;;  %v12349_v13 = vld [vmem:[#allocation171_spill] sm:$0xff] }
 0x3d2   :  { %2580 = vmatpush.msrb.mxu0 %v12320_v15  ;;  %2620 = vmatpush.msrb.mxu2 %v12322_v7  ;;  %v12346_v15 = vld [vmem:[#allocation162_spill] sm:$0xff]  ;;  %v12348_v7 = vld [vmem:[#allocation164_spill] sm:$0xff] }
 0x3d3   :  { %2598 = vmatpush.msrb.mxu1 %v12325_v19  ;;  %2638 = vmatpush.msrb.mxu3 %v12327_v21  ;;  %v12351_v19 = vld [vmem:[#allocation173_spill] sm:$0xff]  ;;  %v12353_v21 = vld [vmem:[#allocation174_spill] sm:$0xff] }
 0x3d4   :  { %2581 = vmatpush.msrb.mxu0 %v12324_v63  ;;  %2621 = vmatpush.msrb.mxu2 %v12326_v45  ;;  %v12350_v63 = vld [vmem:[#allocation166_spill] sm:$0xff]  ;;  %v12352_v45 = vld [vmem:[#allocation168_spill] sm:$0xff] }
 0x3d5   :  { %2599 = vmatpush.msrb.mxu1 %v12329_v44  ;;  %2639 = vmatpush.msrb.mxu3 %v12331_v33  ;;  %v12355_v44 = vld [vmem:[#allocation175_spill] sm:$0xff]  ;;  %v12357_v33 = vld [vmem:[#allocation176_spill] sm:$0xff] }
 0x3d6   :  { %2582 = vmatpush.msrb.mxu0 %v12328_v59  ;;  %2622 = vmatpush.msrb.mxu2 %v12330_v17  ;;  %v12354_v59 = vld [vmem:[#allocation170_spill] sm:$0xff]  ;;  %v12356_v17 = vld [vmem:[#allocation172_spill] sm:$0xff] }
 0x3d7   :  { %2600 = vmatpush.msrb.mxu1 %v12333_v46  ;;  %2640 = vmatpush.msrb.mxu3 %v12335_v61  ;;  %v12358_v46 = vld [vmem:[#allocation8_spill] sm:$0xff] }
 0x3d8   :  { %2583 = vmatpush.msrb.mxu0 %v12332_v57  ;;  %2623 = vmatpush.msrb.mxu2 %v12334_v26 }
 0x3d9   :  { %2601 = vmatpush.msrb.mxu1 %v12337_v50  ;;  %2641 = vmatpush.msrb.mxu3 %v12339_v54  ;;  %v12360_v50 = vld [vmem:[#allocation101_spill] sm:$0xff] }
 0x3da   :  { %2584 = vmatpush.msrb.mxu0 %v12336_v1  ;;  %2624 = vmatpush.msrb.mxu2 %v12338_v43  ;;  %v12359_v1 = vld [vmem:[#allocation43_spill] sm:$0xff] }
 0x3db   :  { %2602 = vmatpush.msrb.mxu1 %v12341_v42  ;;  %2642 = vmatpush.msrb.mxu3 %v12343_v55  ;;  %v151_v43 = vadd.f32 %v12360_v50, %v12359_v1  ;;  %v12361_v55 = vld [vmem:[#allocation10_spill] sm:$0xff] }
 0x3dc   :  { %2585 = vmatpush.msrb.mxu0 %v12340_v24  ;;  %2625 = vmatpush.msrb.mxu2 %v12342_v39 }
 0x3dd   :  { %2603 = vmatpush.msrb.mxu1 %v12345_v22  ;;  %2643 = vmatpush.msrb.mxu3 %v12347_v25  ;;  %v12362_v25 = vld [vmem:[#allocation26_spill] sm:$0xff] }
 0x3de   :  { %2586 = vmatpush.msrb.mxu0 %v12344_v35  ;;  %2626 = vmatpush.msrb.mxu2 %v12346_v15 }
 0x3df   :  { %2604 = vmatpush.msrb.mxu1 %v12349_v13  ;;  %2644 = vmatpush.msrb.mxu3 %v12351_v19  ;;  %v12364_v19 = vld [vmem:[#allocation46_spill] sm:$0xff] }
 0x3e0   :  { %2587 = vmatpush.msrb.mxu0 %v12348_v7  ;;  %2627 = vmatpush.msrb.mxu2 %v12350_v63  ;;  %v12363_v7 = vld [vmem:[#allocation13_spill] sm:$0xff] }
 0x3e1   :  { %2605 = vmatpush.msrb.mxu1 %v12352_v45  ;;  %2645 = vmatpush.msrb.mxu3 %v12353_v21  ;;  %v326_v13 = vadd.f32 %v12363_v7, %v12362_v25 }
 0x3e3   :  { %2606 = vmatpush.msrb.mxu1 %v12354_v59  ;;  %2646 = vmatpush.msrb.mxu3 %v12355_v44  ;;  %v12365_v44 = vld [vmem:[#allocation49_spill] sm:$0xff] }
 0x3e5   :  { %2607 = vmatpush.msrb.mxu1 %v12356_v17  ;;  %2647 = vmatpush.msrb.mxu3 %v12357_v33  ;;  %v12366_v17 = vld [vmem:[#allocation102_spill] sm:$0xff] }
 0x3e6   :  { %v180_v33 = vadd.f32 %v12366_v17, %v12365_v44 }
 0x3fa   :  { %v2142_v57 = vpop.f32.mrf.mxu0 }
 0x3fb   :  { %v2143_v26 = vadd.f32 %v2142_v57, %v12358_v46 }
 0x3fe   :  { %v2162_v61 = vpop.f32.mrf.mxu1 }
 0x3ff   :  { %v2163_v54 = vadd.f32 %v2162_v61, %v2143_v26 }
 0x400   :  { %v2182_v24 = vpop.f32.mrf.mxu2 }
 0x401   :  { %v2374_v42 = vadd.f32 %v2163_v54, %v151_v43  ;;  %v2183_v35 = vadd.f32 %v2182_v24, %v12361_v55 }
 0x402   :  { %v2222_v22 = vpop.f32.mrf.mxu0 }
 0x403   :  { %v3823_v39 = vmul.f32 -1.442695, %v2374_v42  ;;  %v2223_v45 = vadd.f32 %v2222_v22, %v12364_v19  ;;  %v12367_v42 = vld [vmem:[#allocation30_spill] sm:$0xff] }
 0x404   :  { %v2202_v15 = vpop.f32.mrf.mxu3 }
 0x405   :  { %3975 = vpow2.f32 %v3823_v39  ;;  %v2203_v63 = vadd.f32 %v2202_v15, %v2183_v35  ;;  %v12368_v35 = vld [vmem:[#allocation48_spill] sm:$0xff]  ;;  %v12369_v15 = vld [vmem:[#allocation37_spill] sm:$0xff] }
 0x406   :  { %v355_v22 = vadd.f32 %v12369_v15, %v12368_v35  ;;  %v12370_v35 = vld [vmem:[#allocation14_spill] sm:$0xff] }
 0x407   :  { %v2375_v21 = vadd.f32 %v2203_v63, %v326_v13 }
 0x408   :  { %v2262_v61 = vpop.f32.mrf.mxu2 }
 0x409   :  { %v2242_v59 = vpop.f32.mrf.mxu1  ;;  %v3824_v57 = vmul.f32 -1.442695, %v2375_v21  ;;  %v2263_v55 = vadd.f32 %v2262_v61, %v12367_v42 }
 0x40a   :  { %v2243_v26 = vadd.f32 %v2242_v59, %v2223_v45 }
 0x40b   :  { %v3976_v50 = vpop.eup %3975  ;;  %3977 = vpow2.f32 %v3824_v57 }
 0x40c   :  { %v2376_v43 = vadd.f32 %v2243_v26, %v180_v33  ;;  %v2390_v54 = vadd.f32 1.0, %v3976_v50 }
 0x40e   :  { %v3825_v24 = vmul.f32 -1.442695, %v2376_v43  ;;  %3979 = vrcp.f32 %v2390_v54  ;;  %vm2399_vm3 = vweird.f32 %v2390_v54 }
 0x40f   :  { %v2282_v39 = vpop.f32.mrf.mxu3 }
 0x410   :  { %3981 = vpow2.f32 %v3825_v24  ;;  %v2283_v7 = vadd.f32 %v2282_v39, %v2263_v55  ;;  %v2405_v55 = vand.u32 2147483648, %v2390_v54 }
 0x411   :  { %v3978_v13 = vpop.eup %3977 }
 0x412   :  { %v2377_v63 = vadd.f32 %v2283_v7, %v355_v22  ;;  %v2391_v17 = vadd.f32 1.0, %v3978_v13  ;;  %v2403_v22 = vand.u32 2147483647, %v2390_v54 }
 0x414   :  { %v3826_v21 = vmul.f32 -1.442695, %v2377_v63  ;;  %v3980_v45 = vpop.eup %3979  ;;  %3983 = vrcp.f32 %v2391_v17  ;;  %vm2404_vm5 = vcmp.eq.f32.partialorder %v2403_v22, 8.507059e+37  ;;  %vm2414_vm7 = vweird.f32 %v2391_v17 }
 0x415   :  { %v2395_v33 = vmul.f32 %v3980_v45, %v2390_v54  ;;  %vm2400_vm2 = vweird.f32 %v3980_v45  ;;  %v2420_v54 = vand.u32 2147483648, %v2391_v17 }
 0x416   :  { %v3982_v59 = vpop.eup %3981  ;;  %3985 = vpow2.f32 %v3826_v21  ;;  %vm2401_vm4 = vmor %vm2399_vm3, %vm2400_vm2 }
 0x417   :  { %v9279_v57 = vadd.f32 1.0, %v3982_v59  ;;  %v2396_v26 = vsub.f32 1.0, %v2395_v33  ;;  %v2406_v33 = vor.u32 1.1754944e-38, %v2405_v55 }
 0x419   :  { %3987 = vrcp.f32 %v9279_v57  ;;  %v2397_v61 = vmul.f32 %v3980_v45, %v2396_v26  ;;  %vm2429_vm11 = vweird.f32 %v9279_v57 }
 0x41a   :  { %v3984_v50 = vpop.eup %3983 }
 0x41b   :  { %v2398_v24 = vadd.f32 %v3980_v45, %v2397_v61  ;;  %v2410_v39 = vmul.f32 %v3984_v50, %v2391_v17  ;;  %vm2415_vm6 = vweird.f32 %v3984_v50 }
 0x41c   :  { %v3986_v43 = vpop.eup %3985  ;;  %v2302_v7 = vpop.f32.mrf.mxu0  ;;  %vm2416_vm8 = vmor %vm2414_vm7, %vm2415_vm6 }
 0x41d   :  { %v9282_v15 = vadd.f32 1.0, %v3986_v43  ;;  %v2411_v13 = vsub.f32 1.0, %v2410_v39  ;;  %v2402_v21 = vsel %vm2401_vm4, %v3980_v45, %v2398_v24  ;;  %v2303_v42 = vadd.f32 %v2302_v7, %v12370_v35  ;;  %v12371_v45 = vld [vmem:[#allocation25_spill] sm:$0xff]  ;;  %v12372_v35 = vld [vmem:[#allocation19_spill] sm:$0xff] }
 0x41e   :  { %v2407_v44 = vsel %vm2404_vm5, %v2406_v33, %v2402_v21  ;;  %v2418_v39 = vand.u32 2147483647, %v2391_v17  ;;  %v209_v24 = vadd.f32 %v12371_v45, %v6270_v2  ;;  %v2421_v7 = vor.u32 1.1754944e-38, %v2420_v54 }
 0x41f   :  { %v3988_v63 = vpop.eup %3987  ;;  %3989 = vrcp.f32 %v9282_v15  ;;  %v2412_v26 = vmul.f32 %v3984_v50, %v2411_v13  ;;  %v384_v45 = vadd.f32 %v12372_v35, %v6299_v23  ;;  %v2450_v35 = vand.u32 2147483648, %v9282_v15 }
 0x420   :  { %v2425_v59 = vmul.f32 %v3988_v63, %v9279_v57  ;;  %vm2419_vm9 = vcmp.eq.f32.partialorder %v2418_v39, 8.507059e+37  ;;  %vm2430_vm10 = vweird.f32 %v3988_v63  ;;  %vm2444_vm15 = vweird.f32 %v9282_v15 }
 0x421   :  { %v2413_v19 = vadd.f32 %v3984_v50, %v2412_v26  ;;  %vm2431_vm12 = vmor %vm2429_vm11, %vm2430_vm10 }
 0x422   :  { %v2426_v61 = vsub.f32 1.0, %v2425_v59  ;;  %v2322_v43 = vpop.f32.mrf.mxu1  ;;  %v2342_v1 = vpop.f32.mrf.mxu2 }
 0x423   :  { %v2323_v25 = vadd.f32 %v2322_v43, %v2303_v42  ;;  %v2417_v13 = vsel %vm2416_vm8, %v3984_v50, %v2413_v19  ;;  %v2343_v21 = vadd.f32 %v2342_v1, %v6284_v4  ;;  %v2433_v50 = vand.u32 2147483647, %v9279_v57 }
 0x424   :  { %v2427_v16 = vmul.f32 %v3988_v63, %v2426_v61  ;;  %v2422_v26 = vsel %vm2419_vm9, %v2421_v7, %v2417_v13 }
 0x425   :  { %v3990_v46 = vpop.eup %3989  ;;  %v2454_v55 = vmul.f32 %v2407_v44, %v2323_v25  ;;  %v2435_v25 = vand.u32 2147483648, %v9279_v57  ;;  %vm2434_vm14 = vcmp.eq.f32.partialorder %v2433_v50, 8.507059e+37  ;;  %v2473_v57 = vpop.permute.xlu2 %2472  ;;  %v9571_v50 = vld [vmem:[%s11072_s7 + $0x270] sm:$0xff] }
 0x426   :  { %v2440_v22 = vmul.f32 %v3990_v46, %v9282_v15  ;;  %v2428_v43 = vadd.f32 %v3988_v63, %v2427_v16  ;;  %vm2445_vm13 = vweird.f32 %v3990_v46  ;;  %vm2474_vm1 = vcmp.eq.s32.totalorder %v2473_v57, 1  ;;  %12377 = vst [vmem:[#allocation181_spill] sm:$0xff] %v9571_v50  ;;  %v9637_v57 = vld [vmem:[%s11072_s7 + $0x578] sm:$0xff] }
 0x427   :  { %v2456_v59 = vadd.f32 %v2454_v55, %v209_v24  ;;  %v2436_v39 = vor.u32 1.1754944e-38, %v2435_v25  ;;  %vm2446_vm0 = vmor %vm2444_vm15, %vm2445_vm13  ;;  %12388 = vst [vmem:[#allocation100_spill] sm:$0xff] %v9637_v57 }
 0x428   :  { %v2441_v33 = vsub.f32 1.0, %v2440_v22  ;;  %v2362_v42 = vpop.f32.mrf.mxu3  ;;  %v2432_v61 = vsel %vm2431_vm12, %v3988_v63, %v2428_v43  ;;  %v2448_v22 = vand.u32 2147483647, %v9282_v15  ;;  %v9312_v15 = vld [vmem:[%s11072_s7 + $0x2f0] sm:$0xff] }
 0x429   :  { %3991 = vtanh.f32 %v2456_v59  ;;  %v2363_v17 = vadd.f32 %v2362_v42, %v2343_v21  ;;  %v2437_v55 = vsel %vm2434_vm14, %v2436_v39, %v2432_v61  ;;  %v2451_v21 = vor.u32 1.1754944e-38, %v2450_v35  ;;  %v9583_v61 = vld [vmem:[%s11072_s7 + $0x5d0] sm:$0xff]  ;;  %v9595_v39 = vld [vmem:[%s11072_s7 + $0x240] sm:$0xff]  ;;  %v9613_v35 = vld [vmem:[%s11072_s7 + $0x5a8] sm:$0xff] }
 0x42a   :  { %v2442_v44 = vmul.f32 %v3990_v46, %v2441_v33  ;;  %vm2449_vm2 = vcmp.eq.f32.partialorder %v2448_v22, 8.507059e+37  ;;  %12379 = vst [vmem:[#allocation97_spill] sm:$0xff] %v9583_v61  ;;  %v9631_v22 = vld [vmem:[%s11072_s7 + $0x570] sm:$0xff] }
 0x42b   :  { %v2455_v19 = vmul.f32 %v2422_v26, %v2363_v17  ;;  %12381 = vst [vmem:[#allocation98_spill] sm:$0xff] %v9595_v39 }
 0x42c   :  { %v2443_v24 = vadd.f32 %v3990_v46, %v2442_v44  ;;  %v9363_v44 = vld [vmem:[%s11072_s7 + $0x5c0] sm:$0xff]  ;;  %12384 = vst [vmem:[#allocation15_spill] sm:$0xff] %v9613_v35 }
 0x42d   :  { %v2457_v1 = vadd.f32 %v2455_v19, %v384_v45  ;;  %v9319_v45 = vld [vmem:[%s11072_s7 + $0x2c0] sm:$0xff]  ;;  %v9326_v19 = vld [vmem:[%s11072_s7 + $0x290] sm:$0xff]  ;;  %12387 = vst [vmem:[#allocation28_spill] sm:$0xff] %v9631_v22 }
 0x42e   :  { %v2447_v63 = vsel %vm2446_vm0, %v3990_v46, %v2443_v24  ;;  %v9607_v24 = vld [vmem:[%s11072_s7 + $0x5a0] sm:$0xff] }
 0x42f   :  { %v3992_v54 = vpop.eup %3991  ;;  %3993 = vtanh.f32 %v2457_v1  ;;  %v2452_v17 = vsel %vm2449_vm2, %v2451_v21, %v2447_v63  ;;  %v9577_v1 = vld [vmem:[%s11072_s7 + $0x278] sm:$0xff]  ;;  %12383 = vst [vmem:[#allocation7_spill] sm:$0xff] %v9607_v24  ;;  %v9649_v63 = vld [vmem:[%s11072_s7 + $0x1e8] sm:$0xff] }
 0x430   :  { %v2460_v16 = vsub.f32 %v8887_v58, %v3992_v54  ;;  %12378 = vst [vmem:[#allocation182_spill] sm:$0xff] %v9577_v1  ;;  %v9661_v21 = vld [vmem:[%s11072_s7 + $0x548] sm:$0xff] }
 0x431   :  { %12390 = vst [vmem:[#allocation9_spill] sm:$0xff] %v9649_v63 }
 0x432   :  { %v2462_v13 = vmul.f32 %v2460_v16, %v2437_v55  ;;  %v9601_v16 = vld [vmem:[%s11072_s7 + $0x248] sm:$0xff]  ;;  %v9619_v55 = vld [vmem:[%s11072_s7 + $0x210] sm:$0xff]  ;;  %12392 = vst [vmem:[#allocation94_spill] sm:$0xff] %v9661_v21 }
 0x433   :  { %12382 = vst [vmem:[#allocation29_spill] sm:$0xff] %v9601_v16 }
 0x434   :  { %v2464_v7 = vadd.f32 %v3992_v54, %v2462_v13  ;;  %v9589_v54 = vld [vmem:[%s11072_s7 + $0x5d8] sm:$0xff]  ;;  %12385 = vst [vmem:[#allocation93_spill] sm:$0xff] %v9619_v55 }
 0x435   :  { %v3994_v59 = vpop.eup %3993  ;;  %12380 = vst [vmem:[#allocation24_spill] sm:$0xff] %v9589_v54  ;;  %v9625_v13 = vld [vmem:[%s11072_s7 + $0x218] sm:$0xff] }
 0x436   :  { %v2475_v33 = vsel %vm2474_vm1, %v2464_v7, 0.0  ;;  %v2461_v42 = vsub.f32 %v8916_v48, %v3994_v59  ;;  %v9302_v26 = vsel %vm2474_vm1, %v2464_v7, %v8887_v58  ;;  %v2481_v58 = vpop.permute.xlu0 %2480  ;;  %12386 = vst [vmem:[#allocation99_spill] sm:$0xff] %v9625_v13  ;;  %v9643_v7 = vld [vmem:[%s11072_s7 + $0x1e0] sm:$0xff] }
 0x437   :  { %3829 = vst [vmem:[%s11078_s11 + $0x20] sm:$0xff] %v2475_v33  ;;  %2508 = vmatmul.f32.vlgmr.msra.gmra.mxu0 %v9302_v26  ;;  %2548 = vmatmul.f32.vlgmr.msra.gmra.mxu2 %v9302_v26  ;;  %vm2482_vm3 = vcmp.eq.s32.totalorder %v2481_v58, 1  ;;  %v9667_v33 = vld [vmem:[%s11072_s7 + $0x1b0] sm:$0xff]  ;;  %v9691_v58 = vld [vmem:[%s11072_s7 + $0x180] sm:$0xff] }
 0x438   :  { %v2463_v46 = vmul.f32 %v2461_v42, %v2452_v17  ;;  %2652 = vmatpush.msra.mxu0 %v9312_v15  ;;  %2692 = vmatpush.msra.mxu2 %v8898_v34  ;;  %12389 = vst [vmem:[#allocation33_spill] sm:$0xff] %v9643_v7  ;;  %v9673_v42 = vld [vmem:[%s11072_s7 + $0x1b8] sm:$0xff]  ;;  %v9679_v17 = vld [vmem:[%s11072_s7 + $0x510] sm:$0xff] }
 0x439   :  { %12393 = vst [vmem:[#allocation50_spill] sm:$0xff] %v9667_v33 }
 0x43a   :  { %v2465_v43 = vadd.f32 %v3994_v59, %v2463_v46  ;;  %2653 = vmatpush.msra.mxu0 %v9319_v45  ;;  %2693 = vmatpush.msra.mxu2 %v8905_v47  ;;  %v9341_v47 = vld [vmem:[%s11072_s7 + $0x260] sm:$0xff]  ;;  %12394 = vst [vmem:[#allocation58_spill] sm:$0xff] %v9673_v42  ;;  %v9685_v46 = vld [vmem:[%s11072_s7 + $0x518] sm:$0xff] }
 0x43b   :  { %v9655_v59 = vld [vmem:[%s11072_s7 + $0x540] sm:$0xff]  ;;  %12395 = vst [vmem:[#allocation51_spill] sm:$0xff] %v9679_v17 }
 0x43c   :  { %v2483_v25 = vsel %vm2482_vm3, %v2465_v43, 0.0  ;;  %2654 = vmatpush.msra.mxu0 %v9326_v19  ;;  %2694 = vmatpush.msra.mxu2 %v8912_v49  ;;  %v9331_v34 = vsel %vm2482_vm3, %v2465_v43, %v8916_v48  ;;  %v9347_v49 = vld [vmem:[%s11072_s7 + $0x5f0] sm:$0xff]  ;;  %12391 = vst [vmem:[#allocation17_spill] sm:$0xff] %v9655_v59  ;;  %v9697_v43 = vld [vmem:[%s11072_s7 + $0x188] sm:$0xff] }
 0x43d   :  { %3830 = vst [vmem:[%s11079_s12 + $0x18] sm:$0xff] %v2483_v25  ;;  %2528 = vmatmul.f32.vlgmr.msra.gmra.mxu1 %v9331_v34  ;;  %2568 = vmatmul.f32.vlgmr.msra.gmra.mxu3 %v9331_v34  ;;  %v9357_v48 = vld [vmem:[%s11072_s7 + $0x230] sm:$0xff]  ;;  %v9703_v25 = vld [vmem:[%s11072_s7 + $0x4e0] sm:$0xff] }
 0x43e   :  { %2655 = vmatpush.msra.mxu0 %v9341_v47  ;;  %2672 = vmatpush.msra.mxu1 %v9347_v49  ;;  %12396 = vst [vmem:[#allocation34_spill] sm:$0xff] %v9685_v46 }
 0x43f   :  { %2695 = vmatpush.msra.mxu2 %v8928_v10  ;;  %2712 = vmatpush.msra.mxu3 %v8934_v31  ;;  %v9371_v10 = vld [vmem:[%s11072_s7 + $0x200] sm:$0xff]  ;;  %v9377_v31 = vld [vmem:[%s11072_s7 + $0x590] sm:$0xff]  ;;  %12397 = vst [vmem:[#allocation60_spill] sm:$0xff] %v9691_v58 }
 0x440   :  { %2588 = vmatmul.f32.vlgmr.msrb.gmra.mxu0 %v9302_v26  ;;  %2628 = vmatmul.f32.vlgmr.msrb.gmra.mxu2 %v9302_v26  ;;  %12398 = vst [vmem:[#allocation16_spill] sm:$0xff] %v9697_v43 }
 0x441   :  { %2656 = vmatpush.msra.mxu0 %v9357_v48  ;;  %2673 = vmatpush.msra.mxu1 %v9363_v44  ;;  %12399 = vst [vmem:[#allocation53_spill] sm:$0xff] %v9703_v25 }
 0x442   :  { %2696 = vmatpush.msra.mxu2 %v8944_v11  ;;  %2713 = vmatpush.msra.mxu3 %v8950_v5  ;;  %v9385_v11 = vld [vmem:[%s11072_s7 + $0x1d0] sm:$0xff]  ;;  %v9391_v5 = vld [vmem:[%s11072_s7 + $0x560] sm:$0xff] }
 0x443   :  { %2657 = vmatpush.msra.mxu0 %v9371_v10  ;;  %2674 = vmatpush.msra.mxu1 %v9377_v31 }
 0x444   :  { %2697 = vmatpush.msra.mxu2 %v8958_v27  ;;  %2714 = vmatpush.msra.mxu3 %v8964_v52  ;;  %v9401_v27 = vld [vmem:[%s11072_s7 + $0x1a0] sm:$0xff]  ;;  %v9407_v52 = vld [vmem:[%s11072_s7 + $0x530] sm:$0xff] }
 0x445   :  { %2658 = vmatpush.msra.mxu0 %v9385_v11  ;;  %2675 = vmatpush.msra.mxu1 %v9391_v5 }
 0x446   :  { %2698 = vmatpush.msra.mxu2 %v8972_v53  ;;  %2715 = vmatpush.msra.mxu3 %v8978_v8  ;;  %v9415_v53 = vld [vmem:[%s11072_s7 + $0x170] sm:$0xff]  ;;  %v9421_v8 = vld [vmem:[%s11072_s7 + $0x500] sm:$0xff] }
 0x447   :  { %2608 = vmatmul.f32.vlgmr.msrb.gmra.mxu1 %v9331_v34  ;;  %2648 = vmatmul.f32.vlgmr.msrb.gmra.mxu3 %v9331_v34 }
 0x448   :  { %2659 = vmatpush.msra.mxu0 %v9401_v27  ;;  %2676 = vmatpush.msra.mxu1 %v9407_v52 }
 0x449   :  { %2699 = vmatpush.msra.mxu2 %v8988_v0  ;;  %2716 = vmatpush.msra.mxu3 %v8994_v28  ;;  %v9429_v0 = vld [vmem:[%s11072_s7 + $0x140] sm:$0xff]  ;;  %v9435_v28 = vld [vmem:[%s11072_s7 + $0x4d0] sm:$0xff] }
 0x44a   :  { %2660 = vmatpush.msra.mxu0 %v9415_v53  ;;  %2677 = vmatpush.msra.mxu1 %v9421_v8 }
 0x44b   :  { %2700 = vmatpush.msra.mxu2 %v9002_v20  ;;  %2717 = vmatpush.msra.mxu3 %v9008_v9  ;;  %v9443_v20 = vld [vmem:[%s11072_s7 + $0x110] sm:$0xff]  ;;  %v9449_v9 = vld [vmem:[%s11072_s7 + $0x4a0] sm:$0xff] }
 0x44c   :  { %2661 = vmatpush.msra.mxu0 %v9429_v0  ;;  %2678 = vmatpush.msra.mxu1 %v9435_v28 }
 0x44d   :  { %2701 = vmatpush.msra.mxu2 %v9016_v36  ;;  %2718 = vmatpush.msra.mxu3 %v9022_v37  ;;  %v9457_v36 = vld [vmem:[%s11072_s7 + $0xe0] sm:$0xff]  ;;  %v9463_v37 = vld [vmem:[%s11072_s7 + $0x470] sm:$0xff] }
 0x44e   :  { %2662 = vmatpush.msra.mxu0 %v9443_v20  ;;  %2679 = vmatpush.msra.mxu1 %v9449_v9 }
 0x44f   :  { %2702 = vmatpush.msra.mxu2 %v9030_v12  ;;  %2719 = vmatpush.msra.mxu3 %v9036_v51  ;;  %v9471_v12 = vld [vmem:[%s11072_s7 + $0xb0] sm:$0xff]  ;;  %v9477_v51 = vld [vmem:[%s11072_s7 + $0x440] sm:$0xff] }
 0x450   :  { %2663 = vmatpush.msra.mxu0 %v9457_v36  ;;  %2680 = vmatpush.msra.mxu1 %v9463_v37 }
 0x451   :  { %2703 = vmatpush.msra.mxu2 %v9044_v32  ;;  %2720 = vmatpush.msra.mxu3 %v9050_v41  ;;  %v9485_v32 = vld [vmem:[%s11072_s7 + $0x80] sm:$0xff]  ;;  %v9491_v41 = vld [vmem:[%s11072_s7 + $0x410] sm:$0xff] }
 0x452   :  { %2664 = vmatpush.msra.mxu0 %v9471_v12  ;;  %2681 = vmatpush.msra.mxu1 %v9477_v51 }
 0x453   :  { %2704 = vmatpush.msra.mxu2 %v9058_v6  ;;  %2721 = vmatpush.msra.mxu3 %v9064_v3  ;;  %v9499_v6 = vld [vmem:[%s11072_s7 + $0x50] sm:$0xff]  ;;  %v9505_v3 = vld [vmem:[%s11072_s7 + $0x3e0] sm:$0xff] }
 0x454   :  { %2665 = vmatpush.msra.mxu0 %v9485_v32  ;;  %2682 = vmatpush.msra.mxu1 %v9491_v41 }
 0x455   :  { %2705 = vmatpush.msra.mxu2 %v9072_v60  ;;  %2722 = vmatpush.msra.mxu3 %v9078_v56  ;;  %v9514_v60 = vld [vmem:[%s11072_s7 + $0x3b0] sm:$0xff]  ;;  %v9524_v56 = vld [vmem:[%s11072_s7 + $0x380] sm:$0xff] }
 0x456   :  { %2666 = vmatpush.msra.mxu0 %v9499_v6  ;;  %2683 = vmatpush.msra.mxu1 %v9505_v3 }
 0x457   :  { %2706 = vmatpush.msra.mxu2 %v9086_v30  ;;  %2723 = vmatpush.msra.mxu3 %v9092_v40  ;;  %v9531_v30 = vld [vmem:[%s11072_s7 + $0x2d0] sm:$0xff]  ;;  %v9537_v40 = vld [vmem:[%s11072_s7 + $0x2d8] sm:$0xff] }
 0x458   :  { %2667 = vmatpush.msra.mxu0 %v9098_v62  ;;  %2684 = vmatpush.msra.mxu1 %v9514_v60  ;;  %v9543_v62 = vld [vmem:[%s11072_s7 + $0x350] sm:$0xff] }
 0x459   :  { %2707 = vmatpush.msra.mxu2 %v9105_v18  ;;  %2724 = vmatpush.msra.mxu3 %v9111_v38  ;;  %v9550_v18 = vld [vmem:[%s11072_s7 + $0x2a0] sm:$0xff]  ;;  %v9556_v38 = vld [vmem:[%s11072_s7 + $0x2a8] sm:$0xff] }
 0x45a   :  { %2668 = vmatmul.f32.vlgmr.msra.gmra.mxu0 %v9302_v26  ;;  %2708 = vmatmul.f32.vlgmr.msra.gmra.mxu2 %v9302_v26  ;;  %12373 = vst [vmem:[#allocation178_spill] sm:$0xff] %v9550_v18 }
 0x45b   :  { %2685 = vmatpush.msra.mxu1 %v9524_v56  ;;  %2725 = vmatpush.msra.mxu3 %v9120_v29  ;;  %12374 = vst [vmem:[#allocation179_spill] sm:$0xff] %v9556_v38  ;;  %v9562_v29 = vld [vmem:[%s11072_s7 + $0x320] sm:$0xff] }
 0x45c   :  { %2859 = vmatpush.msrb.mxu0 %v9531_v30  ;;  %2899 = vmatpush.msrb.mxu2 %v9537_v40  ;;  %12375 = vst [vmem:[#allocation180_spill] sm:$0xff] %v9562_v29 }
 0x45d   :  { %2686 = vmatpush.msra.mxu1 %v9543_v62  ;;  %2726 = vmatpush.msra.mxu3 %v9129_v14  ;;  %v12376_v14 = vld [vmem:[#allocation177_spill] sm:$0xff] }
 0x45e   :  { %2860 = vmatpush.msrb.mxu0 %v9550_v18  ;;  %2900 = vmatpush.msrb.mxu2 %v9556_v38 }
 0x45f   :  { %2687 = vmatpush.msra.mxu1 %v9562_v29  ;;  %2727 = vmatpush.msra.mxu3 %v12376_v14  ;;  %v9709_v14 = vld [vmem:[%s11072_s7 + $0x4e8] sm:$0xff] }
 0x460   :  { %2688 = vmatmul.f32.vlgmr.msra.gmra.mxu1 %v9331_v34  ;;  %2728 = vmatmul.f32.vlgmr.msra.gmra.mxu3 %v9331_v34  ;;  %12400 = vst [vmem:[#allocation61_spill] sm:$0xff] %v9709_v14 }
 0x461   :  { %2861 = vmatpush.msrb.mxu0 %v9571_v50  ;;  %2901 = vmatpush.msrb.mxu2 %v9577_v1  ;;  %v12509_v1 = vld [vmem:[#allocation11_spill] sm:$0xff] }
 0x462   :  { %2879 = vmatpush.msrb.mxu1 %v9583_v61  ;;  %2919 = vmatpush.msrb.mxu3 %v9589_v54  ;;  %v12508_v61 = vld [vmem:[#allocation49_spill] sm:$0xff] }
 0x463   :  { %2862 = vmatpush.msrb.mxu0 %v9595_v39  ;;  %2902 = vmatpush.msrb.mxu2 %v9601_v16  ;;  %v12507_v39 = vld [vmem:[#allocation46_spill] sm:$0xff] }
 0x464   :  { %2880 = vmatpush.msrb.mxu1 %v9607_v24  ;;  %2920 = vmatpush.msrb.mxu3 %v9613_v35  ;;  %v12505_v35 = vld [vmem:[#allocation26_spill] sm:$0xff]  ;;  %v12506_v24 = vld [vmem:[#allocation32_spill] sm:$0xff] }
 0x465   :  { %2863 = vmatpush.msrb.mxu0 %v9619_v55  ;;  %2903 = vmatpush.msrb.mxu2 %v9625_v13  ;;  %v328_v16 = vadd.f32 %v12506_v24, %v12505_v35 }
 0x466   :  { %2881 = vmatpush.msrb.mxu1 %v9631_v22  ;;  %2921 = vmatpush.msrb.mxu3 %v9637_v57  ;;  %v12504_v22 = vld [vmem:[#allocation10_spill] sm:$0xff] }
 0x467   :  { %2864 = vmatpush.msrb.mxu0 %v9643_v7  ;;  %2904 = vmatpush.msrb.mxu2 %v9649_v63 }
 0x468   :  { %2882 = vmatpush.msrb.mxu1 %v9655_v59  ;;  %2922 = vmatpush.msrb.mxu3 %v9661_v21 }
 0x469   :  { %2865 = vmatpush.msrb.mxu0 %v9667_v33  ;;  %2905 = vmatpush.msrb.mxu2 %v9673_v42  ;;  %v12502_v33 = vld [vmem:[#allocation43_spill] sm:$0xff] }
 0x46a   :  { %2883 = vmatpush.msrb.mxu1 %v9679_v17  ;;  %2923 = vmatpush.msrb.mxu3 %v9685_v46  ;;  %v12501_v46 = vld [vmem:[#allocation8_spill] sm:$0xff] }
 0x46b   :  { %2866 = vmatpush.msrb.mxu0 %v9691_v58  ;;  %2906 = vmatpush.msrb.mxu2 %v9697_v43  ;;  %v9715_v58 = vld [vmem:[%s11072_s7 + $0x150] sm:$0xff]  ;;  %v9721_v43 = vld [vmem:[%s11072_s7 + $0x158] sm:$0xff] }
 0x46c   :  { %2884 = vmatpush.msrb.mxu1 %v9703_v25  ;;  %2924 = vmatpush.msrb.mxu3 %v9709_v14  ;;  %12401 = vst [vmem:[#allocation31_spill] sm:$0xff] %v9715_v58  ;;  %v9727_v25 = vld [vmem:[%s11072_s7 + $0x4b0] sm:$0xff]  ;;  %v9733_v14 = vld [vmem:[%s11072_s7 + $0x4b8] sm:$0xff] }
 0x46d   :  { %2867 = vmatpush.msrb.mxu0 %v9715_v58  ;;  %12402 = vst [vmem:[#allocation38_spill] sm:$0xff] %v9721_v43  ;;  %2907 = vmatpush.msrb.mxu2 %v9721_v43  ;;  %v9739_v58 = vld [vmem:[%s11072_s7 + $0x120] sm:$0xff]  ;;  %v9745_v43 = vld [vmem:[%s11072_s7 + $0x128] sm:$0xff] }
 0x46e   :  { %12403 = vst [vmem:[#allocation18_spill] sm:$0xff] %v9727_v25  ;;  %2885 = vmatpush.msrb.mxu1 %v9727_v25  ;;  %2925 = vmatpush.msrb.mxu3 %v9733_v14  ;;  %v9751_v25 = vld [vmem:[%s11072_s7 + $0x480] sm:$0xff] }
 0x46f   :  { %12404 = vst [vmem:[#allocation57_spill] sm:$0xff] %v9733_v14  ;;  %2868 = vmatpush.msrb.mxu0 %v9739_v58  ;;  %2908 = vmatpush.msrb.mxu2 %v9745_v43  ;;  %v9757_v14 = vld [vmem:[%s11072_s7 + $0x488] sm:$0xff] }
 0x470   :  { %12405 = vst [vmem:[#allocation63_spill] sm:$0xff] %v9739_v58  ;;  %2886 = vmatpush.msrb.mxu1 %v9751_v25  ;;  %2926 = vmatpush.msrb.mxu3 %v9757_v14  ;;  %v9763_v58 = vld [vmem:[%s11072_s7 + $0xf0] sm:$0xff] }
 0x471   :  { %12406 = vst [vmem:[#allocation54_spill] sm:$0xff] %v9745_v43  ;;  %2869 = vmatpush.msrb.mxu0 %v9763_v58  ;;  %v9769_v43 = vld [vmem:[%s11072_s7 + $0xf8] sm:$0xff] }
 0x472   :  { %12407 = vst [vmem:[#allocation55_spill] sm:$0xff] %v9751_v25  ;;  %2909 = vmatpush.msrb.mxu2 %v9769_v43  ;;  %v9775_v25 = vld [vmem:[%s11072_s7 + $0x450] sm:$0xff] }
 0x473   :  { %12408 = vst [vmem:[#allocation64_spill] sm:$0xff] %v9757_v14  ;;  %2887 = vmatpush.msrb.mxu1 %v9775_v25  ;;  %v9781_v14 = vld [vmem:[%s11072_s7 + $0x458] sm:$0xff] }
 0x474   :  { %12409 = vst [vmem:[#allocation39_spill] sm:$0xff] %v9763_v58  ;;  %2927 = vmatpush.msrb.mxu3 %v9781_v14  ;;  %v9787_v58 = vld [vmem:[%s11072_s7 + $0xc0] sm:$0xff] }
 0x475   :  { %12410 = vst [vmem:[#allocation20_spill] sm:$0xff] %v9769_v43  ;;  %2870 = vmatpush.msrb.mxu0 %v9787_v58  ;;  %v9793_v43 = vld [vmem:[%s11072_s7 + $0xc8] sm:$0xff] }
 0x476   :  { %12411 = vst [vmem:[#allocation56_spill] sm:$0xff] %v9775_v25  ;;  %2910 = vmatpush.msrb.mxu2 %v9793_v43  ;;  %v9799_v25 = vld [vmem:[%s11072_s7 + $0x420] sm:$0xff] }
 0x477   :  { %12412 = vst [vmem:[#allocation67_spill] sm:$0xff] %v9781_v14  ;;  %2888 = vmatpush.msrb.mxu1 %v9799_v25  ;;  %v9805_v14 = vld [vmem:[%s11072_s7 + $0x428] sm:$0xff] }
 0x478   :  { %12413 = vst [vmem:[#allocation68_spill] sm:$0xff] %v9787_v58  ;;  %2928 = vmatpush.msrb.mxu3 %v9805_v14  ;;  %v9811_v58 = vld [vmem:[%s11072_s7 + $0x90] sm:$0xff] }
 0x479   :  { %12414 = vst [vmem:[#allocation23_spill] sm:$0xff] %v9793_v43  ;;  %2871 = vmatpush.msrb.mxu0 %v9811_v58  ;;  %v9817_v43 = vld [vmem:[%s11072_s7 + $0x98] sm:$0xff] }
 0x47a   :  { %12415 = vst [vmem:[#allocation59_spill] sm:$0xff] %v9799_v25  ;;  %2911 = vmatpush.msrb.mxu2 %v9817_v43  ;;  %v9823_v25 = vld [vmem:[%s11072_s7 + $0x3f0] sm:$0xff] }
 0x47b   :  { %12416 = vst [vmem:[#allocation70_spill] sm:$0xff] %v9805_v14  ;;  %2889 = vmatpush.msrb.mxu1 %v9823_v25  ;;  %v9829_v14 = vld [vmem:[%s11072_s7 + $0x3f8] sm:$0xff] }
 0x47c   :  { %12417 = vst [vmem:[#allocation72_spill] sm:$0xff] %v9811_v58  ;;  %2929 = vmatpush.msrb.mxu3 %v9829_v14  ;;  %v9835_v58 = vld [vmem:[%s11072_s7 + $0x60] sm:$0xff] }
 0x47d   :  { %12418 = vst [vmem:[#allocation27_spill] sm:$0xff] %v9817_v43  ;;  %2872 = vmatpush.msrb.mxu0 %v9835_v58  ;;  %v9841_v43 = vld [vmem:[%s11072_s7 + $0x68] sm:$0xff] }
 0x47e   :  { %12419 = vst [vmem:[#allocation62_spill] sm:$0xff] %v9823_v25  ;;  %2912 = vmatpush.msrb.mxu2 %v9841_v43  ;;  %v9847_v25 = vld [vmem:[%s11072_s7 + $0x3c0] sm:$0xff] }
 0x47f   :  { %12420 = vst [vmem:[#allocation52_spill] sm:$0xff] %v9829_v14  ;;  %2890 = vmatpush.msrb.mxu1 %v9847_v25  ;;  %v9853_v14 = vld [vmem:[%s11072_s7 + $0x3c8] sm:$0xff] }
 0x480   :  { %12421 = vst [vmem:[#allocation74_spill] sm:$0xff] %v9835_v58  ;;  %2930 = vmatpush.msrb.mxu3 %v9853_v14  ;;  %v9859_v58 = vld [vmem:[%s11072_s7 + $0x30] sm:$0xff] }
 0x481   :  { %12422 = vst [vmem:[#allocation35_spill] sm:$0xff] %v9841_v43  ;;  %2873 = vmatpush.msrb.mxu0 %v9859_v58  ;;  %v9865_v43 = vld [vmem:[%s11072_s7 + $0x38] sm:$0xff] }
 0x482   :  { %12423 = vst [vmem:[#allocation65_spill] sm:$0xff] %v9847_v25  ;;  %2913 = vmatpush.msrb.mxu2 %v9865_v43  ;;  %v9871_v25 = vld [vmem:[%s11072_s7 + $0x390] sm:$0xff] }
 0x483   :  { %12424 = vst [vmem:[#allocation76_spill] sm:$0xff] %v9853_v14  ;;  %2891 = vmatpush.msrb.mxu1 %v9871_v25  ;;  %v9877_v14 = vld [vmem:[%s11072_s7 + $0x398] sm:$0xff] }
 0x484   :  { %12425 = vst [vmem:[#allocation78_spill] sm:$0xff] %v9859_v58  ;;  %2931 = vmatpush.msrb.mxu3 %v9877_v14  ;;  %v9883_v58 = vld [vmem:[%s11072_s7] sm:$0xff] }
 0x485   :  { %12426 = vst [vmem:[#allocation66_spill] sm:$0xff] %v9865_v43  ;;  %2874 = vmatpush.msrb.mxu0 %v9883_v58  ;;  %v9889_v43 = vld [vmem:[%s11072_s7 + $0x8] sm:$0xff] }
 0x486   :  { %12427 = vst [vmem:[#allocation42_spill] sm:$0xff] %v9871_v25  ;;  %2914 = vmatpush.msrb.mxu2 %v9889_v43  ;;  %v9895_v25 = vld [vmem:[%s11072_s7 + $0x2e0] sm:$0xff] }
 0x487   :  { %12428 = vst [vmem:[#allocation79_spill] sm:$0xff] %v9877_v14  ;;  %2939 = vmatpush.msra.mxu0 %v9895_v25  ;;  %v9901_v14 = vld [vmem:[%s11072_s7 + $0x2e8] sm:$0xff] }
 0x488   :  { %12429 = vst [vmem:[#allocation82_spill] sm:$0xff] %v9883_v58  ;;  %2979 = vmatpush.msra.mxu2 %v9901_v14  ;;  %v9907_v58 = vld [vmem:[%s11072_s7 + $0x360] sm:$0xff] }
 0x489   :  { %12430 = vst [vmem:[#allocation71_spill] sm:$0xff] %v9889_v43  ;;  %2892 = vmatpush.msrb.mxu1 %v9907_v58  ;;  %v9913_v43 = vld [vmem:[%s11072_s7 + $0x368] sm:$0xff] }
 0x48a   :  { %12431 = vst [vmem:[#allocation73_spill] sm:$0xff] %v9895_v25  ;;  %2932 = vmatpush.msrb.mxu3 %v9913_v43  ;;  %v9919_v25 = vld [vmem:[%s11072_s7 + $0x2b0] sm:$0xff] }
 0x48b   :  { %12432 = vst [vmem:[#allocation84_spill] sm:$0xff] %v9901_v14  ;;  %2940 = vmatpush.msra.mxu0 %v9919_v25  ;;  %v9925_v14 = vld [vmem:[%s11072_s7 + $0x2b8] sm:$0xff] }
 0x48c   :  { %12433 = vst [vmem:[#allocation86_spill] sm:$0xff] %v9907_v58  ;;  %2980 = vmatpush.msra.mxu2 %v9925_v14  ;;  %v9931_v58 = vld [vmem:[%s11072_s7 + $0x330] sm:$0xff] }
 0x48d   :  { %12434 = vst [vmem:[#allocation75_spill] sm:$0xff] %v9913_v43  ;;  %2893 = vmatpush.msrb.mxu1 %v9931_v58  ;;  %v9937_v43 = vld [vmem:[%s11072_s7 + $0x338] sm:$0xff] }
 0x48e   :  { %12435 = vst [vmem:[#allocation77_spill] sm:$0xff] %v9919_v25  ;;  %2933 = vmatpush.msrb.mxu3 %v9937_v43  ;;  %v9943_v25 = vld [vmem:[%s11072_s7 + $0x280] sm:$0xff] }
 0x48f   :  { %12436 = vst [vmem:[#allocation69_spill] sm:$0xff] %v9925_v14  ;;  %2941 = vmatpush.msra.mxu0 %v9943_v25  ;;  %v9949_v14 = vld [vmem:[%s11072_s7 + $0x288] sm:$0xff] }
 0x490   :  { %12437 = vst [vmem:[#allocation80_spill] sm:$0xff] %v9931_v58  ;;  %2981 = vmatpush.msra.mxu2 %v9949_v14  ;;  %v9955_v58 = vld [vmem:[%s11072_s7 + $0x300] sm:$0xff] }
 0x491   :  { %12438 = vst [vmem:[#allocation89_spill] sm:$0xff] %v9937_v43  ;;  %2894 = vmatpush.msrb.mxu1 %v9955_v58  ;;  %v9961_v43 = vld [vmem:[%s11072_s7 + $0x308] sm:$0xff] }
 0x492   :  { %12439 = vst [vmem:[#allocation81_spill] sm:$0xff] %v9943_v25  ;;  %2934 = vmatpush.msrb.mxu3 %v9961_v43  ;;  %v9967_v25 = vld [vmem:[%s11072_s7 + $0x250] sm:$0xff] }
 0x493   :  { %12440 = vst [vmem:[#allocation103_spill] sm:$0xff] %v9949_v14  ;;  %2942 = vmatpush.msra.mxu0 %v9967_v25  ;;  %v9973_v14 = vld [vmem:[%s11072_s7 + $0x5e0] sm:$0xff] }
 0x494   :  { %12441 = vst [vmem:[#allocation83_spill] sm:$0xff] %v9955_v58  ;;  %2959 = vmatpush.msra.mxu1 %v9973_v14  ;;  %v9979_v58 = vld [vmem:[%s11072_s7 + $0x258] sm:$0xff] }
 0x495   :  { %12442 = vst [vmem:[#allocation105_spill] sm:$0xff] %v9961_v43  ;;  %2982 = vmatpush.msra.mxu2 %v9979_v58  ;;  %v9985_v43 = vld [vmem:[%s11072_s7 + $0x5e8] sm:$0xff] }
 0x496   :  { %12443 = vst [vmem:[#allocation85_spill] sm:$0xff] %v9967_v25  ;;  %2999 = vmatpush.msra.mxu3 %v9985_v43  ;;  %v9991_v25 = vld [vmem:[%s11072_s7 + $0x220] sm:$0xff] }
 0x497   :  { %12444 = vst [vmem:[#allocation107_spill] sm:$0xff] %v9973_v14  ;;  %2943 = vmatpush.msra.mxu0 %v9991_v25  ;;  %v9997_v14 = vld [vmem:[%s11072_s7 + $0x5b0] sm:$0xff] }
 0x498   :  { %12445 = vst [vmem:[#allocation87_spill] sm:$0xff] %v9979_v58  ;;  %2960 = vmatpush.msra.mxu1 %v9997_v14  ;;  %v10003_v58 = vld [vmem:[%s11072_s7 + $0x228] sm:$0xff] }
 0x499   :  { %12446 = vst [vmem:[#allocation109_spill] sm:$0xff] %v9985_v43  ;;  %2983 = vmatpush.msra.mxu2 %v10003_v58  ;;  %v10009_v43 = vld [vmem:[%s11072_s7 + $0x5b8] sm:$0xff] }
 0x49a   :  { %12447 = vst [vmem:[#allocation88_spill] sm:$0xff] %v9991_v25  ;;  %3000 = vmatpush.msra.mxu3 %v10009_v43  ;;  %v10015_v25 = vld [vmem:[%s11072_s7 + $0x1f0] sm:$0xff] }
 0x49b   :  { %12448 = vst [vmem:[#allocation111_spill] sm:$0xff] %v9997_v14  ;;  %2944 = vmatpush.msra.mxu0 %v10015_v25  ;;  %v10021_v14 = vld [vmem:[%s11072_s7 + $0x580] sm:$0xff] }
 0x49c   :  { %12449 = vst [vmem:[#allocation90_spill] sm:$0xff] %v10003_v58  ;;  %2961 = vmatpush.msra.mxu1 %v10021_v14  ;;  %v10027_v58 = vld [vmem:[%s11072_s7 + $0x1f8] sm:$0xff] }
 0x49d   :  { %12450 = vst [vmem:[#allocation113_spill] sm:$0xff] %v10009_v43  ;;  %2984 = vmatpush.msra.mxu2 %v10027_v58  ;;  %v10033_v43 = vld [vmem:[%s11072_s7 + $0x588] sm:$0xff] }
 0x49e   :  { %12451 = vst [vmem:[#allocation104_spill] sm:$0xff] %v10015_v25  ;;  %3001 = vmatpush.msra.mxu3 %v10033_v43  ;;  %v10039_v25 = vld [vmem:[%s11072_s7 + $0x1c0] sm:$0xff] }
 0x49f   :  { %12452 = vst [vmem:[#allocation115_spill] sm:$0xff] %v10021_v14  ;;  %2945 = vmatpush.msra.mxu0 %v10039_v25  ;;  %v10045_v14 = vld [vmem:[%s11072_s7 + $0x550] sm:$0xff] }
 0x4a0   :  { %12453 = vst [vmem:[#allocation106_spill] sm:$0xff] %v10027_v58  ;;  %2962 = vmatpush.msra.mxu1 %v10045_v14  ;;  %v10051_v58 = vld [vmem:[%s11072_s7 + $0x1c8] sm:$0xff] }
 0x4a1   :  { %12454 = vst [vmem:[#allocation117_spill] sm:$0xff] %v10033_v43  ;;  %2985 = vmatpush.msra.mxu2 %v10051_v58  ;;  %v10057_v43 = vld [vmem:[%s11072_s7 + $0x558] sm:$0xff] }
 0x4a2   :  { %12455 = vst [vmem:[#allocation108_spill] sm:$0xff] %v10039_v25  ;;  %3002 = vmatpush.msra.mxu3 %v10057_v43  ;;  %v10063_v25 = vld [vmem:[%s11072_s7 + $0x190] sm:$0xff] }
 0x4a3   :  { %12456 = vst [vmem:[#allocation110_spill] sm:$0xff] %v10045_v14  ;;  %2946 = vmatpush.msra.mxu0 %v10063_v25  ;;  %v10069_v14 = vld [vmem:[%s11072_s7 + $0x520] sm:$0xff] }
 0x4a4   :  { %12457 = vst [vmem:[#allocation119_spill] sm:$0xff] %v10051_v58  ;;  %2963 = vmatpush.msra.mxu1 %v10069_v14  ;;  %v10075_v58 = vld [vmem:[%s11072_s7 + $0x198] sm:$0xff] }
 0x4a5   :  { %12458 = vst [vmem:[#allocation121_spill] sm:$0xff] %v10057_v43  ;;  %2986 = vmatpush.msra.mxu2 %v10075_v58  ;;  %v10081_v43 = vld [vmem:[%s11072_s7 + $0x528] sm:$0xff] }
 0x4a6   :  { %12459 = vst [vmem:[#allocation112_spill] sm:$0xff] %v10063_v25  ;;  %3003 = vmatpush.msra.mxu3 %v10081_v43  ;;  %v10087_v25 = vld [vmem:[%s11072_s7 + $0x160] sm:$0xff] }
 0x4a7   :  { %12460 = vst [vmem:[#allocation114_spill] sm:$0xff] %v10069_v14  ;;  %2947 = vmatpush.msra.mxu0 %v10087_v25  ;;  %v10093_v14 = vld [vmem:[%s11072_s7 + $0x4f0] sm:$0xff] }
 0x4a8   :  { %12461 = vst [vmem:[#allocation123_spill] sm:$0xff] %v10075_v58  ;;  %2964 = vmatpush.msra.mxu1 %v10093_v14  ;;  %v10099_v58 = vld [vmem:[%s11072_s7 + $0x168] sm:$0xff] }
 0x4a9   :  { %12462 = vst [vmem:[#allocation125_spill] sm:$0xff] %v10081_v43  ;;  %2987 = vmatpush.msra.mxu2 %v10099_v58  ;;  %v10105_v43 = vld [vmem:[%s11072_s7 + $0x4f8] sm:$0xff] }
 0x4aa   :  { %12463 = vst [vmem:[#allocation116_spill] sm:$0xff] %v10087_v25  ;;  %3004 = vmatpush.msra.mxu3 %v10105_v43  ;;  %v10111_v25 = vld [vmem:[%s11072_s7 + $0x130] sm:$0xff] }
 0x4ab   :  { %12464 = vst [vmem:[#allocation118_spill] sm:$0xff] %v10093_v14  ;;  %2948 = vmatpush.msra.mxu0 %v10111_v25  ;;  %v10117_v14 = vld [vmem:[%s11072_s7 + $0x4c0] sm:$0xff] }
 0x4ac   :  { %12465 = vst [vmem:[#allocation127_spill] sm:$0xff] %v10099_v58  ;;  %2965 = vmatpush.msra.mxu1 %v10117_v14  ;;  %v10123_v58 = vld [vmem:[%s11072_s7 + $0x138] sm:$0xff] }
 0x4ad   :  { %12466 = vst [vmem:[#allocation129_spill] sm:$0xff] %v10105_v43  ;;  %2988 = vmatpush.msra.mxu2 %v10123_v58  ;;  %v10129_v43 = vld [vmem:[%s11072_s7 + $0x4c8] sm:$0xff] }
 0x4ae   :  { %12467 = vst [vmem:[#allocation120_spill] sm:$0xff] %v10111_v25  ;;  %3005 = vmatpush.msra.mxu3 %v10129_v43  ;;  %v10135_v25 = vld [vmem:[%s11072_s7 + $0x100] sm:$0xff] }
 0x4af   :  { %12468 = vst [vmem:[#allocation130_spill] sm:$0xff] %v10117_v14  ;;  %2949 = vmatpush.msra.mxu0 %v10135_v25  ;;  %v10141_v14 = vld [vmem:[%s11072_s7 + $0x490] sm:$0xff] }
 0x4b0   :  { %12469 = vst [vmem:[#allocation122_spill] sm:$0xff] %v10123_v58  ;;  %2966 = vmatpush.msra.mxu1 %v10141_v14  ;;  %v10147_v58 = vld [vmem:[%s11072_s7 + $0x108] sm:$0xff] }
 0x4b1   :  { %12470 = vst [vmem:[#allocation131_spill] sm:$0xff] %v10129_v43  ;;  %2989 = vmatpush.msra.mxu2 %v10147_v58  ;;  %v10153_v43 = vld [vmem:[%s11072_s7 + $0x498] sm:$0xff] }
 0x4b2   :  { %12471 = vst [vmem:[#allocation124_spill] sm:$0xff] %v10135_v25  ;;  %3006 = vmatpush.msra.mxu3 %v10153_v43  ;;  %v10159_v25 = vld [vmem:[%s11072_s7 + $0xd0] sm:$0xff] }
 0x4b3   :  { %12472 = vst [vmem:[#allocation133_spill] sm:$0xff] %v10141_v14  ;;  %2950 = vmatpush.msra.mxu0 %v10159_v25  ;;  %v10165_v14 = vld [vmem:[%s11072_s7 + $0x460] sm:$0xff] }
 0x4b4   :  { %12473 = vst [vmem:[#allocation126_spill] sm:$0xff] %v10147_v58  ;;  %2967 = vmatpush.msra.mxu1 %v10165_v14  ;;  %v10171_v58 = vld [vmem:[%s11072_s7 + $0xd8] sm:$0xff] }
 0x4b5   :  { %12474 = vst [vmem:[#allocation135_spill] sm:$0xff] %v10153_v43  ;;  %2990 = vmatpush.msra.mxu2 %v10171_v58  ;;  %v10177_v43 = vld [vmem:[%s11072_s7 + $0x468] sm:$0xff] }
 0x4b6   :  { %12475 = vst [vmem:[#allocation128_spill] sm:$0xff] %v10159_v25  ;;  %3007 = vmatpush.msra.mxu3 %v10177_v43  ;;  %v10183_v25 = vld [vmem:[%s11072_s7 + $0xa0] sm:$0xff] }
 0x4b7   :  { %12476 = vst [vmem:[#allocation137_spill] sm:$0xff] %v10165_v14  ;;  %2951 = vmatpush.msra.mxu0 %v10183_v25  ;;  %v10189_v14 = vld [vmem:[%s11072_s7 + $0x430] sm:$0xff] }
 0x4b8   :  { %12477 = vst [vmem:[#allocation132_spill] sm:$0xff] %v10171_v58  ;;  %2968 = vmatpush.msra.mxu1 %v10189_v14  ;;  %v10195_v58 = vld [vmem:[%s11072_s7 + $0xa8] sm:$0xff] }
 0x4b9   :  { %12478 = vst [vmem:[#allocation139_spill] sm:$0xff] %v10177_v43  ;;  %2991 = vmatpush.msra.mxu2 %v10195_v58  ;;  %v10201_v43 = vld [vmem:[%s11072_s7 + $0x438] sm:$0xff] }
 0x4ba   :  { %12479 = vst [vmem:[#allocation134_spill] sm:$0xff] %v10183_v25  ;;  %3008 = vmatpush.msra.mxu3 %v10201_v43  ;;  %v10207_v25 = vld [vmem:[%s11072_s7 + $0x70] sm:$0xff]  ;;  %v2529_v42 = vpop.f32.mrf.mxu1  ;;  %v2549_v63 = vpop.f32.mrf.mxu2 }
 0x4bb   :  { %12480 = vst [vmem:[#allocation141_spill] sm:$0xff] %v10189_v14  ;;  %2952 = vmatpush.msra.mxu0 %v10207_v25  ;;  %v10213_v14 = vld [vmem:[%s11072_s7 + $0x400] sm:$0xff] }
 0x4bc   :  { %12481 = vst [vmem:[#allocation136_spill] sm:$0xff] %v10195_v58  ;;  %2969 = vmatpush.msra.mxu1 %v10213_v14  ;;  %v10219_v58 = vld [vmem:[%s11072_s7 + $0x78] sm:$0xff] }
 0x4bd   :  { %12482 = vst [vmem:[#allocation143_spill] sm:$0xff] %v10201_v43  ;;  %2992 = vmatpush.msra.mxu2 %v10219_v58  ;;  %v10225_v43 = vld [vmem:[%s11072_s7 + $0x408] sm:$0xff] }
 0x4be   :  { %12483 = vst [vmem:[#allocation138_spill] sm:$0xff] %v10207_v25  ;;  %3009 = vmatpush.msra.mxu3 %v10225_v43  ;;  %v10231_v25 = vld [vmem:[%s11072_s7 + $0x40] sm:$0xff] }
 0x4bf   :  { %12484 = vst [vmem:[#allocation145_spill] sm:$0xff] %v10213_v14  ;;  %2953 = vmatpush.msra.mxu0 %v10231_v25  ;;  %v10237_v14 = vld [vmem:[%s11072_s7 + $0x3d0] sm:$0xff] }
 0x4c0   :  { %12485 = vst [vmem:[#allocation140_spill] sm:$0xff] %v10219_v58  ;;  %2970 = vmatpush.msra.mxu1 %v10237_v14  ;;  %v10243_v58 = vld [vmem:[%s11072_s7 + $0x48] sm:$0xff]  ;;  %v2569_v55 = vpop.f32.mrf.mxu3 }
 0x4c1   :  { %12486 = vst [vmem:[#allocation147_spill] sm:$0xff] %v10225_v43  ;;  %2993 = vmatpush.msra.mxu2 %v10243_v58  ;;  %v10249_v43 = vld [vmem:[%s11072_s7 + $0x3d8] sm:$0xff] }
 0x4c2   :  { %12487 = vst [vmem:[#allocation142_spill] sm:$0xff] %v10231_v25  ;;  %3010 = vmatpush.msra.mxu3 %v10249_v43  ;;  %v10255_v25 = vld [vmem:[%s11072_s7 + $0x10] sm:$0xff] }
 0x4c3   :  { %12488 = vst [vmem:[#allocation149_spill] sm:$0xff] %v10237_v14  ;;  %2954 = vmatpush.msra.mxu0 %v10255_v25  ;;  %v10261_v14 = vld [vmem:[%s11072_s7 + $0x3a0] sm:$0xff] }
 0x4c4   :  { %12489 = vst [vmem:[#allocation144_spill] sm:$0xff] %v10243_v58  ;;  %2971 = vmatpush.msra.mxu1 %v10261_v14  ;;  %v10267_v58 = vld [vmem:[%s11072_s7 + $0x18] sm:$0xff] }
 0x4c5   :  { %12490 = vst [vmem:[#allocation151_spill] sm:$0xff] %v10249_v43  ;;  %2994 = vmatpush.msra.mxu2 %v10267_v58  ;;  %v10273_v43 = vld [vmem:[%s11072_s7 + $0x3a8] sm:$0xff] }
 0x4c6   :  { %12491 = vst [vmem:[#allocation146_spill] sm:$0xff] %v10255_v25  ;;  %3011 = vmatpush.msra.mxu3 %v10273_v43  ;;  %v10279_v25 = vld [vmem:[%s11072_s7 + $0x370] sm:$0xff] }
 0x4c7   :  { %12492 = vst [vmem:[#allocation153_spill] sm:$0xff] %v10261_v14  ;;  %2972 = vmatpush.msra.mxu1 %v10279_v25  ;;  %v10285_v14 = vld [vmem:[%s11072_s7 + $0x378] sm:$0xff] }
 0x4c8   :  { %12493 = vst [vmem:[#allocation148_spill] sm:$0xff] %v10267_v58  ;;  %3012 = vmatpush.msra.mxu3 %v10285_v14  ;;  %v10291_v58 = vld [vmem:[%s11072_s7 + $0x340] sm:$0xff] }
 0x4c9   :  { %12494 = vst [vmem:[#allocation155_spill] sm:$0xff] %v10273_v43  ;;  %2973 = vmatpush.msra.mxu1 %v10291_v58  ;;  %v10297_v43 = vld [vmem:[%s11072_s7 + $0x348] sm:$0xff] }
 0x4ca   :  { %12495 = vst [vmem:[#allocation150_spill] sm:$0xff] %v10279_v25  ;;  %3013 = vmatpush.msra.mxu3 %v10297_v43  ;;  %v10303_v25 = vld [vmem:[%s11072_s7 + $0x310] sm:$0xff]  ;;  %v2649_v24 = vpop.f32.mrf.mxu3 }
 0x4cb   :  { %12496 = vst [vmem:[#allocation157_spill] sm:$0xff] %v10285_v14  ;;  %2974 = vmatpush.msra.mxu1 %v10303_v25  ;;  %v10309_v14 = vld [vmem:[%s11072_s7 + $0x318] sm:$0xff] }
 0x4cc   :  { %12497 = vst [vmem:[#allocation152_spill] sm:$0xff] %v10291_v58  ;;  %3014 = vmatpush.msra.mxu3 %v10309_v14  ;;  %v2509_v58 = vpop.f32.mrf.mxu0 }
 0x4cd   :  { %12498 = vst [vmem:[#allocation159_spill] sm:$0xff] %v10297_v43  ;;  %v2510_v17 = vadd.f32 %v2509_v58, %v12501_v46  ;;  %v12503_v43 = vld [vmem:[#allocation21_spill] sm:$0xff]  ;;  %v2609_v46 = vpop.f32.mrf.mxu1 }
 0x4ce   :  { %12499 = vst [vmem:[#allocation154_spill] sm:$0xff] %v10303_v25  ;;  %v153_v21 = vadd.f32 %v12503_v43, %v12502_v33  ;;  %v2550_v25 = vadd.f32 %v2549_v63, %v12504_v22  ;;  %v182_v43 = vadd.f32 %v12509_v1, %v12508_v61  ;;  %v12510_v33 = vld [vmem:[#allocation30_spill] sm:$0xff] }
 0x4cf   :  { %12500 = vst [vmem:[#allocation161_spill] sm:$0xff] %v10309_v14  ;;  %v2530_v59 = vadd.f32 %v2529_v42, %v2510_v17 }
 0x4d0   :  { %v2570_v14 = vadd.f32 %v2569_v55, %v2550_v25  ;;  %v12511_v55 = vld [vmem:[#allocation48_spill] sm:$0xff] }
 0x4d1   :  { %v2741_v7 = vadd.f32 %v2530_v59, %v153_v21  ;;  %v2629_v59 = vpop.f32.mrf.mxu2 }
 0x4d2   :  { %v2742_v58 = vadd.f32 %v2570_v14, %v328_v16  ;;  %v2630_v50 = vadd.f32 %v2629_v59, %v12510_v33 }
 0x4d3   :  { %v3831_v57 = vmul.f32 -1.442695, %v2741_v7 }
 0x4d4   :  { %v2589_v13 = vpop.f32.mrf.mxu0  ;;  %v3832_v42 = vmul.f32 -1.442695, %v2742_v58  ;;  %v2650_v16 = vadd.f32 %v2649_v24, %v2630_v50 }
 0x4d5   :  { %3995 = vpow2.f32 %v3831_v57  ;;  %v2590_v54 = vadd.f32 %v2589_v13, %v12507_v39  ;;  %v12512_v57 = vld [vmem:[#allocation41_spill] sm:$0xff] }
 0x4d6   :  { %3997 = vpow2.f32 %v3832_v42  ;;  %v357_v13 = vadd.f32 %v12512_v57, %v12511_v55  ;;  %v12513_v55 = vld [vmem:[#allocation14_spill] sm:$0xff] }
 0x4d7   :  { %v2610_v17 = vadd.f32 %v2609_v46, %v2590_v54 }
 0x4d8   :  { %v2744_v14 = vadd.f32 %v2650_v16, %v357_v13 }
 0x4d9   :  { %v2743_v63 = vadd.f32 %v2610_v17, %v182_v43 }
 0x4da   :  { %v3834_v58 = vmul.f32 -1.442695, %v2744_v14 }
 0x4db   :  { %v3996_v7 = vpop.eup %3995  ;;  %v3833_v22 = vmul.f32 -1.442695, %v2743_v63 }
 0x4dc   :  { %v2757_v21 = vadd.f32 1.0, %v3996_v7  ;;  %v3998_v25 = vpop.eup %3997  ;;  %v2669_v16 = vpop.f32.mrf.mxu0 }
 0x4dd   :  { %v2758_v1 = vadd.f32 1.0, %v3998_v25  ;;  %v2670_v33 = vadd.f32 %v2669_v16, %v12513_v55  ;;  %v2709_v29 = vpop.f32.mrf.mxu2  ;;  %v12515_v55 = vld [vmem:[#allocation22_spill] sm:$0xff] }
 0x4de   :  { %3999 = vrcp.f32 %v2757_v21  ;;  %v2772_v50 = vand.u32 2147483648, %v2757_v21  ;;  %vm2766_vm5 = vweird.f32 %v2757_v21  ;;  %v2770_v13 = vand.u32 2147483647, %v2757_v21 }
 0x4df   :  { %4001 = vpow2.f32 %v3833_v22  ;;  %vm2781_vm9 = vweird.f32 %v2758_v1 }
 0x4e0   :  { %4003 = vrcp.f32 %v2758_v1  ;;  %vm2771_vm7 = vcmp.eq.f32.partialorder %v2770_v13, 8.507059e+37 }
 0x4e1   :  { %4005 = vpow2.f32 %v3834_v58 }
 0x4e4   :  { %v4000_v54 = vpop.eup %3999 }
 0x4e5   :  { %v4002_v46 = vpop.eup %4001  ;;  %v2762_v43 = vmul.f32 %v4000_v54, %v2757_v21  ;;  %vm2767_vm4 = vweird.f32 %v4000_v54  ;;  %v2787_v21 = vand.u32 2147483648, %v2758_v1 }
 0x4e6   :  { %v10324_v42 = vadd.f32 1.0, %v4002_v46  ;;  %v4004_v7 = vpop.eup %4003  ;;  %vm2768_vm6 = vmor %vm2766_vm5, %vm2767_vm4 }
 0x4e7   :  { %v2763_v17 = vsub.f32 1.0, %v2762_v43  ;;  %v4006_v63 = vpop.eup %4005  ;;  %v2777_v24 = vmul.f32 %v4004_v7, %v2758_v1  ;;  %v2773_v43 = vor.u32 1.1754944e-38, %v2772_v50  ;;  %vm2782_vm8 = vweird.f32 %v4004_v7 }
 0x4e8   :  { %4007 = vrcp.f32 %v10324_v42  ;;  %v10327_v57 = vadd.f32 1.0, %v4006_v63  ;;  %v2689_v63 = vpop.f32.mrf.mxu1  ;;  %vm2783_vm10 = vmor %vm2781_vm9, %vm2782_vm8  ;;  %v2788_v16 = vor.u32 1.1754944e-38, %v2787_v21  ;;  %vm2796_vm13 = vweird.f32 %v10324_v42 }
 0x4e9   :  { %v2764_v59 = vmul.f32 %v4000_v54, %v2763_v17  ;;  %v2778_v25 = vsub.f32 1.0, %v2777_v24  ;;  %v2690_v35 = vadd.f32 %v2689_v63, %v2670_v33  ;;  %v2785_v24 = vand.u32 2147483647, %v2758_v1  ;;  %v2729_v33 = vpop.f32.mrf.mxu3 }
 0x4ea   :  { %4009 = vrcp.f32 %v10327_v57  ;;  %vm2811_vm1 = vweird.f32 %v10327_v57 }
 0x4eb   :  { %v2765_v22 = vadd.f32 %v4000_v54, %v2764_v59  ;;  %v2779_v17 = vmul.f32 %v4004_v7, %v2778_v25  ;;  %vm2786_vm11 = vcmp.eq.f32.partialorder %v2785_v24, 8.507059e+37 }
 0x4ed   :  { %v2769_v58 = vsel %vm2768_vm6, %v4000_v54, %v2765_v22  ;;  %v2780_v39 = vadd.f32 %v4004_v7, %v2779_v17  ;;  %v12514_v54 = vld [vmem:[#allocation4_spill] sm:$0xff] }
 0x4ee   :  { %v4008_v14 = vpop.eup %4007  ;;  %v2774_v61 = vsel %vm2771_vm7, %v2773_v43, %v2769_v58  ;;  %v211_v22 = vadd.f32 %v12514_v54, %v6270_v2  ;;  %v2710_v58 = vadd.f32 %v2709_v29, %v6284_v4  ;;  %v386_v54 = vadd.f32 %v12515_v55, %v6299_v23 }
 0x4ef   :  { %v2792_v46 = vmul.f32 %v4008_v14, %v10324_v42  ;;  %v2821_v50 = vmul.f32 %v2774_v61, %v2690_v35  ;;  %v2784_v25 = vsel %vm2783_vm10, %v4004_v7, %v2780_v39  ;;  %vm2797_vm12 = vweird.f32 %v4008_v14 }
 0x4f0   :  { %v4010_v38 = vpop.eup %4009  ;;  %v2789_v17 = vsel %vm2786_vm11, %v2788_v16, %v2784_v25  ;;  %v2730_v1 = vadd.f32 %v2729_v33, %v2710_v58  ;;  %v2802_v61 = vand.u32 2147483648, %v10324_v42  ;;  %v2800_v7 = vand.u32 2147483647, %v10324_v42  ;;  %vm2798_vm14 = vmor %vm2796_vm13, %vm2797_vm12  ;;  %v2840_v42 = vpop.permute.xlu1 %2839 }
 0x4f1   :  { %v2793_v59 = vsub.f32 1.0, %v2792_v46  ;;  %v2807_v13 = vmul.f32 %v4010_v38, %v10327_v57  ;;  %v2823_v46 = vadd.f32 %v2821_v50, %v211_v22  ;;  %vm2812_vm15 = vweird.f32 %v4010_v38 }
 0x4f2   :  { %v2822_v39 = vmul.f32 %v2789_v17, %v2730_v1  ;;  %v2803_v24 = vor.u32 1.1754944e-38, %v2802_v61  ;;  %vm2801_vm0 = vcmp.eq.f32.partialorder %v2800_v7, 8.507059e+37  ;;  %v2817_v55 = vand.u32 2147483648, %v10327_v57  ;;  %vm2813_vm2 = vmor %vm2811_vm1, %vm2812_vm15  ;;  %v10372_v61 = vld [vmem:[%s11072_s7 + $0x298] sm:$0xff] }
 0x4f3   :  { %v2794_v18 = vmul.f32 %v4008_v14, %v2793_v59  ;;  %v2808_v43 = vsub.f32 1.0, %v2807_v13  ;;  %4011 = vtanh.f32 %v2823_v46  ;;  %v2815_v13 = vand.u32 2147483647, %v10327_v57  ;;  %v10358_v57 = vld [vmem:[%s11072_s7 + $0x2f8] sm:$0xff] }
 0x4f4   :  { %v2824_v29 = vadd.f32 %v2822_v39, %v386_v54  ;;  %vm2841_vm3 = vcmp.eq.s32.totalorder %v2840_v42, 1  ;;  %v2818_v58 = vor.u32 1.1754944e-38, %v2817_v55  ;;  %v10365_v54 = vld [vmem:[%s11072_s7 + $0x2c8] sm:$0xff]  ;;  %v10571_v39 = vld [vmem:[%s11072_s7 + $0x3b8] sm:$0xff]  ;;  %v12531_v42 = vld [vmem:[#allocation100_spill] sm:$0xff] }
 0x4f5   :  { %v2795_v63 = vadd.f32 %v4008_v14, %v2794_v18  ;;  %v2809_v35 = vmul.f32 %v4010_v38, %v2808_v43  ;;  %vm2816_vm4 = vcmp.eq.f32.partialorder %v2815_v13, 8.507059e+37  ;;  %v12517_v7 = vld [vmem:[#allocation179_spill] sm:$0xff]  ;;  %v12530_v13 = vld [vmem:[#allocation28_spill] sm:$0xff] }
 0x4f6   :  { %4013 = vtanh.f32 %v2824_v29  ;;  %v12518_v29 = vld [vmem:[#allocation180_spill] sm:$0xff]  ;;  %v12527_v55 = vld [vmem:[#allocation15_spill] sm:$0xff] }
 0x4f7   :  { %v2799_v59 = vsel %vm2798_vm14, %v4008_v14, %v2795_v63  ;;  %v2810_v22 = vadd.f32 %v4010_v38, %v2809_v35  ;;  %v10589_v35 = vld [vmem:[%s11072_s7 + $0x358] sm:$0xff] }
 0x4f8   :  { %v2804_v50 = vsel %vm2801_vm0, %v2803_v24, %v2799_v59  ;;  %v12522_v59 = vld [vmem:[#allocation97_spill] sm:$0xff]  ;;  %v12524_v24 = vld [vmem:[#allocation98_spill] sm:$0xff] }
 0x4f9   :  { %v4012_v21 = vpop.eup %4011  ;;  %v2814_v14 = vsel %vm2813_vm2, %v4010_v38, %v2810_v22  ;;  %v12526_v22 = vld [vmem:[#allocation7_spill] sm:$0xff] }
 0x4fa   :  { %v2827_v18 = vsub.f32 %v9302_v26, %v4012_v21  ;;  %v2819_v1 = vsel %vm2816_vm4, %v2818_v58, %v2814_v14  ;;  %v12533_v14 = vld [vmem:[#allocation9_spill] sm:$0xff]  ;;  %v12535_v58 = vld [vmem:[#allocation94_spill] sm:$0xff] }
 0x4fc   :  { %v2829_v25 = vmul.f32 %v2827_v18, %v2804_v50  ;;  %v4014_v46 = vpop.eup %4013  ;;  %v12525_v18 = vld [vmem:[#allocation29_spill] sm:$0xff] }
 0x4fd   :  { %v2828_v33 = vsub.f32 %v9331_v34, %v4014_v46  ;;  %v12528_v50 = vld [vmem:[#allocation93_spill] sm:$0xff] }
 0x4fe   :  { %v2831_v16 = vadd.f32 %v4012_v21, %v2829_v25  ;;  %v12523_v21 = vld [vmem:[#allocation24_spill] sm:$0xff]  ;;  %v12529_v25 = vld [vmem:[#allocation99_spill] sm:$0xff] }
 0x4ff   :  { %v2830_v38 = vmul.f32 %v2828_v33, %v2819_v1  ;;  %v12537_v33 = vld [vmem:[#allocation58_spill] sm:$0xff]  ;;  %v12538_v1 = vld [vmem:[#allocation51_spill] sm:$0xff] }
 0x500   :  { %v2842_v43 = vsel %vm2841_vm3, %v2831_v16, 0.0  ;;  %v10347_v17 = vsel %vm2841_vm3, %v2831_v16, %v9302_v26  ;;  %v2848_v26 = vpop.permute.xlu2 %2847  ;;  %v12532_v16 = vld [vmem:[#allocation33_spill] sm:$0xff] }
 0x501   :  { %3837 = vst [vmem:[%s11078_s11 + $0x28] sm:$0xff] %v2842_v43  ;;  %2875 = vmatmul.f32.vlgmr.msrb.gmra.mxu0 %v10347_v17  ;;  %2915 = vmatmul.f32.vlgmr.msrb.gmra.mxu2 %v10347_v17  ;;  %v2832_v63 = vadd.f32 %v4014_v46, %v2830_v38  ;;  %vm2849_vm5 = vcmp.eq.s32.totalorder %v2848_v26, 1  ;;  %v12534_v46 = vld [vmem:[#allocation17_spill] sm:$0xff]  ;;  %v12536_v43 = vld [vmem:[#allocation50_spill] sm:$0xff]  ;;  %v12540_v26 = vld [vmem:[#allocation60_spill] sm:$0xff] }
 0x502   :  { %3019 = vmatpush.msrb.mxu0 %v9312_v15  ;;  %3059 = vmatpush.msrb.mxu2 %v10358_v57  ;;  %v12539_v38 = vld [vmem:[#allocation34_spill] sm:$0xff] }
 0x503   :  { %v2850_v15 = vsel %vm2849_vm5, %v2832_v63, 0.0 }
 0x504   :  { %3020 = vmatpush.msrb.mxu0 %v9319_v45  ;;  %3060 = vmatpush.msrb.mxu2 %v10365_v54  ;;  %v10376_v45 = vsel %vm2849_vm5, %v2832_v63, %v9331_v34  ;;  %3838 = vst [vmem:[%s11079_s12 + $0x10] sm:$0xff] %v2850_v15  ;;  %v10394_v34 = vld [vmem:[%s11072_s7 + $0x5f8] sm:$0xff]  ;;  %v12541_v63 = vld [vmem:[#allocation16_spill] sm:$0xff]  ;;  %v12542_v15 = vld [vmem:[#allocation53_spill] sm:$0xff] }
 0x505   :  { %2895 = vmatmul.f32.vlgmr.msrb.gmra.mxu1 %v10376_v45  ;;  %2935 = vmatmul.f32.vlgmr.msrb.gmra.mxu3 %v10376_v45 }
 0x506   :  { %3021 = vmatpush.msrb.mxu0 %v9326_v19  ;;  %3061 = vmatpush.msrb.mxu2 %v10372_v61  ;;  %v10388_v19 = vld [vmem:[%s11072_s7 + $0x268] sm:$0xff] }
 0x507   :  { %3039 = vmatpush.msrb.mxu1 %v9347_v49  ;;  %3079 = vmatpush.msrb.mxu3 %v10394_v34  ;;  %v10410_v49 = vld [vmem:[%s11072_s7 + $0x5c8] sm:$0xff] }
 0x508   :  { %3022 = vmatpush.msrb.mxu0 %v9341_v47  ;;  %3062 = vmatpush.msrb.mxu2 %v10388_v19  ;;  %v10404_v47 = vld [vmem:[%s11072_s7 + $0x238] sm:$0xff] }
 0x509   :  { %2955 = vmatmul.f32.vlgmr.msra.gmra.mxu0 %v10347_v17  ;;  %2995 = vmatmul.f32.vlgmr.msra.gmra.mxu2 %v10347_v17 }
 0x50a   :  { %3023 = vmatpush.msrb.mxu0 %v9357_v48  ;;  %3040 = vmatpush.msrb.mxu1 %v9363_v44  ;;  %v10418_v48 = vld [vmem:[%s11072_s7 + $0x208] sm:$0xff]  ;;  %v10424_v44 = vld [vmem:[%s11072_s7 + $0x598] sm:$0xff] }
 0x50b   :  { %3063 = vmatpush.msrb.mxu2 %v10404_v47  ;;  %3080 = vmatpush.msrb.mxu3 %v10410_v49 }
 0x50c   :  { %3024 = vmatpush.msrb.mxu0 %v9371_v10  ;;  %3041 = vmatpush.msrb.mxu1 %v9377_v31  ;;  %v10432_v10 = vld [vmem:[%s11072_s7 + $0x1d8] sm:$0xff]  ;;  %v10438_v31 = vld [vmem:[%s11072_s7 + $0x568] sm:$0xff] }
 0x50d   :  { %3064 = vmatpush.msrb.mxu2 %v10418_v48  ;;  %3081 = vmatpush.msrb.mxu3 %v10424_v44 }
 0x50e   :  { %3025 = vmatpush.msrb.mxu0 %v9385_v11  ;;  %3042 = vmatpush.msrb.mxu1 %v9391_v5  ;;  %v10448_v11 = vld [vmem:[%s11072_s7 + $0x1a8] sm:$0xff]  ;;  %v10454_v5 = vld [vmem:[%s11072_s7 + $0x538] sm:$0xff] }
 0x50f   :  { %3065 = vmatpush.msrb.mxu2 %v10432_v10  ;;  %3082 = vmatpush.msrb.mxu3 %v10438_v31 }
 0x510   :  { %2975 = vmatmul.f32.vlgmr.msra.gmra.mxu1 %v10376_v45  ;;  %3015 = vmatmul.f32.vlgmr.msra.gmra.mxu3 %v10376_v45 }
 0x511   :  { %3026 = vmatpush.msrb.mxu0 %v9401_v27  ;;  %3043 = vmatpush.msrb.mxu1 %v9407_v52  ;;  %v10462_v27 = vld [vmem:[%s11072_s7 + $0x178] sm:$0xff]  ;;  %v10468_v52 = vld [vmem:[%s11072_s7 + $0x508] sm:$0xff] }
 0x512   :  { %3066 = vmatpush.msrb.mxu2 %v10448_v11  ;;  %3083 = vmatpush.msrb.mxu3 %v10454_v5 }
 0x513   :  { %3027 = vmatpush.msrb.mxu0 %v9415_v53  ;;  %3044 = vmatpush.msrb.mxu1 %v9421_v8  ;;  %v10476_v53 = vld [vmem:[%s11072_s7 + $0x148] sm:$0xff]  ;;  %v10482_v8 = vld [vmem:[%s11072_s7 + $0x4d8] sm:$0xff] }
 0x514   :  { %3067 = vmatpush.msrb.mxu2 %v10462_v27  ;;  %3084 = vmatpush.msrb.mxu3 %v10468_v52 }
 0x515   :  { %3028 = vmatpush.msrb.mxu0 %v9429_v0  ;;  %3045 = vmatpush.msrb.mxu1 %v9435_v28  ;;  %v10490_v0 = vld [vmem:[%s11072_s7 + $0x118] sm:$0xff]  ;;  %v10496_v28 = vld [vmem:[%s11072_s7 + $0x4a8] sm:$0xff] }
 0x516   :  { %3068 = vmatpush.msrb.mxu2 %v10476_v53  ;;  %3085 = vmatpush.msrb.mxu3 %v10482_v8 }
 0x517   :  { %3029 = vmatpush.msrb.mxu0 %v9443_v20  ;;  %3046 = vmatpush.msrb.mxu1 %v9449_v9  ;;  %v10504_v20 = vld [vmem:[%s11072_s7 + $0xe8] sm:$0xff]  ;;  %v10510_v9 = vld [vmem:[%s11072_s7 + $0x478] sm:$0xff] }
 0x518   :  { %3069 = vmatpush.msrb.mxu2 %v10490_v0  ;;  %3086 = vmatpush.msrb.mxu3 %v10496_v28 }
 0x519   :  { %3030 = vmatpush.msrb.mxu0 %v9457_v36  ;;  %3047 = vmatpush.msrb.mxu1 %v9463_v37  ;;  %v10518_v36 = vld [vmem:[%s11072_s7 + $0xb8] sm:$0xff]  ;;  %v10524_v37 = vld [vmem:[%s11072_s7 + $0x448] sm:$0xff] }
 0x51a   :  { %3070 = vmatpush.msrb.mxu2 %v10504_v20  ;;  %3087 = vmatpush.msrb.mxu3 %v10510_v9 }
 0x51b   :  { %3031 = vmatpush.msrb.mxu0 %v9471_v12  ;;  %3048 = vmatpush.msrb.mxu1 %v9477_v51  ;;  %v10532_v12 = vld [vmem:[%s11072_s7 + $0x88] sm:$0xff]  ;;  %v10538_v51 = vld [vmem:[%s11072_s7 + $0x418] sm:$0xff] }
 0x51c   :  { %3071 = vmatpush.msrb.mxu2 %v10518_v36  ;;  %3088 = vmatpush.msrb.mxu3 %v10524_v37 }
 0x51d   :  { %3032 = vmatpush.msrb.mxu0 %v9485_v32  ;;  %3049 = vmatpush.msrb.mxu1 %v9491_v41  ;;  %v10546_v32 = vld [vmem:[%s11072_s7 + $0x58] sm:$0xff]  ;;  %v10552_v41 = vld [vmem:[%s11072_s7 + $0x3e8] sm:$0xff] }
 0x51e   :  { %3072 = vmatpush.msrb.mxu2 %v10532_v12  ;;  %3089 = vmatpush.msrb.mxu3 %v10538_v51 }
 0x51f   :  { %3033 = vmatpush.msrb.mxu0 %v9499_v6  ;;  %3050 = vmatpush.msrb.mxu1 %v9505_v3  ;;  %v10558_v6 = vld [vmem:[%s11072_s7 + $0x20] sm:$0xff]  ;;  %v10565_v3 = vld [vmem:[%s11072_s7 + $0x28] sm:$0xff] }
 0x520   :  { %3073 = vmatpush.msrb.mxu2 %v10546_v32  ;;  %3090 = vmatpush.msrb.mxu3 %v10552_v41 }
 0x521   :  { %3034 = vmatpush.msrb.mxu0 %v10558_v6  ;;  %3051 = vmatpush.msrb.mxu1 %v9514_v60  ;;  %v10580_v60 = vld [vmem:[%s11072_s7 + $0x388] sm:$0xff] }
 0x522   :  { %3074 = vmatpush.msrb.mxu2 %v10565_v3  ;;  %3091 = vmatpush.msrb.mxu3 %v10571_v39 }
 0x523   :  { %3035 = vmatmul.f32.vlgmr.msrb.gmra.mxu0 %v10347_v17  ;;  %3075 = vmatmul.f32.vlgmr.msrb.gmra.mxu2 %v10347_v17 }
 0x524   :  { %3052 = vmatpush.msrb.mxu1 %v9524_v56  ;;  %3092 = vmatpush.msrb.mxu3 %v10580_v60  ;;  %v12516_v56 = vld [vmem:[#allocation178_spill] sm:$0xff] }
 0x525   :  { %3226 = vmatpush.msra.mxu0 %v9531_v30  ;;  %3266 = vmatpush.msra.mxu2 %v9537_v40  ;;  %v10598_v30 = vld [vmem:[%s11072_s7 + $0x328] sm:$0xff] }
 0x526   :  { %3053 = vmatpush.msrb.mxu1 %v9543_v62  ;;  %3093 = vmatpush.msrb.mxu3 %v10589_v35  ;;  %12519 = vst [vmem:[#allocation156_spill] sm:$0xff] %v10598_v30  ;;  %v12520_v40 = vld [vmem:[#allocation181_spill] sm:$0xff]  ;;  %v12521_v62 = vld [vmem:[#allocation182_spill] sm:$0xff] }
 0x527   :  { %3227 = vmatpush.msra.mxu0 %v12516_v56  ;;  %3267 = vmatpush.msra.mxu2 %v12517_v7  ;;  %v12543_v56 = vld [vmem:[#allocation61_spill] sm:$0xff]  ;;  %v12544_v7 = vld [vmem:[#allocation31_spill] sm:$0xff] }
 0x528   :  { %3054 = vmatpush.msrb.mxu1 %v12518_v29  ;;  %3094 = vmatpush.msrb.mxu3 %v10598_v30  ;;  %v12545_v29 = vld [vmem:[#allocation38_spill] sm:$0xff] }
 0x529   :  { %3055 = vmatmul.f32.vlgmr.msrb.gmra.mxu1 %v10376_v45  ;;  %3095 = vmatmul.f32.vlgmr.msrb.gmra.mxu3 %v10376_v45 }
 0x52a   :  { %3228 = vmatpush.msra.mxu0 %v12520_v40  ;;  %3268 = vmatpush.msra.mxu2 %v12521_v62  ;;  %v12546_v40 = vld [vmem:[#allocation18_spill] sm:$0xff]  ;;  %v12547_v62 = vld [vmem:[#allocation57_spill] sm:$0xff] }
 0x52b   :  { %3246 = vmatpush.msra.mxu1 %v12522_v59  ;;  %3286 = vmatpush.msra.mxu3 %v12523_v21  ;;  %v12548_v59 = vld [vmem:[#allocation63_spill] sm:$0xff]  ;;  %v12549_v21 = vld [vmem:[#allocation54_spill] sm:$0xff] }
 0x52c   :  { %3229 = vmatpush.msra.mxu0 %v12524_v24  ;;  %3269 = vmatpush.msra.mxu2 %v12525_v18  ;;  %v12550_v24 = vld [vmem:[#allocation55_spill] sm:$0xff]  ;;  %v12551_v18 = vld [vmem:[#allocation64_spill] sm:$0xff] }
 0x52d   :  { %3247 = vmatpush.msra.mxu1 %v12526_v22  ;;  %3287 = vmatpush.msra.mxu3 %v12527_v55  ;;  %v12552_v22 = vld [vmem:[#allocation39_spill] sm:$0xff]  ;;  %v12553_v55 = vld [vmem:[#allocation20_spill] sm:$0xff] }
 0x52e   :  { %3230 = vmatpush.msra.mxu0 %v12528_v50  ;;  %3270 = vmatpush.msra.mxu2 %v12529_v25  ;;  %v12554_v50 = vld [vmem:[#allocation56_spill] sm:$0xff]  ;;  %v12555_v25 = vld [vmem:[#allocation67_spill] sm:$0xff] }
 0x52f   :  { %3248 = vmatpush.msra.mxu1 %v12530_v13  ;;  %3288 = vmatpush.msra.mxu3 %v12531_v42  ;;  %v12556_v13 = vld [vmem:[#allocation68_spill] sm:$0xff]  ;;  %v12557_v42 = vld [vmem:[#allocation23_spill] sm:$0xff] }
 0x530   :  { %3231 = vmatpush.msra.mxu0 %v12532_v16  ;;  %3271 = vmatpush.msra.mxu2 %v12533_v14  ;;  %v12558_v16 = vld [vmem:[#allocation59_spill] sm:$0xff]  ;;  %v12559_v14 = vld [vmem:[#allocation70_spill] sm:$0xff] }
 0x531   :  { %3249 = vmatpush.msra.mxu1 %v12534_v46  ;;  %3289 = vmatpush.msra.mxu3 %v12535_v58  ;;  %v12560_v46 = vld [vmem:[#allocation72_spill] sm:$0xff]  ;;  %v12561_v58 = vld [vmem:[#allocation27_spill] sm:$0xff] }
 0x532   :  { %3232 = vmatpush.msra.mxu0 %v12536_v43  ;;  %3272 = vmatpush.msra.mxu2 %v12537_v33  ;;  %v12562_v43 = vld [vmem:[#allocation62_spill] sm:$0xff]  ;;  %v12563_v33 = vld [vmem:[#allocation52_spill] sm:$0xff] }
 0x533   :  { %3250 = vmatpush.msra.mxu1 %v12538_v1  ;;  %3290 = vmatpush.msra.mxu3 %v12539_v38  ;;  %v12564_v1 = vld [vmem:[#allocation74_spill] sm:$0xff]  ;;  %v12565_v38 = vld [vmem:[#allocation35_spill] sm:$0xff] }
 0x534   :  { %3233 = vmatpush.msra.mxu0 %v12540_v26  ;;  %3273 = vmatpush.msra.mxu2 %v12541_v63  ;;  %v12566_v26 = vld [vmem:[#allocation65_spill] sm:$0xff]  ;;  %v12567_v63 = vld [vmem:[#allocation76_spill] sm:$0xff] }
 0x535   :  { %3251 = vmatpush.msra.mxu1 %v12542_v15  ;;  %3291 = vmatpush.msra.mxu3 %v12543_v56  ;;  %v12568_v15 = vld [vmem:[#allocation78_spill] sm:$0xff] }
 0x536   :  { %3234 = vmatpush.msra.mxu0 %v12544_v7  ;;  %3274 = vmatpush.msra.mxu2 %v12545_v29  ;;  %v12569_v56 = vld [vmem:[#allocation66_spill] sm:$0xff]  ;;  %v12571_v29 = vld [vmem:[#allocation79_spill] sm:$0xff] }
 0x537   :  { %3252 = vmatpush.msra.mxu1 %v12546_v40  ;;  %3292 = vmatpush.msra.mxu3 %v12547_v62  ;;  %v12570_v7 = vld [vmem:[#allocation42_spill] sm:$0xff]  ;;  %v12573_v62 = vld [vmem:[#allocation71_spill] sm:$0xff] }
 0x538   :  { %3235 = vmatpush.msra.mxu0 %v12548_v59  ;;  %3275 = vmatpush.msra.mxu2 %v12549_v21  ;;  %v12572_v40 = vld [vmem:[#allocation82_spill] sm:$0xff]  ;;  %v12574_v59 = vld [vmem:[#allocation73_spill] sm:$0xff]  ;;  %v12575_v21 = vld [vmem:[#allocation84_spill] sm:$0xff] }
 0x539   :  { %3253 = vmatpush.msra.mxu1 %v12550_v24  ;;  %3293 = vmatpush.msra.mxu3 %v12551_v18  ;;  %v12576_v24 = vld [vmem:[#allocation86_spill] sm:$0xff]  ;;  %v12577_v18 = vld [vmem:[#allocation75_spill] sm:$0xff] }
 0x53a   :  { %3236 = vmatpush.msra.mxu0 %v12552_v22  ;;  %3276 = vmatpush.msra.mxu2 %v12553_v55  ;;  %v12578_v22 = vld [vmem:[#allocation77_spill] sm:$0xff] }
 0x53b   :  { %3254 = vmatpush.msra.mxu1 %v12554_v50  ;;  %3294 = vmatpush.msra.mxu3 %v12555_v25  ;;  %v12579_v55 = vld [vmem:[#allocation69_spill] sm:$0xff]  ;;  %v12580_v50 = vld [vmem:[#allocation80_spill] sm:$0xff] }
 0x53c   :  { %3237 = vmatpush.msra.mxu0 %v12556_v13  ;;  %3277 = vmatpush.msra.mxu2 %v12557_v42  ;;  %v12581_v25 = vld [vmem:[#allocation89_spill] sm:$0xff]  ;;  %v12583_v42 = vld [vmem:[#allocation103_spill] sm:$0xff] }
 0x53d   :  { %3255 = vmatpush.msra.mxu1 %v12558_v16  ;;  %3295 = vmatpush.msra.mxu3 %v12559_v14  ;;  %v12582_v13 = vld [vmem:[#allocation81_spill] sm:$0xff]  ;;  %v12584_v16 = vld [vmem:[#allocation83_spill] sm:$0xff] }
 0x53e   :  { %3238 = vmatpush.msra.mxu0 %v12560_v46  ;;  %3278 = vmatpush.msra.mxu2 %v12561_v58  ;;  %v12585_v14 = vld [vmem:[#allocation105_spill] sm:$0xff]  ;;  %v12587_v58 = vld [vmem:[#allocation107_spill] sm:$0xff] }
 0x53f   :  { %3256 = vmatpush.msra.mxu1 %v12562_v43  ;;  %3296 = vmatpush.msra.mxu3 %v12563_v33  ;;  %v12586_v46 = vld [vmem:[#allocation85_spill] sm:$0xff]  ;;  %v12588_v43 = vld [vmem:[#allocation87_spill] sm:$0xff] }
 0x540   :  { %3239 = vmatpush.msra.mxu0 %v12564_v1  ;;  %3279 = vmatpush.msra.mxu2 %v12565_v38  ;;  %v12589_v33 = vld [vmem:[#allocation109_spill] sm:$0xff]  ;;  %v12590_v1 = vld [vmem:[#allocation88_spill] sm:$0xff]  ;;  %v12591_v38 = vld [vmem:[#allocation111_spill] sm:$0xff] }
 0x541   :  { %3257 = vmatpush.msra.mxu1 %v12566_v26  ;;  %3297 = vmatpush.msra.mxu3 %v12567_v63  ;;  %v12592_v26 = vld [vmem:[#allocation90_spill] sm:$0xff]  ;;  %v12593_v63 = vld [vmem:[#allocation113_spill] sm:$0xff] }
 0x542   :  { %3240 = vmatpush.msra.mxu0 %v12568_v15  ;;  %3280 = vmatpush.msra.mxu2 %v12569_v56  ;;  %v12594_v15 = vld [vmem:[#allocation104_spill] sm:$0xff]  ;;  %v12595_v56 = vld [vmem:[#allocation115_spill] sm:$0xff] }
 0x543   :  { %3258 = vmatpush.msra.mxu1 %v12570_v7  ;;  %3298 = vmatpush.msra.mxu3 %v12571_v29  ;;  %v12596_v7 = vld [vmem:[#allocation106_spill] sm:$0xff]  ;;  %v12597_v29 = vld [vmem:[#allocation117_spill] sm:$0xff] }
 0x544   :  { %3241 = vmatpush.msra.mxu0 %v12572_v40  ;;  %3281 = vmatpush.msra.mxu2 %v12573_v62  ;;  %v12598_v40 = vld [vmem:[#allocation108_spill] sm:$0xff]  ;;  %v12599_v62 = vld [vmem:[#allocation110_spill] sm:$0xff] }
 0x545   :  { %3259 = vmatpush.msra.mxu1 %v12576_v24  ;;  %3299 = vmatpush.msra.mxu3 %v12577_v18  ;;  %v12602_v24 = vld [vmem:[#allocation112_spill] sm:$0xff]  ;;  %v12603_v18 = vld [vmem:[#allocation114_spill] sm:$0xff] }
 0x546   :  { %3306 = vmatpush.msrb.mxu0 %v12574_v59  ;;  %3346 = vmatpush.msrb.mxu2 %v12575_v21  ;;  %v12600_v59 = vld [vmem:[#allocation119_spill] sm:$0xff]  ;;  %v12601_v21 = vld [vmem:[#allocation121_spill] sm:$0xff] }
 0x547   :  { %3260 = vmatpush.msra.mxu1 %v12580_v50  ;;  %3300 = vmatpush.msra.mxu3 %v12581_v25  ;;  %v12606_v50 = vld [vmem:[#allocation116_spill] sm:$0xff]  ;;  %v12607_v25 = vld [vmem:[#allocation118_spill] sm:$0xff] }
 0x548   :  { %3307 = vmatpush.msrb.mxu0 %v12578_v22  ;;  %3347 = vmatpush.msrb.mxu2 %v12579_v55  ;;  %v12604_v22 = vld [vmem:[#allocation123_spill] sm:$0xff]  ;;  %v12605_v55 = vld [vmem:[#allocation125_spill] sm:$0xff] }
 0x549   :  { %3261 = vmatpush.msra.mxu1 %v12584_v16  ;;  %3301 = vmatpush.msra.mxu3 %v12585_v14  ;;  %v12610_v16 = vld [vmem:[#allocation120_spill] sm:$0xff]  ;;  %v12611_v14 = vld [vmem:[#allocation130_spill] sm:$0xff] }
 0x54a   :  { %3308 = vmatpush.msrb.mxu0 %v12582_v13  ;;  %3348 = vmatpush.msrb.mxu2 %v12583_v42  ;;  %v12608_v13 = vld [vmem:[#allocation127_spill] sm:$0xff]  ;;  %v12609_v42 = vld [vmem:[#allocation129_spill] sm:$0xff] }
 0x54b   :  { %3326 = vmatpush.msrb.mxu1 %v12587_v58  ;;  %3366 = vmatpush.msrb.mxu3 %v12589_v33  ;;  %v12613_v58 = vld [vmem:[#allocation131_spill] sm:$0xff]  ;;  %v12615_v33 = vld [vmem:[#allocation133_spill] sm:$0xff] }
 0x54c   :  { %3309 = vmatpush.msrb.mxu0 %v12586_v46  ;;  %3349 = vmatpush.msrb.mxu2 %v12588_v43  ;;  %v12612_v46 = vld [vmem:[#allocation122_spill] sm:$0xff]  ;;  %v12614_v43 = vld [vmem:[#allocation124_spill] sm:$0xff] }
 0x54d   :  { %3327 = vmatpush.msrb.mxu1 %v12591_v38  ;;  %3367 = vmatpush.msrb.mxu3 %v12593_v63  ;;  %v12617_v38 = vld [vmem:[#allocation135_spill] sm:$0xff]  ;;  %v12619_v63 = vld [vmem:[#allocation137_spill] sm:$0xff] }
 0x54e   :  { %3310 = vmatpush.msrb.mxu0 %v12590_v1  ;;  %3350 = vmatpush.msrb.mxu2 %v12592_v26  ;;  %v12616_v1 = vld [vmem:[#allocation126_spill] sm:$0xff]  ;;  %v12618_v26 = vld [vmem:[#allocation128_spill] sm:$0xff] }
 0x54f   :  { %3328 = vmatpush.msrb.mxu1 %v12595_v56  ;;  %3368 = vmatpush.msrb.mxu3 %v12597_v29  ;;  %v12621_v56 = vld [vmem:[#allocation139_spill] sm:$0xff]  ;;  %v12623_v29 = vld [vmem:[#allocation141_spill] sm:$0xff] }
 0x550   :  { %3311 = vmatpush.msrb.mxu0 %v12594_v15  ;;  %3351 = vmatpush.msrb.mxu2 %v12596_v7  ;;  %v12620_v15 = vld [vmem:[#allocation132_spill] sm:$0xff]  ;;  %v12622_v7 = vld [vmem:[#allocation134_spill] sm:$0xff] }
 0x551   :  { %3329 = vmatpush.msrb.mxu1 %v12599_v62  ;;  %3369 = vmatpush.msrb.mxu3 %v12601_v21  ;;  %v12625_v62 = vld [vmem:[#allocation143_spill] sm:$0xff]  ;;  %v12627_v21 = vld [vmem:[#allocation145_spill] sm:$0xff] }
 0x552   :  { %3312 = vmatpush.msrb.mxu0 %v12598_v40  ;;  %3352 = vmatpush.msrb.mxu2 %v12600_v59  ;;  %v12624_v40 = vld [vmem:[#allocation136_spill] sm:$0xff]  ;;  %v12626_v59 = vld [vmem:[#allocation138_spill] sm:$0xff] }
 0x553   :  { %3330 = vmatpush.msrb.mxu1 %v12603_v18  ;;  %3370 = vmatpush.msrb.mxu3 %v12605_v55  ;;  %v12629_v18 = vld [vmem:[#allocation147_spill] sm:$0xff]  ;;  %v12631_v55 = vld [vmem:[#allocation149_spill] sm:$0xff] }
 0x554   :  { %3313 = vmatpush.msrb.mxu0 %v12602_v24  ;;  %3353 = vmatpush.msrb.mxu2 %v12604_v22  ;;  %v12628_v24 = vld [vmem:[#allocation140_spill] sm:$0xff]  ;;  %v12630_v22 = vld [vmem:[#allocation142_spill] sm:$0xff] }
 0x555   :  { %3331 = vmatpush.msrb.mxu1 %v12607_v25  ;;  %3371 = vmatpush.msrb.mxu3 %v12609_v42  ;;  %v12633_v25 = vld [vmem:[#allocation151_spill] sm:$0xff]  ;;  %v12635_v42 = vld [vmem:[#allocation153_spill] sm:$0xff] }
 0x556   :  { %3314 = vmatpush.msrb.mxu0 %v12606_v50  ;;  %3354 = vmatpush.msrb.mxu2 %v12608_v13  ;;  %v12632_v50 = vld [vmem:[#allocation144_spill] sm:$0xff]  ;;  %v12634_v13 = vld [vmem:[#allocation146_spill] sm:$0xff] }
 0x557   :  { %3332 = vmatpush.msrb.mxu1 %v12611_v14  ;;  %3372 = vmatpush.msrb.mxu3 %v12613_v58  ;;  %v12637_v14 = vld [vmem:[#allocation155_spill] sm:$0xff]  ;;  %v12639_v58 = vld [vmem:[#allocation157_spill] sm:$0xff] }
 0x558   :  { %3315 = vmatpush.msrb.mxu0 %v12610_v16  ;;  %3355 = vmatpush.msrb.mxu2 %v12612_v46  ;;  %v12636_v16 = vld [vmem:[#allocation148_spill] sm:$0xff]  ;;  %v12638_v46 = vld [vmem:[#allocation150_spill] sm:$0xff] }
 0x559   :  { %3333 = vmatpush.msrb.mxu1 %v12615_v33  ;;  %3373 = vmatpush.msrb.mxu3 %v12617_v38  ;;  %v12641_v33 = vld [vmem:[#allocation159_spill] sm:$0xff]  ;;  %v12643_v38 = vld [vmem:[#allocation161_spill] sm:$0xff] }
 0x55a   :  { %3316 = vmatpush.msrb.mxu0 %v12614_v43  ;;  %3356 = vmatpush.msrb.mxu2 %v12616_v1  ;;  %v12640_v43 = vld [vmem:[#allocation152_spill] sm:$0xff]  ;;  %v12642_v1 = vld [vmem:[#allocation154_spill] sm:$0xff] }
 0x55b   :  { %3334 = vmatpush.msrb.mxu1 %v12619_v63  ;;  %3374 = vmatpush.msrb.mxu3 %v12621_v56  ;;  %v12644_v63 = vld [vmem:[#allocation8_spill] sm:$0xff] }
 0x55c   :  { %3317 = vmatpush.msrb.mxu0 %v12618_v26  ;;  %3357 = vmatpush.msrb.mxu2 %v12620_v15 }
 0x55d   :  { %3335 = vmatpush.msrb.mxu1 %v12623_v29  ;;  %3375 = vmatpush.msrb.mxu3 %v12625_v62  ;;  %v12646_v29 = vld [vmem:[#allocation91_spill] sm:$0xff] }
 0x55e   :  { %3318 = vmatpush.msrb.mxu0 %v12622_v7  ;;  %3358 = vmatpush.msrb.mxu2 %v12624_v40  ;;  %v12645_v7 = vld [vmem:[#allocation43_spill] sm:$0xff] }
 0x55f   :  { %3336 = vmatpush.msrb.mxu1 %v12627_v21  ;;  %3376 = vmatpush.msrb.mxu3 %v12629_v18  ;;  %v156_v40 = vadd.f32 %v12646_v29, %v12645_v7  ;;  %v12647_v18 = vld [vmem:[#allocation10_spill] sm:$0xff] }
 0x560   :  { %3319 = vmatpush.msrb.mxu0 %v12626_v59  ;;  %3359 = vmatpush.msrb.mxu2 %v12628_v24 }
 0x561   :  { %3337 = vmatpush.msrb.mxu1 %v12631_v55  ;;  %3377 = vmatpush.msrb.mxu3 %v12633_v25  ;;  %v12648_v25 = vld [vmem:[#allocation26_spill] sm:$0xff] }
 0x562   :  { %3320 = vmatpush.msrb.mxu0 %v12630_v22  ;;  %3360 = vmatpush.msrb.mxu2 %v12632_v50 }
 0x563   :  { %3338 = vmatpush.msrb.mxu1 %v12635_v42  ;;  %3378 = vmatpush.msrb.mxu3 %v12637_v14  ;;  %v12650_v14 = vld [vmem:[#allocation46_spill] sm:$0xff] }
 0x564   :  { %3321 = vmatpush.msrb.mxu0 %v12634_v13  ;;  %3361 = vmatpush.msrb.mxu2 %v12636_v16  ;;  %v12649_v13 = vld [vmem:[#allocation36_spill] sm:$0xff] }
 0x565   :  { %3339 = vmatpush.msrb.mxu1 %v12638_v46  ;;  %3379 = vmatpush.msrb.mxu3 %v12639_v58  ;;  %v331_v42 = vadd.f32 %v12649_v13, %v12648_v25 }
 0x567   :  { %3340 = vmatpush.msrb.mxu1 %v12640_v43  ;;  %3380 = vmatpush.msrb.mxu3 %v12641_v33  ;;  %v12651_v33 = vld [vmem:[#allocation49_spill] sm:$0xff] }
 0x569   :  { %3341 = vmatpush.msrb.mxu1 %v12642_v1  ;;  %3381 = vmatpush.msrb.mxu3 %v12643_v38  ;;  %v12652_v1 = vld [vmem:[#allocation92_spill] sm:$0xff] }
 0x56a   :  { %v185_v38 = vadd.f32 %v12652_v1, %v12651_v33 }
 0x57e   :  { %v2876_v26 = vpop.f32.mrf.mxu0 }
 0x57f   :  { %v2877_v15 = vadd.f32 %v2876_v26, %v12644_v63 }
 0x582   :  { %v2896_v56 = vpop.f32.mrf.mxu1 }
 0x583   :  { %v2897_v62 = vadd.f32 %v2896_v56, %v2877_v15 }
 0x584   :  { %v2916_v59 = vpop.f32.mrf.mxu2 }
 0x585   :  { %v3108_v21 = vadd.f32 %v2897_v62, %v156_v40  ;;  %v2917_v22 = vadd.f32 %v2916_v59, %v12647_v18 }
 0x586   :  { %v2956_v55 = vpop.f32.mrf.mxu0 }
 0x587   :  { %v3839_v24 = vmul.f32 -1.442695, %v3108_v21  ;;  %v2957_v46 = vadd.f32 %v2956_v55, %v12650_v14  ;;  %v12653_v21 = vld [vmem:[#allocation30_spill] sm:$0xff] }
 0x588   :  { %v2936_v50 = vpop.f32.mrf.mxu3 }
 0x589   :  { %4015 = vpow2.f32 %v3839_v24  ;;  %v2937_v16 = vadd.f32 %v2936_v50, %v2917_v22  ;;  %v12654_v22 = vld [vmem:[#allocation48_spill] sm:$0xff]  ;;  %v12655_v50 = vld [vmem:[#allocation45_spill] sm:$0xff] }
 0x58a   :  { %v360_v55 = vadd.f32 %v12655_v50, %v12654_v22  ;;  %v12656_v22 = vld [vmem:[#allocation14_spill] sm:$0xff] }
 0x58b   :  { %v3109_v58 = vadd.f32 %v2937_v16, %v331_v42 }
 0x58c   :  { %v2996_v56 = vpop.f32.mrf.mxu2 }
 0x58d   :  { %v2976_v43 = vpop.f32.mrf.mxu1  ;;  %v3840_v26 = vmul.f32 -1.442695, %v3109_v58  ;;  %v2997_v18 = vadd.f32 %v2996_v56, %v12653_v21 }
 0x58e   :  { %v2977_v15 = vadd.f32 %v2976_v43, %v2957_v46 }
 0x58f   :  { %v4016_v29 = vpop.eup %4015  ;;  %4017 = vpow2.f32 %v3840_v26 }
 0x590   :  { %v3110_v40 = vadd.f32 %v2977_v15, %v185_v38  ;;  %v3124_v62 = vadd.f32 1.0, %v4016_v29 }
 0x592   :  { %v3841_v59 = vmul.f32 -1.442695, %v3110_v40  ;;  %4019 = vrcp.f32 %v3124_v62  ;;  %vm3133_vm7 = vweird.f32 %v3124_v62 }
 0x593   :  { %v3016_v24 = vpop.f32.mrf.mxu3 }
 0x594   :  { %4021 = vpow2.f32 %v3841_v59  ;;  %v3017_v13 = vadd.f32 %v3016_v24, %v2997_v18  ;;  %v3139_v18 = vand.u32 2147483648, %v3124_v62 }
 0x595   :  { %v4018_v42 = vpop.eup %4017 }
 0x596   :  { %v3111_v16 = vadd.f32 %v3017_v13, %v360_v55  ;;  %v3125_v1 = vadd.f32 1.0, %v4018_v42  ;;  %v3137_v55 = vand.u32 2147483647, %v3124_v62 }
 0x598   :  { %v3842_v58 = vmul.f32 -1.442695, %v3111_v16  ;;  %v4020_v46 = vpop.eup %4019  ;;  %4023 = vrcp.f32 %v3125_v1  ;;  %vm3138_vm9 = vcmp.eq.f32.partialorder %v3137_v55, 8.507059e+37  ;;  %vm3148_vm11 = vweird.f32 %v3125_v1 }
 0x599   :  { %v3129_v38 = vmul.f32 %v4020_v46, %v3124_v62  ;;  %vm3134_vm6 = vweird.f32 %v4020_v46  ;;  %v3154_v62 = vand.u32 2147483648, %v3125_v1 }
 0x59a   :  { %v4022_v43 = vpop.eup %4021  ;;  %4025 = vpow2.f32 %v3842_v58  ;;  %vm3135_vm8 = vmor %vm3133_vm7, %vm3134_vm6 }
 0x59b   :  { %v10739_v26 = vadd.f32 1.0, %v4022_v43  ;;  %v3130_v15 = vsub.f32 1.0, %v3129_v38  ;;  %v3140_v38 = vor.u32 1.1754944e-38, %v3139_v18 }
 0x59d   :  { %4027 = vrcp.f32 %v10739_v26  ;;  %v3131_v56 = vmul.f32 %v4020_v46, %v3130_v15  ;;  %vm3163_vm15 = vweird.f32 %v10739_v26 }
 0x59e   :  { %v4024_v29 = vpop.eup %4023 }
 0x59f   :  { %v3132_v59 = vadd.f32 %v4020_v46, %v3131_v56  ;;  %v3144_v24 = vmul.f32 %v4024_v29, %v3125_v1  ;;  %vm3149_vm10 = vweird.f32 %v4024_v29 }
 0x5a0   :  { %v4026_v40 = vpop.eup %4025  ;;  %v3036_v13 = vpop.f32.mrf.mxu0  ;;  %vm3150_vm12 = vmor %vm3148_vm11, %vm3149_vm10 }
 0x5a1   :  { %v10742_v50 = vadd.f32 1.0, %v4026_v40  ;;  %v3145_v42 = vsub.f32 1.0, %v3144_v24  ;;  %v3136_v58 = vsel %vm3135_vm8, %v4020_v46, %v3132_v59  ;;  %v3037_v21 = vadd.f32 %v3036_v13, %v12656_v22  ;;  %v12657_v46 = vld [vmem:[#allocation5_spill] sm:$0xff]  ;;  %v12658_v22 = vld [vmem:[#allocation44_spill] sm:$0xff] }
 0x5a2   :  { %v3141_v33 = vsel %vm3138_vm9, %v3140_v38, %v3136_v58  ;;  %v3152_v24 = vand.u32 2147483647, %v3125_v1  ;;  %v214_v59 = vadd.f32 %v12657_v46, %v6270_v2  ;;  %v3155_v13 = vor.u32 1.1754944e-38, %v3154_v62 }
 0x5a3   :  { %v4028_v16 = vpop.eup %4027  ;;  %4029 = vrcp.f32 %v10742_v50  ;;  %v3146_v15 = vmul.f32 %v4024_v29, %v3145_v42  ;;  %v389_v46 = vadd.f32 %v12658_v22, %v6299_v23  ;;  %v3184_v22 = vand.u32 2147483648, %v10742_v50 }
 0x5a4   :  { %v3159_v43 = vmul.f32 %v4028_v16, %v10739_v26  ;;  %vm3153_vm13 = vcmp.eq.f32.partialorder %v3152_v24, 8.507059e+37  ;;  %vm3164_vm14 = vweird.f32 %v4028_v16  ;;  %vm3178_vm3 = vweird.f32 %v10742_v50 }
 0x5a5   :  { %v3147_v14 = vadd.f32 %v4024_v29, %v3146_v15  ;;  %vm3165_vm0 = vmor %vm3163_vm15, %vm3164_vm14 }
 0x5a6   :  { %v3160_v56 = vsub.f32 1.0, %v3159_v43  ;;  %v3056_v40 = vpop.f32.mrf.mxu1  ;;  %v3076_v7 = vpop.f32.mrf.mxu2 }
 0x5a7   :  { %v3057_v25 = vadd.f32 %v3056_v40, %v3037_v21  ;;  %v3151_v42 = vsel %vm3150_vm12, %v4024_v29, %v3147_v14  ;;  %v3077_v58 = vadd.f32 %v3076_v7, %v6284_v4  ;;  %v3167_v29 = vand.u32 2147483647, %v10739_v26 }
 0x5a8   :  { %v3161_v30 = vmul.f32 %v4028_v16, %v3160_v56  ;;  %v3156_v15 = vsel %vm3153_vm13, %v3155_v13, %v3151_v42 }
 0x5a9   :  { %v4030_v63 = vpop.eup %4029  ;;  %v3188_v18 = vmul.f32 %v3141_v33, %v3057_v25  ;;  %v3169_v25 = vand.u32 2147483648, %v10739_v26  ;;  %vm3168_vm2 = vcmp.eq.f32.partialorder %v3167_v29, 8.507059e+37  ;;  %v3207_v26 = vpop.permute.xlu0 %3206  ;;  %v3604_v29 = vld [vmem:[%s11081_s9 + $0x60] sm:$0xff] }
 0x5aa   :  { %v3174_v55 = vmul.f32 %v4030_v63, %v10742_v50  ;;  %v3162_v40 = vadd.f32 %v4028_v16, %v3161_v30  ;;  %vm3179_vm1 = vweird.f32 %v4030_v63  ;;  %vm3208_vm5 = vcmp.eq.s32.totalorder %v3207_v26, 1 }
 0x5ab   :  { %v3190_v43 = vadd.f32 %v3188_v18, %v214_v59  ;;  %v3170_v24 = vor.u32 1.1754944e-38, %v3169_v25  ;;  %vm3180_vm4 = vmor %vm3178_vm3, %vm3179_vm1 }
 0x5ac   :  { %v3175_v38 = vsub.f32 1.0, %v3174_v55  ;;  %v3096_v21 = vpop.f32.mrf.mxu3  ;;  %v3166_v56 = vsel %vm3165_vm0, %v4028_v16, %v3162_v40  ;;  %v3182_v55 = vand.u32 2147483647, %v10742_v50  ;;  %v4633_v40 = vld [vmem:[%s11072_s7 + $0x2f0] sm:$0xff] }
 0x5ad   :  { %4031 = vtanh.f32 %v3190_v43  ;;  %v3097_v1 = vadd.f32 %v3096_v21, %v3077_v58  ;;  %v3171_v18 = vsel %vm3168_vm2, %v3170_v24, %v3166_v56  ;;  %v3185_v58 = vor.u32 1.1754944e-38, %v3184_v22  ;;  %v12660_v56 = vld [vmem:[#allocation8_spill] sm:$0xff]  ;;  %v12661_v22 = vld [vmem:[#allocation43_spill] sm:$0xff] }
 0x5ae   :  { %v3176_v33 = vmul.f32 %v4030_v63, %v3175_v38  ;;  %vm3183_vm6 = vcmp.eq.f32.partialorder %v3182_v55, 8.507059e+37 }
 0x5af   :  { %v3189_v14 = vmul.f32 %v3156_v15, %v3097_v1 }
 0x5b0   :  { %v3177_v59 = vadd.f32 %v4030_v63, %v3176_v33 }
 0x5b1   :  { %v3191_v7 = vadd.f32 %v3189_v14, %v389_v46  ;;  %v4634_v46 = vld [vmem:[%s11072_s7 + $0x2c0] sm:$0xff]  ;;  %v4635_v14 = vld [vmem:[%s11072_s7 + $0x290] sm:$0xff] }
 0x5b2   :  { %v3181_v16 = vsel %vm3180_vm4, %v4030_v63, %v3177_v59  ;;  %v3215_v63 = vpop.permute.xlu1 %3214  ;;  %v3622_v59 = vld [vmem:[%s11081_s9 + $0xf0] sm:$0xff] }
 0x5b3   :  { %v4032_v62 = vpop.eup %4031  ;;  %4033 = vtanh.f32 %v3191_v7  ;;  %v3186_v1 = vsel %vm3183_vm6, %v3185_v58, %v3181_v16  ;;  %vm3216_vm7 = vcmp.eq.s32.totalorder %v3215_v63, 1  ;;  %v3623_v7 = vld [vmem:[%s11081_s9 + $0xf8] sm:$0xff]  ;;  %v3621_v16 = vld [vmem:[%s11081_s9 + $0xe8] sm:$0xff] }
 0x5b4   :  { %v3194_v30 = vsub.f32 %v10347_v17, %v4032_v62  ;;  %v3601_v58 = vld [vmem:[%s11081_s9 + $0x48] sm:$0xff] }
 0x5b6   :  { %v3196_v42 = vmul.f32 %v3194_v30, %v3171_v18  ;;  %v3603_v30 = vld [vmem:[%s11081_s9 + $0x58] sm:$0xff] }
 0x5b7   :  { %v12662_v18 = vld [vmem:[#allocation95_spill] sm:$0xff] }
 0x5b8   :  { %v3198_v13 = vadd.f32 %v4032_v62, %v3196_v42  ;;  %v158_v42 = vadd.f32 %v12662_v18, %v12661_v22 }
 0x5b9   :  { %v4034_v43 = vpop.eup %4033 }
 0x5ba   :  { %v3209_v38 = vsel %vm3208_vm5, %v3198_v13, 0.0  ;;  %v3195_v21 = vsub.f32 %v10376_v45, %v4034_v43  ;;  %v10762_v15 = vsel %vm3208_vm5, %v3198_v13, %v10347_v17  ;;  %v3602_v13 = vld [vmem:[%s11081_s9 + $0x50] sm:$0xff] }
 0x5bb   :  { %3845 = vst [vmem:[%s11078_s11 + $0x30] sm:$0xff] %v3209_v38  ;;  %3242 = vmatmul.f32.vlgmr.msra.gmra.mxu0 %v10762_v15  ;;  %3282 = vmatmul.f32.vlgmr.msra.gmra.mxu2 %v10762_v15  ;;  %v3620_v38 = vld [vmem:[%s11081_s9 + $0xe0] sm:$0xff] }
 0x5bc   :  { %v3197_v50 = vmul.f32 %v3195_v21, %v3186_v1  ;;  %3386 = vmatpush.msra.mxu0 %v4633_v40  ;;  %3426 = vmatpush.msra.mxu2 %v10358_v57  ;;  %v4636_v57 = vld [vmem:[%s11072_s7 + $0x260] sm:$0xff]  ;;  %v12663_v1 = vld [vmem:[#allocation10_spill] sm:$0xff] }
 0x5be   :  { %v3199_v17 = vadd.f32 %v4034_v43, %v3197_v50  ;;  %3387 = vmatpush.msra.mxu0 %v4634_v46  ;;  %3427 = vmatpush.msra.mxu2 %v10365_v54  ;;  %v4637_v54 = vld [vmem:[%s11072_s7 + $0x5f0] sm:$0xff]  ;;  %v3619_v46 = vld [vmem:[%s11081_s9 + $0xd8] sm:$0xff] }
 0x5c0   :  { %v3217_v25 = vsel %vm3216_vm7, %v3199_v17, 0.0  ;;  %3388 = vmatpush.msra.mxu0 %v4635_v14  ;;  %3428 = vmatpush.msra.mxu2 %v10372_v61  ;;  %v10782_v33 = vsel %vm3216_vm7, %v3199_v17, %v10376_v45  ;;  %v4638_v61 = vld [vmem:[%s11072_s7 + $0x230] sm:$0xff]  ;;  %v4639_v45 = vld [vmem:[%s11072_s7 + $0x5c0] sm:$0xff] }
 0x5c1   :  { %3846 = vst [vmem:[%s11079_s12 + $0x8] sm:$0xff] %v3217_v25  ;;  %3262 = vmatmul.f32.vlgmr.msra.gmra.mxu1 %v10782_v33  ;;  %3302 = vmatmul.f32.vlgmr.msra.gmra.mxu3 %v10782_v33  ;;  %v3600_v17 = vld [vmem:[%s11081_s9 + $0x40] sm:$0xff]  ;;  %v12664_v25 = vld [vmem:[#allocation26_spill] sm:$0xff] }
 0x5c2   :  { %3389 = vmatpush.msra.mxu0 %v4636_v57  ;;  %3406 = vmatpush.msra.mxu1 %v4637_v54  ;;  %v12665_v14 = vld [vmem:[#allocation40_spill] sm:$0xff] }
 0x5c3   :  { %3429 = vmatpush.msra.mxu2 %v10388_v19  ;;  %3446 = vmatpush.msra.mxu3 %v10394_v34  ;;  %v4640_v19 = vld [vmem:[%s11072_s7 + $0x200] sm:$0xff]  ;;  %v4641_v34 = vld [vmem:[%s11072_s7 + $0x590] sm:$0xff]  ;;  %v333_v57 = vadd.f32 %v12665_v14, %v12664_v25 }
 0x5c4   :  { %3322 = vmatmul.f32.vlgmr.msrb.gmra.mxu0 %v10762_v15  ;;  %3362 = vmatmul.f32.vlgmr.msrb.gmra.mxu2 %v10762_v15 }
 0x5c5   :  { %3390 = vmatpush.msra.mxu0 %v4638_v61  ;;  %3407 = vmatpush.msra.mxu1 %v4639_v45  ;;  %v3599_v61 = vld [vmem:[%s11081_s9 + $0x38] sm:$0xff]  ;;  %v3618_v45 = vld [vmem:[%s11081_s9 + $0xd0] sm:$0xff] }
 0x5c6   :  { %3430 = vmatpush.msra.mxu2 %v10404_v47  ;;  %3447 = vmatpush.msra.mxu3 %v10410_v49  ;;  %v4642_v47 = vld [vmem:[%s11072_s7 + $0x1d0] sm:$0xff]  ;;  %v4643_v49 = vld [vmem:[%s11072_s7 + $0x560] sm:$0xff] }
 0x5c7   :  { %3391 = vmatpush.msra.mxu0 %v4640_v19  ;;  %3408 = vmatpush.msra.mxu1 %v4641_v34  ;;  %v12666_v19 = vld [vmem:[#allocation46_spill] sm:$0xff] }
 0x5c8   :  { %3431 = vmatpush.msra.mxu2 %v10418_v48  ;;  %3448 = vmatpush.msra.mxu3 %v10424_v44  ;;  %v4644_v48 = vld [vmem:[%s11072_s7 + $0x1a0] sm:$0xff]  ;;  %v4645_v44 = vld [vmem:[%s11072_s7 + $0x530] sm:$0xff] }
 0x5c9   :  { %3392 = vmatpush.msra.mxu0 %v4642_v47  ;;  %3409 = vmatpush.msra.mxu1 %v4643_v49 }
 0x5ca   :  { %3432 = vmatpush.msra.mxu2 %v10432_v10  ;;  %3449 = vmatpush.msra.mxu3 %v10438_v31  ;;  %v4646_v10 = vld [vmem:[%s11072_s7 + $0x170] sm:$0xff]  ;;  %v4647_v31 = vld [vmem:[%s11072_s7 + $0x500] sm:$0xff] }
 0x5cb   :  { %3342 = vmatmul.f32.vlgmr.msrb.gmra.mxu1 %v10782_v33  ;;  %3382 = vmatmul.f32.vlgmr.msrb.gmra.mxu3 %v10782_v33 }
 0x5cc   :  { %3393 = vmatpush.msra.mxu0 %v4644_v48  ;;  %3410 = vmatpush.msra.mxu1 %v4645_v44  ;;  %v3598_v48 = vld [vmem:[%s11081_s9 + $0x30] sm:$0xff]  ;;  %v3617_v44 = vld [vmem:[%s11081_s9 + $0xc8] sm:$0xff] }
 0x5cd   :  { %3433 = vmatpush.msra.mxu2 %v10448_v11  ;;  %3450 = vmatpush.msra.mxu3 %v10454_v5  ;;  %v4648_v11 = vld [vmem:[%s11072_s7 + $0x140] sm:$0xff]  ;;  %v4649_v5 = vld [vmem:[%s11072_s7 + $0x4d0] sm:$0xff] }
 0x5ce   :  { %3394 = vmatpush.msra.mxu0 %v4646_v10  ;;  %3411 = vmatpush.msra.mxu1 %v4647_v31  ;;  %v12667_v10 = vld [vmem:[#allocation49_spill] sm:$0xff]  ;;  %v12668_v31 = vld [vmem:[#allocation96_spill] sm:$0xff] }
 0x5cf   :  { %3434 = vmatpush.msra.mxu2 %v10462_v27  ;;  %3451 = vmatpush.msra.mxu3 %v10468_v52  ;;  %v4650_v27 = vld [vmem:[%s11072_s7 + $0x110] sm:$0xff]  ;;  %v4651_v52 = vld [vmem:[%s11072_s7 + $0x4a0] sm:$0xff] }
 0x5d0   :  { %3395 = vmatpush.msra.mxu0 %v4648_v11  ;;  %3412 = vmatpush.msra.mxu1 %v4649_v5  ;;  %v187_v11 = vadd.f32 %v12668_v31, %v12667_v10 }
 0x5d1   :  { %3435 = vmatpush.msra.mxu2 %v10476_v53  ;;  %3452 = vmatpush.msra.mxu3 %v10482_v8  ;;  %v4652_v53 = vld [vmem:[%s11072_s7 + $0xe0] sm:$0xff]  ;;  %v4653_v8 = vld [vmem:[%s11072_s7 + $0x470] sm:$0xff] }
 0x5d2   :  { %3396 = vmatpush.msra.mxu0 %v4650_v27  ;;  %3413 = vmatpush.msra.mxu1 %v4651_v52 }
 0x5d3   :  { %3436 = vmatpush.msra.mxu2 %v10490_v0  ;;  %3453 = vmatpush.msra.mxu3 %v10496_v28  ;;  %v4654_v0 = vld [vmem:[%s11072_s7 + $0xb0] sm:$0xff]  ;;  %v4655_v28 = vld [vmem:[%s11072_s7 + $0x440] sm:$0xff] }
 0x5d4   :  { %3397 = vmatpush.msra.mxu0 %v4652_v53  ;;  %3414 = vmatpush.msra.mxu1 %v4653_v8  ;;  %v3597_v53 = vld [vmem:[%s11081_s9 + $0x28] sm:$0xff]  ;;  %v3616_v8 = vld [vmem:[%s11081_s9 + $0xc0] sm:$0xff] }
 0x5d5   :  { %3437 = vmatpush.msra.mxu2 %v10504_v20  ;;  %3454 = vmatpush.msra.mxu3 %v10510_v9  ;;  %v4656_v20 = vld [vmem:[%s11072_s7 + $0x80] sm:$0xff]  ;;  %v4657_v9 = vld [vmem:[%s11072_s7 + $0x410] sm:$0xff] }
 0x5d6   :  { %3398 = vmatpush.msra.mxu0 %v4654_v0  ;;  %3415 = vmatpush.msra.mxu1 %v4655_v28 }
 0x5d7   :  { %3438 = vmatpush.msra.mxu2 %v10518_v36  ;;  %3455 = vmatpush.msra.mxu3 %v10524_v37  ;;  %v4658_v36 = vld [vmem:[%s11072_s7 + $0x50] sm:$0xff]  ;;  %v4659_v37 = vld [vmem:[%s11072_s7 + $0x3e0] sm:$0xff] }
 0x5d8   :  { %3399 = vmatpush.msra.mxu0 %v4656_v20  ;;  %3416 = vmatpush.msra.mxu1 %v4657_v9  ;;  %v3596_v9 = vld [vmem:[%s11081_s9 + $0x20] sm:$0xff] }
 0x5d9   :  { %3439 = vmatpush.msra.mxu2 %v10532_v12  ;;  %3456 = vmatpush.msra.mxu3 %v10538_v51  ;;  %v4660_v12 = vld [vmem:[%s11072_s7 + $0x3b0] sm:$0xff]  ;;  %v4661_v51 = vld [vmem:[%s11072_s7 + $0x380] sm:$0xff] }
 0x5da   :  { %3400 = vmatpush.msra.mxu0 %v4658_v36  ;;  %3417 = vmatpush.msra.mxu1 %v4659_v37  ;;  %v3615_v36 = vld [vmem:[%s11081_s9 + $0xb8] sm:$0xff] }
 0x5db   :  { %3440 = vmatpush.msra.mxu2 %v10546_v32  ;;  %3457 = vmatpush.msra.mxu3 %v10552_v41  ;;  %v4662_v32 = vld [vmem:[%s11072_s7 + $0x350] sm:$0xff]  ;;  %v4663_v41 = vld [vmem:[%s11072_s7 + $0x320] sm:$0xff] }
 0x5dc   :  { %3401 = vmatpush.msra.mxu0 %v10558_v6  ;;  %3418 = vmatpush.msra.mxu1 %v4660_v12  ;;  %v12659_v6 = vld [vmem:[#allocation156_spill] sm:$0xff]  ;;  %v12669_v12 = vld [vmem:[#allocation30_spill] sm:$0xff] }
 0x5dd   :  { %3441 = vmatpush.msra.mxu2 %v10565_v3  ;;  %3458 = vmatpush.msra.mxu3 %v10571_v39  ;;  %v3607_v3 = vld [vmem:[%s11081_s9 + $0x78] sm:$0xff]  ;;  %v3606_v39 = vld [vmem:[%s11081_s9 + $0x70] sm:$0xff] }
 0x5de   :  { %3402 = vmatmul.f32.vlgmr.msra.gmra.mxu0 %v10762_v15  ;;  %3442 = vmatmul.f32.vlgmr.msra.gmra.mxu2 %v10762_v15 }
 0x5df   :  { %3419 = vmatpush.msra.mxu1 %v4661_v51  ;;  %3459 = vmatpush.msra.mxu3 %v10580_v60 }
 0x5e0   :  { %3628 = vmatpush.msrb.mxu0 %v3607_v3  ;;  %v12670_v3 = vld [vmem:[#allocation48_spill] sm:$0xff] }
 0x5e1   :  { %3420 = vmatpush.msra.mxu1 %v4662_v32  ;;  %3460 = vmatpush.msra.mxu3 %v10589_v35  ;;  %v3605_v35 = vld [vmem:[%s11081_s9 + $0x68] sm:$0xff] }
 0x5e2   :  { %3629 = vmatpush.msrb.mxu0 %v3606_v39  ;;  %v12671_v39 = vld [vmem:[#allocation12_spill] sm:$0xff] }
 0x5e3   :  { %3421 = vmatpush.msra.mxu1 %v4663_v41  ;;  %3461 = vmatpush.msra.mxu3 %v12659_v6  ;;  %v3595_v41 = vld [vmem:[%s11081_s9 + $0x18] sm:$0xff]  ;;  %v3614_v6 = vld [vmem:[%s11081_s9 + $0xb0] sm:$0xff] }
 0x5e4   :  { %3422 = vmatmul.f32.vlgmr.msra.gmra.mxu1 %v10782_v33  ;;  %3462 = vmatmul.f32.vlgmr.msra.gmra.mxu3 %v10782_v33 }
 0x5e5   :  { %3630 = vmatpush.msrb.mxu0 %v3605_v35  ;;  %3648 = vmatpush.msrb.mxu1 %v3623_v7  ;;  %v3613_v7 = vld [vmem:[%s11081_s9 + $0xa8] sm:$0xff] }
 0x5e7   :  { %3631 = vmatpush.msrb.mxu0 %v3604_v29  ;;  %3649 = vmatpush.msrb.mxu1 %v3622_v59  ;;  %v3594_v29 = vld [vmem:[%s11081_s9 + $0x10] sm:$0xff]  ;;  %v3612_v59 = vld [vmem:[%s11081_s9 + $0xa0] sm:$0xff] }
 0x5e9   :  { %3632 = vmatpush.msrb.mxu0 %v3603_v30  ;;  %3650 = vmatpush.msrb.mxu1 %v3621_v16  ;;  %v3593_v30 = vld [vmem:[%s11081_s9 + $0x8] sm:$0xff] }
 0x5eb   :  { %3633 = vmatpush.msrb.mxu0 %v3602_v13  ;;  %3651 = vmatpush.msrb.mxu1 %v3620_v38 }
 0x5ed   :  { %3634 = vmatpush.msrb.mxu0 %v3601_v58  ;;  %3652 = vmatpush.msrb.mxu1 %v3619_v46  ;;  %v3609_v58 = vld [vmem:[%s11081_s9 + $0x88] sm:$0xff] }
 0x5ef   :  { %3635 = vmatpush.msrb.mxu0 %v3600_v17  ;;  %3653 = vmatpush.msrb.mxu1 %v3618_v45 }
 0x5f1   :  { %3636 = vmatpush.msrb.mxu0 %v3599_v61  ;;  %3654 = vmatpush.msrb.mxu1 %v3617_v44 }
 0x5f3   :  { %3637 = vmatpush.msrb.mxu0 %v3598_v48  ;;  %3655 = vmatpush.msrb.mxu1 %v3616_v8 }
 0x5f5   :  { %3638 = vmatpush.msrb.mxu0 %v3597_v53  ;;  %3656 = vmatpush.msrb.mxu1 %v3615_v36 }
 0x5f7   :  { %3639 = vmatpush.msrb.mxu0 %v3596_v9  ;;  %3657 = vmatpush.msrb.mxu1 %v3614_v6 }
 0x5f9   :  { %3640 = vmatpush.msrb.mxu0 %v3595_v41  ;;  %3658 = vmatpush.msrb.mxu1 %v3613_v7 }
 0x5fb   :  { %3641 = vmatpush.msrb.mxu0 %v3594_v29  ;;  %3659 = vmatpush.msrb.mxu1 %v3612_v59 }
 0x5fd   :  { %3642 = vmatpush.msrb.mxu0 %v3593_v30 }
 0x638   :  { %v3243_v60 = vpop.f32.mrf.mxu0 }
 0x639   :  { %v3244_v62 = vadd.f32 %v3243_v60, %v12660_v56  ;;  %v362_v60 = vadd.f32 %v12671_v39, %v12670_v3 }
 0x63e   :  { %v3263_v24 = vpop.f32.mrf.mxu1  ;;  %v3283_v26 = vpop.f32.mrf.mxu2 }
 0x63f   :  { %v3264_v55 = vadd.f32 %v3263_v24, %v3244_v62  ;;  %v3284_v63 = vadd.f32 %v3283_v26, %v12663_v1 }
 0x641   :  { %v3475_v43 = vadd.f32 %v3264_v55, %v158_v42  ;;  %v3323_v50 = vpop.f32.mrf.mxu0  ;;  %v3592_v42 = vld [vmem:[%s11081_s9] sm:$0xff]  ;;  %v3611_v55 = vld [vmem:[%s11081_s9 + $0x98] sm:$0xff] }
 0x642   :  { %v3324_v34 = vadd.f32 %v3323_v50, %v12666_v19  ;;  %3643 = vmatpush.msrb.mxu0 %v3592_v42  ;;  %3660 = vmatpush.msrb.mxu1 %v3611_v55  ;;  %v3574_v55 = vpop.permute.xlu2 %3573 }
 0x643   :  { %v3847_v21 = vmul.f32 -1.442695, %v3475_v43  ;;  %v3610_v43 = vld [vmem:[%s11081_s9 + $0x90] sm:$0xff]  ;;  %vm3575_vm7 = vcmp.eq.s32.totalorder %v3574_v55, 1 }
 0x644   :  { %v3303_v40 = vpop.f32.mrf.mxu3  ;;  %3661 = vmatpush.msrb.mxu1 %v3610_v43 }
 0x645   :  { %4035 = vpow2.f32 %v3847_v21  ;;  %v3304_v54 = vadd.f32 %v3303_v40, %v3284_v63  ;;  %v3608_v21 = vld [vmem:[%s11081_s9 + $0x80] sm:$0xff] }
 0x646   :  { %3662 = vmatpush.msrb.mxu1 %v3609_v58 }
 0x647   :  { %v3476_v47 = vadd.f32 %v3304_v54, %v333_v57  ;;  %v3363_v52 = vpop.f32.mrf.mxu2 }
 0x648   :  { %v3343_v49 = vpop.f32.mrf.mxu1  ;;  %v3364_v51 = vadd.f32 %v3363_v52, %v12669_v12  ;;  %3663 = vmatpush.msrb.mxu1 %v3608_v21 }
 0x649   :  { %v3848_v5 = vmul.f32 -1.442695, %v3476_v47  ;;  %v3344_v27 = vadd.f32 %v3343_v49, %v3324_v34  ;;  %v12672_v49 = vld [vmem:[#allocation14_spill] sm:$0xff] }
 0x64b   :  { %v4036_v0 = vpop.eup %4035  ;;  %4037 = vpow2.f32 %v3848_v5  ;;  %v3477_v28 = vadd.f32 %v3344_v27, %v187_v11 }
 0x64c   :  { %v10977_v20 = vadd.f32 1.0, %v4036_v0  ;;  %v12673_v0 = vld [vmem:[#allocation6_spill] sm:$0xff] }
 0x64d   :  { %v3849_v37 = vmul.f32 -1.442695, %v3477_v28  ;;  %v216_v28 = vadd.f32 %v12673_v0, %v6270_v2 }
 0x64e   :  { %4039 = vrcp.f32 %v10977_v20  ;;  %v3383_v32 = vpop.f32.mrf.mxu3  ;;  %v3506_v17 = vand.u32 2147483648, %v10977_v20  ;;  %vm3500_vm9 = vweird.f32 %v10977_v20  ;;  %v3504_v14 = vand.u32 2147483647, %v10977_v20 }
 0x64f   :  { %4041 = vpow2.f32 %v3849_v37  ;;  %v3384_v35 = vadd.f32 %v3383_v32, %v3364_v51 }
 0x650   :  { %v3507_v34 = vor.u32 1.1754944e-38, %v3506_v17  ;;  %vm3505_vm11 = vcmp.eq.f32.partialorder %v3504_v14, 8.507059e+37 }
 0x651   :  { %v4038_v56 = vpop.eup %4037  ;;  %v3478_v62 = vadd.f32 %v3384_v35, %v362_v60  ;;  %v12674_v35 = vld [vmem:[#allocation47_spill] sm:$0xff] }
 0x652   :  { %v11001_v24 = vadd.f32 1.0, %v4038_v56  ;;  %v391_v2 = vadd.f32 %v12674_v35, %v6299_v23 }
 0x653   :  { %v3850_v22 = vmul.f32 -1.442695, %v3478_v62 }
 0x654   :  { %v4040_v18 = vpop.eup %4039  ;;  %4043 = vrcp.f32 %v11001_v24  ;;  %v3521_v5 = vand.u32 2147483648, %v11001_v24  ;;  %vm3515_vm13 = vweird.f32 %v11001_v24  ;;  %v3519_v52 = vand.u32 2147483647, %v11001_v24 }
 0x655   :  { %v4042_v26 = vpop.eup %4041  ;;  %4045 = vpow2.f32 %v3850_v22  ;;  %v3496_v13 = vmul.f32 %v4040_v18, %v10977_v20  ;;  %vm3501_vm8 = vweird.f32 %v4040_v18 }
 0x656   :  { %v11017_v16 = vadd.f32 1.0, %v4042_v26  ;;  %vm3502_vm10 = vmor %vm3500_vm9, %vm3501_vm8  ;;  %v3522_v12 = vor.u32 1.1754944e-38, %v3521_v5  ;;  %vm3520_vm15 = vcmp.eq.f32.partialorder %v3519_v52, 8.507059e+37 }
 0x657   :  { %v3497_v38 = vsub.f32 1.0, %v3496_v13 }
 0x658   :  { %4047 = vrcp.f32 %v11017_v16  ;;  %v3536_v29 = vand.u32 2147483648, %v11017_v16  ;;  %vm3530_vm1 = vweird.f32 %v11017_v16  ;;  %v3534_v62 = vand.u32 2147483647, %v11017_v16 }
 0x659   :  { %v3498_v1 = vmul.f32 %v4040_v18, %v3497_v38 }
 0x65a   :  { %v4044_v63 = vpop.eup %4043  ;;  %v3537_v59 = vor.u32 1.1754944e-38, %v3536_v29  ;;  %vm3535_vm3 = vcmp.eq.f32.partialorder %v3534_v62, 8.507059e+37 }
 0x65b   :  { %v4046_v50 = vpop.eup %4045  ;;  %v3499_v40 = vadd.f32 %v4040_v18, %v3498_v1  ;;  %v3511_v46 = vmul.f32 %v4044_v63, %v11001_v24  ;;  %v3403_v57 = vpop.f32.mrf.mxu0  ;;  %vm3516_vm12 = vweird.f32 %v4044_v63 }
 0x65c   :  { %v11031_v25 = vadd.f32 1.0, %v4046_v50  ;;  %v3404_v48 = vadd.f32 %v3403_v57, %v12672_v49  ;;  %vm3517_vm14 = vmor %vm3515_vm13, %vm3516_vm12 }
 0x65d   :  { %v3512_v54 = vsub.f32 1.0, %v3511_v46  ;;  %v3503_v45 = vsel %vm3502_vm10, %v4040_v18, %v3499_v40  ;;  %v3582_v40 = vpop.permute.xlu0 %3581 }
 0x65e   :  { %v4048_v61 = vpop.eup %4047  ;;  %4049 = vrcp.f32 %v11031_v25  ;;  %v3508_v31 = vsel %vm3505_vm11, %v3507_v34, %v3503_v45  ;;  %v3551_v23 = vand.u32 2147483648, %v11031_v25  ;;  %vm3545_vm5 = vweird.f32 %v11031_v25 }
 0x65f   :  { %v3526_v19 = vmul.f32 %v4048_v61, %v11017_v16  ;;  %v3513_v47 = vmul.f32 %v4044_v63, %v3512_v54  ;;  %vm3531_vm0 = vweird.f32 %v4048_v61  ;;  %v3549_v13 = vand.u32 2147483647, %v11031_v25 }
 0x660   :  { %vm3532_vm2 = vmor %vm3530_vm1, %vm3531_vm0  ;;  %v3552_v38 = vor.u32 1.1754944e-38, %v3551_v23  ;;  %vm3583_vm9 = vcmp.eq.s32.totalorder %v3582_v40, 1 }
 0x661   :  { %v3527_v44 = vsub.f32 1.0, %v3526_v19  ;;  %v3423_v10 = vpop.f32.mrf.mxu1  ;;  %v3514_v11 = vadd.f32 %v4044_v63, %v3513_v47  ;;  %v3443_v53 = vpop.f32.mrf.mxu2  ;;  %vm3550_vm8 = vcmp.eq.f32.partialorder %v3549_v13, 8.507059e+37 }
 0x662   :  { %v3424_v27 = vadd.f32 %v3423_v10, %v3404_v48  ;;  %v3444_v32 = vadd.f32 %v3443_v53, %v6284_v4 }
 0x663   :  { %v3518_v9 = vsel %vm3517_vm14, %v4044_v63, %v3514_v11  ;;  %v3528_v36 = vmul.f32 %v4048_v61, %v3527_v44 }
 0x664   :  { %v4050_v8 = vpop.eup %4049  ;;  %v3555_v20 = vmul.f32 %v3508_v31, %v3424_v27  ;;  %v3523_v3 = vsel %vm3520_vm15, %v3522_v12, %v3518_v9 }
 0x665   :  { %v3541_v37 = vmul.f32 %v4050_v8, %v11031_v25  ;;  %v3529_v60 = vadd.f32 %v4048_v61, %v3528_v36  ;;  %vm3546_vm4 = vweird.f32 %v4050_v8 }
 0x666   :  { %v3557_v51 = vadd.f32 %v3555_v20, %v216_v28  ;;  %vm3547_vm6 = vmor %vm3545_vm5, %vm3546_vm4 }
 0x667   :  { %v3542_v41 = vsub.f32 1.0, %v3541_v37  ;;  %v3463_v6 = vpop.f32.mrf.mxu3  ;;  %v3533_v24 = vsel %vm3532_vm2, %v4048_v61, %v3529_v60 }
 0x668   :  { %4051 = vtanh.f32 %v3557_v51  ;;  %v3464_v39 = vadd.f32 %v3463_v6, %v3444_v32  ;;  %v3538_v42 = vsel %vm3535_vm3, %v3537_v59, %v3533_v24 }
 0x669   :  { %v3543_v56 = vmul.f32 %v4050_v8, %v3542_v41 }
 0x66a   :  { %v3556_v7 = vmul.f32 %v3523_v3, %v3464_v39 }
 0x66b   :  { %v3544_v18 = vadd.f32 %v4050_v8, %v3543_v56 }
 0x66c   :  { %v3558_v4 = vadd.f32 %v3556_v7, %v391_v2 }
 0x66d   :  { %v3548_v43 = vsel %vm3547_vm6, %v4050_v8, %v3544_v18 }
 0x66e   :  { %v4052_v30 = vpop.eup %4051  ;;  %4053 = vtanh.f32 %v3558_v4  ;;  %v3553_v50 = vsel %vm3550_vm8, %v3552_v38, %v3548_v43 }
 0x66f   :  { %v3561_v22 = vsub.f32 %v10762_v15, %v4052_v30 }
 0x671   :  { %v3563_v26 = vmul.f32 %v3561_v22, %v3538_v42 }
 0x673   :  { %v3565_v16 = vadd.f32 %v4052_v30, %v3563_v26 }
 0x674   :  { %v4054_v58 = vpop.eup %4053 }
 0x675   :  { %v3562_v21 = vsub.f32 %v10782_v33, %v4054_v58  ;;  %v3576_v1 = vsel %vm3575_vm7, %v3565_v16, 0.0  ;;  %v3586_v63 = vsel %vm3575_vm7, %v3565_v16, %v10762_v15  ;;  %v3894_v15 = vld [vmem:[%s11080_s10] ss:$0 sm:$0xff] }
 0x676   :  { %3852 = vst [vmem:[%s11078_s11 + $0x38] sm:$0xff] %v3576_v1  ;;  %3644 = vmatmul.f32.vlgmr.msrb.gmra.mxu0 %v3586_v63 }
 0x677   :  { %v3564_v17 = vmul.f32 %v3562_v21, %v3553_v50 }
 0x679   :  { %v3566_v46 = vadd.f32 %v4054_v58, %v3564_v17 }
 0x67b   :  { %v3584_v25 = vsel %vm3583_vm9, %v3566_v46, 0.0  ;;  %v3588_v14 = vsel %vm3583_vm9, %v3566_v46, %v10782_v33 }
 0x67c   :  { %3585 = vst [vmem:[%s11079_s12] sm:$0xff] %v3584_v25  ;;  %3664 = vmatmul.f32.vlgmr.msrb.gmra.mxu1 %v3588_v14 }
 0x6f3   :  { %v3645_v57 = vpop.f32.mrf.mxu0 }
 0x6f4   :  { %v3646_v54 = vadd.f32 %v3894_v15, %v3645_v57 }
 0x6f9   :  { %v3665_v61 = vpop.f32.mrf.mxu1 }
 0x6fa   :  { %v3666_v45 = vadd.f32 %v3665_v61, %v3646_v54 }
 0x6fc   :  { %4055 = vtanh.f32 %v3666_v45 }
 0x702   :  { %v4056_v19 = vpop.eup %4055 }
 0x703   :  { %3669 = vst [vmem:[%s11082_s13] sm:$0xff] %v4056_v19 }

</bundles_post_ra>
